<compile_context>
chip_gen: v7x
topology: tpu7x:2x2x1
jax: 0.10.0
libtpu: 0.0.40
codegen_flags: <defaults>
</compile_context>

<pallas_src>
import jax
import jax.numpy as jnp
from jax.experimental import pallas as pl
from jax.experimental.pallas import tpu as pltpu

IMG_FEAT = 512
TXT_FEAT = 768
IN_FEAT = IMG_FEAT + TXT_FEAT   # 1280
HIDDEN = 1024
OUT = 1


def classifier_kernel(img_ref, txt_ref, w1_ref, w234_ref, w5_ref, o_ref):
    # img_ref: (TB, 512) bf16, txt_ref: (TB, 768) bf16
    # w1_ref: (1280, 1024) bf16, w234_ref: (3, 1024, 1024) bf16, w5_ref: (1, 1024) bf16
    img = img_ref[...]
    txt = txt_ref[...]

    # Layer 1: concat-free split matmul against the two halves of w1; partials
    # accumulated in f32 on the MXU.
    w1a = w1_ref[:IMG_FEAT, :]          # (512, 1024)
    w1b = w1_ref[IMG_FEAT:, :]          # (768, 1024)
    h = jnp.dot(img, w1a, preferred_element_type=jnp.float32)
    h = h + jnp.dot(txt, w1b, preferred_element_type=jnp.float32)
    h = jnp.maximum(h, 0.0).astype(jnp.bfloat16)

    # Hidden layers 2..4: bf16 inputs, f32 MXU accumulate, ReLU on the VPU.
    h = jnp.maximum(jnp.dot(h, w234_ref[0], preferred_element_type=jnp.float32),
                    0.0).astype(jnp.bfloat16)
    h = jnp.maximum(jnp.dot(h, w234_ref[1], preferred_element_type=jnp.float32),
                    0.0).astype(jnp.bfloat16)
    h = jnp.maximum(jnp.dot(h, w234_ref[2], preferred_element_type=jnp.float32),
                    0.0)                                         # (TB, 1024) f32

    # Final 1024 -> 1: an N=1 matmul wastes the MXU and lane-pads the weight, so
    # multiply against the (1, 1024) weight row on the VPU and reduce over lanes.
    logits = jnp.sum(h * w5_ref[...].astype(jnp.float32), axis=-1, keepdims=True)
    # Sigmoid: exp on the EUP, approximate reciprocal also on the EUP slot.
    o_ref[...] = pl.reciprocal(1.0 + jnp.exp(-logits), approx=True)


def classifier_forward(image_feats, text_feats, weights, *, batch_tile=256):
    """image_feats: (B, 512), text_feats: (B, 768).

    weights (all bf16, stored [in, out]):
      w1   (1280, 1024)      -- layer-1 weight, rows [0:512]=image, [512:1280]=text
      w234 (3, 1024, 1024)   -- hidden layers 2..4 stacked
      w5   (1, 1024)         -- final 1024->1 weight as a row
    """
    assert batch_tile % 8 == 0, "batch_tile must be a multiple of 8 (sublane)"
    w1, w234, w5 = weights

    # bf16 feature inputs: halves input DMA and skips the in-kernel cast.
    image_feats = image_feats.astype(jnp.bfloat16)
    text_feats = text_feats.astype(jnp.bfloat16)

    B = image_feats.shape[0]
    tb = min(batch_tile, B)
    n_tiles = pl.cdiv(B, tb)
    b_pad = n_tiles * tb
    if b_pad != B:
        pad = b_pad - B
        image_feats = jnp.pad(image_feats, ((0, pad), (0, 0)))
        text_feats = jnp.pad(text_feats, ((0, pad), (0, 0)))

    out = pl.pallas_call(
        classifier_kernel,
        out_shape=jax.ShapeDtypeStruct((b_pad, OUT), jnp.float32),
        grid_spec=pltpu.PrefetchScalarGridSpec(
            num_scalar_prefetch=0,
            grid=(n_tiles,),
            in_specs=[
                # Batch-tiled activations.
                pl.BlockSpec((tb, IMG_FEAT), lambda i: (i, 0)),
                pl.BlockSpec((tb, TXT_FEAT), lambda i: (i, 0)),
                # Weights: constant block index -> DMA'd once per core, then kept
                # VMEM-resident across all batch tiles (Pallas skips re-fetch).
                pl.BlockSpec((IN_FEAT, HIDDEN), lambda i: (0, 0)),
                pl.BlockSpec((3, HIDDEN, HIDDEN), lambda i: (0, 0, 0)),
                pl.BlockSpec((1, HIDDEN), lambda i: (0, 0)),
            ],
            out_specs=pl.BlockSpec((tb, OUT), lambda i: (i, 0)),
        ),
        compiler_params=pltpu.CompilerParams(
            # Batch tiles are independent -> megacore sharding on v7x.
            dimension_semantics=("parallel",),
            # ~17 MiB double-buffered weights + batch tiles; safe on v5e/v6e/v7x.
            vmem_limit_bytes=28 * 1024 * 1024,
        ),
    )(image_feats, text_feats, w1, w234, w5)
    return out[:B]


def init_weights(key):
    """nn.Linear-style init (uniform +/-1/sqrt(fan_in)), stored [in, out], bf16 once."""
    keys = jax.random.split(key, 5)
    b1 = 1.0 / jnp.sqrt(jnp.float32(IN_FEAT))
    bh = 1.0 / jnp.sqrt(jnp.float32(HIDDEN))
    w1 = jax.random.uniform(keys[0], (IN_FEAT, HIDDEN), jnp.float32, -b1, b1)
    w2 = jax.random.uniform(keys[1], (HIDDEN, HIDDEN), jnp.float32, -bh, bh)
    w3 = jax.random.uniform(keys[2], (HIDDEN, HIDDEN), jnp.float32, -bh, bh)
    w4 = jax.random.uniform(keys[3], (HIDDEN, HIDDEN), jnp.float32, -bh, bh)
    w234 = jnp.stack([w2, w3, w4], axis=0)
    w5 = jax.random.uniform(keys[4], (HIDDEN, OUT), jnp.float32, -bh, bh).reshape(1, HIDDEN)
    return tuple(w.astype(jnp.bfloat16) for w in (w1, w234, w5))


if __name__ == "__main__":
    key = jax.random.PRNGKey(0)
    k_img, k_txt, k_w = jax.random.split(key, 3)

    # Small demo shapes; batch_tile=8 so the (16-row) batch exercises two grid
    # tiles and the weight-resident-across-tiles path. Production default is
    # batch_tile=256 (v6e/v7x) / 128 (v5e).
    B = 16
    image_feats = jax.random.normal(k_img, (B, IMG_FEAT), jnp.float32)
    text_feats = jax.random.normal(k_txt, (B, TXT_FEAT), jnp.float32)

    weights = init_weights(k_w)

    out = jax.block_until_ready(
        classifier_forward(image_feats, text_feats, weights, batch_tile=8))

    # Reference in plain JAX using the same bf16 weights / bf16 matmul inputs.
    w1, w234, w5 = weights
    img_b = image_feats.astype(jnp.bfloat16)
    txt_b = text_feats.astype(jnp.bfloat16)
    h = (jnp.dot(img_b, w1[:IMG_FEAT], preferred_element_type=jnp.float32)
         + jnp.dot(txt_b, w1[IMG_FEAT:], preferred_element_type=jnp.float32))
    h = jnp.maximum(h, 0.0)
    for k in range(3):
        h = jnp.maximum(jnp.dot(h.astype(jnp.bfloat16), w234[k],
                                preferred_element_type=jnp.float32), 0.0)
    logits = jnp.sum(h * w5.astype(jnp.float32), axis=-1, keepdims=True)
    ref = jax.nn.sigmoid(logits)

    assert out.shape == (B, OUT)
    assert jnp.allclose(out, ref, atol=1e-2, rtol=1e-2), (
        f"max abs diff {float(jnp.max(jnp.abs(out - ref)))}")

    print("KERNEL_OK")
</pallas_src>

<mosaic_0001>
module attributes {stable_mosaic.version = 11 : i64} {
  func.func @classifier_kernel(%arg0: i32, %arg1: memref<8x512xbf16, #tpu.memory_space<vmem>>, %arg2: memref<8x768xbf16, #tpu.memory_space<vmem>>, %arg3: memref<1280x1024xbf16, #tpu.memory_space<vmem>>, %arg4: memref<3x1024x1024xbf16, #tpu.memory_space<vmem>>, %arg5: memref<1x1024xbf16, #tpu.memory_space<vmem>>, %arg6: memref<8x1xf32, #tpu.memory_space<vmem>>) attributes {dimension_semantics = [#tpu.dimension_semantics<parallel>], iteration_bounds = array<i64: 2>, scalar_prefetch = 0 : i64, scratch_operands = 0 : i64, tpu.core_type = #tpu.core_type<tc>, window_params = [{transform_indices = @transform_0, window_bounds = array<i64: 8, 512>}, {transform_indices = @transform_1, window_bounds = array<i64: 8, 768>}, {pipeline_mode = #tpu.pipeline_mode<synchronous>, transform_indices = @transform_2, window_bounds = array<i64: 1280, 1024>}, {pipeline_mode = #tpu.pipeline_mode<synchronous>, transform_indices = @transform_3, window_bounds = array<i64: 3, 1024, 1024>}, {pipeline_mode = #tpu.pipeline_mode<synchronous>, transform_indices = @transform_4, window_bounds = array<i64: 1, 1024>}, {transform_indices = @transform_5, window_bounds = array<i64: 8, 1>}]} {
    %c0 = arith.constant 0 : index
    %c0_0 = arith.constant 0 : index
    %0 = vector.load %arg1[%c0, %c0_0] : memref<8x512xbf16, #tpu.memory_space<vmem>>, vector<8x512xbf16>
    %c0_1 = arith.constant 0 : index
    %c0_2 = arith.constant 0 : index
    %1 = vector.load %arg2[%c0_1, %c0_2] : memref<8x768xbf16, #tpu.memory_space<vmem>>, vector<8x768xbf16>
    %c0_3 = arith.constant 0 : index
    %c0_4 = arith.constant 0 : index
    %2 = vector.load %arg3[%c0_3, %c0_4] : memref<1280x1024xbf16, #tpu.memory_space<vmem>>, vector<512x1024xbf16>
    %c512 = arith.constant 512 : index
    %c0_5 = arith.constant 0 : index
    %3 = vector.load %arg3[%c512, %c0_5] : memref<1280x1024xbf16, #tpu.memory_space<vmem>>, vector<768x1024xbf16>
    %cst = arith.constant dense<0.000000e+00> : vector<8x1024xf32>
    %4 = tpu.matmul %0, %2, %cst {dimension_numbers = #tpu.dot_dimension_numbers<[1], [0], [0], [1], [0, 0, 1, 1], [], []>} : vector<8x512xbf16>, vector<512x1024xbf16>, vector<8x1024xf32> -> vector<8x1024xf32>
    %cst_6 = arith.constant dense<0.000000e+00> : vector<8x1024xf32>
    %5 = tpu.matmul %1, %3, %cst_6 {dimension_numbers = #tpu.dot_dimension_numbers<[1], [0], [0], [1], [0, 0, 1, 1], [], []>} : vector<8x768xbf16>, vector<768x1024xbf16>, vector<8x1024xf32> -> vector<8x1024xf32>
    %6 = arith.addf %4, %5 : vector<8x1024xf32>
    %cst_7 = arith.constant 0.000000e+00 : f32
    %7 = vector.broadcast %cst_7 : f32 to vector<8x1024xf32>
    %8 = arith.maximumf %6, %7 : vector<8x1024xf32>
    %9 = arith.truncf %8 : vector<8x1024xf32> to vector<8x1024xbf16>
    %c0_8 = arith.constant 0 : index
    %c0_9 = arith.constant 0 : index
    %c0_10 = arith.constant 0 : index
    %10 = vector.load %arg4[%c0_8, %c0_9, %c0_10] : memref<3x1024x1024xbf16, #tpu.memory_space<vmem>>, vector<1x1024x1024xbf16>
    %11 = vector.shape_cast %10 : vector<1x1024x1024xbf16> to vector<1024x1024xbf16>
    %cst_11 = arith.constant dense<0.000000e+00> : vector<8x1024xf32>
    %12 = tpu.matmul %9, %11, %cst_11 {dimension_numbers = #tpu.dot_dimension_numbers<[1], [0], [0], [1], [0, 0, 1, 1], [], []>} : vector<8x1024xbf16>, vector<1024x1024xbf16>, vector<8x1024xf32> -> vector<8x1024xf32>
    %cst_12 = arith.constant 0.000000e+00 : f32
    %13 = vector.broadcast %cst_12 : f32 to vector<8x1024xf32>
    %14 = arith.maximumf %12, %13 : vector<8x1024xf32>
    %15 = arith.truncf %14 : vector<8x1024xf32> to vector<8x1024xbf16>
    %c1 = arith.constant 1 : index
    %c0_13 = arith.constant 0 : index
    %c0_14 = arith.constant 0 : index
    %16 = vector.load %arg4[%c1, %c0_13, %c0_14] : memref<3x1024x1024xbf16, #tpu.memory_space<vmem>>, vector<1x1024x1024xbf16>
    %17 = vector.shape_cast %16 : vector<1x1024x1024xbf16> to vector<1024x1024xbf16>
    %cst_15 = arith.constant dense<0.000000e+00> : vector<8x1024xf32>
    %18 = tpu.matmul %15, %17, %cst_15 {dimension_numbers = #tpu.dot_dimension_numbers<[1], [0], [0], [1], [0, 0, 1, 1], [], []>} : vector<8x1024xbf16>, vector<1024x1024xbf16>, vector<8x1024xf32> -> vector<8x1024xf32>
    %cst_16 = arith.constant 0.000000e+00 : f32
    %19 = vector.broadcast %cst_16 : f32 to vector<8x1024xf32>
    %20 = arith.maximumf %18, %19 : vector<8x1024xf32>
    %21 = arith.truncf %20 : vector<8x1024xf32> to vector<8x1024xbf16>
    %c2 = arith.constant 2 : index
    %c0_17 = arith.constant 0 : index
    %c0_18 = arith.constant 0 : index
    %22 = vector.load %arg4[%c2, %c0_17, %c0_18] : memref<3x1024x1024xbf16, #tpu.memory_space<vmem>>, vector<1x1024x1024xbf16>
    %23 = vector.shape_cast %22 : vector<1x1024x1024xbf16> to vector<1024x1024xbf16>
    %cst_19 = arith.constant dense<0.000000e+00> : vector<8x1024xf32>
    %24 = tpu.matmul %21, %23, %cst_19 {dimension_numbers = #tpu.dot_dimension_numbers<[1], [0], [0], [1], [0, 0, 1, 1], [], []>} : vector<8x1024xbf16>, vector<1024x1024xbf16>, vector<8x1024xf32> -> vector<8x1024xf32>
    %cst_20 = arith.constant 0.000000e+00 : f32
    %25 = vector.broadcast %cst_20 : f32 to vector<8x1024xf32>
    %26 = arith.maximumf %24, %25 : vector<8x1024xf32>
    %c0_21 = arith.constant 0 : index
    %c0_22 = arith.constant 0 : index
    %27 = vector.load %arg5[%c0_21, %c0_22] : memref<1x1024xbf16, #tpu.memory_space<vmem>>, vector<1x1024xbf16>
    %28 = arith.extf %27 : vector<1x1024xbf16> to vector<1x1024xf32>
    %29 = vector.broadcast %28 : vector<1x1024xf32> to vector<8x1024xf32>
    %30 = arith.mulf %26, %29 : vector<8x1024xf32>
    %cst_23 = arith.constant dense<0.000000e+00> : vector<8xf32>
    %31 = vector.multi_reduction <add>, %30, %cst_23 [1] : vector<8x1024xf32> to vector<8xf32>
    %32 = vector.shape_cast %31 : vector<8xf32> to vector<8x1xf32>
    %cst_24 = arith.constant 0.000000e+00 : f32
    %33 = vector.broadcast %cst_24 : f32 to vector<8x1xf32>
    %34 = arith.subf %33, %32 : vector<8x1xf32>
    %35 = math.exp %34 : vector<8x1xf32>
    %cst_25 = arith.constant 1.000000e+00 : f32
    %36 = vector.broadcast %cst_25 : f32 to vector<8x1xf32>
    %37 = arith.addf %36, %35 : vector<8x1xf32>
    %38 = tpu.reciprocal %37 {approx = true} : vector<8x1xf32> -> vector<8x1xf32>
    %c0_26 = arith.constant 0 : index
    %c0_27 = arith.constant 0 : index
    %39 = vector.load %arg6[%c0_26, %c0_27] : memref<8x1xf32, #tpu.memory_space<vmem>>, vector<8x1xf32>
    tpu.vector_store %arg6[%c0_26, %c0_27], %38 {strides = array<i32>} : memref<8x1xf32, #tpu.memory_space<vmem>>, vector<8x1xf32>,
    return
  }
  func.func @transform_0(%arg0: i32) -> (i32, i32) {
    %c0_i32 = arith.constant 0 : i32
    %c0_i32_0 = arith.constant 0 : i32
    return %arg0, %c0_i32 : i32, i32
  }
  func.func @transform_1(%arg0: i32) -> (i32, i32) {
    %c0_i32 = arith.constant 0 : i32
    %c0_i32_0 = arith.constant 0 : i32
    return %arg0, %c0_i32 : i32, i32
  }
  func.func @transform_2(%arg0: i32) -> (i32, i32) {
    %c0_i32 = arith.constant 0 : i32
    %c0_i32_0 = arith.constant 0 : i32
    %c0_i32_1 = arith.constant 0 : i32
    return %c0_i32, %c0_i32_0 : i32, i32
  }
  func.func @transform_3(%arg0: i32) -> (i32, i32, i32) {
    %c0_i32 = arith.constant 0 : i32
    %c0_i32_0 = arith.constant 0 : i32
    %c0_i32_1 = arith.constant 0 : i32
    %c0_i32_2 = arith.constant 0 : i32
    return %c0_i32, %c0_i32_0, %c0_i32_1 : i32, i32, i32
  }
  func.func @transform_4(%arg0: i32) -> (i32, i32) {
    %c0_i32 = arith.constant 0 : i32
    %c0_i32_0 = arith.constant 0 : i32
    %c0_i32_1 = arith.constant 0 : i32
    return %c0_i32, %c0_i32_0 : i32, i32
  }
  func.func @transform_5(%arg0: i32) -> (i32, i32) {
    %c0_i32 = arith.constant 0 : i32
    %c0_i32_0 = arith.constant 0 : i32
    return %arg0, %c0_i32 : i32, i32
  }
}

</mosaic_0001>

<bundles_post_ra>
// kernel: tpu_custom_call.1
= control target key start
LH: loop header
LB: loop body
LE: loop exit
PB: predicated region body
PF: predicated region fallthrough
CT: control target
= control target key end

     0   :  { %10 = vsyncpa [#allocation3], 0  ;;  %s19775_s0 = inlined_call_operand.hbm [shape: bf16[16,512], index: 0, kind: input, shape index: {}]   ;;  %s19776_s1 = inlined_call_operand.hbm [shape: bf16[16,768], index: 1, kind: input, shape index: {}]   ;;  %s19777_s2 = inlined_call_operand.hbm [shape: bf16[1280,1024], index: 2, kind: input, shape index: {}]   ;;  %s19778_s3 = inlined_call_operand.hbm [shape: bf16[3,1024,1024], index: 3, kind: input, shape index: {}]   ;;  %s19779_s4 = inlined_call_operand.hbm [shape: bf16[1,1024], index: 4, kind: input, shape index: {}]   ;;  %s19780_s5 = inlined_call_operand.vmem [shape: f32[16,1], index: 5, kind: output, shape index: {}]  }
   0x1   :  { %12 = vsyncpa [#allocation3 + $0x1], 0 }
   0x2   :  { %13 = vsyncpa [#allocation5], 0 }
   0x3   :  { %15 = vsyncpa [#allocation5 + $0x1], 0 }
   0x4   :  { %16 = vsyncpa [#allocation8], 0  ;;  %s19215_s18 = smov 0   ;;  %s19217_s19 = smov 0  }
   0x5   :  { %s19219_s20 = smov 0   ;;  %s19221_s21 = smov 0  }
   0x6 LB: > { %s19234_s22 = sadd.s32 4294967295, %s19176_s21   ;;  %p42_p0 = scmp.ne.s32.totalorder %s19168_s19, %s19164_s18  ;;  %s19176_s21 = sphi %s19221_s21, %s19798_s21   ;;  %s19172_s20 = sphi %s19219_s20, %s19797_s20   ;;  %s19168_s19 = sphi %s19217_s19, %s19796_s19   ;;  %s19164_s18 = sphi %s19215_s18, %s19795_s18  }
   0x7   : > { %p19781_p1 = scmp.eq.s32.totalorder %s19234_s22, 0  ;;  %p16480_p2 = scmp.ge.s32.totalorder %s19176_s21, 1 }
   0x8   : > { %p168_p3 = scmp.lt.s32.totalorder %s19176_s21, 3  ;;  %s19178_s25 = smov [#allocation6]  }
   0x9   : > { %p19242_p4 = por %p19781_p1, %p42_p0  ;;  %s180_s26 = sshll.u32 %s19178_s25, 4  ;;  %s19250_s26 = int_to_ptr.vmem [resolvable:$true] %s180_s26 }
   0xa   : > { %p19246_p5 = pnand %p16480_p2, %p168_p3  ;;  %s19179_s28 = smov [#allocation7]  }
   0xb   : > { %s19784_s23 = scalar_select %p19242_p4, 1, 0 }
   0xc   : > { %s19785_s24 = scalar_select %p19246_p5, 1, 0 }
   0xd   : > { %p18911_p6 = pneg %p19246_p5  ;;  %s193_s29 = sshll.u32 %s19179_s28, 4  ;;  %s19260_s29 = int_to_ptr.vmem [resolvable:$true] %s193_s29 }
   0xe   : > { %s19180_s30 = smov [#allocation9]   ;;  %s18986_s9 = scalar_lea.hbm %s19777_s2, 81920 }
   0xf   : > { %p19256_p7 = pnand %p18911_p6, %p19781_p1  ;;  %s19262_s6 = sshll.u32 %s19180_s30, 4  ;;  %s208_s6 = int_to_ptr.vmem [resolvable:$true] %s19262_s6 }
  0x10   : > { %p18987_p8 = scmp.ne.s32.totalorder %s19777_s2, %s18986_s9  ;;  %p18993_p12 = scmp.lt.u32.totalorder %s18986_s9, %s19777_s2 }
  0x11   : > { %p19272_p9 = pneg %p19256_p7 }
  0x13   : > { %p18989_p10 = pnand %p19272_p9, %p18987_p8 }
  0x15   : > { %p18990_p11 = pneg %p18989_p10 }
  0x17   : > { %p18995_p13 = pnand %p18993_p12, %p18990_p11 }
  0x19   : > { %18998 = shalt.err (!%p18995_p13)
}
  0x1a   : > { %s18999_s15 = scalar_lea.vmem %s19250_s26, 81920  ;;  %p19007_p6 = scmp.lt.s32.totalorder %s19250_s26, %s19250_s26 }
  0x1b   : > { %p19000_p0 = scmp.ne.s32.totalorder %s19250_s26, %s18999_s15  ;;  %p19008_p1 = scmp.lt.s32.totalorder %s18999_s15, %s18999_s15 }
  0x1d   : > { %p19002_p2 = pnand %p19000_p0, %p19272_p9  ;;  %p19009_p8 = por %p19008_p1, %p19007_p6 }
  0x1f   : > { %p19003_p3 = pneg %p19002_p2 }
  0x21   : > { %p19010_p10 = pnand %p19009_p8, %p19003_p3 }
  0x23   : > { %19013 = shalt.err (!%p19010_p10)
}
  0x24   : > { %s19181_s16 = smov 512   ;;  %s19182_s17 = smov 32  }
  0x25   : > { %18914 = dma.hbm_to_vmem [thread:$0]  (!%p19256_p7), %s19777_s2, 81920, %s19250_s26, [#allocation5], %s19181_s16, %s19181_s16, %s19182_s17  }
  0x26   : > { %s19014_s7 = scalar_lea.hbm %s19778_s3, 196608 }
  0x27   : > { %p19015_p1 = scmp.ne.s32.totalorder %s19778_s3, %s19014_s7  ;;  %p19021_p13 = scmp.lt.u32.totalorder %s19014_s7, %s19778_s3 }
  0x29   : > { %p19017_p11 = pnand %p19015_p1, %p19272_p9 }
  0x2b   : > { %p19018_p12 = pneg %p19017_p11 }
  0x2d   : > { %p19023_p0 = pnand %p19021_p13, %p19018_p12 }
  0x2f   : > { %19026 = shalt.err (!%p19023_p0)
}
  0x30   : > { %s19027_s26 = scalar_lea.vmem %s19260_s29, 196608  ;;  %p19035_p8 = scmp.lt.s32.totalorder %s19260_s29, %s19260_s29 }
  0x31   : > { %p19028_p2 = scmp.ne.s32.totalorder %s19260_s29, %s19027_s26  ;;  %p19036_p10 = scmp.lt.s32.totalorder %s19027_s26, %s19027_s26 }
  0x33   : > { %p19030_p3 = pnand %p19028_p2, %p19272_p9  ;;  %p19037_p1 = por %p19036_p10, %p19035_p8 }
  0x35   : > { %p19031_p6 = pneg %p19030_p3 }
  0x37   : > { %p19038_p11 = pnand %p19037_p1, %p19031_p6 }
  0x39   : > { %19041 = shalt.err (!%p19038_p11)
}
  0x3a   : > { %18917 = dma.hbm_to_vmem [thread:$0]  (!%p19256_p7), %s19778_s3, 196608, %s19260_s29, [#allocation8], %s19181_s16, %s19181_s16, %s19182_s17  }
  0x3b   : > { %s19042_s25 = scalar_lea.hbm %s19779_s4, 128 }
  0x3c   : > { %p19043_p12 = scmp.ne.s32.totalorder %s19779_s4, %s19042_s25  ;;  %p19049_p2 = scmp.lt.u32.totalorder %s19042_s25, %s19779_s4 }
  0x3e   : > { %p19045_p13 = pnand %p19043_p12, %p19272_p9 }
  0x40   : > { %p19046_p0 = pneg %p19045_p13 }
  0x42   : > { %p19051_p3 = pnand %p19049_p2, %p19046_p0 }
  0x44   : > { %19054 = shalt.err (!%p19051_p3)
}
  0x45   : > { %s19055_s9 = scalar_lea.vmem %s208_s6, 128  ;;  %p19063_p1 = scmp.lt.s32.totalorder %s208_s6, %s208_s6 }
  0x46   : > { %p19056_p6 = scmp.ne.s32.totalorder %s208_s6, %s19055_s9  ;;  %p19064_p11 = scmp.lt.s32.totalorder %s19055_s9, %s19055_s9 }
  0x48   : > { %p19058_p8 = pnand %p19056_p6, %p19272_p9  ;;  %p19065_p4 = por %p19064_p11, %p19063_p1 }
  0x4a   : > { %p19059_p10 = pneg %p19058_p8 }
  0x4c   : > { %p19066_p5 = pnand %p19065_p4, %p19059_p10 }
  0x4e   : > { %19069 = shalt.err (!%p19066_p5)
}
  0x4f   : > { %18920 = dma.hbm_to_vmem [thread:$0]  (!%p19256_p7), %s19779_s4, 128, %s208_s6, [#allocation8]  }
  0x50   : > { %s19336_s12 = sadd.s32 1, %s19176_s21   ;;  %s29_s27 = sadd.s32 1, %s19172_s20 }
  0x51   : > { %s26_s17 = ssub.s32 %s19176_s21, %s19336_s12  ;;  %p36_p5 = scmp.ne.s32.totalorder %s19172_s20, %s19168_s19 }
  0x52   : > { %p27_p4 = scmp.eq.s32.totalorder %s26_s17, 0  ;;  %p37_p9 = scmp.eq.s32.totalorder %s19176_s21, 0 }
  0x53   : > { %p18931_p12 = scmp.lt.s32.totalorder %s19176_s21, 2  ;;  %s19349_s11 = sand.u32 1, %s19172_s20  }
  0x54   : > { %s19346_s10 = scalar_select %p27_p4, %s19172_s20, %s29_s27  }
  0x55   : > { %p38_p13 = por %p37_p9, %p36_p5  ;;  %s16485_s26 = sshll.u32 %s19349_s11, 4 }
  0x56   : > { %s18683_s6 = sshll.u32 %s19176_s21, 8  ;;  %s222_s18 = scalar_lea.vmem [#allocation2], %s16485_s26 }
  0x57   : > { %s19356_s15 = scalar_lea.hbm %s19775_s0, %s18683_s6  ;;  %s230_s25 = sshll.u32 %s222_s18, 4  ;;  %s19358_s25 = int_to_ptr.vmem [resolvable:$true] %s230_s25 }
  0x58   : > { %p19360_p7 = pnand %p18931_p12, %p38_p13  ;;  %s237_s30 = sand.u32 1, %s19176_s21  }
  0x59   : > { %s18892_s7 = smul.u32 24, %s19349_s11  ;;  %s219_s8 = scalar_lea.sflag [#allocation3], %s19349_s11 }
  0x5a   : > { %s19070_s9 = scalar_lea.hbm %s19356_s15, 256  ;;  %p19072_p2 = pneg %p19360_p7 }
  0x5b   : > { %p19071_p0 = scmp.ne.s32.totalorder %s19356_s15, %s19070_s9  ;;  %s19075_s17 = scalar_lea.hbm %s19775_s0, 512 }
  0x5c   : > { %p19076_p8 = scmp.lt.u32.totalorder %s19356_s15, %s19775_s0  ;;  %p19077_p10 = scmp.lt.u32.totalorder %s19075_s17, %s19070_s9 }
  0x5d   : > { %p19073_p3 = pnand %p19072_p2, %p19071_p0  ;;  %p19079_p11 = scmp.lt.u32.totalorder %s19070_s9, %s19356_s15 }
  0x5e   : > { %p19078_p1 = por %p19077_p10, %p19076_p8 }
  0x5f   : > { %p19074_p6 = pneg %p19073_p3 }
  0x60   : > { %p19080_p4 = por %p19079_p11, %p19078_p1 }
  0x62   : > { %p19081_p5 = pnand %p19080_p4, %p19074_p6 }
  0x64   : > { %19084 = shalt.err (!%p19081_p5)
}
  0x65   : > { %s19085_s6 = scalar_lea.vmem %s19358_s25, 256  ;;  %s19183_s13 = smov [#allocation2]  }
  0x66   : > { %p19086_p9 = scmp.ne.s32.totalorder %s19358_s25, %s19085_s6  ;;  %s19090_s14 = sshll.u32 %s19183_s13, 4  ;;  %s19091_s14 = int_to_ptr.vmem [resolvable:$false] %s19090_s14 }
  0x67   : > { %s19092_s18 = scalar_lea.vmem %s19091_s14, 512  ;;  %p19093_p0 = scmp.lt.s32.totalorder %s19358_s25, %s19091_s14 }
  0x68   : > { %p19088_p12 = pnand %p19086_p9, %p19072_p2  ;;  %p19094_p3 = scmp.lt.s32.totalorder %s19092_s18, %s19085_s6 }
  0x6a   : > { %p19089_p13 = pneg %p19088_p12  ;;  %p19095_p8 = por %p19094_p3, %p19093_p0 }
  0x6c   : > { %p19096_p10 = pnand %p19095_p8, %p19089_p13 }
  0x6e   : > { %19099 = shalt.err (!%p19096_p10)
}
  0x6f   : > { %18924 = dma.hbm_to_vmem [thread:$0]  (!%p19360_p7), %s19356_s15, 256, %s19358_s25, %s219_s8  }
  0x70   : > { %s18893_s9 = smul.u32 384, %s19176_s21  ;;  %s241_s29 = scalar_lea.vmem [#allocation4], %s18892_s7 }
  0x71   : > { %s249_s16 = sshll.u32 %s241_s29, 4  ;;  %s238_s6 = scalar_lea.sflag [#allocation5], %s237_s30  ;;  %s250_s16 = int_to_ptr.vmem [resolvable:$true] %s249_s16 }
  0x72   : > { %s19398_s26 = scalar_lea.hbm %s19776_s1, %s18893_s9  ;;  %s19105_s25 = scalar_lea.hbm %s19776_s1, 768 }
  0x73   : > { %s19100_s13 = scalar_lea.hbm %s19398_s26, 384  ;;  %p19106_p4 = scmp.lt.u32.totalorder %s19398_s26, %s19776_s1 }
  0x74   : > { %p19101_p6 = scmp.ne.s32.totalorder %s19398_s26, %s19100_s13  ;;  %p19107_p5 = scmp.lt.u32.totalorder %s19105_s25, %s19100_s13 }
  0x75   : > { %p19109_p12 = scmp.lt.u32.totalorder %s19100_s13, %s19398_s26 }
  0x76   : > { %p19103_p1 = pnand %p19101_p6, %p19072_p2  ;;  %p19108_p9 = por %p19107_p5, %p19106_p4 }
  0x78   : > { %p19104_p11 = pneg %p19103_p1  ;;  %p19110_p13 = por %p19109_p12, %p19108_p9 }
  0x7a   : > { %p19111_p0 = pnand %p19110_p13, %p19104_p11 }
  0x7c   : > { %19114 = shalt.err (!%p19111_p0)
}
  0x7d   : > { %s19115_s21 = scalar_lea.vmem %s250_s16, 384  ;;  %s19184_s30 = smov [#allocation4]  }
  0x7e   : > { %p19116_p3 = scmp.ne.s32.totalorder %s250_s16, %s19115_s21  ;;  %s19120_s14 = sshll.u32 %s19184_s30, 4  ;;  %s19121_s14 = int_to_ptr.vmem [resolvable:$false] %s19120_s14 }
  0x7f   : > { %s19122_s18 = scalar_lea.vmem %s19121_s14, 768  ;;  %p19123_p6 = scmp.lt.s32.totalorder %s250_s16, %s19121_s14 }
  0x80   : > { %p19118_p8 = pnand %p19116_p3, %p19072_p2  ;;  %p19124_p1 = scmp.lt.s32.totalorder %s19122_s18, %s19115_s21 }
  0x82   : > { %p19119_p10 = pneg %p19118_p8  ;;  %p19125_p4 = por %p19124_p1, %p19123_p6 }
  0x84   : > { %p19126_p5 = pnand %p19125_p4, %p19119_p10 }
  0x86   : > { %19129 = shalt.err (!%p19126_p5)
}
  0x87   : > { %18927 = dma.hbm_to_vmem [thread:$0]  (!%p19360_p7), %s19398_s26, 384, %s250_s16, %s238_s6  }
  0x88   : > { %p19789_p11 = scmp.ne.s32.totalorder %s19785_s24, 0 }
  0x89   : > { %s260_s9 = sand.u32 (!%p19789_p11), 1, %s19168_s19   ;;  %p19790_p2 = scmp.ne.s32.totalorder (!%p19789_p11), %s19784_s23, 0 }
  0x8a   : > { %258 = sbr.rel (%p19789_p11) target bundleno = 2809 (0xaf9), region = 40  ;;  %s16490_s29 = sshll.u32 (!%p19789_p11), %s260_s9, 4 }
  0x8b   : > { %s261_s17 = scalar_lea.sflag (!%p19789_p11), [#allocation3], %s260_s9  ;;  %s19424_s27 = scalar_lea.vmem (!%p19789_p11), [#allocation2], %s16490_s29 }
  0x91   : > { %19147 = dma.done.wait (%p19790_p2), %s261_s17, 256  }
  0x92   : > { %19149 = vsyncadd (%p19790_p2), %s261_s17, 4294967040  ;;  %s269_s28 = sand.u32 1, %s19234_s22   ;;  %s18894_s13 = smul.u32 24, %s260_s9 }
  0x93   : > { %s270_s16 = scalar_lea.sflag [#allocation5], %s269_s28 }
  0x94   : > { %s19431_s26 = scalar_lea.vmem [#allocation4], %s18894_s13 }
  0x95   : > { %19151 = dma.done.wait (%p19790_p2), %s270_s16, 384  }
  0x96   : > { %19153 = vsyncadd (%p19790_p2), %s270_s16, 4294966912  ;;  %p19791_p7 = scmp.eq.s32.totalorder %s19234_s22, 0 }
  0x98   : > { %19155 = dma.done.wait (%p19791_p7), [#allocation5], 81920   ;;  %p19792_p9 = pmov %p19791_p7 }
  0x99   : > { %p19793_p12 = pmov %p19791_p7 }
  0x9a   : > { %19157 = vsyncadd (%p19792_p9), [#allocation5], 4294885376 }
  0x9b   : > { %19159 = dma.done.wait (%p19793_p12), [#allocation8], 196736   ;;  %p19794_p13 = pmov %p19791_p7 }
  0x9c   : > { %v581_v0 = vld [vmem:[#allocation6 + $0x800] sm:$0xff]  ;;  %v582_v2 = vld [vmem:[#allocation6 + $0x808] sm:$0xff]  ;;  %p316_p0 = scmp.lt.s32.totalorder %s19234_s22, 1  ;;  %vm16361_vm0 = vcmask 7168  }
  0x9d   : > { %19161 = vsyncadd (%p19794_p13), [#allocation8], 4294770560  ;;  %v585_v1 = vld [vmem:[#allocation6 + $0x820] sm:$0xff]  ;;  %v586_v4 = vld [vmem:[#allocation6 + $0x828] sm:$0xff] }
  0x9e   : > { %v16502_v3 = vcombine.high %v581_v0, %v585_v1  ;;  %v16501_v5 = vcombine.low %v581_v0, %v585_v1  ;;  %v589_v6 = vld [vmem:[#allocation6 + $0x840] sm:$0xff]  ;;  %v16504_v8 = vcombine.high %v582_v2, %v586_v4  ;;  %v16503_v9 = vcombine.low %v582_v2, %v586_v4  ;;  %v590_v11 = vld [vmem:[#allocation6 + $0x848] sm:$0xff]  ;;  %s19800_s22 = smov (!%p316_p0, %s19234_s22), 1 }
  0x9f   : > { %v593_v7 = vld [vmem:[#allocation6 + $0x860] sm:$0xff]  ;;  %v594_v12 = vld [vmem:[#allocation6 + $0x868] sm:$0xff]  ;;  %s16494_s23 = sshll.u32 %s19800_s22, 3 }
  0xa0   : > { %v16510_v10 = vcombine.high %v589_v6, %v593_v7  ;;  %v597_v13 = vld [vmem:[#allocation6 + $0x880] sm:$0xff]  ;;  %2906 = vmatprep.subr.bf16.mxu0 %v16502_v3  ;;  %v16512_v14 = vcombine.high %v590_v11, %v594_v12  ;;  %v598_v16 = vld [vmem:[#allocation6 + $0x888] sm:$0xff]  ;;  %3029 = vmatprep.subr.bf16.mxu1 %v16504_v8  ;;  %v16509_v18 = vcombine.low %v589_v6, %v593_v7  ;;  %s319_s11 = scalar_lea.vmem %s19780_s5, %s16494_s23 }
  0xa1   : > { %v601_v15 = vld [vmem:[#allocation6 + $0x8a0] sm:$0xff]  ;;  %v602_v17 = vld [vmem:[#allocation6 + $0x8a8] sm:$0xff]  ;;  %2907 = vmatpush1.bf16.msra.mxu0 %v16501_v5  ;;  %3030 = vmatpush1.bf16.msra.mxu1 %v16503_v9  ;;  %v16511_v19 = vcombine.low %v590_v11, %v594_v12 }
  0xa2   : > { %2908 = vmatprep.subr.bf16.mxu0 %v16510_v10  ;;  %v16518_v20 = vcombine.high %v597_v13, %v601_v15  ;;  %3031 = vmatprep.subr.bf16.mxu1 %v16512_v14  ;;  %v16520_v21 = vcombine.high %v598_v16, %v602_v17  ;;  %v605_v22 = vld [vmem:[#allocation6 + $0x8c0] sm:$0xff]  ;;  %v606_v24 = vld [vmem:[#allocation6 + $0x8c8] sm:$0xff]  ;;  %v16517_v26 = vcombine.low %v597_v13, %v601_v15 }
  0xa3   : > { %v609_v23 = vld [vmem:[#allocation6 + $0x8e0] sm:$0xff]  ;;  %v610_v25 = vld [vmem:[#allocation6 + $0x8e8] sm:$0xff]  ;;  %v16519_v27 = vcombine.low %v598_v16, %v602_v17 }
  0xa4   : > { %v16526_v28 = vcombine.high %v605_v22, %v609_v23  ;;  %v16528_v29 = vcombine.high %v606_v24, %v610_v25  ;;  %v613_v30 = vld [vmem:[#allocation6 + $0x900] sm:$0xff]  ;;  %v614_v32 = vld [vmem:[#allocation6 + $0x908] sm:$0xff]  ;;  %v16525_v34 = vcombine.low %v605_v22, %v609_v23  ;;  %v16527_v35 = vcombine.low %v606_v24, %v610_v25 }
  0xa5   : > { %2909 = vmatpush1.bf16.msra.mxu0 %v16509_v18  ;;  %3032 = vmatpush1.bf16.msra.mxu1 %v16511_v19  ;;  %v617_v31 = vld [vmem:[#allocation6 + $0x920] sm:$0xff]  ;;  %v618_v33 = vld [vmem:[#allocation6 + $0x928] sm:$0xff] }
  0xa6   : > { %2910 = vmatprep.subr.bf16.mxu0 %v16518_v20  ;;  %3033 = vmatprep.subr.bf16.mxu1 %v16520_v21  ;;  %v16534_v36 = vcombine.high %v613_v30, %v617_v31  ;;  %v16536_v37 = vcombine.high %v614_v32, %v618_v33  ;;  %v621_v38 = vld [vmem:[#allocation6 + $0x940] sm:$0xff]  ;;  %v622_v40 = vld [vmem:[#allocation6 + $0x948] sm:$0xff]  ;;  %v16533_v42 = vcombine.low %v613_v30, %v617_v31 }
  0xa7   : > { %v625_v39 = vld [vmem:[#allocation6 + $0x960] sm:$0xff]  ;;  %v626_v41 = vld [vmem:[#allocation6 + $0x968] sm:$0xff]  ;;  %v16535_v43 = vcombine.low %v614_v32, %v618_v33 }
  0xa8   : > { %v16542_v44 = vcombine.high %v621_v38, %v625_v39  ;;  %v16544_v45 = vcombine.high %v622_v40, %v626_v41  ;;  %v629_v46 = vld [vmem:[#allocation6 + $0x980] sm:$0xff]  ;;  %v630_v48 = vld [vmem:[#allocation6 + $0x988] sm:$0xff]  ;;  %v16541_v50 = vcombine.low %v621_v38, %v625_v39  ;;  %v16543_v51 = vcombine.low %v622_v40, %v626_v41 }
  0xa9   : > { %2911 = vmatpush1.bf16.msra.mxu0 %v16517_v26  ;;  %3034 = vmatpush1.bf16.msra.mxu1 %v16519_v27  ;;  %v633_v47 = vld [vmem:[#allocation6 + $0x9a0] sm:$0xff]  ;;  %v634_v49 = vld [vmem:[#allocation6 + $0x9a8] sm:$0xff] }
  0xaa   : > { %2912 = vmatprep.subr.bf16.mxu0 %v16526_v28  ;;  %3035 = vmatprep.subr.bf16.mxu1 %v16528_v29  ;;  %v16550_v52 = vcombine.high %v629_v46, %v633_v47  ;;  %v19446_v53 = vld [vmem:[%s19431_s26] sm:$0xff]  ;;  %v16552_v54 = vcombine.high %v630_v48, %v634_v49  ;;  %v637_v55 = vld [vmem:[#allocation6 + $0x9c0] sm:$0xff]  ;;  %v16549_v60 = vcombine.low %v629_v46, %v633_v47 }
  0xab   : > { %v641_v56 = vld [vmem:[#allocation6 + $0x9e0] sm:$0xff]  ;;  %v19450_v57 = vcombine.high %v19446_v53, %v19446_v53  ;;  %v638_v58 = vld [vmem:[#allocation6 + $0x9c8] sm:$0xff]  ;;  %v16551_v61 = vcombine.low %v630_v48, %v634_v49 }
  0xac   : > { %v642_v59 = vld [vmem:[#allocation6 + $0x9e8] sm:$0xff]  ;;  %v16558_v62 = vcombine.high %v637_v55, %v641_v56  ;;  %v645_v0 = vld [vmem:[#allocation6 + $0xa00] sm:$0xff]  ;;  %v16557_v4 = vcombine.low %v637_v55, %v641_v56 }
  0xad   : > { %2913 = vmatpush1.bf16.msra.mxu0 %v16525_v34  ;;  %3036 = vmatpush1.bf16.msra.mxu1 %v16527_v35  ;;  %v16560_v63 = vcombine.high %v638_v58, %v642_v59  ;;  %v649_v1 = vld [vmem:[#allocation6 + $0xa20] sm:$0xff]  ;;  %v646_v2 = vld [vmem:[#allocation6 + $0xa08] sm:$0xff]  ;;  %v16559_v5 = vcombine.low %v638_v58, %v642_v59 }
  0xae   : > { %2914 = vmatprep.subr.bf16.mxu0 %v16534_v36  ;;  %3037 = vmatprep.subr.bf16.mxu1 %v16536_v37  ;;  %v650_v3 = vld [vmem:[#allocation6 + $0xa28] sm:$0xff]  ;;  %v16566_v6 = vcombine.high %v645_v0, %v649_v1  ;;  %v653_v8 = vld [vmem:[#allocation6 + $0xa40] sm:$0xff]  ;;  %v16565_v12 = vcombine.low %v645_v0, %v649_v1 }
  0xaf   : > { %2938 = vmatprep.mubr.bf16.mxu0 %v19450_v57  ;;  %3061 = vmatprep.mubr.bf16.mxu1 %v19450_v57  ;;  %v16568_v7 = vcombine.high %v646_v2, %v650_v3  ;;  %v657_v9 = vld [vmem:[#allocation6 + $0xa60] sm:$0xff]  ;;  %v654_v10 = vld [vmem:[#allocation6 + $0xa48] sm:$0xff]  ;;  %v16567_v13 = vcombine.low %v646_v2, %v650_v3 }
  0xb0   : > { %v658_v11 = vld [vmem:[#allocation6 + $0xa68] sm:$0xff]  ;;  %v16574_v14 = vcombine.high %v653_v8, %v657_v9  ;;  %v661_v16 = vld [vmem:[#allocation6 + $0xa80] sm:$0xff]  ;;  %v16573_v20 = vcombine.low %v653_v8, %v657_v9 }
  0xb1   : > { %2915 = vmatpush1.bf16.msra.mxu0 %v16533_v42  ;;  %3038 = vmatpush1.bf16.msra.mxu1 %v16535_v43  ;;  %v16576_v15 = vcombine.high %v654_v10, %v658_v11  ;;  %v665_v17 = vld [vmem:[#allocation6 + $0xaa0] sm:$0xff]  ;;  %v662_v18 = vld [vmem:[#allocation6 + $0xa88] sm:$0xff]  ;;  %v16575_v21 = vcombine.low %v654_v10, %v658_v11 }
  0xb2   : > { %2916 = vmatprep.subr.bf16.mxu0 %v16542_v44  ;;  %3039 = vmatprep.subr.bf16.mxu1 %v16544_v45  ;;  %v666_v19 = vld [vmem:[#allocation6 + $0xaa8] sm:$0xff]  ;;  %v16582_v22 = vcombine.high %v661_v16, %v665_v17  ;;  %v669_v24 = vld [vmem:[#allocation6 + $0xac0] sm:$0xff]  ;;  %v16581_v28 = vcombine.low %v661_v16, %v665_v17 }
  0xb3   : > { %v16584_v23 = vcombine.high %v662_v18, %v666_v19  ;;  %v673_v25 = vld [vmem:[#allocation6 + $0xae0] sm:$0xff]  ;;  %v670_v26 = vld [vmem:[#allocation6 + $0xac8] sm:$0xff]  ;;  %v16583_v29 = vcombine.low %v662_v18, %v666_v19 }
  0xb4   : > { %v674_v27 = vld [vmem:[#allocation6 + $0xae8] sm:$0xff]  ;;  %v16590_v30 = vcombine.high %v669_v24, %v673_v25  ;;  %v677_v32 = vld [vmem:[#allocation6 + $0xb00] sm:$0xff]  ;;  %v16589_v36 = vcombine.low %v669_v24, %v673_v25 }
  0xb5   : > { %2917 = vmatpush1.bf16.msra.mxu0 %v16541_v50  ;;  %3040 = vmatpush1.bf16.msra.mxu1 %v16543_v51  ;;  %v16592_v31 = vcombine.high %v670_v26, %v674_v27  ;;  %v681_v33 = vld [vmem:[#allocation6 + $0xb20] sm:$0xff]  ;;  %v678_v34 = vld [vmem:[#allocation6 + $0xb08] sm:$0xff]  ;;  %v16591_v37 = vcombine.low %v670_v26, %v674_v27 }
  0xb6   : > { %2918 = vmatprep.subr.bf16.mxu0 %v16550_v52  ;;  %3041 = vmatprep.subr.bf16.mxu1 %v16552_v54  ;;  %v682_v35 = vld [vmem:[#allocation6 + $0xb28] sm:$0xff]  ;;  %v16598_v38 = vcombine.high %v677_v32, %v681_v33  ;;  %v685_v40 = vld [vmem:[#allocation6 + $0xb40] sm:$0xff]  ;;  %v16597_v44 = vcombine.low %v677_v32, %v681_v33 }
  0xb7   : > { %v16600_v39 = vcombine.high %v678_v34, %v682_v35  ;;  %v689_v41 = vld [vmem:[#allocation6 + $0xb60] sm:$0xff]  ;;  %v686_v42 = vld [vmem:[#allocation6 + $0xb48] sm:$0xff]  ;;  %v16599_v45 = vcombine.low %v678_v34, %v682_v35 }
  0xb8   : > { %v690_v43 = vld [vmem:[#allocation6 + $0xb68] sm:$0xff]  ;;  %v16606_v46 = vcombine.high %v685_v40, %v689_v41  ;;  %v693_v48 = vld [vmem:[#allocation6 + $0xb80] sm:$0xff]  ;;  %v16605_v52 = vcombine.low %v685_v40, %v689_v41 }
  0xb9   : > { %2919 = vmatpush1.bf16.msra.mxu0 %v16549_v60  ;;  %3042 = vmatpush1.bf16.msra.mxu1 %v16551_v61  ;;  %v16608_v47 = vcombine.high %v686_v42, %v690_v43  ;;  %v697_v49 = vld [vmem:[#allocation6 + $0xba0] sm:$0xff]  ;;  %v694_v50 = vld [vmem:[#allocation6 + $0xb88] sm:$0xff]  ;;  %v16607_v54 = vcombine.low %v686_v42, %v690_v43 }
  0xba   : > { %2920 = vmatprep.subr.bf16.mxu0 %v16558_v62  ;;  %3043 = vmatprep.subr.bf16.mxu1 %v16560_v63  ;;  %v698_v51 = vld [vmem:[#allocation6 + $0xba8] sm:$0xff]  ;;  %v16614_v55 = vcombine.high %v693_v48, %v697_v49  ;;  %v701_v58 = vld [vmem:[#allocation6 + $0xbc0] sm:$0xff]  ;;  %v16613_v62 = vcombine.low %v693_v48, %v697_v49 }
  0xbb   : > { %v16616_v56 = vcombine.high %v694_v50, %v698_v51  ;;  %v705_v59 = vld [vmem:[#allocation6 + $0xbe0] sm:$0xff]  ;;  %v702_v60 = vld [vmem:[#allocation6 + $0xbc8] sm:$0xff]  ;;  %v16615_v63 = vcombine.low %v694_v50, %v698_v51 }
  0xbc   : > { %v706_v61 = vld [vmem:[#allocation6 + $0xbe8] sm:$0xff]  ;;  %v16622_v0 = vcombine.high %v701_v58, %v705_v59  ;;  %v709_v2 = vld [vmem:[#allocation6 + $0xc00] sm:$0xff] }
  0xbd   : > { %2921 = vmatpush1.bf16.msra.mxu0 %v16557_v4  ;;  %3044 = vmatpush1.bf16.msra.mxu1 %v16559_v5  ;;  %v16624_v1 = vcombine.high %v702_v60, %v706_v61  ;;  %v713_v3 = vld [vmem:[#allocation6 + $0xc20] sm:$0xff]  ;;  %v710_v4 = vld [vmem:[#allocation6 + $0xc08] sm:$0xff] }
  0xbe   : > { %2922 = vmatprep.subr.bf16.mxu0 %v16566_v6  ;;  %3045 = vmatprep.subr.bf16.mxu1 %v16568_v7  ;;  %v714_v5 = vld [vmem:[#allocation6 + $0xc28] sm:$0xff]  ;;  %v16621_v6 = vcombine.low %v701_v58, %v705_v59  ;;  %v16623_v7 = vcombine.low %v702_v60, %v706_v61  ;;  %v16630_v8 = vcombine.high %v709_v2, %v713_v3  ;;  %v717_v10 = vld [vmem:[#allocation6 + $0xc40] sm:$0xff] }
  0xbf   : > { %v16632_v9 = vcombine.high %v710_v4, %v714_v5  ;;  %v721_v11 = vld [vmem:[#allocation6 + $0xc60] sm:$0xff]  ;;  %v16629_v16 = vcombine.low %v709_v2, %v713_v3  ;;  %v16631_v17 = vcombine.low %v710_v4, %v714_v5 }
  0xc0   : > { %v16638_v18 = vcombine.high %v717_v10, %v721_v11  ;;  %v16637_v24 = vcombine.low %v717_v10, %v721_v11 }
  0xc1   : > { %2923 = vmatpush1.bf16.msra.mxu0 %v16565_v12  ;;  %3046 = vmatpush1.bf16.msra.mxu1 %v16567_v13  ;;  %v19456_v12 = vcombine.low %v19446_v53, %v19446_v53  ;;  %v718_v13 = vld [vmem:[#allocation6 + $0xc48] sm:$0xff] }
  0xc2   : > { %2924 = vmatprep.subr.bf16.mxu0 %v16574_v14  ;;  %3047 = vmatprep.subr.bf16.mxu1 %v16576_v15  ;;  %v722_v14 = vld [vmem:[#allocation6 + $0xc68] sm:$0xff]  ;;  %v19459_v15 = vld [vmem:[%s19431_s26 + $0x8] sm:$0xff] }
  0xc3   : > { %v16640_v19 = vcombine.high %v718_v13, %v722_v14  ;;  %v726_v53 = vld [vmem:[#allocation6 + $0xc88] sm:$0xff]  ;;  %v16639_v25 = vcombine.low %v718_v13, %v722_v14 }
  0xc5   : > { %2925 = vmatpush1.bf16.msra.mxu0 %v16573_v20  ;;  %3048 = vmatpush1.bf16.msra.mxu1 %v16575_v21  ;;  %v725_v20 = vld [vmem:[#allocation6 + $0xc80] sm:$0xff] }
  0xc6   : > { %2926 = vmatprep.subr.bf16.mxu0 %v16582_v22  ;;  %3049 = vmatprep.subr.bf16.mxu1 %v16584_v23  ;;  %v729_v21 = vld [vmem:[#allocation6 + $0xca0] sm:$0xff]  ;;  %v19463_v22 = vcombine.high %v19459_v15, %v19459_v15  ;;  %v730_v23 = vld [vmem:[#allocation6 + $0xca8] sm:$0xff] }
  0xc7   : > { %v16646_v26 = vcombine.high %v725_v20, %v729_v21  ;;  %v16648_v27 = vcombine.high %v726_v53, %v730_v23  ;;  %v16645_v32 = vcombine.low %v725_v20, %v729_v21  ;;  %v16647_v33 = vcombine.low %v726_v53, %v730_v23 }
  0xc9   : > { %2927 = vmatpush1.bf16.msra.mxu0 %v16581_v28  ;;  %3050 = vmatpush1.bf16.msra.mxu1 %v16583_v29  ;;  %v733_v28 = vld [vmem:[#allocation6 + $0xcc0] sm:$0xff] }
  0xca   : > { %2928 = vmatprep.subr.bf16.mxu0 %v16590_v30  ;;  %3051 = vmatprep.subr.bf16.mxu1 %v16592_v31  ;;  %v737_v29 = vld [vmem:[#allocation6 + $0xce0] sm:$0xff]  ;;  %v734_v30 = vld [vmem:[#allocation6 + $0xcc8] sm:$0xff] }
  0xcb   : > { %v738_v31 = vld [vmem:[#allocation6 + $0xce8] sm:$0xff]  ;;  %v16654_v34 = vcombine.high %v733_v28, %v737_v29  ;;  %v16653_v40 = vcombine.low %v733_v28, %v737_v29 }
  0xcc   : > { %v16656_v35 = vcombine.high %v734_v30, %v738_v31  ;;  %v16655_v41 = vcombine.low %v734_v30, %v738_v31 }
  0xcd   : > { %2929 = vmatpush1.bf16.msra.mxu0 %v16589_v36  ;;  %3052 = vmatpush1.bf16.msra.mxu1 %v16591_v37  ;;  %v741_v36 = vld [vmem:[#allocation6 + $0xd00] sm:$0xff] }
  0xce   : > { %2930 = vmatprep.subr.bf16.mxu0 %v16598_v38  ;;  %3053 = vmatprep.subr.bf16.mxu1 %v16600_v39  ;;  %v745_v37 = vld [vmem:[#allocation6 + $0xd20] sm:$0xff]  ;;  %v742_v38 = vld [vmem:[#allocation6 + $0xd08] sm:$0xff] }
  0xcf   : > { %v746_v39 = vld [vmem:[#allocation6 + $0xd28] sm:$0xff]  ;;  %v16662_v42 = vcombine.high %v741_v36, %v745_v37  ;;  %v16661_v48 = vcombine.low %v741_v36, %v745_v37 }
  0xd0   : > { %v16664_v43 = vcombine.high %v742_v38, %v746_v39  ;;  %v16663_v49 = vcombine.low %v742_v38, %v746_v39 }
  0xd1   : > { %2931 = vmatpush1.bf16.msra.mxu0 %v16597_v44  ;;  %3054 = vmatpush1.bf16.msra.mxu1 %v16599_v45  ;;  %v749_v44 = vld [vmem:[#allocation6 + $0xd40] sm:$0xff] }
  0xd2   : > { %2932 = vmatprep.subr.bf16.mxu0 %v16606_v46  ;;  %3055 = vmatprep.subr.bf16.mxu1 %v16608_v47  ;;  %v753_v45 = vld [vmem:[#allocation6 + $0xd60] sm:$0xff]  ;;  %v750_v46 = vld [vmem:[#allocation6 + $0xd48] sm:$0xff] }
  0xd3   : > { %v754_v47 = vld [vmem:[#allocation6 + $0xd68] sm:$0xff]  ;;  %v16670_v50 = vcombine.high %v749_v44, %v753_v45  ;;  %v16669_v58 = vcombine.low %v749_v44, %v753_v45 }
  0xd4   : > { %v16672_v51 = vcombine.high %v750_v46, %v754_v47  ;;  %v16671_v59 = vcombine.low %v750_v46, %v754_v47 }
  0xd5   : > { %2933 = vmatpush1.bf16.msra.mxu0 %v16605_v52  ;;  %3056 = vmatpush1.bf16.msra.mxu1 %v16607_v54  ;;  %v757_v52 = vld [vmem:[#allocation6 + $0xd80] sm:$0xff] }
  0xd6   : > { %2934 = vmatprep.subr.bf16.mxu0 %v16614_v55  ;;  %3057 = vmatprep.subr.bf16.mxu1 %v16616_v56  ;;  %v761_v54 = vld [vmem:[#allocation6 + $0xda0] sm:$0xff]  ;;  %v758_v55 = vld [vmem:[#allocation6 + $0xd88] sm:$0xff] }
  0xd7   : > { %v762_v56 = vld [vmem:[#allocation6 + $0xda8] sm:$0xff]  ;;  %v16678_v60 = vcombine.high %v757_v52, %v761_v54  ;;  %v16677_v2 = vcombine.low %v757_v52, %v761_v54 }
  0xd8   : > { %v16680_v61 = vcombine.high %v758_v55, %v762_v56  ;;  %v16679_v3 = vcombine.low %v758_v55, %v762_v56 }
  0xd9   : > { %2935 = vmatpush1.bf16.msra.mxu0 %v16613_v62  ;;  %3058 = vmatpush1.bf16.msra.mxu1 %v16615_v63  ;;  %v765_v62 = vld [vmem:[#allocation6 + $0xdc0] sm:$0xff] }
  0xda   : > { %2936 = vmatprep.subr.bf16.mxu0 %v16622_v0  ;;  %3059 = vmatprep.subr.bf16.mxu1 %v16624_v1  ;;  %v769_v63 = vld [vmem:[#allocation6 + $0xde0] sm:$0xff]  ;;  %v766_v0 = vld [vmem:[#allocation6 + $0xdc8] sm:$0xff] }
  0xdb   : > { %v770_v1 = vld [vmem:[#allocation6 + $0xde8] sm:$0xff]  ;;  %v16686_v4 = vcombine.high %v765_v62, %v769_v63  ;;  %v16685_v10 = vcombine.low %v765_v62, %v769_v63 }
  0xdc   : > { %v16688_v5 = vcombine.high %v766_v0, %v770_v1  ;;  %v16687_v11 = vcombine.low %v766_v0, %v770_v1 }
  0xdd   : > { %2937 = vmatpush1.bf16.msra.mxu0 %v16621_v6  ;;  %3060 = vmatpush1.bf16.msra.mxu1 %v16623_v7  ;;  %v773_v6 = vld [vmem:[#allocation6 + $0xe00] sm:$0xff] }
  0xde   : > { %2947 = vmatprep.subr.bf16.mxu0 %v16630_v8  ;;  %3070 = vmatprep.subr.bf16.mxu1 %v16632_v9  ;;  %v777_v7 = vld [vmem:[#allocation6 + $0xe20] sm:$0xff]  ;;  %v774_v8 = vld [vmem:[#allocation6 + $0xe08] sm:$0xff] }
  0xdf   : > { %v778_v9 = vld [vmem:[#allocation6 + $0xe28] sm:$0xff]  ;;  %v16694_v13 = vcombine.high %v773_v6, %v777_v7  ;;  %v16693_v20 = vcombine.low %v773_v6, %v777_v7 }
  0xe0   : > { %2939 = vmatmul.mubr.bf16.vlgmr.msra.gmra.mrb[0].mxu0 %v19456_v12  ;;  %3062 = vmatmul.mubr.bf16.vlgmr.msra.gmra.mrb[0].mxu1 %v19456_v12  ;;  %v16696_v14 = vcombine.high %v774_v8, %v778_v9  ;;  %v16695_v21 = vcombine.low %v774_v8, %v778_v9 }
  0xe1   : > { %2948 = vmatpush1.bf16.msra.mxu0 %v16629_v16  ;;  %3071 = vmatpush1.bf16.msra.mxu1 %v16631_v17  ;;  %v781_v16 = vld [vmem:[#allocation6 + $0xe40] sm:$0xff] }
  0xe2   : > { %2949 = vmatprep.subr.bf16.mxu0 %v16638_v18  ;;  %3072 = vmatprep.subr.bf16.mxu1 %v16640_v19  ;;  %v785_v17 = vld [vmem:[#allocation6 + $0xe60] sm:$0xff]  ;;  %v782_v18 = vld [vmem:[#allocation6 + $0xe48] sm:$0xff] }
  0xe3   : > { %2979 = vmatprep.mubr.bf16.mxu0 %v19463_v22  ;;  %3102 = vmatprep.mubr.bf16.mxu1 %v19463_v22  ;;  %v786_v19 = vld [vmem:[#allocation6 + $0xe68] sm:$0xff]  ;;  %v16702_v53 = vcombine.high %v781_v16, %v785_v17  ;;  %v16701_v28 = vcombine.low %v781_v16, %v785_v17 }
  0xe4   : > { %v16704_v23 = vcombine.high %v782_v18, %v786_v19  ;;  %v16703_v29 = vcombine.low %v782_v18, %v786_v19 }
  0xe5   : > { %2950 = vmatpush1.bf16.msra.mxu0 %v16637_v24  ;;  %3073 = vmatpush1.bf16.msra.mxu1 %v16639_v25  ;;  %v789_v24 = vld [vmem:[#allocation6 + $0xe80] sm:$0xff] }
  0xe6   : > { %2951 = vmatprep.subr.bf16.mxu0 %v16646_v26  ;;  %3074 = vmatprep.subr.bf16.mxu1 %v16648_v27  ;;  %v793_v25 = vld [vmem:[#allocation6 + $0xea0] sm:$0xff]  ;;  %v790_v26 = vld [vmem:[#allocation6 + $0xe88] sm:$0xff] }
  0xe7   : > { %v794_v27 = vld [vmem:[#allocation6 + $0xea8] sm:$0xff]  ;;  %v16710_v30 = vcombine.high %v789_v24, %v793_v25  ;;  %v16709_v36 = vcombine.low %v789_v24, %v793_v25  ;;  %v19474_v25 = vld [vmem:[%s19431_s26 + $0x10] sm:$0xff] }
  0xe8   : > { %v16712_v31 = vcombine.high %v790_v26, %v794_v27  ;;  %v16711_v37 = vcombine.low %v790_v26, %v794_v27  ;;  %v850_v24 = vld [vmem:[#allocation6 + $0x1068] sm:$0xff] }
  0xe9   : > { %2952 = vmatpush1.bf16.msra.mxu0 %v16645_v32  ;;  %3075 = vmatpush1.bf16.msra.mxu1 %v16647_v33  ;;  %v797_v32 = vld [vmem:[#allocation6 + $0xec0] sm:$0xff] }
  0xea   : > { %2953 = vmatprep.subr.bf16.mxu0 %v16654_v34  ;;  %3076 = vmatprep.subr.bf16.mxu1 %v16656_v35  ;;  %v801_v33 = vld [vmem:[#allocation6 + $0xee0] sm:$0xff]  ;;  %v798_v34 = vld [vmem:[#allocation6 + $0xec8] sm:$0xff] }
  0xeb   : > { %v802_v35 = vld [vmem:[#allocation6 + $0xee8] sm:$0xff]  ;;  %v16718_v38 = vcombine.high %v797_v32, %v801_v33  ;;  %v16717_v44 = vcombine.low %v797_v32, %v801_v33  ;;  %v19478_v32 = vcombine.high %v19474_v25, %v19474_v25 }
  0xec   : > { %v16720_v39 = vcombine.high %v798_v34, %v802_v35  ;;  %v16719_v45 = vcombine.low %v798_v34, %v802_v35  ;;  %v858_v33 = vld [vmem:[#allocation6 + $0x10a8] sm:$0xff] }
  0xed   : > { %2954 = vmatpush1.bf16.msra.mxu0 %v16653_v40  ;;  %3077 = vmatpush1.bf16.msra.mxu1 %v16655_v41  ;;  %v805_v40 = vld [vmem:[#allocation6 + $0xf00] sm:$0xff] }
  0xee   : > { %2955 = vmatprep.subr.bf16.mxu0 %v16662_v42  ;;  %3078 = vmatprep.subr.bf16.mxu1 %v16664_v43  ;;  %v809_v41 = vld [vmem:[#allocation6 + $0xf20] sm:$0xff]  ;;  %v806_v42 = vld [vmem:[#allocation6 + $0xf08] sm:$0xff] }
  0xef   : > { %v810_v43 = vld [vmem:[#allocation6 + $0xf28] sm:$0xff]  ;;  %v16726_v46 = vcombine.high %v805_v40, %v809_v41  ;;  %v16725_v52 = vcombine.low %v805_v40, %v809_v41 }
  0xf0   : > { %v16728_v47 = vcombine.high %v806_v42, %v810_v43  ;;  %v16727_v54 = vcombine.low %v806_v42, %v810_v43  ;;  %v862_v40 = vld [vmem:[#allocation6 + $0x10c8] sm:$0xff] }
  0xf1   : > { %2956 = vmatpush1.bf16.msra.mxu0 %v16661_v48  ;;  %3079 = vmatpush1.bf16.msra.mxu1 %v16663_v49  ;;  %v813_v48 = vld [vmem:[#allocation6 + $0xf40] sm:$0xff]  ;;  %v866_v41 = vld [vmem:[#allocation6 + $0x10e8] sm:$0xff] }
  0xf2   : > { %2957 = vmatprep.subr.bf16.mxu0 %v16670_v50  ;;  %3080 = vmatprep.subr.bf16.mxu1 %v16672_v51  ;;  %v817_v49 = vld [vmem:[#allocation6 + $0xf60] sm:$0xff]  ;;  %v814_v50 = vld [vmem:[#allocation6 + $0xf48] sm:$0xff] }
  0xf3   : > { %v818_v51 = vld [vmem:[#allocation6 + $0xf68] sm:$0xff]  ;;  %v16734_v55 = vcombine.high %v813_v48, %v817_v49  ;;  %v16733_v62 = vcombine.low %v813_v48, %v817_v49 }
  0xf4   : > { %v16736_v56 = vcombine.high %v814_v50, %v818_v51  ;;  %v16735_v63 = vcombine.low %v814_v50, %v818_v51  ;;  %v870_v48 = vld [vmem:[#allocation6 + $0x1108] sm:$0xff]  ;;  %v16783_v51 = vcombine.low %v862_v40, %v866_v41 }
  0xf5   : > { %2958 = vmatpush1.bf16.msra.mxu0 %v16669_v58  ;;  %3081 = vmatpush1.bf16.msra.mxu1 %v16671_v59  ;;  %v821_v58 = vld [vmem:[#allocation6 + $0xf80] sm:$0xff]  ;;  %v874_v49 = vld [vmem:[#allocation6 + $0x1128] sm:$0xff] }
  0xf6   : > { %2959 = vmatprep.subr.bf16.mxu0 %v16678_v60  ;;  %3082 = vmatprep.subr.bf16.mxu1 %v16680_v61  ;;  %v825_v59 = vld [vmem:[#allocation6 + $0xfa0] sm:$0xff]  ;;  %v822_v60 = vld [vmem:[#allocation6 + $0xf88] sm:$0xff] }
  0xf7   : > { %v826_v61 = vld [vmem:[#allocation6 + $0xfa8] sm:$0xff]  ;;  %v16742_v0 = vcombine.high %v821_v58, %v825_v59  ;;  %v16741_v6 = vcombine.low %v821_v58, %v825_v59 }
  0xf8   : > { %v16744_v1 = vcombine.high %v822_v60, %v826_v61  ;;  %v16743_v7 = vcombine.low %v822_v60, %v826_v61  ;;  %v878_v58 = vld [vmem:[#allocation6 + $0x1148] sm:$0xff]  ;;  %v16791_v61 = vcombine.low %v870_v48, %v874_v49 }
  0xf9   : > { %2960 = vmatpush1.bf16.msra.mxu0 %v16677_v2  ;;  %3083 = vmatpush1.bf16.msra.mxu1 %v16679_v3  ;;  %v829_v2 = vld [vmem:[#allocation6 + $0xfc0] sm:$0xff]  ;;  %v882_v59 = vld [vmem:[#allocation6 + $0x1168] sm:$0xff] }
  0xfa   : > { %2961 = vmatprep.subr.bf16.mxu0 %v16686_v4  ;;  %3084 = vmatprep.subr.bf16.mxu1 %v16688_v5  ;;  %v833_v3 = vld [vmem:[#allocation6 + $0xfe0] sm:$0xff]  ;;  %v830_v4 = vld [vmem:[#allocation6 + $0xfc8] sm:$0xff] }
  0xfb   : > { %v834_v5 = vld [vmem:[#allocation6 + $0xfe8] sm:$0xff]  ;;  %v16750_v8 = vcombine.high %v829_v2, %v833_v3  ;;  %v16749_v16 = vcombine.low %v829_v2, %v833_v3 }
  0xfc   : > { %v16752_v9 = vcombine.high %v830_v4, %v834_v5  ;;  %v16751_v17 = vcombine.low %v830_v4, %v834_v5  ;;  %v886_v2 = vld [vmem:[#allocation6 + $0x1188] sm:$0xff]  ;;  %v16799_v5 = vcombine.low %v878_v58, %v882_v59 }
  0xfd   : > { %2962 = vmatpush1.bf16.msra.mxu0 %v16685_v10  ;;  %3085 = vmatpush1.bf16.msra.mxu1 %v16687_v11  ;;  %v837_v10 = vld [vmem:[#allocation6 + $0x1000] sm:$0xff]  ;;  %v890_v3 = vld [vmem:[#allocation6 + $0x11a8] sm:$0xff] }
  0xfe   : > { %2963 = vmatprep.subr.bf16.mxu0 %v16694_v13  ;;  %3086 = vmatprep.subr.bf16.mxu1 %v16696_v14  ;;  %v841_v11 = vld [vmem:[#allocation6 + $0x1020] sm:$0xff]  ;;  %v838_v13 = vld [vmem:[#allocation6 + $0x1008] sm:$0xff] }
  0xff   : > { %v842_v14 = vld [vmem:[#allocation6 + $0x1028] sm:$0xff]  ;;  %v16758_v18 = vcombine.high %v837_v10, %v841_v11  ;;  %v16757_v26 = vcombine.low %v837_v10, %v841_v11 }
 0x100   : > { %v16760_v19 = vcombine.high %v838_v13, %v842_v14  ;;  %v16759_v27 = vcombine.low %v838_v13, %v842_v14  ;;  %v894_v10 = vld [vmem:[#allocation6 + $0x11c8] sm:$0xff]  ;;  %v16807_v14 = vcombine.low %v886_v2, %v890_v3 }
 0x101   : > { %2964 = vmatpush1.bf16.msra.mxu0 %v16693_v20  ;;  %3087 = vmatpush1.bf16.msra.mxu1 %v16695_v21  ;;  %v845_v20 = vld [vmem:[#allocation6 + $0x1040] sm:$0xff]  ;;  %v898_v11 = vld [vmem:[#allocation6 + $0x11e8] sm:$0xff] }
 0x102   : > { %2965 = vmatprep.subr.bf16.mxu0 %v16702_v53  ;;  %3088 = vmatprep.subr.bf16.mxu1 %v16704_v23  ;;  %v849_v21 = vld [vmem:[#allocation6 + $0x1060] sm:$0xff]  ;;  %v19471_v53 = vcombine.low %v19459_v15, %v19459_v15  ;;  %v846_v23 = vld [vmem:[#allocation6 + $0x1048] sm:$0xff] }
 0x103   : > { %v854_v15 = vld [vmem:[#allocation6 + $0x1088] sm:$0xff]  ;;  %v16765_v34 = vcombine.low %v845_v20, %v849_v21  ;;  %v16767_v35 = vcombine.low %v846_v23, %v850_v24 }
 0x104   : > { %v16775_v43 = vcombine.low %v854_v15, %v858_v33 }
 0x105   : > { %2966 = vmatpush1.bf16.msra.mxu0 %v16701_v28  ;;  %3089 = vmatpush1.bf16.msra.mxu1 %v16703_v29  ;;  %v16766_v28 = vcombine.high %v845_v20, %v849_v21  ;;  %v16768_v29 = vcombine.high %v846_v23, %v850_v24  ;;  %v902_v20 = vld [vmem:[#allocation6 + $0x1208] sm:$0xff]  ;;  %v16815_v24 = vcombine.low %v894_v10, %v898_v11 }
 0x106   : > { %2967 = vmatprep.subr.bf16.mxu0 %v16710_v30  ;;  %3090 = vmatprep.subr.bf16.mxu1 %v16712_v31  ;;  %v853_v30 = vld [vmem:[#allocation6 + $0x1080] sm:$0xff]  ;;  %v906_v21 = vld [vmem:[#allocation6 + $0x1228] sm:$0xff] }
 0x107   : > { %v857_v31 = vld [vmem:[#allocation6 + $0x10a0] sm:$0xff] }
 0x108   : > { %v16773_v42 = vcombine.low %v853_v30, %v857_v31 }
 0x109   : > { %2968 = vmatpush1.bf16.msra.mxu0 %v16709_v36  ;;  %3091 = vmatpush1.bf16.msra.mxu1 %v16711_v37  ;;  %v16774_v36 = vcombine.high %v853_v30, %v857_v31  ;;  %v16776_v37 = vcombine.high %v854_v15, %v858_v33  ;;  %v910_v30 = vld [vmem:[#allocation6 + $0x1248] sm:$0xff]  ;;  %v16823_v33 = vcombine.low %v902_v20, %v906_v21 }
 0x10a   : > { %2969 = vmatprep.subr.bf16.mxu0 %v16718_v38  ;;  %3092 = vmatprep.subr.bf16.mxu1 %v16720_v39  ;;  %v861_v38 = vld [vmem:[#allocation6 + $0x10c0] sm:$0xff]  ;;  %v914_v31 = vld [vmem:[#allocation6 + $0x1268] sm:$0xff] }
 0x10b   : > { %v865_v39 = vld [vmem:[#allocation6 + $0x10e0] sm:$0xff] }
 0x10c   : > { %v16781_v50 = vcombine.low %v861_v38, %v865_v39 }
 0x10d   : > { %2970 = vmatpush1.bf16.msra.mxu0 %v16717_v44  ;;  %3093 = vmatpush1.bf16.msra.mxu1 %v16719_v45  ;;  %v16782_v44 = vcombine.high %v861_v38, %v865_v39  ;;  %v16784_v45 = vcombine.high %v862_v40, %v866_v41  ;;  %v918_v38 = vld [vmem:[#allocation6 + $0x1288] sm:$0xff]  ;;  %v16831_v41 = vcombine.low %v910_v30, %v914_v31 }
 0x10e   : > { %2971 = vmatprep.subr.bf16.mxu0 %v16726_v46  ;;  %3094 = vmatprep.subr.bf16.mxu1 %v16728_v47  ;;  %v869_v46 = vld [vmem:[#allocation6 + $0x1100] sm:$0xff]  ;;  %v922_v39 = vld [vmem:[#allocation6 + $0x12a8] sm:$0xff] }
 0x10f   : > { %v873_v47 = vld [vmem:[#allocation6 + $0x1120] sm:$0xff] }
 0x110   : > { %v16789_v60 = vcombine.low %v869_v46, %v873_v47 }
 0x111   : > { %2972 = vmatpush1.bf16.msra.mxu0 %v16725_v52  ;;  %3095 = vmatpush1.bf16.msra.mxu1 %v16727_v54  ;;  %v16790_v52 = vcombine.high %v869_v46, %v873_v47  ;;  %v16792_v54 = vcombine.high %v870_v48, %v874_v49  ;;  %v926_v46 = vld [vmem:[#allocation6 + $0x12c8] sm:$0xff]  ;;  %v16839_v49 = vcombine.low %v918_v38, %v922_v39 }
 0x112   : > { %2973 = vmatprep.subr.bf16.mxu0 %v16734_v55  ;;  %3096 = vmatprep.subr.bf16.mxu1 %v16736_v56  ;;  %v877_v55 = vld [vmem:[#allocation6 + $0x1140] sm:$0xff]  ;;  %v930_v47 = vld [vmem:[#allocation6 + $0x12e8] sm:$0xff] }
 0x113   : > { %v881_v56 = vld [vmem:[#allocation6 + $0x1160] sm:$0xff] }
 0x114   : > { %v16797_v4 = vcombine.low %v877_v55, %v881_v56 }
 0x115   : > { %2974 = vmatpush1.bf16.msra.mxu0 %v16733_v62  ;;  %3097 = vmatpush1.bf16.msra.mxu1 %v16735_v63  ;;  %v16798_v62 = vcombine.high %v877_v55, %v881_v56  ;;  %v16800_v63 = vcombine.high %v878_v58, %v882_v59  ;;  %v934_v55 = vld [vmem:[#allocation6 + $0x1308] sm:$0xff]  ;;  %v16847_v59 = vcombine.low %v926_v46, %v930_v47 }
 0x116   : > { %2975 = vmatprep.subr.bf16.mxu0 %v16742_v0  ;;  %3098 = vmatprep.subr.bf16.mxu1 %v16744_v1  ;;  %v885_v0 = vld [vmem:[#allocation6 + $0x1180] sm:$0xff]  ;;  %v938_v56 = vld [vmem:[#allocation6 + $0x1328] sm:$0xff] }
 0x117   : > { %v889_v1 = vld [vmem:[#allocation6 + $0x11a0] sm:$0xff] }
 0x118   : > { %v16805_v13 = vcombine.low %v885_v0, %v889_v1 }
 0x119   : > { %2976 = vmatpush1.bf16.msra.mxu0 %v16741_v6  ;;  %3099 = vmatpush1.bf16.msra.mxu1 %v16743_v7  ;;  %v16806_v6 = vcombine.high %v885_v0, %v889_v1  ;;  %v16808_v7 = vcombine.high %v886_v2, %v890_v3  ;;  %v942_v0 = vld [vmem:[#allocation6 + $0x1348] sm:$0xff]  ;;  %v16855_v3 = vcombine.low %v934_v55, %v938_v56 }
 0x11a   : > { %2977 = vmatprep.subr.bf16.mxu0 %v16750_v8  ;;  %3100 = vmatprep.subr.bf16.mxu1 %v16752_v9  ;;  %v893_v8 = vld [vmem:[#allocation6 + $0x11c0] sm:$0xff]  ;;  %v946_v1 = vld [vmem:[#allocation6 + $0x1368] sm:$0xff] }
 0x11b   : > { %v897_v9 = vld [vmem:[#allocation6 + $0x11e0] sm:$0xff] }
 0x11c   : > { %v16813_v23 = vcombine.low %v893_v8, %v897_v9 }
 0x11d   : > { %2978 = vmatpush1.bf16.msra.mxu0 %v16749_v16  ;;  %3101 = vmatpush1.bf16.msra.mxu1 %v16751_v17  ;;  %v16814_v16 = vcombine.high %v893_v8, %v897_v9  ;;  %v16816_v17 = vcombine.high %v894_v10, %v898_v11  ;;  %v950_v8 = vld [vmem:[#allocation6 + $0x1388] sm:$0xff]  ;;  %v16863_v11 = vcombine.low %v942_v0, %v946_v1 }
 0x11e   : > { %2988 = vmatprep.subr.bf16.mxu0 %v16758_v18  ;;  %3111 = vmatprep.subr.bf16.mxu1 %v16760_v19  ;;  %v901_v18 = vld [vmem:[#allocation6 + $0x1200] sm:$0xff]  ;;  %v954_v9 = vld [vmem:[#allocation6 + $0x13a8] sm:$0xff] }
 0x11f   : > { %v905_v19 = vld [vmem:[#allocation6 + $0x1220] sm:$0xff] }
 0x120   : > { %2980 = vmatmul.mubr.bf16.vlgmr.msra.gmra.mrb[0].mxu0 %v19471_v53  ;;  %3103 = vmatmul.mubr.bf16.vlgmr.msra.gmra.mrb[0].mxu1 %v19471_v53  ;;  %v16821_v15 = vcombine.low %v901_v18, %v905_v19 }
 0x121   : > { %2989 = vmatpush1.bf16.msra.mxu0 %v16757_v26  ;;  %3112 = vmatpush1.bf16.msra.mxu1 %v16759_v27  ;;  %v16822_v26 = vcombine.high %v901_v18, %v905_v19  ;;  %v16824_v27 = vcombine.high %v902_v20, %v906_v21  ;;  %v958_v18 = vld [vmem:[#allocation6 + $0x13c8] sm:$0xff]  ;;  %v16871_v21 = vcombine.low %v950_v8, %v954_v9 }
 0x122   : > { %2990 = vmatprep.subr.bf16.mxu0 %v16766_v28  ;;  %3113 = vmatprep.subr.bf16.mxu1 %v16768_v29  ;;  %v909_v28 = vld [vmem:[#allocation6 + $0x1240] sm:$0xff]  ;;  %v962_v19 = vld [vmem:[#allocation6 + $0x13e8] sm:$0xff] }
 0x123   : > { %3020 = vmatprep.mubr.bf16.mxu0 %v19478_v32  ;;  %3143 = vmatprep.mubr.bf16.mxu1 %v19478_v32  ;;  %v913_v29 = vld [vmem:[#allocation6 + $0x1260] sm:$0xff] }
 0x124   : > { %v16829_v40 = vcombine.low %v909_v28, %v913_v29 }
 0x125   : > { %2991 = vmatpush1.bf16.msra.mxu0 %v16765_v34  ;;  %3114 = vmatpush1.bf16.msra.mxu1 %v16767_v35  ;;  %v16830_v34 = vcombine.high %v909_v28, %v913_v29  ;;  %v16832_v35 = vcombine.high %v910_v30, %v914_v31  ;;  %v584_v28 = vld [vmem:[#allocation6 + $0x818] sm:$0xff]  ;;  %v16879_v31 = vcombine.low %v958_v18, %v962_v19 }
 0x126   : > { %2992 = vmatprep.subr.bf16.mxu0 %v16774_v36  ;;  %3115 = vmatprep.subr.bf16.mxu1 %v16776_v37  ;;  %v917_v36 = vld [vmem:[#allocation6 + $0x1280] sm:$0xff]  ;;  %v588_v29 = vld [vmem:[#allocation6 + $0x838] sm:$0xff] }
 0x127   : > { %v921_v37 = vld [vmem:[#allocation6 + $0x12a0] sm:$0xff] }
 0x128   : > { %v16837_v48 = vcombine.low %v917_v36, %v921_v37 }
 0x129   : > { %2993 = vmatpush1.bf16.msra.mxu0 %v16773_v42  ;;  %3116 = vmatpush1.bf16.msra.mxu1 %v16775_v43  ;;  %v16838_v42 = vcombine.high %v917_v36, %v921_v37  ;;  %v16840_v43 = vcombine.high %v918_v38, %v922_v39  ;;  %v19486_v36 = vcombine.low %v19474_v25, %v19474_v25  ;;  %v592_v37 = vld [vmem:[#allocation6 + $0x858] sm:$0xff] }
 0x12a   : > { %2994 = vmatprep.subr.bf16.mxu0 %v16782_v44  ;;  %3117 = vmatprep.subr.bf16.mxu1 %v16784_v45  ;;  %v925_v44 = vld [vmem:[#allocation6 + $0x12c0] sm:$0xff]  ;;  %v596_v38 = vld [vmem:[#allocation6 + $0x878] sm:$0xff] }
 0x12b   : > { %v929_v45 = vld [vmem:[#allocation6 + $0x12e0] sm:$0xff] }
 0x12c   : > { %v16845_v58 = vcombine.low %v925_v44, %v929_v45 }
 0x12d   : > { %2995 = vmatpush1.bf16.msra.mxu0 %v16781_v50  ;;  %3118 = vmatpush1.bf16.msra.mxu1 %v16783_v51  ;;  %v16846_v50 = vcombine.high %v925_v44, %v929_v45  ;;  %v16848_v51 = vcombine.high %v926_v46, %v930_v47  ;;  %v603_v44 = vld [vmem:[#allocation6 + $0x8b0] sm:$0xff]  ;;  %v600_v45 = vld [vmem:[#allocation6 + $0x898] sm:$0xff]  ;;  %v16515_v47 = vcombine.low %v592_v37, %v596_v38 }
 0x12e   : > { %2996 = vmatprep.subr.bf16.mxu0 %v16790_v52  ;;  %3119 = vmatprep.subr.bf16.mxu1 %v16792_v54  ;;  %v933_v52 = vld [vmem:[#allocation6 + $0x1300] sm:$0xff]  ;;  %v604_v46 = vld [vmem:[#allocation6 + $0x8b8] sm:$0xff] }
 0x12f   : > { %v937_v54 = vld [vmem:[#allocation6 + $0x1320] sm:$0xff] }
 0x130   : > { %v16853_v2 = vcombine.low %v933_v52, %v937_v54 }
 0x131   : > { %2997 = vmatpush1.bf16.msra.mxu0 %v16789_v60  ;;  %3120 = vmatpush1.bf16.msra.mxu1 %v16791_v61  ;;  %v16854_v60 = vcombine.high %v933_v52, %v937_v54  ;;  %v16856_v61 = vcombine.high %v934_v55, %v938_v56  ;;  %v608_v52 = vld [vmem:[#allocation6 + $0x8d8] sm:$0xff]  ;;  %v16523_v56 = vcombine.low %v600_v45, %v604_v46 }
 0x132   : > { %2998 = vmatprep.subr.bf16.mxu0 %v16798_v62  ;;  %3121 = vmatprep.subr.bf16.mxu1 %v16800_v63  ;;  %v941_v62 = vld [vmem:[#allocation6 + $0x1340] sm:$0xff]  ;;  %v612_v54 = vld [vmem:[#allocation6 + $0x8f8] sm:$0xff] }
 0x133   : > { %v945_v63 = vld [vmem:[#allocation6 + $0x1360] sm:$0xff] }
 0x134   : > { %v16861_v10 = vcombine.low %v941_v62, %v945_v63 }
 0x135   : > { %2999 = vmatpush1.bf16.msra.mxu0 %v16797_v4  ;;  %3122 = vmatpush1.bf16.msra.mxu1 %v16799_v5  ;;  %v16862_v4 = vcombine.high %v941_v62, %v945_v63  ;;  %v16864_v5 = vcombine.high %v942_v0, %v946_v1  ;;  %v616_v62 = vld [vmem:[#allocation6 + $0x918] sm:$0xff]  ;;  %v16531_v1 = vcombine.low %v608_v52, %v612_v54 }
 0x136   : > { %3000 = vmatprep.subr.bf16.mxu0 %v16806_v6  ;;  %3123 = vmatprep.subr.bf16.mxu1 %v16808_v7  ;;  %v949_v6 = vld [vmem:[#allocation6 + $0x1380] sm:$0xff]  ;;  %v620_v63 = vld [vmem:[#allocation6 + $0x938] sm:$0xff] }
 0x137   : > { %v953_v7 = vld [vmem:[#allocation6 + $0x13a0] sm:$0xff] }
 0x138   : > { %v16869_v20 = vcombine.low %v949_v6, %v953_v7 }
 0x139   : > { %3001 = vmatpush1.bf16.msra.mxu0 %v16805_v13  ;;  %3124 = vmatpush1.bf16.msra.mxu1 %v16807_v14  ;;  %v16870_v13 = vcombine.high %v949_v6, %v953_v7  ;;  %v16872_v14 = vcombine.high %v950_v8, %v954_v9  ;;  %v628_v6 = vld [vmem:[#allocation6 + $0x978] sm:$0xff]  ;;  %v16539_v8 = vcombine.low %v616_v62, %v620_v63 }
 0x13a   : > { %3002 = vmatprep.subr.bf16.mxu0 %v16814_v16  ;;  %3125 = vmatprep.subr.bf16.mxu1 %v16816_v17  ;;  %v957_v16 = vld [vmem:[#allocation6 + $0x13c0] sm:$0xff] }
 0x13b   : > { %v961_v17 = vld [vmem:[#allocation6 + $0x13e0] sm:$0xff] }
 0x13c   : > { %v16877_v30 = vcombine.low %v957_v16, %v961_v17 }
 0x13d   : > { %3003 = vmatpush1.bf16.msra.mxu0 %v16813_v23  ;;  %3126 = vmatpush1.bf16.msra.mxu1 %v16815_v24  ;;  %v16878_v23 = vcombine.high %v957_v16, %v961_v17  ;;  %v16880_v24 = vcombine.high %v958_v18, %v962_v19  ;;  %v636_v16 = vld [vmem:[#allocation6 + $0x9b8] sm:$0xff] }
 0x13e   : > { %3004 = vmatprep.subr.bf16.mxu0 %v16822_v26  ;;  %3127 = vmatprep.subr.bf16.mxu1 %v16824_v27  ;;  %v583_v26 = vld [vmem:[#allocation6 + $0x810] sm:$0xff] }
 0x13f   : > { %v587_v27 = vld [vmem:[#allocation6 + $0x830] sm:$0xff] }
 0x140   : > { %v16505_v39 = vcombine.low %v583_v26, %v587_v27 }
 0x141   : > { %3005 = vmatpush1.bf16.msra.mxu0 %v16821_v15  ;;  %3128 = vmatpush1.bf16.msra.mxu1 %v16823_v33  ;;  %v16506_v15 = vcombine.high %v583_v26, %v587_v27  ;;  %v16508_v33 = vcombine.high %v584_v28, %v588_v29  ;;  %v644_v26 = vld [vmem:[#allocation6 + $0x9f8] sm:$0xff] }
 0x142   : > { %3006 = vmatprep.subr.bf16.mxu0 %v16830_v34  ;;  %3129 = vmatprep.subr.bf16.mxu1 %v16832_v35  ;;  %v591_v34 = vld [vmem:[#allocation6 + $0x850] sm:$0xff] }
 0x143   : > { %v595_v35 = vld [vmem:[#allocation6 + $0x870] sm:$0xff] }
 0x144   : > { %v16513_v25 = vcombine.low %v591_v34, %v595_v35 }
 0x145   : > { %3007 = vmatpush1.bf16.msra.mxu0 %v16829_v40  ;;  %3130 = vmatpush1.bf16.msra.mxu1 %v16831_v41  ;;  %v16507_v40 = vcombine.low %v584_v28, %v588_v29  ;;  %v16514_v41 = vcombine.high %v591_v34, %v595_v35  ;;  %v652_v34 = vld [vmem:[#allocation6 + $0xa38] sm:$0xff] }
 0x146   : > { %3008 = vmatprep.subr.bf16.mxu0 %v16838_v42  ;;  %3131 = vmatprep.subr.bf16.mxu1 %v16840_v43  ;;  %v16516_v42 = vcombine.high %v592_v37, %v596_v38  ;;  %v599_v43 = vld [vmem:[#allocation6 + $0x890] sm:$0xff] }
 0x147   : > { %v16521_v55 = vcombine.low %v599_v43, %v603_v44 }
 0x149   : > { %3009 = vmatpush1.bf16.msra.mxu0 %v16837_v48  ;;  %3132 = vmatpush1.bf16.msra.mxu1 %v16839_v49  ;;  %v16522_v48 = vcombine.high %v599_v43, %v603_v44  ;;  %v16524_v49 = vcombine.high %v600_v45, %v604_v46  ;;  %v660_v43 = vld [vmem:[#allocation6 + $0xa78] sm:$0xff] }
 0x14a   : > { %3010 = vmatprep.subr.bf16.mxu0 %v16846_v50  ;;  %3133 = vmatprep.subr.bf16.mxu1 %v16848_v51  ;;  %v607_v50 = vld [vmem:[#allocation6 + $0x8d0] sm:$0xff] }
 0x14b   : > { %v611_v51 = vld [vmem:[#allocation6 + $0x8f0] sm:$0xff] }
 0x14c   : > { %v16529_v0 = vcombine.low %v607_v50, %v611_v51 }
 0x14d   : > { %3011 = vmatpush1.bf16.msra.mxu0 %v16845_v58  ;;  %3134 = vmatpush1.bf16.msra.mxu1 %v16847_v59  ;;  %v16530_v58 = vcombine.high %v607_v50, %v611_v51  ;;  %v16532_v59 = vcombine.high %v608_v52, %v612_v54  ;;  %v668_v50 = vld [vmem:[#allocation6 + $0xab8] sm:$0xff] }
 0x14e   : > { %3012 = vmatprep.subr.bf16.mxu0 %v16854_v60  ;;  %3135 = vmatprep.subr.bf16.mxu1 %v16856_v61  ;;  %v615_v60 = vld [vmem:[#allocation6 + $0x910] sm:$0xff] }
 0x14f   : > { %v619_v61 = vld [vmem:[#allocation6 + $0x930] sm:$0xff] }
 0x150   : > { %v16537_v7 = vcombine.low %v615_v60, %v619_v61 }
 0x151   : > { %3013 = vmatpush1.bf16.msra.mxu0 %v16853_v2  ;;  %3136 = vmatpush1.bf16.msra.mxu1 %v16855_v3  ;;  %v16538_v2 = vcombine.high %v615_v60, %v619_v61  ;;  %v623_v3 = vld [vmem:[#allocation6 + $0x950] sm:$0xff]  ;;  %v676_v60 = vld [vmem:[#allocation6 + $0xaf8] sm:$0xff] }
 0x152   : > { %3014 = vmatprep.subr.bf16.mxu0 %v16862_v4  ;;  %3137 = vmatprep.subr.bf16.mxu1 %v16864_v5  ;;  %v627_v4 = vld [vmem:[#allocation6 + $0x970] sm:$0xff]  ;;  %v624_v5 = vld [vmem:[#allocation6 + $0x958] sm:$0xff] }
 0x153   : > { %v16546_v9 = vcombine.high %v623_v3, %v627_v4  ;;  %v16545_v17 = vcombine.low %v623_v3, %v627_v4  ;;  %v16547_v18 = vcombine.low %v624_v5, %v628_v6  ;;  %v684_v3 = vld [vmem:[#allocation6 + $0xb38] sm:$0xff] }
 0x155   : > { %3015 = vmatpush1.bf16.msra.mxu0 %v16861_v10  ;;  %3138 = vmatpush1.bf16.msra.mxu1 %v16863_v11  ;;  %v16548_v10 = vcombine.high %v624_v5, %v628_v6  ;;  %v631_v11 = vld [vmem:[#allocation6 + $0x990] sm:$0xff] }
 0x156   : > { %3016 = vmatprep.subr.bf16.mxu0 %v16870_v13  ;;  %3139 = vmatprep.subr.bf16.mxu1 %v16872_v14  ;;  %v635_v13 = vld [vmem:[#allocation6 + $0x9b0] sm:$0xff]  ;;  %v632_v14 = vld [vmem:[#allocation6 + $0x998] sm:$0xff] }
 0x157   : > { %v16554_v19 = vcombine.high %v631_v11, %v635_v13  ;;  %v16553_v27 = vcombine.low %v631_v11, %v635_v13  ;;  %v16555_v28 = vcombine.low %v632_v14, %v636_v16  ;;  %v692_v11 = vld [vmem:[#allocation6 + $0xb78] sm:$0xff] }
 0x159   : > { %3017 = vmatpush1.bf16.msra.mxu0 %v16869_v20  ;;  %3140 = vmatpush1.bf16.msra.mxu1 %v16871_v21  ;;  %v16556_v20 = vcombine.high %v632_v14, %v636_v16  ;;  %v639_v21 = vld [vmem:[#allocation6 + $0x9d0] sm:$0xff] }
 0x15a   : > { %3018 = vmatprep.subr.bf16.mxu0 %v16878_v23  ;;  %3141 = vmatprep.subr.bf16.mxu1 %v16880_v24  ;;  %v643_v23 = vld [vmem:[#allocation6 + $0x9f0] sm:$0xff]  ;;  %v640_v24 = vld [vmem:[#allocation6 + $0x9d8] sm:$0xff] }
 0x15b   : > { %v16562_v29 = vcombine.high %v639_v21, %v643_v23  ;;  %v16561_v35 = vcombine.low %v639_v21, %v643_v23  ;;  %v16563_v37 = vcombine.low %v640_v24, %v644_v26  ;;  %v700_v21 = vld [vmem:[#allocation6 + $0xbb8] sm:$0xff] }
 0x15d   : > { %3019 = vmatpush1.bf16.msra.mxu0 %v16877_v30  ;;  %3142 = vmatpush1.bf16.msra.mxu1 %v16879_v31  ;;  %v16564_v30 = vcombine.high %v640_v24, %v644_v26  ;;  %v647_v31 = vld [vmem:[#allocation6 + $0xa10] sm:$0xff] }
 0x15e   : > { %3152 = vmatprep.subr.bf16.mxu0 %v16506_v15  ;;  %3275 = vmatprep.subr.bf16.mxu1 %v16508_v33  ;;  %v651_v15 = vld [vmem:[#allocation6 + $0xa30] sm:$0xff]  ;;  %v648_v33 = vld [vmem:[#allocation6 + $0xa18] sm:$0xff] }
 0x15f   : > { %v16570_v38 = vcombine.high %v647_v31, %v651_v15  ;;  %v16569_v44 = vcombine.low %v647_v31, %v651_v15  ;;  %v16571_v45 = vcombine.low %v648_v33, %v652_v34  ;;  %v708_v31 = vld [vmem:[#allocation6 + $0xbf8] sm:$0xff] }
 0x160   : > { %3021 = vmatmul.mubr.bf16.vlgmr.msra.gmra.mrb[0].mxu0 %v19486_v36  ;;  %3144 = vmatmul.mubr.bf16.vlgmr.msra.gmra.mrb[0].mxu1 %v19486_v36 }
 0x161   : > { %3153 = vmatpush1.bf16.msra.mxu0 %v16505_v39  ;;  %3276 = vmatpush1.bf16.msra.mxu1 %v16507_v40  ;;  %v16572_v39 = vcombine.high %v648_v33, %v652_v34  ;;  %v655_v40 = vld [vmem:[#allocation6 + $0xa50] sm:$0xff] }
 0x162   : > { %3154 = vmatprep.subr.bf16.mxu0 %v16514_v41  ;;  %3277 = vmatprep.subr.bf16.mxu1 %v16516_v42  ;;  %v659_v41 = vld [vmem:[#allocation6 + $0xa70] sm:$0xff]  ;;  %v656_v42 = vld [vmem:[#allocation6 + $0xa58] sm:$0xff] }
 0x163   : > { %3184 = vmatprep.mubr.bf16.mxu0 %v19450_v57  ;;  %3307 = vmatprep.mubr.bf16.mxu1 %v19450_v57  ;;  %v16540_v57 = vcombine.high %v616_v62, %v620_v63  ;;  %v16578_v46 = vcombine.high %v655_v40, %v659_v41  ;;  %v16577_v51 = vcombine.low %v655_v40, %v659_v41  ;;  %v716_v40 = vld [vmem:[#allocation6 + $0xc38] sm:$0xff] }
 0x164   : > { %v16579_v52 = vcombine.low %v656_v42, %v660_v43 }
 0x165   : > { %3155 = vmatpush1.bf16.msra.mxu0 %v16513_v25  ;;  %3278 = vmatpush1.bf16.msra.mxu1 %v16515_v47  ;;  %v16580_v25 = vcombine.high %v656_v42, %v660_v43  ;;  %v663_v47 = vld [vmem:[#allocation6 + $0xa90] sm:$0xff] }
 0x166   : > { %3156 = vmatprep.subr.bf16.mxu0 %v16522_v48  ;;  %3279 = vmatprep.subr.bf16.mxu1 %v16524_v49  ;;  %v667_v48 = vld [vmem:[#allocation6 + $0xab0] sm:$0xff]  ;;  %v664_v49 = vld [vmem:[#allocation6 + $0xa98] sm:$0xff] }
 0x167   : > { %v16586_v54 = vcombine.high %v663_v47, %v667_v48  ;;  %v16585_v61 = vcombine.low %v663_v47, %v667_v48  ;;  %v16587_v62 = vcombine.low %v664_v49, %v668_v50  ;;  %v724_v47 = vld [vmem:[#allocation6 + $0xc78] sm:$0xff] }
 0x169   : > { %3157 = vmatpush1.bf16.msra.mxu0 %v16521_v55  ;;  %3280 = vmatpush1.bf16.msra.mxu1 %v16523_v56  ;;  %v16588_v55 = vcombine.high %v664_v49, %v668_v50  ;;  %v671_v56 = vld [vmem:[#allocation6 + $0xad0] sm:$0xff] }
 0x16a   : > { %3158 = vmatprep.subr.bf16.mxu0 %v16530_v58  ;;  %3281 = vmatprep.subr.bf16.mxu1 %v16532_v59  ;;  %v675_v58 = vld [vmem:[#allocation6 + $0xaf0] sm:$0xff]  ;;  %v672_v59 = vld [vmem:[#allocation6 + $0xad8] sm:$0xff] }
 0x16b   : > { %v16594_v63 = vcombine.high %v671_v56, %v675_v58  ;;  %v16593_v4 = vcombine.low %v671_v56, %v675_v58  ;;  %v16595_v5 = vcombine.low %v672_v59, %v676_v60  ;;  %v732_v56 = vld [vmem:[#allocation6 + $0xcb8] sm:$0xff] }
 0x16d   : > { %3159 = vmatpush1.bf16.msra.mxu0 %v16529_v0  ;;  %3282 = vmatpush1.bf16.msra.mxu1 %v16531_v1  ;;  %v16596_v0 = vcombine.high %v672_v59, %v676_v60  ;;  %v679_v1 = vld [vmem:[#allocation6 + $0xb10] sm:$0xff] }
 0x16e   : > { %3160 = vmatprep.subr.bf16.mxu0 %v16538_v2  ;;  %3283 = vmatprep.subr.bf16.mxu1 %v16540_v57  ;;  %v683_v2 = vld [vmem:[#allocation6 + $0xb30] sm:$0xff]  ;;  %v680_v57 = vld [vmem:[#allocation6 + $0xb18] sm:$0xff] }
 0x16f   : > { %v16602_v6 = vcombine.high %v679_v1, %v683_v2  ;;  %v16601_v13 = vcombine.low %v679_v1, %v683_v2  ;;  %v16603_v14 = vcombine.low %v680_v57, %v684_v3  ;;  %v740_v1 = vld [vmem:[#allocation6 + $0xcf8] sm:$0xff] }
 0x171   : > { %3161 = vmatpush1.bf16.msra.mxu0 %v16537_v7  ;;  %3284 = vmatpush1.bf16.msra.mxu1 %v16539_v8  ;;  %v16604_v7 = vcombine.high %v680_v57, %v684_v3  ;;  %v687_v8 = vld [vmem:[#allocation6 + $0xb50] sm:$0xff] }
 0x172   : > { %3162 = vmatprep.subr.bf16.mxu0 %v16546_v9  ;;  %3285 = vmatprep.subr.bf16.mxu1 %v16548_v10  ;;  %v691_v9 = vld [vmem:[#allocation6 + $0xb70] sm:$0xff]  ;;  %v688_v10 = vld [vmem:[#allocation6 + $0xb58] sm:$0xff] }
 0x173   : > { %v16610_v16 = vcombine.high %v687_v8, %v691_v9  ;;  %v16609_v23 = vcombine.low %v687_v8, %v691_v9  ;;  %v16611_v24 = vcombine.low %v688_v10, %v692_v11 }
 0x175   : > { %3163 = vmatpush1.bf16.msra.mxu0 %v16545_v17  ;;  %3286 = vmatpush1.bf16.msra.mxu1 %v16547_v18  ;;  %v16612_v17 = vcombine.high %v688_v10, %v692_v11  ;;  %v695_v18 = vld [vmem:[#allocation6 + $0xb90] sm:$0xff] }
 0x176   : > { %3164 = vmatprep.subr.bf16.mxu0 %v16554_v19  ;;  %3287 = vmatprep.subr.bf16.mxu1 %v16556_v20  ;;  %v699_v19 = vld [vmem:[#allocation6 + $0xbb0] sm:$0xff]  ;;  %v696_v20 = vld [vmem:[#allocation6 + $0xb98] sm:$0xff] }
 0x177   : > { %v16618_v26 = vcombine.high %v695_v18, %v699_v19  ;;  %v16617_v15 = vcombine.low %v695_v18, %v699_v19  ;;  %v16619_v33 = vcombine.low %v696_v20, %v700_v21  ;;  %v751_v11 = vld [vmem:[#allocation6 + $0xd50] sm:$0xff] }
 0x179   : > { %3165 = vmatpush1.bf16.msra.mxu0 %v16553_v27  ;;  %3288 = vmatpush1.bf16.msra.mxu1 %v16555_v28  ;;  %v16620_v27 = vcombine.high %v696_v20, %v700_v21  ;;  %v703_v28 = vld [vmem:[#allocation6 + $0xbd0] sm:$0xff] }
 0x17a   : > { %3166 = vmatprep.subr.bf16.mxu0 %v16562_v29  ;;  %3289 = vmatprep.subr.bf16.mxu1 %v16564_v30  ;;  %v707_v29 = vld [vmem:[#allocation6 + $0xbf0] sm:$0xff]  ;;  %v704_v30 = vld [vmem:[#allocation6 + $0xbd8] sm:$0xff] }
 0x17b   : > { %v16626_v34 = vcombine.high %v703_v28, %v707_v29  ;;  %v16625_v41 = vcombine.low %v703_v28, %v707_v29  ;;  %v16627_v42 = vcombine.low %v704_v30, %v708_v31  ;;  %v759_v21 = vld [vmem:[#allocation6 + $0xd90] sm:$0xff] }
 0x17d   : > { %3167 = vmatpush1.bf16.msra.mxu0 %v16561_v35  ;;  %3290 = vmatpush1.bf16.msra.mxu1 %v16563_v37  ;;  %v16628_v35 = vcombine.high %v704_v30, %v708_v31  ;;  %v711_v37 = vld [vmem:[#allocation6 + $0xc10] sm:$0xff] }
 0x17e   : > { %3168 = vmatprep.subr.bf16.mxu0 %v16570_v38  ;;  %3291 = vmatprep.subr.bf16.mxu1 %v16572_v39  ;;  %v715_v38 = vld [vmem:[#allocation6 + $0xc30] sm:$0xff]  ;;  %v712_v39 = vld [vmem:[#allocation6 + $0xc18] sm:$0xff] }
 0x17f   : > { %v16634_v43 = vcombine.high %v711_v37, %v715_v38  ;;  %v16633_v48 = vcombine.low %v711_v37, %v715_v38  ;;  %v16635_v49 = vcombine.low %v712_v39, %v716_v40  ;;  %v767_v31 = vld [vmem:[#allocation6 + $0xdd0] sm:$0xff] }
 0x181   : > { %3169 = vmatpush1.bf16.msra.mxu0 %v16569_v44  ;;  %3292 = vmatpush1.bf16.msra.mxu1 %v16571_v45  ;;  %v16636_v44 = vcombine.high %v712_v39, %v716_v40  ;;  %v719_v45 = vld [vmem:[#allocation6 + $0xc50] sm:$0xff] }
 0x182   : > { %3170 = vmatprep.subr.bf16.mxu0 %v16578_v46  ;;  %3293 = vmatprep.subr.bf16.mxu1 %v16580_v25  ;;  %v723_v46 = vld [vmem:[#allocation6 + $0xc70] sm:$0xff]  ;;  %v720_v25 = vld [vmem:[#allocation6 + $0xc58] sm:$0xff] }
 0x183   : > { %v16642_v50 = vcombine.high %v719_v45, %v723_v46  ;;  %v16641_v58 = vcombine.low %v719_v45, %v723_v46  ;;  %v16643_v59 = vcombine.low %v720_v25, %v724_v47  ;;  %v775_v40 = vld [vmem:[#allocation6 + $0xe10] sm:$0xff] }
 0x185   : > { %3171 = vmatpush1.bf16.msra.mxu0 %v16577_v51  ;;  %3294 = vmatpush1.bf16.msra.mxu1 %v16579_v52  ;;  %v16644_v51 = vcombine.high %v720_v25, %v724_v47  ;;  %v727_v52 = vld [vmem:[#allocation6 + $0xc90] sm:$0xff] }
 0x186   : > { %3172 = vmatprep.subr.bf16.mxu0 %v16586_v54  ;;  %3295 = vmatprep.subr.bf16.mxu1 %v16588_v55  ;;  %v731_v54 = vld [vmem:[#allocation6 + $0xcb0] sm:$0xff]  ;;  %v728_v55 = vld [vmem:[#allocation6 + $0xc98] sm:$0xff] }
 0x187   : > { %v16650_v60 = vcombine.high %v727_v52, %v731_v54  ;;  %v16649_v2 = vcombine.low %v727_v52, %v731_v54  ;;  %v783_v47 = vld [vmem:[#allocation6 + $0xe50] sm:$0xff] }
 0x189   : > { %3173 = vmatpush1.bf16.msra.mxu0 %v16585_v61  ;;  %3296 = vmatpush1.bf16.msra.mxu1 %v16587_v62  ;;  %v16652_v61 = vcombine.high %v728_v55, %v732_v56  ;;  %v735_v62 = vld [vmem:[#allocation6 + $0xcd0] sm:$0xff] }
 0x18a   : > { %3174 = vmatprep.subr.bf16.mxu0 %v16594_v63  ;;  %3297 = vmatprep.subr.bf16.mxu1 %v16596_v0  ;;  %v739_v63 = vld [vmem:[#allocation6 + $0xcf0] sm:$0xff]  ;;  %v736_v0 = vld [vmem:[#allocation6 + $0xcd8] sm:$0xff] }
 0x18b   : > { %v16658_v57 = vcombine.high %v735_v62, %v739_v63  ;;  %v16660_v3 = vcombine.high %v736_v0, %v740_v1  ;;  %v16657_v8 = vcombine.low %v735_v62, %v739_v63  ;;  %v16659_v9 = vcombine.low %v736_v0, %v740_v1  ;;  %v799_v1 = vld [vmem:[#allocation6 + $0xed0] sm:$0xff] }
 0x18d   : > { %3175 = vmatpush1.bf16.msra.mxu0 %v16593_v4  ;;  %3298 = vmatpush1.bf16.msra.mxu1 %v16595_v5  ;;  %v743_v4 = vld [vmem:[#allocation6 + $0xd10] sm:$0xff] }
 0x18e   : > { %3176 = vmatprep.subr.bf16.mxu0 %v16602_v6  ;;  %3299 = vmatprep.subr.bf16.mxu1 %v16604_v7  ;;  %v747_v5 = vld [vmem:[#allocation6 + $0xd30] sm:$0xff]  ;;  %v744_v6 = vld [vmem:[#allocation6 + $0xd18] sm:$0xff] }
 0x18f   : > { %v748_v7 = vld [vmem:[#allocation6 + $0xd38] sm:$0xff]  ;;  %v16666_v10 = vcombine.high %v743_v4, %v747_v5 }
 0x190   : > { %v16667_v18 = vcombine.low %v744_v6, %v748_v7 }
 0x191   : > { %3177 = vmatpush1.bf16.msra.mxu0 %v16601_v13  ;;  %3300 = vmatpush1.bf16.msra.mxu1 %v16603_v14  ;;  %v755_v13 = vld [vmem:[#allocation6 + $0xd70] sm:$0xff]  ;;  %v752_v14 = vld [vmem:[#allocation6 + $0xd58] sm:$0xff] }
 0x192   : > { %3178 = vmatprep.subr.bf16.mxu0 %v16610_v16  ;;  %3301 = vmatprep.subr.bf16.mxu1 %v16612_v17  ;;  %v756_v16 = vld [vmem:[#allocation6 + $0xd78] sm:$0xff]  ;;  %v16665_v17 = vcombine.low %v743_v4, %v747_v5  ;;  %v16674_v19 = vcombine.high %v751_v11, %v755_v13 }
 0x193   : > { %v16676_v20 = vcombine.high %v752_v14, %v756_v16  ;;  %v16675_v28 = vcombine.low %v752_v14, %v756_v16  ;;  %v815_v16 = vld [vmem:[#allocation6 + $0xf50] sm:$0xff] }
 0x195   : > { %3179 = vmatpush1.bf16.msra.mxu0 %v16609_v23  ;;  %3302 = vmatpush1.bf16.msra.mxu1 %v16611_v24  ;;  %v763_v23 = vld [vmem:[#allocation6 + $0xdb0] sm:$0xff]  ;;  %v760_v24 = vld [vmem:[#allocation6 + $0xd98] sm:$0xff] }
 0x196   : > { %3180 = vmatprep.subr.bf16.mxu0 %v16618_v26  ;;  %3303 = vmatprep.subr.bf16.mxu1 %v16620_v27  ;;  %v764_v26 = vld [vmem:[#allocation6 + $0xdb8] sm:$0xff]  ;;  %v16673_v27 = vcombine.low %v751_v11, %v755_v13  ;;  %v16682_v29 = vcombine.high %v759_v21, %v763_v23 }
 0x197   : > { %v16684_v30 = vcombine.high %v760_v24, %v764_v26  ;;  %v16683_v37 = vcombine.low %v760_v24, %v764_v26  ;;  %v823_v26 = vld [vmem:[#allocation6 + $0xf90] sm:$0xff] }
 0x199   : > { %3181 = vmatpush1.bf16.msra.mxu0 %v16617_v15  ;;  %3304 = vmatpush1.bf16.msra.mxu1 %v16619_v33  ;;  %v771_v15 = vld [vmem:[#allocation6 + $0xdf0] sm:$0xff]  ;;  %v768_v33 = vld [vmem:[#allocation6 + $0xdd8] sm:$0xff] }
 0x19a   : > { %3182 = vmatprep.subr.bf16.mxu0 %v16626_v34  ;;  %3305 = vmatprep.subr.bf16.mxu1 %v16628_v35  ;;  %v772_v34 = vld [vmem:[#allocation6 + $0xdf8] sm:$0xff]  ;;  %v16681_v35 = vcombine.low %v759_v21, %v763_v23  ;;  %v16690_v38 = vcombine.high %v767_v31, %v771_v15 }
 0x19b   : > { %v16692_v39 = vcombine.high %v768_v33, %v772_v34  ;;  %v16691_v45 = vcombine.low %v768_v33, %v772_v34  ;;  %v831_v34 = vld [vmem:[#allocation6 + $0xfd0] sm:$0xff] }
 0x19d   : > { %3183 = vmatpush1.bf16.msra.mxu0 %v16625_v41  ;;  %3306 = vmatpush1.bf16.msra.mxu1 %v16627_v42  ;;  %v779_v41 = vld [vmem:[#allocation6 + $0xe30] sm:$0xff]  ;;  %v776_v42 = vld [vmem:[#allocation6 + $0xe18] sm:$0xff] }
 0x19e   : > { %3193 = vmatprep.subr.bf16.mxu0 %v16634_v43  ;;  %3316 = vmatprep.subr.bf16.mxu1 %v16636_v44  ;;  %v780_v43 = vld [vmem:[#allocation6 + $0xe38] sm:$0xff]  ;;  %v16689_v44 = vcombine.low %v767_v31, %v771_v15  ;;  %v16698_v46 = vcombine.high %v775_v40, %v779_v41 }
 0x19f   : > { %v16700_v25 = vcombine.high %v776_v42, %v780_v43  ;;  %v16699_v52 = vcombine.low %v776_v42, %v780_v43  ;;  %v839_v43 = vld [vmem:[#allocation6 + $0x1010] sm:$0xff] }
 0x1a0   : > { %3185 = vmatmul.mubr.bf16.vlgmr.msra.gmra.mrb[4].mxu0 %v19456_v12  ;;  %3308 = vmatmul.mubr.bf16.vlgmr.msra.gmra.mrb[4].mxu1 %v19456_v12  ;;  %v16651_v12 = vcombine.low %v728_v55, %v732_v56  ;;  %v791_v56 = vld [vmem:[#allocation6 + $0xe90] sm:$0xff] }
 0x1a1   : > { %3194 = vmatpush1.bf16.msra.mxu0 %v16633_v48  ;;  %3317 = vmatpush1.bf16.msra.mxu1 %v16635_v49  ;;  %v787_v48 = vld [vmem:[#allocation6 + $0xe70] sm:$0xff]  ;;  %v784_v49 = vld [vmem:[#allocation6 + $0xe58] sm:$0xff] }
 0x1a2   : > { %3195 = vmatprep.subr.bf16.mxu0 %v16642_v50  ;;  %3318 = vmatprep.subr.bf16.mxu1 %v16644_v51  ;;  %v788_v50 = vld [vmem:[#allocation6 + $0xe78] sm:$0xff]  ;;  %v16697_v51 = vcombine.low %v775_v40, %v779_v41  ;;  %v16706_v54 = vcombine.high %v783_v47, %v787_v48 }
 0x1a3   : > { %3225 = vmatprep.mubr.bf16.mxu0 %v19463_v22  ;;  %3348 = vmatprep.mubr.bf16.mxu1 %v19463_v22  ;;  %v16668_v22 = vcombine.high %v744_v6, %v748_v7  ;;  %v16708_v55 = vcombine.high %v784_v49, %v788_v50  ;;  %v16707_v62 = vcombine.low %v784_v49, %v788_v50  ;;  %v807_v7 = vld [vmem:[#allocation6 + $0xf10] sm:$0xff] }
 0x1a4   : > { %v847_v50 = vld [vmem:[#allocation6 + $0x1050] sm:$0xff] }
 0x1a5   : > { %3196 = vmatpush1.bf16.msra.mxu0 %v16641_v58  ;;  %3319 = vmatpush1.bf16.msra.mxu1 %v16643_v59  ;;  %v795_v58 = vld [vmem:[#allocation6 + $0xeb0] sm:$0xff]  ;;  %v792_v59 = vld [vmem:[#allocation6 + $0xe98] sm:$0xff] }
 0x1a6   : > { %3197 = vmatprep.subr.bf16.mxu0 %v16650_v60  ;;  %3320 = vmatprep.subr.bf16.mxu1 %v16652_v61  ;;  %v796_v60 = vld [vmem:[#allocation6 + $0xeb8] sm:$0xff]  ;;  %v16705_v61 = vcombine.low %v783_v47, %v787_v48  ;;  %v16714_v63 = vcombine.high %v791_v56, %v795_v58 }
 0x1a7   : > { %v16716_v0 = vcombine.high %v792_v59, %v796_v60  ;;  %v16715_v4 = vcombine.low %v792_v59, %v796_v60  ;;  %v855_v60 = vld [vmem:[#allocation6 + $0x1090] sm:$0xff] }
 0x1a9   : > { %3198 = vmatpush1.bf16.msra.mxu0 %v16649_v2  ;;  %3321 = vmatpush1.bf16.msra.mxu1 %v16651_v12  ;;  %v803_v2 = vld [vmem:[#allocation6 + $0xef0] sm:$0xff]  ;;  %v800_v12 = vld [vmem:[#allocation6 + $0xed8] sm:$0xff] }
 0x1aa   : > { %3199 = vmatprep.subr.bf16.mxu0 %v16658_v57  ;;  %3322 = vmatprep.subr.bf16.mxu1 %v16660_v3  ;;  %v804_v57 = vld [vmem:[#allocation6 + $0xef8] sm:$0xff]  ;;  %v16713_v3 = vcombine.low %v791_v56, %v795_v58  ;;  %v16722_v5 = vcombine.high %v799_v1, %v803_v2 }
 0x1ab   : > { %v16724_v6 = vcombine.high %v800_v12, %v804_v57  ;;  %v16723_v11 = vcombine.low %v800_v12, %v804_v57  ;;  %v863_v57 = vld [vmem:[#allocation6 + $0x10d0] sm:$0xff] }
 0x1ad   : > { %3200 = vmatpush1.bf16.msra.mxu0 %v16657_v8  ;;  %3323 = vmatpush1.bf16.msra.mxu1 %v16659_v9  ;;  %v811_v8 = vld [vmem:[#allocation6 + $0xf30] sm:$0xff]  ;;  %v808_v9 = vld [vmem:[#allocation6 + $0xf18] sm:$0xff] }
 0x1ae   : > { %3201 = vmatprep.subr.bf16.mxu0 %v16666_v10  ;;  %3324 = vmatprep.subr.bf16.mxu1 %v16668_v22  ;;  %v812_v10 = vld [vmem:[#allocation6 + $0xf38] sm:$0xff]  ;;  %v16721_v22 = vcombine.low %v799_v1, %v803_v2  ;;  %v16730_v13 = vcombine.high %v807_v7, %v811_v8 }
 0x1af   : > { %v16732_v14 = vcombine.high %v808_v9, %v812_v10  ;;  %v16731_v21 = vcombine.low %v808_v9, %v812_v10  ;;  %v871_v9 = vld [vmem:[#allocation6 + $0x1110] sm:$0xff] }
 0x1b0   : > { %v875_v10 = vld [vmem:[#allocation6 + $0x1130] sm:$0xff] }
 0x1b1   : > { %3202 = vmatpush1.bf16.msra.mxu0 %v16665_v17  ;;  %3325 = vmatpush1.bf16.msra.mxu1 %v16667_v18  ;;  %v819_v17 = vld [vmem:[#allocation6 + $0xf70] sm:$0xff]  ;;  %v816_v18 = vld [vmem:[#allocation6 + $0xf58] sm:$0xff] }
 0x1b2   : > { %3203 = vmatprep.subr.bf16.mxu0 %v16674_v19  ;;  %3326 = vmatprep.subr.bf16.mxu1 %v16676_v20  ;;  %v820_v19 = vld [vmem:[#allocation6 + $0xf78] sm:$0xff]  ;;  %v16729_v20 = vcombine.low %v807_v7, %v811_v8  ;;  %v16738_v23 = vcombine.high %v815_v16, %v819_v17 }
 0x1b3   : > { %v16740_v24 = vcombine.high %v816_v18, %v820_v19  ;;  %v16739_v31 = vcombine.low %v816_v18, %v820_v19  ;;  %v883_v18 = vld [vmem:[#allocation6 + $0x1170] sm:$0xff]  ;;  %v880_v19 = vld [vmem:[#allocation6 + $0x1158] sm:$0xff] }
 0x1b5   : > { %3204 = vmatpush1.bf16.msra.mxu0 %v16673_v27  ;;  %3327 = vmatpush1.bf16.msra.mxu1 %v16675_v28  ;;  %v827_v27 = vld [vmem:[#allocation6 + $0xfb0] sm:$0xff]  ;;  %v824_v28 = vld [vmem:[#allocation6 + $0xf98] sm:$0xff] }
 0x1b6   : > { %3205 = vmatprep.subr.bf16.mxu0 %v16682_v29  ;;  %3328 = vmatprep.subr.bf16.mxu1 %v16684_v30  ;;  %v828_v29 = vld [vmem:[#allocation6 + $0xfb8] sm:$0xff]  ;;  %v16737_v30 = vcombine.low %v815_v16, %v819_v17  ;;  %v16746_v15 = vcombine.high %v823_v26, %v827_v27  ;;  %v16794_v16 = vcombine.high %v871_v9, %v875_v10  ;;  %v879_v17 = vld [vmem:[#allocation6 + $0x1150] sm:$0xff] }
 0x1b7   : > { %v16748_v33 = vcombine.high %v824_v28, %v828_v29  ;;  %v16747_v40 = vcombine.low %v824_v28, %v828_v29  ;;  %v891_v28 = vld [vmem:[#allocation6 + $0x11b0] sm:$0xff]  ;;  %v888_v29 = vld [vmem:[#allocation6 + $0x1198] sm:$0xff] }
 0x1b9   : > { %3206 = vmatpush1.bf16.msra.mxu0 %v16681_v35  ;;  %3329 = vmatpush1.bf16.msra.mxu1 %v16683_v37  ;;  %v835_v35 = vld [vmem:[#allocation6 + $0xff0] sm:$0xff]  ;;  %v832_v37 = vld [vmem:[#allocation6 + $0xfd8] sm:$0xff] }
 0x1ba   : > { %3207 = vmatprep.subr.bf16.mxu0 %v16690_v38  ;;  %3330 = vmatprep.subr.bf16.mxu1 %v16692_v39  ;;  %v836_v38 = vld [vmem:[#allocation6 + $0xff8] sm:$0xff]  ;;  %v16745_v39 = vcombine.low %v823_v26, %v827_v27  ;;  %v16754_v41 = vcombine.high %v831_v34, %v835_v35  ;;  %v887_v27 = vld [vmem:[#allocation6 + $0x1190] sm:$0xff] }
 0x1bb   : > { %v16756_v42 = vcombine.high %v832_v37, %v836_v38  ;;  %v16755_v47 = vcombine.low %v832_v37, %v836_v38  ;;  %v899_v37 = vld [vmem:[#allocation6 + $0x11f0] sm:$0xff]  ;;  %v896_v38 = vld [vmem:[#allocation6 + $0x11d8] sm:$0xff] }
 0x1bd   : > { %3208 = vmatpush1.bf16.msra.mxu0 %v16689_v44  ;;  %3331 = vmatpush1.bf16.msra.mxu1 %v16691_v45  ;;  %v843_v44 = vld [vmem:[#allocation6 + $0x1030] sm:$0xff]  ;;  %v840_v45 = vld [vmem:[#allocation6 + $0x1018] sm:$0xff] }
 0x1be   : > { %3209 = vmatprep.subr.bf16.mxu0 %v16698_v46  ;;  %3332 = vmatprep.subr.bf16.mxu1 %v16700_v25  ;;  %v844_v46 = vld [vmem:[#allocation6 + $0x1038] sm:$0xff]  ;;  %v16753_v25 = vcombine.low %v831_v34, %v835_v35  ;;  %v16762_v48 = vcombine.high %v839_v43, %v843_v44  ;;  %v895_v35 = vld [vmem:[#allocation6 + $0x11d0] sm:$0xff] }
 0x1bf   : > { %v16764_v49 = vcombine.high %v840_v45, %v844_v46  ;;  %v16763_v56 = vcombine.low %v840_v45, %v844_v46  ;;  %v907_v45 = vld [vmem:[#allocation6 + $0x1230] sm:$0xff]  ;;  %v904_v46 = vld [vmem:[#allocation6 + $0x1218] sm:$0xff] }
 0x1c1   : > { %3210 = vmatpush1.bf16.msra.mxu0 %v16697_v51  ;;  %3333 = vmatpush1.bf16.msra.mxu1 %v16699_v52  ;;  %v851_v51 = vld [vmem:[#allocation6 + $0x1070] sm:$0xff]  ;;  %v848_v52 = vld [vmem:[#allocation6 + $0x1058] sm:$0xff] }
 0x1c2   : > { %3211 = vmatprep.subr.bf16.mxu0 %v16706_v54  ;;  %3334 = vmatprep.subr.bf16.mxu1 %v16708_v55  ;;  %v852_v54 = vld [vmem:[#allocation6 + $0x1078] sm:$0xff]  ;;  %v16761_v55 = vcombine.low %v839_v43, %v843_v44  ;;  %v16770_v58 = vcombine.high %v847_v50, %v851_v51  ;;  %v903_v44 = vld [vmem:[#allocation6 + $0x1210] sm:$0xff] }
 0x1c3   : > { %v16772_v59 = vcombine.high %v848_v52, %v852_v54  ;;  %v16771_v1 = vcombine.low %v848_v52, %v852_v54  ;;  %v915_v52 = vld [vmem:[#allocation6 + $0x1270] sm:$0xff]  ;;  %v912_v54 = vld [vmem:[#allocation6 + $0x1258] sm:$0xff] }
 0x1c5   : > { %3212 = vmatpush1.bf16.msra.mxu0 %v16705_v61  ;;  %3335 = vmatpush1.bf16.msra.mxu1 %v16707_v62  ;;  %v859_v61 = vld [vmem:[#allocation6 + $0x10b0] sm:$0xff]  ;;  %v856_v62 = vld [vmem:[#allocation6 + $0x1098] sm:$0xff] }
 0x1c6   : > { %3213 = vmatprep.subr.bf16.mxu0 %v16714_v63  ;;  %3336 = vmatprep.subr.bf16.mxu1 %v16716_v0  ;;  %v860_v63 = vld [vmem:[#allocation6 + $0x10b8] sm:$0xff]  ;;  %v16769_v0 = vcombine.low %v847_v50, %v851_v51  ;;  %v16778_v2 = vcombine.high %v855_v60, %v859_v61  ;;  %v911_v51 = vld [vmem:[#allocation6 + $0x1250] sm:$0xff] }
 0x1c7   : > { %v16780_v12 = vcombine.high %v856_v62, %v860_v63 }
 0x1c9   : > { %3214 = vmatpush1.bf16.msra.mxu0 %v16713_v3  ;;  %3337 = vmatpush1.bf16.msra.mxu1 %v16715_v4  ;;  %v867_v3 = vld [vmem:[#allocation6 + $0x10f0] sm:$0xff]  ;;  %v864_v4 = vld [vmem:[#allocation6 + $0x10d8] sm:$0xff] }
 0x1ca   : > { %3215 = vmatprep.subr.bf16.mxu0 %v16722_v5  ;;  %3338 = vmatprep.subr.bf16.mxu1 %v16724_v6  ;;  %v868_v5 = vld [vmem:[#allocation6 + $0x10f8] sm:$0xff]  ;;  %v16777_v6 = vcombine.low %v855_v60, %v859_v61  ;;  %v16786_v7 = vcombine.high %v863_v57, %v867_v3  ;;  %v919_v61 = vld [vmem:[#allocation6 + $0x1290] sm:$0xff] }
 0x1cb   : > { %v16788_v8 = vcombine.high %v864_v4, %v868_v5 }
 0x1cd   : > { %3216 = vmatpush1.bf16.msra.mxu0 %v16721_v22  ;;  %3339 = vmatpush1.bf16.msra.mxu1 %v16723_v11  ;;  %v872_v22 = vld [vmem:[#allocation6 + $0x1118] sm:$0xff] }
 0x1ce   : > { %3217 = vmatprep.subr.bf16.mxu0 %v16730_v13  ;;  %3340 = vmatprep.subr.bf16.mxu1 %v16732_v14  ;;  %v876_v11 = vld [vmem:[#allocation6 + $0x1138] sm:$0xff]  ;;  %v16785_v13 = vcombine.low %v863_v57, %v867_v3  ;;  %v16787_v14 = vcombine.low %v864_v4, %v868_v5  ;;  %v927_v3 = vld [vmem:[#allocation6 + $0x12d0] sm:$0xff] }
 0x1cf   : > { %v931_v4 = vld [vmem:[#allocation6 + $0x12f0] sm:$0xff]  ;;  %v928_v5 = vld [vmem:[#allocation6 + $0x12d8] sm:$0xff] }
 0x1d1   : > { %3218 = vmatpush1.bf16.msra.mxu0 %v16729_v20  ;;  %3341 = vmatpush1.bf16.msra.mxu1 %v16731_v21  ;;  %v884_v20 = vld [vmem:[#allocation6 + $0x1178] sm:$0xff]  ;;  %v16793_v21 = vcombine.low %v871_v9, %v875_v10  ;;  %v935_v10 = vld [vmem:[#allocation6 + $0x1310] sm:$0xff] }
 0x1d2   : > { %3219 = vmatprep.subr.bf16.mxu0 %v16738_v23  ;;  %3342 = vmatprep.subr.bf16.mxu1 %v16740_v24  ;;  %v16795_v23 = vcombine.low %v872_v22, %v876_v11  ;;  %v16802_v24 = vcombine.high %v879_v17, %v883_v18  ;;  %v16804_v26 = vcombine.high %v880_v19, %v884_v20 }
 0x1d5   : > { %3220 = vmatpush1.bf16.msra.mxu0 %v16737_v30  ;;  %3343 = vmatpush1.bf16.msra.mxu1 %v16739_v31  ;;  %v892_v30 = vld [vmem:[#allocation6 + $0x11b8] sm:$0xff]  ;;  %v16801_v31 = vcombine.low %v879_v17, %v883_v18  ;;  %v943_v18 = vld [vmem:[#allocation6 + $0x1350] sm:$0xff] }
 0x1d6   : > { %3221 = vmatprep.subr.bf16.mxu0 %v16746_v15  ;;  %3344 = vmatprep.subr.bf16.mxu1 %v16748_v33  ;;  %v16803_v15 = vcombine.low %v880_v19, %v884_v20  ;;  %v16810_v33 = vcombine.high %v887_v27, %v891_v28  ;;  %v16812_v34 = vcombine.high %v888_v29, %v892_v30  ;;  %v947_v19 = vld [vmem:[#allocation6 + $0x1370] sm:$0xff]  ;;  %v944_v20 = vld [vmem:[#allocation6 + $0x1358] sm:$0xff] }
 0x1d9   : > { %3222 = vmatpush1.bf16.msra.mxu0 %v16745_v39  ;;  %3345 = vmatpush1.bf16.msra.mxu1 %v16747_v40  ;;  %v900_v39 = vld [vmem:[#allocation6 + $0x11f8] sm:$0xff]  ;;  %v16809_v40 = vcombine.low %v887_v27, %v891_v28  ;;  %v951_v28 = vld [vmem:[#allocation6 + $0x1390] sm:$0xff] }
 0x1da   : > { %3223 = vmatprep.subr.bf16.mxu0 %v16754_v41  ;;  %3346 = vmatprep.subr.bf16.mxu1 %v16756_v42  ;;  %v16811_v41 = vcombine.low %v888_v29, %v892_v30  ;;  %v16818_v42 = vcombine.high %v895_v35, %v899_v37  ;;  %v16820_v43 = vcombine.high %v896_v38, %v900_v39  ;;  %v955_v29 = vld [vmem:[#allocation6 + $0x13b0] sm:$0xff]  ;;  %v952_v30 = vld [vmem:[#allocation6 + $0x1398] sm:$0xff] }
 0x1dd   : > { %3224 = vmatpush1.bf16.msra.mxu0 %v16753_v25  ;;  %3347 = vmatpush1.bf16.msra.mxu1 %v16755_v47  ;;  %v908_v25 = vld [vmem:[#allocation6 + $0x1238] sm:$0xff]  ;;  %v16817_v47 = vcombine.low %v895_v35, %v899_v37  ;;  %v959_v37 = vld [vmem:[#allocation6 + $0x13d0] sm:$0xff] }
 0x1de   : > { %3234 = vmatprep.subr.bf16.mxu0 %v16762_v48  ;;  %3357 = vmatprep.subr.bf16.mxu1 %v16764_v49  ;;  %v16819_v48 = vcombine.low %v896_v38, %v900_v39  ;;  %v16826_v49 = vcombine.high %v903_v44, %v907_v45  ;;  %v16828_v50 = vcombine.high %v904_v46, %v908_v25  ;;  %v963_v38 = vld [vmem:[#allocation6 + $0x13f0] sm:$0xff]  ;;  %v960_v39 = vld [vmem:[#allocation6 + $0x13d8] sm:$0xff] }
 0x1e0   : > { %3226 = vmatmul.mubr.bf16.vlgmr.msra.gmra.mrb[4].mxu0 %v19471_v53  ;;  %3349 = vmatmul.mubr.bf16.vlgmr.msra.gmra.mrb[4].mxu1 %v19471_v53  ;;  %v16779_v53 = vcombine.low %v856_v62, %v860_v63  ;;  %v923_v62 = vld [vmem:[#allocation6 + $0x12b0] sm:$0xff]  ;;  %v920_v63 = vld [vmem:[#allocation6 + $0x1298] sm:$0xff] }
 0x1e1   : > { %3235 = vmatpush1.bf16.msra.mxu0 %v16761_v55  ;;  %3358 = vmatpush1.bf16.msra.mxu1 %v16763_v56  ;;  %v916_v55 = vld [vmem:[#allocation6 + $0x1278] sm:$0xff]  ;;  %v16825_v56 = vcombine.low %v903_v44, %v907_v45  ;;  %v325_v45 = vld [vmem:[#allocation6] sm:$0xff] }
 0x1e2   : > { %3236 = vmatprep.subr.bf16.mxu0 %v16770_v58  ;;  %3359 = vmatprep.subr.bf16.mxu1 %v16772_v59  ;;  %v16827_v58 = vcombine.low %v904_v46, %v908_v25  ;;  %v16834_v59 = vcombine.high %v911_v51, %v915_v52  ;;  %v16836_v60 = vcombine.high %v912_v54, %v916_v55  ;;  %v329_v46 = vld [vmem:[#allocation6 + $0x20] sm:$0xff]  ;;  %v326_v25 = vld [vmem:[#allocation6 + $0x8] sm:$0xff] }
 0x1e3   : > { %3266 = vmatprep.mubr.bf16.mxu0 %v19478_v32  ;;  %3389 = vmatprep.mubr.bf16.mxu1 %v19478_v32  ;;  %v16796_v32 = vcombine.high %v872_v22, %v876_v11  ;;  %v939_v22 = vld [vmem:[#allocation6 + $0x1330] sm:$0xff]  ;;  %v936_v11 = vld [vmem:[#allocation6 + $0x1318] sm:$0xff] }
 0x1e5   : > { %3237 = vmatpush1.bf16.msra.mxu0 %v16769_v0  ;;  %3360 = vmatpush1.bf16.msra.mxu1 %v16771_v1  ;;  %v924_v0 = vld [vmem:[#allocation6 + $0x12b8] sm:$0xff]  ;;  %v16833_v1 = vcombine.low %v911_v51, %v915_v52  ;;  %v333_v52 = vld [vmem:[#allocation6 + $0x40] sm:$0xff] }
 0x1e6   : > { %3238 = vmatprep.subr.bf16.mxu0 %v16778_v2  ;;  %3361 = vmatprep.subr.bf16.mxu1 %v16780_v12  ;;  %v16835_v2 = vcombine.low %v912_v54, %v916_v55  ;;  %v16842_v12 = vcombine.high %v919_v61, %v923_v62  ;;  %v16844_v57 = vcombine.high %v920_v63, %v924_v0  ;;  %v337_v54 = vld [vmem:[#allocation6 + $0x60] sm:$0xff]  ;;  %v334_v55 = vld [vmem:[#allocation6 + $0x48] sm:$0xff] }
 0x1e9   : > { %3239 = vmatpush1.bf16.msra.mxu0 %v16777_v6  ;;  %3362 = vmatpush1.bf16.msra.mxu1 %v16779_v53  ;;  %v932_v6 = vld [vmem:[#allocation6 + $0x12f8] sm:$0xff]  ;;  %v16841_v53 = vcombine.low %v919_v61, %v923_v62  ;;  %v16898_v61 = vcombine.high %v333_v52, %v337_v54 }
 0x1ea   : > { %3240 = vmatprep.subr.bf16.mxu0 %v16786_v7  ;;  %3363 = vmatprep.subr.bf16.mxu1 %v16788_v8  ;;  %v16843_v7 = vcombine.low %v920_v63, %v924_v0  ;;  %v16850_v8 = vcombine.high %v927_v3, %v931_v4  ;;  %v16852_v9 = vcombine.high %v928_v5, %v932_v6  ;;  %v341_v63 = vld [vmem:[#allocation6 + $0x80] sm:$0xff] }
 0x1eb   : > { %v345_v0 = vld [vmem:[#allocation6 + $0xa0] sm:$0xff] }
 0x1ed   : > { %3241 = vmatpush1.bf16.msra.mxu0 %v16785_v13  ;;  %3364 = vmatpush1.bf16.msra.mxu1 %v16787_v14  ;;  %v940_v13 = vld [vmem:[#allocation6 + $0x1338] sm:$0xff]  ;;  %v16849_v14 = vcombine.low %v927_v3, %v931_v4  ;;  %v16906_v4 = vcombine.high %v341_v63, %v345_v0 }
 0x1ee   : > { %3242 = vmatprep.subr.bf16.mxu0 %v16794_v16  ;;  %3365 = vmatprep.subr.bf16.mxu1 %v16796_v32  ;;  %v16851_v16 = vcombine.low %v928_v5, %v932_v6  ;;  %v16858_v32 = vcombine.high %v935_v10, %v939_v22  ;;  %v16860_v17 = vcombine.high %v936_v11, %v940_v13  ;;  %v349_v6 = vld [vmem:[#allocation6 + $0xc0] sm:$0xff] }
 0x1f1   : > { %3243 = vmatpush1.bf16.msra.mxu0 %v16793_v21  ;;  %3366 = vmatpush1.bf16.msra.mxu1 %v16795_v23  ;;  %v948_v21 = vld [vmem:[#allocation6 + $0x1378] sm:$0xff]  ;;  %v16857_v23 = vcombine.low %v935_v10, %v939_v22 }
 0x1f2   : > { %3244 = vmatprep.subr.bf16.mxu0 %v16802_v24  ;;  %3367 = vmatprep.subr.bf16.mxu1 %v16804_v26  ;;  %v16859_v24 = vcombine.low %v936_v11, %v940_v13  ;;  %v16866_v26 = vcombine.high %v943_v18, %v947_v19  ;;  %v16868_v27 = vcombine.high %v944_v20, %v948_v21  ;;  %v357_v11 = vld [vmem:[#allocation6 + $0x100] sm:$0xff] }
 0x1f3   : > { %v361_v13 = vld [vmem:[#allocation6 + $0x120] sm:$0xff] }
 0x1f5   : > { %3245 = vmatpush1.bf16.msra.mxu0 %v16801_v31  ;;  %3368 = vmatpush1.bf16.msra.mxu1 %v16803_v15  ;;  %v956_v31 = vld [vmem:[#allocation6 + $0x13b8] sm:$0xff]  ;;  %v16865_v15 = vcombine.low %v943_v18, %v947_v19  ;;  %v16922_v18 = vcombine.high %v357_v11, %v361_v13 }
 0x1f6   : > { %3246 = vmatprep.subr.bf16.mxu0 %v16810_v33  ;;  %3369 = vmatprep.subr.bf16.mxu1 %v16812_v34  ;;  %v16867_v33 = vcombine.low %v944_v20, %v948_v21  ;;  %v16874_v34 = vcombine.high %v951_v28, %v955_v29  ;;  %v16876_v35 = vcombine.high %v952_v30, %v956_v31  ;;  %v365_v20 = vld [vmem:[#allocation6 + $0x140] sm:$0xff] }
 0x1f7   : > { %v369_v21 = vld [vmem:[#allocation6 + $0x160] sm:$0xff] }
 0x1f9   : > { %3247 = vmatpush1.bf16.msra.mxu0 %v16809_v40  ;;  %3370 = vmatpush1.bf16.msra.mxu1 %v16811_v41  ;;  %v964_v40 = vld [vmem:[#allocation6 + $0x13f8] sm:$0xff]  ;;  %v16873_v41 = vcombine.low %v951_v28, %v955_v29  ;;  %v16930_v28 = vcombine.high %v365_v20, %v369_v21 }
 0x1fa   : > { %3248 = vmatprep.subr.bf16.mxu0 %v16818_v42  ;;  %3371 = vmatprep.subr.bf16.mxu1 %v16820_v43  ;;  %v16875_v42 = vcombine.low %v952_v30, %v956_v31  ;;  %v16882_v43 = vcombine.high %v959_v37, %v963_v38  ;;  %v16884_v44 = vcombine.high %v960_v39, %v964_v40  ;;  %v373_v30 = vld [vmem:[#allocation6 + $0x180] sm:$0xff] }
 0x1fb   : > { %v377_v31 = vld [vmem:[#allocation6 + $0x1a0] sm:$0xff] }
 0x1fd   : > { %3249 = vmatpush1.bf16.msra.mxu0 %v16817_v47  ;;  %3372 = vmatpush1.bf16.msra.mxu1 %v16819_v48  ;;  %v330_v47 = vld [vmem:[#allocation6 + $0x28] sm:$0xff]  ;;  %v16881_v48 = vcombine.low %v959_v37, %v963_v38  ;;  %v16938_v37 = vcombine.high %v373_v30, %v377_v31 }
 0x1fe   : > { %3250 = vmatprep.subr.bf16.mxu0 %v16826_v49  ;;  %3373 = vmatprep.subr.bf16.mxu1 %v16828_v50  ;;  %v16883_v49 = vcombine.low %v960_v39, %v964_v40  ;;  %v16890_v50 = vcombine.high %v325_v45, %v329_v46  ;;  %v16892_v51 = vcombine.high %v326_v25, %v330_v47  ;;  %v381_v39 = vld [vmem:[#allocation6 + $0x1c0] sm:$0xff] }
 0x1ff   : > { %v385_v40 = vld [vmem:[#allocation6 + $0x1e0] sm:$0xff] }
 0x201   : > { %3251 = vmatpush1.bf16.msra.mxu0 %v16825_v56  ;;  %3374 = vmatpush1.bf16.msra.mxu1 %v16827_v58  ;;  %v338_v56 = vld [vmem:[#allocation6 + $0x68] sm:$0xff]  ;;  %v19501_v58 = vld [vmem:[%s19424_s27] sm:$0xff] }
 0x202   : > { %3252 = vmatprep.subr.bf16.mxu0 %v16834_v59  ;;  %3375 = vmatprep.subr.bf16.mxu1 %v16836_v60  ;;  %v16889_v59 = vcombine.low %v325_v45, %v329_v46  ;;  %v16891_v60 = vcombine.low %v326_v25, %v330_v47  ;;  %v16900_v62 = vcombine.high %v334_v55, %v338_v56  ;;  %v389_v25 = vld [vmem:[#allocation6 + $0x200] sm:$0xff] }
 0x203   : > { %v16899_v3 = vcombine.low %v334_v55, %v338_v56  ;;  %v16946_v45 = vcombine.high %v381_v39, %v385_v40  ;;  %v393_v47 = vld [vmem:[#allocation6 + $0x220] sm:$0xff] }
 0x204   : > { %v397_v55 = vld [vmem:[#allocation6 + $0x240] sm:$0xff] }
 0x205   : > { %3253 = vmatpush1.bf16.msra.mxu0 %v16833_v1  ;;  %3376 = vmatpush1.bf16.msra.mxu1 %v16835_v2  ;;  %v19505_v1 = vcombine.high %v19501_v58, %v19501_v58  ;;  %v342_v2 = vld [vmem:[#allocation6 + $0x88] sm:$0xff]  ;;  %v401_v56 = vld [vmem:[#allocation6 + $0x260] sm:$0xff] }
 0x206   : > { %3254 = vmatprep.subr.bf16.mxu0 %v16842_v12  ;;  %3377 = vmatprep.subr.bf16.mxu1 %v16844_v57  ;;  %v346_v12 = vld [vmem:[#allocation6 + $0xa8] sm:$0xff]  ;;  %v16897_v57 = vcombine.low %v333_v52, %v337_v54  ;;  %v16954_v52 = vcombine.high %v389_v25, %v393_v47 }
 0x207   : > { %v16908_v5 = vcombine.high %v342_v2, %v346_v12 }
 0x209   : > { %3255 = vmatpush1.bf16.msra.mxu0 %v16841_v53  ;;  %3378 = vmatpush1.bf16.msra.mxu1 %v16843_v7  ;;  %v353_v53 = vld [vmem:[#allocation6 + $0xe0] sm:$0xff]  ;;  %v350_v7 = vld [vmem:[#allocation6 + $0xc8] sm:$0xff] }
 0x20a   : > { %3256 = vmatprep.subr.bf16.mxu0 %v16850_v8  ;;  %3379 = vmatprep.subr.bf16.mxu1 %v16852_v9  ;;  %v354_v8 = vld [vmem:[#allocation6 + $0xe8] sm:$0xff]  ;;  %v16905_v9 = vcombine.low %v341_v63, %v345_v0  ;;  %v16914_v10 = vcombine.high %v349_v6, %v353_v53  ;;  %v16962_v63 = vcombine.high %v397_v55, %v401_v56 }
 0x20b   : > { %v16916_v22 = vcombine.high %v350_v7, %v354_v8 }
 0x20d   : > { %3257 = vmatpush1.bf16.msra.mxu0 %v16849_v14  ;;  %3380 = vmatpush1.bf16.msra.mxu1 %v16851_v16  ;;  %v358_v14 = vld [vmem:[#allocation6 + $0x108] sm:$0xff] }
 0x20e   : > { %3258 = vmatprep.subr.bf16.mxu0 %v16858_v32  ;;  %3381 = vmatprep.subr.bf16.mxu1 %v16860_v17  ;;  %v362_v16 = vld [vmem:[#allocation6 + $0x128] sm:$0xff]  ;;  %v16913_v32 = vcombine.low %v349_v6, %v353_v53  ;;  %v16915_v17 = vcombine.low %v350_v7, %v354_v8  ;;  %v413_v7 = vld [vmem:[#allocation6 + $0x2c0] sm:$0xff] }
 0x20f   : > { %v16924_v19 = vcombine.high %v358_v14, %v362_v16  ;;  %v417_v8 = vld [vmem:[#allocation6 + $0x2e0] sm:$0xff] }
 0x211   : > { %3259 = vmatpush1.bf16.msra.mxu0 %v16857_v23  ;;  %3382 = vmatpush1.bf16.msra.mxu1 %v16859_v24  ;;  %v366_v23 = vld [vmem:[#allocation6 + $0x148] sm:$0xff] }
 0x212   : > { %3260 = vmatprep.subr.bf16.mxu0 %v16866_v26  ;;  %3383 = vmatprep.subr.bf16.mxu1 %v16868_v27  ;;  %v370_v24 = vld [vmem:[#allocation6 + $0x168] sm:$0xff]  ;;  %v16921_v26 = vcombine.low %v357_v11, %v361_v13  ;;  %v16923_v27 = vcombine.low %v358_v14, %v362_v16  ;;  %v16978_v11 = vcombine.high %v413_v7, %v417_v8  ;;  %v421_v14 = vld [vmem:[#allocation6 + $0x300] sm:$0xff] }
 0x213   : > { %v16932_v29 = vcombine.high %v366_v23, %v370_v24  ;;  %v425_v16 = vld [vmem:[#allocation6 + $0x320] sm:$0xff] }
 0x215   : > { %3261 = vmatpush1.bf16.msra.mxu0 %v16865_v15  ;;  %3384 = vmatpush1.bf16.msra.mxu1 %v16867_v33  ;;  %v374_v15 = vld [vmem:[#allocation6 + $0x188] sm:$0xff] }
 0x216   : > { %3262 = vmatprep.subr.bf16.mxu0 %v16874_v34  ;;  %3385 = vmatprep.subr.bf16.mxu1 %v16876_v35  ;;  %v378_v33 = vld [vmem:[#allocation6 + $0x1a8] sm:$0xff]  ;;  %v16929_v34 = vcombine.low %v365_v20, %v369_v21  ;;  %v16931_v35 = vcombine.low %v366_v23, %v370_v24  ;;  %v16986_v20 = vcombine.high %v421_v14, %v425_v16  ;;  %v429_v23 = vld [vmem:[#allocation6 + $0x340] sm:$0xff] }
 0x217   : > { %v16940_v38 = vcombine.high %v374_v15, %v378_v33  ;;  %v433_v24 = vld [vmem:[#allocation6 + $0x360] sm:$0xff] }
 0x219   : > { %3263 = vmatpush1.bf16.msra.mxu0 %v16873_v41  ;;  %3386 = vmatpush1.bf16.msra.mxu1 %v16875_v42  ;;  %v382_v41 = vld [vmem:[#allocation6 + $0x1c8] sm:$0xff] }
 0x21a   : > { %3264 = vmatprep.subr.bf16.mxu0 %v16882_v43  ;;  %3387 = vmatprep.subr.bf16.mxu1 %v16884_v44  ;;  %v386_v42 = vld [vmem:[#allocation6 + $0x1e8] sm:$0xff]  ;;  %v16937_v43 = vcombine.low %v373_v30, %v377_v31  ;;  %v16939_v44 = vcombine.low %v374_v15, %v378_v33  ;;  %v16994_v30 = vcombine.high %v429_v23, %v433_v24  ;;  %v437_v15 = vld [vmem:[#allocation6 + $0x380] sm:$0xff] }
 0x21b   : > { %v16948_v46 = vcombine.high %v382_v41, %v386_v42  ;;  %v441_v33 = vld [vmem:[#allocation6 + $0x3a0] sm:$0xff] }
 0x21d   : > { %3265 = vmatpush1.bf16.msra.mxu0 %v16881_v48  ;;  %3388 = vmatpush1.bf16.msra.mxu1 %v16883_v49  ;;  %v390_v48 = vld [vmem:[#allocation6 + $0x208] sm:$0xff] }
 0x21e   : > { %4692 = vmatprep.subr.bf16.mxu0 %v16890_v50  ;;  %4774 = vmatprep.subr.bf16.mxu1 %v16892_v51  ;;  %v394_v49 = vld [vmem:[#allocation6 + $0x228] sm:$0xff]  ;;  %v16945_v50 = vcombine.low %v381_v39, %v385_v40  ;;  %v16947_v51 = vcombine.low %v382_v41, %v386_v42  ;;  %v17002_v39 = vcombine.high %v437_v15, %v441_v33  ;;  %v445_v41 = vld [vmem:[#allocation6 + $0x3c0] sm:$0xff] }
 0x21f   : > { %v16956_v54 = vcombine.high %v390_v48, %v394_v49  ;;  %v449_v42 = vld [vmem:[#allocation6 + $0x3e0] sm:$0xff] }
 0x220   : > { %3267 = vmatmul.mubr.bf16.vlgmr.msra.gmra.mrb[4].mxu0 %v19486_v36  ;;  %3390 = vmatmul.mubr.bf16.vlgmr.msra.gmra.mrb[4].mxu1 %v19486_v36  ;;  %v16907_v36 = vcombine.low %v342_v2, %v346_v12  ;;  %v405_v2 = vld [vmem:[#allocation6 + $0x280] sm:$0xff] }
 0x221   : > { %4693 = vmatpush1.bf16.msra.mxu0 %v16889_v59  ;;  %4775 = vmatpush1.bf16.msra.mxu1 %v16891_v60  ;;  %v398_v59 = vld [vmem:[#allocation6 + $0x248] sm:$0xff]  ;;  %v409_v12 = vld [vmem:[#allocation6 + $0x2a0] sm:$0xff] }
 0x222   : > { %4694 = vmatprep.subr.bf16.mxu0 %v16898_v61  ;;  %4776 = vmatprep.subr.bf16.mxu1 %v16900_v62  ;;  %v402_v60 = vld [vmem:[#allocation6 + $0x268] sm:$0xff]  ;;  %v16953_v61 = vcombine.low %v389_v25, %v393_v47  ;;  %v16955_v62 = vcombine.low %v390_v48, %v394_v49  ;;  %v16970_v6 = vcombine.high %v405_v2, %v409_v12  ;;  %v453_v48 = vld [vmem:[#allocation6 + $0x400] sm:$0xff] }
 0x223   : > { %4724 = vmatprep.mubr.bf16.mxu0 %v19505_v1  ;;  %4806 = vmatprep.mubr.bf16.mxu1 %v19505_v1  ;;  %v16964_v0 = vcombine.high %v398_v59, %v402_v60  ;;  %v17010_v25 = vcombine.high %v445_v41, %v449_v42  ;;  %v457_v49 = vld [vmem:[#allocation6 + $0x420] sm:$0xff] }
 0x225   : > { %4695 = vmatpush1.bf16.msra.mxu0 %v16897_v57  ;;  %4777 = vmatpush1.bf16.msra.mxu1 %v16899_v3  ;;  %v406_v57 = vld [vmem:[#allocation6 + $0x288] sm:$0xff] }
 0x226   : > { %4696 = vmatprep.subr.bf16.mxu0 %v16906_v4  ;;  %4778 = vmatprep.subr.bf16.mxu1 %v16908_v5  ;;  %v410_v3 = vld [vmem:[#allocation6 + $0x2a8] sm:$0xff]  ;;  %v16961_v4 = vcombine.low %v397_v55, %v401_v56  ;;  %v16963_v5 = vcombine.low %v398_v59, %v402_v60  ;;  %v17018_v55 = vcombine.high %v453_v48, %v457_v49  ;;  %v461_v59 = vld [vmem:[#allocation6 + $0x440] sm:$0xff] }
 0x227   : > { %v16972_v53 = vcombine.high %v406_v57, %v410_v3  ;;  %v465_v60 = vld [vmem:[#allocation6 + $0x460] sm:$0xff] }
 0x229   : > { %4697 = vmatpush1.bf16.msra.mxu0 %v16905_v9  ;;  %4779 = vmatpush1.bf16.msra.mxu1 %v16907_v36  ;;  %v414_v9 = vld [vmem:[#allocation6 + $0x2c8] sm:$0xff] }
 0x22a   : > { %4698 = vmatprep.subr.bf16.mxu0 %v16914_v10  ;;  %4780 = vmatprep.subr.bf16.mxu1 %v16916_v22  ;;  %v418_v36 = vld [vmem:[#allocation6 + $0x2e8] sm:$0xff]  ;;  %v16969_v10 = vcombine.low %v405_v2, %v409_v12  ;;  %v16971_v22 = vcombine.low %v406_v57, %v410_v3  ;;  %v17017_v2 = vcombine.low %v453_v48, %v457_v49 }
 0x22b   : > { %v16980_v13 = vcombine.high %v414_v9, %v418_v36  ;;  %v17026_v57 = vcombine.high %v461_v59, %v465_v60 }
 0x22d   : > { %4699 = vmatpush1.bf16.msra.mxu0 %v16913_v32  ;;  %4781 = vmatpush1.bf16.msra.mxu1 %v16915_v17  ;;  %v422_v32 = vld [vmem:[#allocation6 + $0x308] sm:$0xff] }
 0x22e   : > { %4700 = vmatprep.subr.bf16.mxu0 %v16922_v18  ;;  %4782 = vmatprep.subr.bf16.mxu1 %v16924_v19  ;;  %v426_v17 = vld [vmem:[#allocation6 + $0x328] sm:$0xff]  ;;  %v16977_v18 = vcombine.low %v413_v7, %v417_v8  ;;  %v16979_v19 = vcombine.low %v414_v9, %v418_v36  ;;  %v17025_v7 = vcombine.low %v461_v59, %v465_v60 }
 0x22f   : > { %v16988_v21 = vcombine.high %v422_v32, %v426_v17 }
 0x231   : > { %4701 = vmatpush1.bf16.msra.mxu0 %v16921_v26  ;;  %4783 = vmatpush1.bf16.msra.mxu1 %v16923_v27  ;;  %v430_v26 = vld [vmem:[#allocation6 + $0x348] sm:$0xff] }
 0x232   : > { %4702 = vmatprep.subr.bf16.mxu0 %v16930_v28  ;;  %4784 = vmatprep.subr.bf16.mxu1 %v16932_v29  ;;  %v434_v27 = vld [vmem:[#allocation6 + $0x368] sm:$0xff]  ;;  %v16985_v28 = vcombine.low %v421_v14, %v425_v16  ;;  %v16987_v29 = vcombine.low %v422_v32, %v426_v17 }
 0x233   : > { %v16996_v31 = vcombine.high %v430_v26, %v434_v27 }
 0x235   : > { %4703 = vmatpush1.bf16.msra.mxu0 %v16929_v34  ;;  %4785 = vmatpush1.bf16.msra.mxu1 %v16931_v35  ;;  %v438_v34 = vld [vmem:[#allocation6 + $0x388] sm:$0xff] }
 0x236   : > { %4704 = vmatprep.subr.bf16.mxu0 %v16938_v37  ;;  %4786 = vmatprep.subr.bf16.mxu1 %v16940_v38  ;;  %v442_v35 = vld [vmem:[#allocation6 + $0x3a8] sm:$0xff]  ;;  %v16993_v37 = vcombine.low %v429_v23, %v433_v24  ;;  %v16995_v38 = vcombine.low %v430_v26, %v434_v27 }
 0x237   : > { %v17004_v40 = vcombine.high %v438_v34, %v442_v35 }
 0x239   : > { %4705 = vmatpush1.bf16.msra.mxu0 %v16937_v43  ;;  %4787 = vmatpush1.bf16.msra.mxu1 %v16939_v44  ;;  %v446_v43 = vld [vmem:[#allocation6 + $0x3c8] sm:$0xff] }
 0x23a   : > { %4706 = vmatprep.subr.bf16.mxu0 %v16946_v45  ;;  %4788 = vmatprep.subr.bf16.mxu1 %v16948_v46  ;;  %v450_v44 = vld [vmem:[#allocation6 + $0x3e8] sm:$0xff]  ;;  %v17001_v45 = vcombine.low %v437_v15, %v441_v33  ;;  %v17003_v46 = vcombine.low %v438_v34, %v442_v35 }
 0x23b   : > { %v17012_v47 = vcombine.high %v446_v43, %v450_v44 }
 0x23d   : > { %4707 = vmatpush1.bf16.msra.mxu0 %v16945_v50  ;;  %4789 = vmatpush1.bf16.msra.mxu1 %v16947_v51  ;;  %v454_v50 = vld [vmem:[#allocation6 + $0x408] sm:$0xff] }
 0x23e   : > { %4708 = vmatprep.subr.bf16.mxu0 %v16954_v52  ;;  %4790 = vmatprep.subr.bf16.mxu1 %v16956_v54  ;;  %v458_v51 = vld [vmem:[#allocation6 + $0x428] sm:$0xff]  ;;  %v17009_v52 = vcombine.low %v445_v41, %v449_v42  ;;  %v17011_v54 = vcombine.low %v446_v43, %v450_v44 }
 0x23f   : > { %v17020_v56 = vcombine.high %v454_v50, %v458_v51  ;;  %v17019_v12 = vcombine.low %v454_v50, %v458_v51 }
 0x241   : > { %4709 = vmatpush1.bf16.msra.mxu0 %v16953_v61  ;;  %4791 = vmatpush1.bf16.msra.mxu1 %v16955_v62  ;;  %v19513_v61 = vcombine.low %v19501_v58, %v19501_v58  ;;  %v462_v62 = vld [vmem:[#allocation6 + $0x448] sm:$0xff] }
 0x242   : > { %4710 = vmatprep.subr.bf16.mxu0 %v16962_v63  ;;  %4792 = vmatprep.subr.bf16.mxu1 %v16964_v0  ;;  %v466_v63 = vld [vmem:[#allocation6 + $0x468] sm:$0xff] }
 0x243   : > { %v19516_v0 = vld [vmem:[%s19424_s27 + $0x8] sm:$0xff]  ;;  %v17028_v3 = vcombine.high %v462_v62, %v466_v63  ;;  %v17027_v8 = vcombine.low %v462_v62, %v466_v63 }
 0x244   : > { %v470_v58 = vld [vmem:[#allocation6 + $0x488] sm:$0xff] }
 0x245   : > { %4711 = vmatpush1.bf16.msra.mxu0 %v16961_v4  ;;  %4793 = vmatpush1.bf16.msra.mxu1 %v16963_v5  ;;  %v469_v4 = vld [vmem:[#allocation6 + $0x480] sm:$0xff] }
 0x246   : > { %4712 = vmatprep.subr.bf16.mxu0 %v16970_v6  ;;  %4794 = vmatprep.subr.bf16.mxu1 %v16972_v53  ;;  %v473_v5 = vld [vmem:[#allocation6 + $0x4a0] sm:$0xff]  ;;  %v19520_v6 = vcombine.high %v19516_v0, %v19516_v0  ;;  %v474_v53 = vld [vmem:[#allocation6 + $0x4a8] sm:$0xff] }
 0x247   : > { %v17034_v9 = vcombine.high %v469_v4, %v473_v5  ;;  %v17036_v36 = vcombine.high %v470_v58, %v474_v53  ;;  %v17033_v14 = vcombine.low %v469_v4, %v473_v5  ;;  %v17035_v16 = vcombine.low %v470_v58, %v474_v53 }
 0x249   : > { %4713 = vmatpush1.bf16.msra.mxu0 %v16969_v10  ;;  %4795 = vmatpush1.bf16.msra.mxu1 %v16971_v22  ;;  %v477_v10 = vld [vmem:[#allocation6 + $0x4c0] sm:$0xff] }
 0x24a   : > { %4714 = vmatprep.subr.bf16.mxu0 %v16978_v11  ;;  %4796 = vmatprep.subr.bf16.mxu1 %v16980_v13  ;;  %v481_v22 = vld [vmem:[#allocation6 + $0x4e0] sm:$0xff]  ;;  %v478_v11 = vld [vmem:[#allocation6 + $0x4c8] sm:$0xff] }
 0x24b   : > { %v482_v13 = vld [vmem:[#allocation6 + $0x4e8] sm:$0xff]  ;;  %v17042_v32 = vcombine.high %v477_v10, %v481_v22  ;;  %v17041_v23 = vcombine.low %v477_v10, %v481_v22 }
 0x24c   : > { %v17044_v17 = vcombine.high %v478_v11, %v482_v13  ;;  %v17043_v24 = vcombine.low %v478_v11, %v482_v13 }
 0x24d   : > { %4715 = vmatpush1.bf16.msra.mxu0 %v16977_v18  ;;  %4797 = vmatpush1.bf16.msra.mxu1 %v16979_v19  ;;  %v485_v18 = vld [vmem:[#allocation6 + $0x500] sm:$0xff] }
 0x24e   : > { %4716 = vmatprep.subr.bf16.mxu0 %v16986_v20  ;;  %4798 = vmatprep.subr.bf16.mxu1 %v16988_v21  ;;  %v489_v19 = vld [vmem:[#allocation6 + $0x520] sm:$0xff]  ;;  %v486_v20 = vld [vmem:[#allocation6 + $0x508] sm:$0xff] }
 0x24f   : > { %v490_v21 = vld [vmem:[#allocation6 + $0x528] sm:$0xff]  ;;  %v17050_v26 = vcombine.high %v485_v18, %v489_v19  ;;  %v17049_v15 = vcombine.low %v485_v18, %v489_v19 }
 0x250   : > { %v17052_v27 = vcombine.high %v486_v20, %v490_v21  ;;  %v17051_v33 = vcombine.low %v486_v20, %v490_v21 }
 0x251   : > { %4717 = vmatpush1.bf16.msra.mxu0 %v16985_v28  ;;  %4799 = vmatpush1.bf16.msra.mxu1 %v16987_v29  ;;  %v493_v28 = vld [vmem:[#allocation6 + $0x540] sm:$0xff] }
 0x252   : > { %4718 = vmatprep.subr.bf16.mxu0 %v16994_v30  ;;  %4800 = vmatprep.subr.bf16.mxu1 %v16996_v31  ;;  %v497_v29 = vld [vmem:[#allocation6 + $0x560] sm:$0xff]  ;;  %v494_v30 = vld [vmem:[#allocation6 + $0x548] sm:$0xff] }
 0x253   : > { %v498_v31 = vld [vmem:[#allocation6 + $0x568] sm:$0xff]  ;;  %v17058_v34 = vcombine.high %v493_v28, %v497_v29  ;;  %v17057_v41 = vcombine.low %v493_v28, %v497_v29 }
 0x254   : > { %v17060_v35 = vcombine.high %v494_v30, %v498_v31  ;;  %v17059_v42 = vcombine.low %v494_v30, %v498_v31 }
 0x255   : > { %4719 = vmatpush1.bf16.msra.mxu0 %v16993_v37  ;;  %4801 = vmatpush1.bf16.msra.mxu1 %v16995_v38  ;;  %v501_v37 = vld [vmem:[#allocation6 + $0x580] sm:$0xff] }
 0x256   : > { %4720 = vmatprep.subr.bf16.mxu0 %v17002_v39  ;;  %4802 = vmatprep.subr.bf16.mxu1 %v17004_v40  ;;  %v505_v38 = vld [vmem:[#allocation6 + $0x5a0] sm:$0xff]  ;;  %v502_v39 = vld [vmem:[#allocation6 + $0x588] sm:$0xff] }
 0x257   : > { %v506_v40 = vld [vmem:[#allocation6 + $0x5a8] sm:$0xff]  ;;  %v17066_v43 = vcombine.high %v501_v37, %v505_v38  ;;  %v17065_v48 = vcombine.low %v501_v37, %v505_v38 }
 0x258   : > { %v17068_v44 = vcombine.high %v502_v39, %v506_v40  ;;  %v17067_v49 = vcombine.low %v502_v39, %v506_v40 }
 0x259   : > { %4721 = vmatpush1.bf16.msra.mxu0 %v17001_v45  ;;  %4803 = vmatpush1.bf16.msra.mxu1 %v17003_v46  ;;  %v509_v45 = vld [vmem:[#allocation6 + $0x5c0] sm:$0xff] }
 0x25a   : > { %4722 = vmatprep.subr.bf16.mxu0 %v17010_v25  ;;  %4804 = vmatprep.subr.bf16.mxu1 %v17012_v47  ;;  %v513_v46 = vld [vmem:[#allocation6 + $0x5e0] sm:$0xff]  ;;  %v510_v25 = vld [vmem:[#allocation6 + $0x5c8] sm:$0xff] }
 0x25b   : > { %v514_v47 = vld [vmem:[#allocation6 + $0x5e8] sm:$0xff]  ;;  %v17074_v50 = vcombine.high %v509_v45, %v513_v46  ;;  %v17073_v59 = vcombine.low %v509_v45, %v513_v46 }
 0x25c   : > { %v17076_v51 = vcombine.high %v510_v25, %v514_v47  ;;  %v17075_v60 = vcombine.low %v510_v25, %v514_v47 }
 0x25d   : > { %4723 = vmatpush1.bf16.msra.mxu0 %v17009_v52  ;;  %4805 = vmatpush1.bf16.msra.mxu1 %v17011_v54  ;;  %v517_v52 = vld [vmem:[#allocation6 + $0x600] sm:$0xff] }
 0x25e   : > { %4733 = vmatprep.subr.bf16.mxu0 %v17018_v55  ;;  %4815 = vmatprep.subr.bf16.mxu1 %v17020_v56  ;;  %v521_v54 = vld [vmem:[#allocation6 + $0x620] sm:$0xff]  ;;  %v518_v55 = vld [vmem:[#allocation6 + $0x608] sm:$0xff] }
 0x25f   : > { %v522_v56 = vld [vmem:[#allocation6 + $0x628] sm:$0xff]  ;;  %v17082_v62 = vcombine.high %v517_v52, %v521_v54  ;;  %v17081_v4 = vcombine.low %v517_v52, %v521_v54 }
 0x260   : > { %4725 = vmatmul.mubr.bf16.vlgmr.msra.gmra.mrb[0].mxu0 %v19513_v61  ;;  %4807 = vmatmul.mubr.bf16.vlgmr.msra.gmra.mrb[0].mxu1 %v19513_v61  ;;  %v17084_v63 = vcombine.high %v518_v55, %v522_v56  ;;  %v17083_v5 = vcombine.low %v518_v55, %v522_v56 }
 0x261   : > { %4734 = vmatpush1.bf16.msra.mxu0 %v17017_v2  ;;  %4816 = vmatpush1.bf16.msra.mxu1 %v17019_v12  ;;  %v525_v2 = vld [vmem:[#allocation6 + $0x640] sm:$0xff] }
 0x262   : > { %4735 = vmatprep.subr.bf16.mxu0 %v17026_v57  ;;  %4817 = vmatprep.subr.bf16.mxu1 %v17028_v3  ;;  %v529_v12 = vld [vmem:[#allocation6 + $0x660] sm:$0xff]  ;;  %v526_v57 = vld [vmem:[#allocation6 + $0x648] sm:$0xff] }
 0x263   : > { %4765 = vmatprep.mubr.bf16.mxu0 %v19520_v6  ;;  %4847 = vmatprep.mubr.bf16.mxu1 %v19520_v6  ;;  %v530_v3 = vld [vmem:[#allocation6 + $0x668] sm:$0xff]  ;;  %v17090_v58 = vcombine.high %v525_v2, %v529_v12  ;;  %v17089_v10 = vcombine.low %v525_v2, %v529_v12 }
 0x264   : > { %v17092_v53 = vcombine.high %v526_v57, %v530_v3  ;;  %v17091_v22 = vcombine.low %v526_v57, %v530_v3 }
 0x265   : > { %4736 = vmatpush1.bf16.msra.mxu0 %v17025_v7  ;;  %4818 = vmatpush1.bf16.msra.mxu1 %v17027_v8  ;;  %v533_v7 = vld [vmem:[#allocation6 + $0x680] sm:$0xff] }
 0x266   : > { %4737 = vmatprep.subr.bf16.mxu0 %v17034_v9  ;;  %4819 = vmatprep.subr.bf16.mxu1 %v17036_v36  ;;  %v537_v8 = vld [vmem:[#allocation6 + $0x6a0] sm:$0xff]  ;;  %v534_v9 = vld [vmem:[#allocation6 + $0x688] sm:$0xff] }
 0x267   : > { %v538_v36 = vld [vmem:[#allocation6 + $0x6a8] sm:$0xff]  ;;  %v17098_v11 = vcombine.high %v533_v7, %v537_v8  ;;  %v17097_v18 = vcombine.low %v533_v7, %v537_v8  ;;  %v340_v7 = vld [vmem:[#allocation6 + $0x78] sm:$0xff] }
 0x268   : > { %v17100_v13 = vcombine.high %v534_v9, %v538_v36  ;;  %v17099_v19 = vcombine.low %v534_v9, %v538_v36 }
 0x269   : > { %4738 = vmatpush1.bf16.msra.mxu0 %v17033_v14  ;;  %4820 = vmatpush1.bf16.msra.mxu1 %v17035_v16  ;;  %v541_v14 = vld [vmem:[#allocation6 + $0x6c0] sm:$0xff] }
 0x26a   : > { %4739 = vmatprep.subr.bf16.mxu0 %v17042_v32  ;;  %4821 = vmatprep.subr.bf16.mxu1 %v17044_v17  ;;  %v545_v16 = vld [vmem:[#allocation6 + $0x6e0] sm:$0xff]  ;;  %v542_v32 = vld [vmem:[#allocation6 + $0x6c8] sm:$0xff] }
 0x26b   : > { %v546_v17 = vld [vmem:[#allocation6 + $0x6e8] sm:$0xff]  ;;  %v17106_v20 = vcombine.high %v541_v14, %v545_v16  ;;  %v17105_v28 = vcombine.low %v541_v14, %v545_v16  ;;  %v348_v14 = vld [vmem:[#allocation6 + $0xb8] sm:$0xff] }
 0x26c   : > { %v17108_v21 = vcombine.high %v542_v32, %v546_v17  ;;  %v17107_v29 = vcombine.low %v542_v32, %v546_v17 }
 0x26d   : > { %4740 = vmatpush1.bf16.msra.mxu0 %v17041_v23  ;;  %4822 = vmatpush1.bf16.msra.mxu1 %v17043_v24  ;;  %v549_v23 = vld [vmem:[#allocation6 + $0x700] sm:$0xff] }
 0x26e   : > { %4741 = vmatprep.subr.bf16.mxu0 %v17050_v26  ;;  %4823 = vmatprep.subr.bf16.mxu1 %v17052_v27  ;;  %v553_v24 = vld [vmem:[#allocation6 + $0x720] sm:$0xff]  ;;  %v550_v26 = vld [vmem:[#allocation6 + $0x708] sm:$0xff] }
 0x26f   : > { %v554_v27 = vld [vmem:[#allocation6 + $0x728] sm:$0xff]  ;;  %v17114_v30 = vcombine.high %v549_v23, %v553_v24  ;;  %v17113_v37 = vcombine.low %v549_v23, %v553_v24 }
 0x270   : > { %v17116_v31 = vcombine.high %v550_v26, %v554_v27  ;;  %v17115_v38 = vcombine.low %v550_v26, %v554_v27 }
 0x271   : > { %4742 = vmatpush1.bf16.msra.mxu0 %v17049_v15  ;;  %4824 = vmatpush1.bf16.msra.mxu1 %v17051_v33  ;;  %v557_v15 = vld [vmem:[#allocation6 + $0x740] sm:$0xff] }
 0x272   : > { %4743 = vmatprep.subr.bf16.mxu0 %v17058_v34  ;;  %4825 = vmatprep.subr.bf16.mxu1 %v17060_v35  ;;  %v561_v33 = vld [vmem:[#allocation6 + $0x760] sm:$0xff]  ;;  %v558_v34 = vld [vmem:[#allocation6 + $0x748] sm:$0xff] }
 0x273   : > { %v562_v35 = vld [vmem:[#allocation6 + $0x768] sm:$0xff]  ;;  %v17122_v39 = vcombine.high %v557_v15, %v561_v33  ;;  %v17121_v45 = vcombine.low %v557_v15, %v561_v33 }
 0x274   : > { %v17124_v40 = vcombine.high %v558_v34, %v562_v35  ;;  %v17123_v46 = vcombine.low %v558_v34, %v562_v35  ;;  %v367_v35 = vld [vmem:[#allocation6 + $0x150] sm:$0xff] }
 0x275   : > { %4744 = vmatpush1.bf16.msra.mxu0 %v17057_v41  ;;  %4826 = vmatpush1.bf16.msra.mxu1 %v17059_v42  ;;  %v565_v41 = vld [vmem:[#allocation6 + $0x780] sm:$0xff] }
 0x276   : > { %4745 = vmatprep.subr.bf16.mxu0 %v17066_v43  ;;  %4827 = vmatprep.subr.bf16.mxu1 %v17068_v44  ;;  %v569_v42 = vld [vmem:[#allocation6 + $0x7a0] sm:$0xff]  ;;  %v566_v43 = vld [vmem:[#allocation6 + $0x788] sm:$0xff] }
 0x277   : > { %v570_v44 = vld [vmem:[#allocation6 + $0x7a8] sm:$0xff]  ;;  %v17130_v25 = vcombine.high %v565_v41, %v569_v42  ;;  %v17129_v52 = vcombine.low %v565_v41, %v569_v42 }
 0x278   : > { %v17132_v47 = vcombine.high %v566_v43, %v570_v44  ;;  %v17131_v54 = vcombine.low %v566_v43, %v570_v44  ;;  %v375_v44 = vld [vmem:[#allocation6 + $0x190] sm:$0xff] }
 0x279   : > { %4746 = vmatpush1.bf16.msra.mxu0 %v17065_v48  ;;  %4828 = vmatpush1.bf16.msra.mxu1 %v17067_v49  ;;  %v573_v48 = vld [vmem:[#allocation6 + $0x7c0] sm:$0xff] }
 0x27a   : > { %4747 = vmatprep.subr.bf16.mxu0 %v17074_v50  ;;  %4829 = vmatprep.subr.bf16.mxu1 %v17076_v51  ;;  %v577_v49 = vld [vmem:[#allocation6 + $0x7e0] sm:$0xff]  ;;  %v574_v50 = vld [vmem:[#allocation6 + $0x7c8] sm:$0xff] }
 0x27b   : > { %v578_v51 = vld [vmem:[#allocation6 + $0x7e8] sm:$0xff]  ;;  %v17138_v55 = vcombine.high %v573_v48, %v577_v49  ;;  %v17137_v2 = vcombine.low %v573_v48, %v577_v49 }
 0x27c   : > { %v17140_v56 = vcombine.high %v574_v50, %v578_v51  ;;  %v17139_v12 = vcombine.low %v574_v50, %v578_v51  ;;  %v383_v51 = vld [vmem:[#allocation6 + $0x1d0] sm:$0xff] }
 0x27d   : > { %4748 = vmatpush1.bf16.msra.mxu0 %v17073_v59  ;;  %4830 = vmatpush1.bf16.msra.mxu1 %v17075_v60  ;;  %v327_v59 = vld [vmem:[#allocation6 + $0x10] sm:$0xff] }
 0x27e   : > { %4749 = vmatprep.subr.bf16.mxu0 %v17082_v62  ;;  %4831 = vmatprep.subr.bf16.mxu1 %v17084_v63  ;;  %v331_v60 = vld [vmem:[#allocation6 + $0x30] sm:$0xff]  ;;  %v328_v62 = vld [vmem:[#allocation6 + $0x18] sm:$0xff] }
 0x27f   : > { %v332_v63 = vld [vmem:[#allocation6 + $0x38] sm:$0xff]  ;;  %v16894_v57 = vcombine.high %v327_v59, %v331_v60  ;;  %v16893_v8 = vcombine.low %v327_v59, %v331_v60 }
 0x280   : > { %v16896_v3 = vcombine.high %v328_v62, %v332_v63  ;;  %v16895_v9 = vcombine.low %v328_v62, %v332_v63  ;;  %v391_v63 = vld [vmem:[#allocation6 + $0x210] sm:$0xff] }
 0x281   : > { %4750 = vmatpush1.bf16.msra.mxu0 %v17081_v4  ;;  %4832 = vmatpush1.bf16.msra.mxu1 %v17083_v5  ;;  %v335_v4 = vld [vmem:[#allocation6 + $0x50] sm:$0xff] }
 0x282   : > { %4751 = vmatprep.subr.bf16.mxu0 %v17090_v58  ;;  %4833 = vmatprep.subr.bf16.mxu1 %v17092_v53  ;;  %v339_v5 = vld [vmem:[#allocation6 + $0x70] sm:$0xff]  ;;  %v19528_v58 = vcombine.low %v19516_v0, %v19516_v0  ;;  %v336_v53 = vld [vmem:[#allocation6 + $0x58] sm:$0xff] }
 0x283   : > { %v16902_v36 = vcombine.high %v335_v4, %v339_v5  ;;  %v16901_v0 = vcombine.low %v335_v4, %v339_v5  ;;  %v16903_v16 = vcombine.low %v336_v53, %v340_v7 }
 0x285   : > { %4752 = vmatpush1.bf16.msra.mxu0 %v17089_v10  ;;  %4834 = vmatpush1.bf16.msra.mxu1 %v17091_v22  ;;  %v16904_v10 = vcombine.high %v336_v53, %v340_v7  ;;  %v343_v22 = vld [vmem:[#allocation6 + $0x90] sm:$0xff] }
 0x286   : > { %4753 = vmatprep.subr.bf16.mxu0 %v17098_v11  ;;  %4835 = vmatprep.subr.bf16.mxu1 %v17100_v13  ;;  %v347_v11 = vld [vmem:[#allocation6 + $0xb0] sm:$0xff]  ;;  %v344_v13 = vld [vmem:[#allocation6 + $0x98] sm:$0xff] }
 0x287   : > { %v16910_v32 = vcombine.high %v343_v22, %v347_v11  ;;  %v16912_v17 = vcombine.high %v344_v13, %v348_v14  ;;  %v16909_v23 = vcombine.low %v343_v22, %v347_v11  ;;  %v16911_v24 = vcombine.low %v344_v13, %v348_v14  ;;  %v399_v7 = vld [vmem:[#allocation6 + $0x250] sm:$0xff] }
 0x288   : > { %v407_v14 = vld [vmem:[#allocation6 + $0x290] sm:$0xff] }
 0x289   : > { %4754 = vmatpush1.bf16.msra.mxu0 %v17097_v18  ;;  %4836 = vmatpush1.bf16.msra.mxu1 %v17099_v19  ;;  %v351_v18 = vld [vmem:[#allocation6 + $0xd0] sm:$0xff] }
 0x28a   : > { %4755 = vmatprep.subr.bf16.mxu0 %v17106_v20  ;;  %4837 = vmatprep.subr.bf16.mxu1 %v17108_v21  ;;  %v355_v19 = vld [vmem:[#allocation6 + $0xf0] sm:$0xff]  ;;  %v352_v20 = vld [vmem:[#allocation6 + $0xd8] sm:$0xff] }
 0x28b   : > { %v356_v21 = vld [vmem:[#allocation6 + $0xf8] sm:$0xff]  ;;  %v16918_v26 = vcombine.high %v351_v18, %v355_v19  ;;  %v16917_v15 = vcombine.low %v351_v18, %v355_v19 }
 0x28c   : > { %v16920_v27 = vcombine.high %v352_v20, %v356_v21  ;;  %v16919_v33 = vcombine.low %v352_v20, %v356_v21  ;;  %v415_v21 = vld [vmem:[#allocation6 + $0x2d0] sm:$0xff] }
 0x28d   : > { %4756 = vmatpush1.bf16.msra.mxu0 %v17105_v28  ;;  %4838 = vmatpush1.bf16.msra.mxu1 %v17107_v29  ;;  %v359_v28 = vld [vmem:[#allocation6 + $0x110] sm:$0xff] }
 0x28e   : > { %4757 = vmatprep.subr.bf16.mxu0 %v17114_v30  ;;  %4839 = vmatprep.subr.bf16.mxu1 %v17116_v31  ;;  %v363_v29 = vld [vmem:[#allocation6 + $0x130] sm:$0xff]  ;;  %v360_v30 = vld [vmem:[#allocation6 + $0x118] sm:$0xff] }
 0x28f   : > { %v364_v31 = vld [vmem:[#allocation6 + $0x138] sm:$0xff]  ;;  %v16926_v34 = vcombine.high %v359_v28, %v363_v29 }
 0x290   : > { %v16927_v41 = vcombine.low %v360_v30, %v364_v31 }
 0x291   : > { %4758 = vmatpush1.bf16.msra.mxu0 %v17113_v37  ;;  %4840 = vmatpush1.bf16.msra.mxu1 %v17115_v38  ;;  %v371_v37 = vld [vmem:[#allocation6 + $0x170] sm:$0xff]  ;;  %v368_v38 = vld [vmem:[#allocation6 + $0x158] sm:$0xff] }
 0x292   : > { %4759 = vmatprep.subr.bf16.mxu0 %v17122_v39  ;;  %4841 = vmatprep.subr.bf16.mxu1 %v17124_v40  ;;  %v372_v39 = vld [vmem:[#allocation6 + $0x178] sm:$0xff]  ;;  %v16925_v40 = vcombine.low %v359_v28, %v363_v29  ;;  %v16934_v42 = vcombine.high %v367_v35, %v371_v37 }
 0x293   : > { %v16936_v43 = vcombine.high %v368_v38, %v372_v39  ;;  %v16935_v48 = vcombine.low %v368_v38, %v372_v39  ;;  %v431_v39 = vld [vmem:[#allocation6 + $0x350] sm:$0xff] }
 0x295   : > { %4760 = vmatpush1.bf16.msra.mxu0 %v17121_v45  ;;  %4842 = vmatpush1.bf16.msra.mxu1 %v17123_v46  ;;  %v379_v45 = vld [vmem:[#allocation6 + $0x1b0] sm:$0xff]  ;;  %v376_v46 = vld [vmem:[#allocation6 + $0x198] sm:$0xff] }
 0x296   : > { %4761 = vmatprep.subr.bf16.mxu0 %v17130_v25  ;;  %4843 = vmatprep.subr.bf16.mxu1 %v17132_v47  ;;  %v380_v25 = vld [vmem:[#allocation6 + $0x1b8] sm:$0xff]  ;;  %v16933_v47 = vcombine.low %v367_v35, %v371_v37  ;;  %v16942_v49 = vcombine.high %v375_v44, %v379_v45 }
 0x297   : > { %v16944_v50 = vcombine.high %v376_v46, %v380_v25  ;;  %v16943_v59 = vcombine.low %v376_v46, %v380_v25  ;;  %v439_v25 = vld [vmem:[#allocation6 + $0x390] sm:$0xff] }
 0x299   : > { %4762 = vmatpush1.bf16.msra.mxu0 %v17129_v52  ;;  %4844 = vmatpush1.bf16.msra.mxu1 %v17131_v54  ;;  %v387_v52 = vld [vmem:[#allocation6 + $0x1f0] sm:$0xff]  ;;  %v384_v54 = vld [vmem:[#allocation6 + $0x1d8] sm:$0xff] }
 0x29a   : > { %4763 = vmatprep.subr.bf16.mxu0 %v17138_v55  ;;  %4845 = vmatprep.subr.bf16.mxu1 %v17140_v56  ;;  %v388_v55 = vld [vmem:[#allocation6 + $0x1f8] sm:$0xff]  ;;  %v16941_v56 = vcombine.low %v375_v44, %v379_v45  ;;  %v16950_v60 = vcombine.high %v383_v51, %v387_v52 }
 0x29b   : > { %v16952_v62 = vcombine.high %v384_v54, %v388_v55  ;;  %v16951_v4 = vcombine.low %v384_v54, %v388_v55  ;;  %v447_v55 = vld [vmem:[#allocation6 + $0x3d0] sm:$0xff] }
 0x29d   : > { %4764 = vmatpush1.bf16.msra.mxu0 %v17137_v2  ;;  %4846 = vmatpush1.bf16.msra.mxu1 %v17139_v12  ;;  %v395_v2 = vld [vmem:[#allocation6 + $0x230] sm:$0xff]  ;;  %v392_v12 = vld [vmem:[#allocation6 + $0x218] sm:$0xff] }
 0x29e   : > { %4856 = vmatprep.subr.bf16.mxu0 %v16894_v57  ;;  %4938 = vmatprep.subr.bf16.mxu1 %v16896_v3  ;;  %v396_v57 = vld [vmem:[#allocation6 + $0x238] sm:$0xff]  ;;  %v16949_v3 = vcombine.low %v383_v51, %v387_v52  ;;  %v16958_v5 = vcombine.high %v391_v63, %v395_v2 }
 0x29f   : > { %v16960_v53 = vcombine.high %v392_v12, %v396_v57  ;;  %v16959_v22 = vcombine.low %v392_v12, %v396_v57  ;;  %v455_v57 = vld [vmem:[#allocation6 + $0x410] sm:$0xff] }
 0x2a0   : > { %4766 = vmatmul.mubr.bf16.vlgmr.msra.gmra.mrb[0].mxu0 %v19528_v58  ;;  %4848 = vmatmul.mubr.bf16.vlgmr.msra.gmra.mrb[0].mxu1 %v19528_v58 }
 0x2a1   : > { %4857 = vmatpush1.bf16.msra.mxu0 %v16893_v8  ;;  %4939 = vmatpush1.bf16.msra.mxu1 %v16895_v9  ;;  %v403_v8 = vld [vmem:[#allocation6 + $0x270] sm:$0xff]  ;;  %v400_v9 = vld [vmem:[#allocation6 + $0x258] sm:$0xff] }
 0x2a2   : > { %4858 = vmatprep.subr.bf16.mxu0 %v16902_v36  ;;  %4940 = vmatprep.subr.bf16.mxu1 %v16904_v10  ;;  %v404_v36 = vld [vmem:[#allocation6 + $0x278] sm:$0xff]  ;;  %v16957_v10 = vcombine.low %v391_v63, %v395_v2  ;;  %v16966_v11 = vcombine.high %v399_v7, %v403_v8 }
 0x2a3   : > { %4888 = vmatprep.mubr.bf16.mxu0 %v19505_v1  ;;  %4970 = vmatprep.mubr.bf16.mxu1 %v19505_v1  ;;  %v16928_v1 = vcombine.high %v360_v30, %v364_v31  ;;  %v16968_v13 = vcombine.high %v400_v9, %v404_v36  ;;  %v16967_v18 = vcombine.low %v400_v9, %v404_v36  ;;  %v423_v31 = vld [vmem:[#allocation6 + $0x310] sm:$0xff] }
 0x2a4   : > { %v463_v36 = vld [vmem:[#allocation6 + $0x450] sm:$0xff] }
 0x2a5   : > { %4859 = vmatpush1.bf16.msra.mxu0 %v16901_v0  ;;  %4941 = vmatpush1.bf16.msra.mxu1 %v16903_v16  ;;  %v411_v0 = vld [vmem:[#allocation6 + $0x2b0] sm:$0xff]  ;;  %v408_v16 = vld [vmem:[#allocation6 + $0x298] sm:$0xff] }
 0x2a6   : > { %4860 = vmatprep.subr.bf16.mxu0 %v16910_v32  ;;  %4942 = vmatprep.subr.bf16.mxu1 %v16912_v17  ;;  %v412_v32 = vld [vmem:[#allocation6 + $0x2b8] sm:$0xff]  ;;  %v16965_v17 = vcombine.low %v399_v7, %v403_v8  ;;  %v16974_v19 = vcombine.high %v407_v14, %v411_v0 }
 0x2a7   : > { %v16976_v20 = vcombine.high %v408_v16, %v412_v32  ;;  %v16975_v28 = vcombine.low %v408_v16, %v412_v32  ;;  %v471_v32 = vld [vmem:[#allocation6 + $0x490] sm:$0xff] }
 0x2a9   : > { %4861 = vmatpush1.bf16.msra.mxu0 %v16909_v23  ;;  %4943 = vmatpush1.bf16.msra.mxu1 %v16911_v24  ;;  %v419_v23 = vld [vmem:[#allocation6 + $0x2f0] sm:$0xff]  ;;  %v416_v24 = vld [vmem:[#allocation6 + $0x2d8] sm:$0xff] }
 0x2aa   : > { %4862 = vmatprep.subr.bf16.mxu0 %v16918_v26  ;;  %4944 = vmatprep.subr.bf16.mxu1 %v16920_v27  ;;  %v420_v26 = vld [vmem:[#allocation6 + $0x2f8] sm:$0xff]  ;;  %v16973_v27 = vcombine.low %v407_v14, %v411_v0  ;;  %v16982_v29 = vcombine.high %v415_v21, %v419_v23 }
 0x2ab   : > { %v16984_v30 = vcombine.high %v416_v24, %v420_v26  ;;  %v16983_v35 = vcombine.low %v416_v24, %v420_v26  ;;  %v479_v26 = vld [vmem:[#allocation6 + $0x4d0] sm:$0xff] }
 0x2ad   : > { %4863 = vmatpush1.bf16.msra.mxu0 %v16917_v15  ;;  %4945 = vmatpush1.bf16.msra.mxu1 %v16919_v33  ;;  %v427_v15 = vld [vmem:[#allocation6 + $0x330] sm:$0xff]  ;;  %v424_v33 = vld [vmem:[#allocation6 + $0x318] sm:$0xff] }
 0x2ae   : > { %4864 = vmatprep.subr.bf16.mxu0 %v16926_v34  ;;  %4946 = vmatprep.subr.bf16.mxu1 %v16928_v1  ;;  %v428_v34 = vld [vmem:[#allocation6 + $0x338] sm:$0xff]  ;;  %v16981_v1 = vcombine.low %v415_v21, %v419_v23  ;;  %v16990_v37 = vcombine.high %v423_v31, %v427_v15 }
 0x2af   : > { %v16992_v38 = vcombine.high %v424_v33, %v428_v34  ;;  %v16991_v44 = vcombine.low %v424_v33, %v428_v34  ;;  %v487_v33 = vld [vmem:[#allocation6 + $0x510] sm:$0xff] }
 0x2b0   : > { %v491_v34 = vld [vmem:[#allocation6 + $0x530] sm:$0xff] }
 0x2b1   : > { %4865 = vmatpush1.bf16.msra.mxu0 %v16925_v40  ;;  %4947 = vmatpush1.bf16.msra.mxu1 %v16927_v41  ;;  %v435_v40 = vld [vmem:[#allocation6 + $0x370] sm:$0xff]  ;;  %v432_v41 = vld [vmem:[#allocation6 + $0x358] sm:$0xff] }
 0x2b2   : > { %4866 = vmatprep.subr.bf16.mxu0 %v16934_v42  ;;  %4948 = vmatprep.subr.bf16.mxu1 %v16936_v43  ;;  %v436_v42 = vld [vmem:[#allocation6 + $0x378] sm:$0xff]  ;;  %v16989_v43 = vcombine.low %v423_v31, %v427_v15  ;;  %v16998_v45 = vcombine.high %v431_v39, %v435_v40 }
 0x2b3   : > { %v17000_v46 = vcombine.high %v432_v41, %v436_v42  ;;  %v16999_v51 = vcombine.low %v432_v41, %v436_v42  ;;  %v499_v41 = vld [vmem:[#allocation6 + $0x570] sm:$0xff]  ;;  %v496_v42 = vld [vmem:[#allocation6 + $0x558] sm:$0xff] }
 0x2b5   : > { %4867 = vmatpush1.bf16.msra.mxu0 %v16933_v47  ;;  %4949 = vmatpush1.bf16.msra.mxu1 %v16935_v48  ;;  %v443_v47 = vld [vmem:[#allocation6 + $0x3b0] sm:$0xff]  ;;  %v440_v48 = vld [vmem:[#allocation6 + $0x398] sm:$0xff] }
 0x2b6   : > { %4868 = vmatprep.subr.bf16.mxu0 %v16942_v49  ;;  %4950 = vmatprep.subr.bf16.mxu1 %v16944_v50  ;;  %v444_v49 = vld [vmem:[#allocation6 + $0x3b8] sm:$0xff]  ;;  %v16997_v50 = vcombine.low %v431_v39, %v435_v40  ;;  %v17006_v52 = vcombine.high %v439_v25, %v443_v47  ;;  %v17054_v39 = vcombine.high %v487_v33, %v491_v34  ;;  %v495_v40 = vld [vmem:[#allocation6 + $0x550] sm:$0xff] }
 0x2b7   : > { %v17008_v54 = vcombine.high %v440_v48, %v444_v49  ;;  %v17007_v63 = vcombine.low %v440_v48, %v444_v49  ;;  %v507_v48 = vld [vmem:[#allocation6 + $0x5b0] sm:$0xff]  ;;  %v504_v49 = vld [vmem:[#allocation6 + $0x598] sm:$0xff] }
 0x2b9   : > { %4869 = vmatpush1.bf16.msra.mxu0 %v16941_v56  ;;  %4951 = vmatpush1.bf16.msra.mxu1 %v16943_v59  ;;  %v451_v56 = vld [vmem:[#allocation6 + $0x3f0] sm:$0xff]  ;;  %v448_v59 = vld [vmem:[#allocation6 + $0x3d8] sm:$0xff] }
 0x2ba   : > { %4870 = vmatprep.subr.bf16.mxu0 %v16950_v60  ;;  %4952 = vmatprep.subr.bf16.mxu1 %v16952_v62  ;;  %v452_v60 = vld [vmem:[#allocation6 + $0x3f8] sm:$0xff]  ;;  %v17005_v62 = vcombine.low %v439_v25, %v443_v47  ;;  %v17014_v2 = vcombine.high %v447_v55, %v451_v56  ;;  %v503_v47 = vld [vmem:[#allocation6 + $0x590] sm:$0xff] }
 0x2bb   : > { %v17016_v12 = vcombine.high %v448_v59, %v452_v60  ;;  %v17015_v7 = vcombine.low %v448_v59, %v452_v60  ;;  %v515_v59 = vld [vmem:[#allocation6 + $0x5f0] sm:$0xff]  ;;  %v512_v60 = vld [vmem:[#allocation6 + $0x5d8] sm:$0xff] }
 0x2bd   : > { %4871 = vmatpush1.bf16.msra.mxu0 %v16949_v3  ;;  %4953 = vmatpush1.bf16.msra.mxu1 %v16951_v4  ;;  %v459_v3 = vld [vmem:[#allocation6 + $0x430] sm:$0xff]  ;;  %v456_v4 = vld [vmem:[#allocation6 + $0x418] sm:$0xff] }
 0x2be   : > { %4872 = vmatprep.subr.bf16.mxu0 %v16958_v5  ;;  %4954 = vmatprep.subr.bf16.mxu1 %v16960_v53  ;;  %v460_v5 = vld [vmem:[#allocation6 + $0x438] sm:$0xff]  ;;  %v17013_v53 = vcombine.low %v447_v55, %v451_v56  ;;  %v17022_v8 = vcombine.high %v455_v57, %v459_v3  ;;  %v511_v56 = vld [vmem:[#allocation6 + $0x5d0] sm:$0xff] }
 0x2bf   : > { %v17024_v9 = vcombine.high %v456_v4, %v460_v5  ;;  %v17023_v14 = vcombine.low %v456_v4, %v460_v5  ;;  %v523_v4 = vld [vmem:[#allocation6 + $0x630] sm:$0xff]  ;;  %v520_v5 = vld [vmem:[#allocation6 + $0x618] sm:$0xff] }
 0x2c1   : > { %4873 = vmatpush1.bf16.msra.mxu0 %v16957_v10  ;;  %4955 = vmatpush1.bf16.msra.mxu1 %v16959_v22  ;;  %v467_v10 = vld [vmem:[#allocation6 + $0x470] sm:$0xff]  ;;  %v464_v22 = vld [vmem:[#allocation6 + $0x458] sm:$0xff] }
 0x2c2   : > { %4874 = vmatprep.subr.bf16.mxu0 %v16966_v11  ;;  %4956 = vmatprep.subr.bf16.mxu1 %v16968_v13  ;;  %v468_v11 = vld [vmem:[#allocation6 + $0x478] sm:$0xff]  ;;  %v17021_v13 = vcombine.low %v455_v57, %v459_v3  ;;  %v17030_v0 = vcombine.high %v463_v36, %v467_v10  ;;  %v519_v3 = vld [vmem:[#allocation6 + $0x610] sm:$0xff] }
 0x2c3   : > { %v17032_v16 = vcombine.high %v464_v22, %v468_v11  ;;  %v17031_v21 = vcombine.low %v464_v22, %v468_v11  ;;  %v531_v22 = vld [vmem:[#allocation6 + $0x670] sm:$0xff]  ;;  %v528_v11 = vld [vmem:[#allocation6 + $0x658] sm:$0xff] }
 0x2c5   : > { %4875 = vmatpush1.bf16.msra.mxu0 %v16965_v17  ;;  %4957 = vmatpush1.bf16.msra.mxu1 %v16967_v18  ;;  %v475_v17 = vld [vmem:[#allocation6 + $0x4b0] sm:$0xff]  ;;  %v472_v18 = vld [vmem:[#allocation6 + $0x498] sm:$0xff] }
 0x2c6   : > { %4876 = vmatprep.subr.bf16.mxu0 %v16974_v19  ;;  %4958 = vmatprep.subr.bf16.mxu1 %v16976_v20  ;;  %v476_v19 = vld [vmem:[#allocation6 + $0x4b8] sm:$0xff]  ;;  %v17029_v20 = vcombine.low %v463_v36, %v467_v10  ;;  %v17038_v23 = vcombine.high %v471_v32, %v475_v17  ;;  %v527_v10 = vld [vmem:[#allocation6 + $0x650] sm:$0xff] }
 0x2c7   : > { %v17040_v24 = vcombine.high %v472_v18, %v476_v19 }
 0x2c9   : > { %4877 = vmatpush1.bf16.msra.mxu0 %v16973_v27  ;;  %4959 = vmatpush1.bf16.msra.mxu1 %v16975_v28  ;;  %v483_v27 = vld [vmem:[#allocation6 + $0x4f0] sm:$0xff]  ;;  %v480_v28 = vld [vmem:[#allocation6 + $0x4d8] sm:$0xff] }
 0x2ca   : > { %4878 = vmatprep.subr.bf16.mxu0 %v16982_v29  ;;  %4960 = vmatprep.subr.bf16.mxu1 %v16984_v30  ;;  %v484_v29 = vld [vmem:[#allocation6 + $0x4f8] sm:$0xff]  ;;  %v17037_v30 = vcombine.low %v471_v32, %v475_v17  ;;  %v17046_v31 = vcombine.high %v479_v26, %v483_v27  ;;  %v535_v17 = vld [vmem:[#allocation6 + $0x690] sm:$0xff] }
 0x2cb   : > { %v17048_v15 = vcombine.high %v480_v28, %v484_v29 }
 0x2cd   : > { %4879 = vmatpush1.bf16.msra.mxu0 %v16981_v1  ;;  %4961 = vmatpush1.bf16.msra.mxu1 %v16983_v35  ;;  %v488_v1 = vld [vmem:[#allocation6 + $0x518] sm:$0xff] }
 0x2ce   : > { %4880 = vmatprep.subr.bf16.mxu0 %v16990_v37  ;;  %4962 = vmatprep.subr.bf16.mxu1 %v16992_v38  ;;  %v492_v35 = vld [vmem:[#allocation6 + $0x538] sm:$0xff]  ;;  %v17045_v37 = vcombine.low %v479_v26, %v483_v27  ;;  %v17047_v38 = vcombine.low %v480_v28, %v484_v29  ;;  %v543_v27 = vld [vmem:[#allocation6 + $0x6d0] sm:$0xff] }
 0x2cf   : > { %v547_v28 = vld [vmem:[#allocation6 + $0x6f0] sm:$0xff]  ;;  %v544_v29 = vld [vmem:[#allocation6 + $0x6d8] sm:$0xff] }
 0x2d1   : > { %4881 = vmatpush1.bf16.msra.mxu0 %v16989_v43  ;;  %4963 = vmatpush1.bf16.msra.mxu1 %v16991_v44  ;;  %v500_v43 = vld [vmem:[#allocation6 + $0x578] sm:$0xff]  ;;  %v17053_v44 = vcombine.low %v487_v33, %v491_v34  ;;  %v551_v34 = vld [vmem:[#allocation6 + $0x710] sm:$0xff] }
 0x2d2   : > { %4882 = vmatprep.subr.bf16.mxu0 %v16998_v45  ;;  %4964 = vmatprep.subr.bf16.mxu1 %v17000_v46  ;;  %v17055_v45 = vcombine.low %v488_v1, %v492_v35  ;;  %v17062_v46 = vcombine.high %v495_v40, %v499_v41  ;;  %v17064_v25 = vcombine.high %v496_v42, %v500_v43 }
 0x2d5   : > { %4883 = vmatpush1.bf16.msra.mxu0 %v16997_v50  ;;  %4965 = vmatpush1.bf16.msra.mxu1 %v16999_v51  ;;  %v508_v50 = vld [vmem:[#allocation6 + $0x5b8] sm:$0xff]  ;;  %v17061_v51 = vcombine.low %v495_v40, %v499_v41  ;;  %v559_v41 = vld [vmem:[#allocation6 + $0x750] sm:$0xff] }
 0x2d6   : > { %4884 = vmatprep.subr.bf16.mxu0 %v17006_v52  ;;  %4966 = vmatprep.subr.bf16.mxu1 %v17008_v54  ;;  %v17063_v52 = vcombine.low %v496_v42, %v500_v43  ;;  %v17070_v54 = vcombine.high %v503_v47, %v507_v48  ;;  %v17072_v55 = vcombine.high %v504_v49, %v508_v50  ;;  %v563_v42 = vld [vmem:[#allocation6 + $0x770] sm:$0xff]  ;;  %v560_v43 = vld [vmem:[#allocation6 + $0x758] sm:$0xff] }
 0x2d9   : > { %4885 = vmatpush1.bf16.msra.mxu0 %v17005_v62  ;;  %4967 = vmatpush1.bf16.msra.mxu1 %v17007_v63  ;;  %v516_v62 = vld [vmem:[#allocation6 + $0x5f8] sm:$0xff]  ;;  %v17069_v63 = vcombine.low %v503_v47, %v507_v48  ;;  %v567_v48 = vld [vmem:[#allocation6 + $0x790] sm:$0xff] }
 0x2da   : > { %4886 = vmatprep.subr.bf16.mxu0 %v17014_v2  ;;  %4968 = vmatprep.subr.bf16.mxu1 %v17016_v12  ;;  %v17071_v2 = vcombine.low %v504_v49, %v508_v50  ;;  %v17078_v12 = vcombine.high %v511_v56, %v515_v59  ;;  %v17080_v57 = vcombine.high %v512_v60, %v516_v62  ;;  %v571_v49 = vld [vmem:[#allocation6 + $0x7b0] sm:$0xff]  ;;  %v568_v50 = vld [vmem:[#allocation6 + $0x798] sm:$0xff] }
 0x2dd   : > { %4887 = vmatpush1.bf16.msra.mxu0 %v17013_v53  ;;  %4969 = vmatpush1.bf16.msra.mxu1 %v17015_v7  ;;  %v524_v53 = vld [vmem:[#allocation6 + $0x638] sm:$0xff]  ;;  %v17077_v7 = vcombine.low %v511_v56, %v515_v59  ;;  %v575_v59 = vld [vmem:[#allocation6 + $0x7d0] sm:$0xff] }
 0x2de   : > { %4897 = vmatprep.subr.bf16.mxu0 %v17022_v8  ;;  %4979 = vmatprep.subr.bf16.mxu1 %v17024_v9  ;;  %v17079_v8 = vcombine.low %v512_v60, %v516_v62  ;;  %v17086_v9 = vcombine.high %v519_v3, %v523_v4  ;;  %v17088_v36 = vcombine.high %v520_v5, %v524_v53  ;;  %v579_v60 = vld [vmem:[#allocation6 + $0x7f0] sm:$0xff]  ;;  %v576_v62 = vld [vmem:[#allocation6 + $0x7d8] sm:$0xff] }
 0x2e0   : > { %4889 = vmatmul.mubr.bf16.vlgmr.msra.gmra.mrb[4].mxu0 %v19513_v61  ;;  %4971 = vmatmul.mubr.bf16.vlgmr.msra.gmra.mrb[4].mxu1 %v19513_v61  ;;  %v17039_v61 = vcombine.low %v472_v18, %v476_v19  ;;  %v539_v18 = vld [vmem:[#allocation6 + $0x6b0] sm:$0xff]  ;;  %v536_v19 = vld [vmem:[#allocation6 + $0x698] sm:$0xff] }
 0x2e1   : > { %4898 = vmatpush1.bf16.msra.mxu0 %v17021_v13  ;;  %4980 = vmatpush1.bf16.msra.mxu1 %v17023_v14  ;;  %v532_v13 = vld [vmem:[#allocation6 + $0x678] sm:$0xff]  ;;  %v17085_v14 = vcombine.low %v519_v3, %v523_v4  ;;  %v5036_v4 = vld [vmem:[#allocation7] sm:$0xff] }
 0x2e2   : > { %4899 = vmatprep.subr.bf16.mxu0 %v17030_v0  ;;  %4981 = vmatprep.subr.bf16.mxu1 %v17032_v16  ;;  %v17087_v0 = vcombine.low %v520_v5, %v524_v53  ;;  %v17094_v16 = vcombine.high %v527_v10, %v531_v22  ;;  %v17096_v32 = vcombine.high %v528_v11, %v532_v13  ;;  %v5040_v5 = vld [vmem:[#allocation7 + $0x20] sm:$0xff]  ;;  %v5037_v53 = vld [vmem:[#allocation7 + $0x8] sm:$0xff] }
 0x2e3   : > { %4929 = vmatprep.mubr.bf16.mxu0 %v19520_v6  ;;  %5011 = vmatprep.mubr.bf16.mxu1 %v19520_v6  ;;  %v17056_v6 = vcombine.high %v488_v1, %v492_v35  ;;  %v555_v1 = vld [vmem:[#allocation6 + $0x730] sm:$0xff]  ;;  %v552_v35 = vld [vmem:[#allocation6 + $0x718] sm:$0xff] }
 0x2e5   : > { %4900 = vmatpush1.bf16.msra.mxu0 %v17029_v20  ;;  %4982 = vmatpush1.bf16.msra.mxu1 %v17031_v21  ;;  %v540_v20 = vld [vmem:[#allocation6 + $0x6b8] sm:$0xff]  ;;  %v17093_v21 = vcombine.low %v527_v10, %v531_v22  ;;  %v5044_v22 = vld [vmem:[#allocation7 + $0x40] sm:$0xff] }
 0x2e6   : > { %4901 = vmatprep.subr.bf16.mxu0 %v17038_v23  ;;  %4983 = vmatprep.subr.bf16.mxu1 %v17040_v24  ;;  %v17095_v23 = vcombine.low %v528_v11, %v532_v13  ;;  %v17102_v24 = vcombine.high %v535_v17, %v539_v18  ;;  %v17104_v26 = vcombine.high %v536_v19, %v540_v20  ;;  %v5048_v11 = vld [vmem:[#allocation7 + $0x60] sm:$0xff]  ;;  %v5045_v13 = vld [vmem:[#allocation7 + $0x48] sm:$0xff] }
 0x2e9   : > { %4902 = vmatpush1.bf16.msra.mxu0 %v17037_v30  ;;  %4984 = vmatpush1.bf16.msra.mxu1 %v17039_v61  ;;  %v548_v30 = vld [vmem:[#allocation6 + $0x6f8] sm:$0xff]  ;;  %v17101_v61 = vcombine.low %v535_v17, %v539_v18  ;;  %v5052_v18 = vld [vmem:[#allocation7 + $0x80] sm:$0xff] }
 0x2ea   : > { %4903 = vmatprep.subr.bf16.mxu0 %v17046_v31  ;;  %4985 = vmatprep.subr.bf16.mxu1 %v17048_v15  ;;  %v17103_v31 = vcombine.low %v536_v19, %v540_v20  ;;  %v17110_v15 = vcombine.high %v543_v27, %v547_v28  ;;  %v17112_v33 = vcombine.high %v544_v29, %v548_v30  ;;  %v5056_v19 = vld [vmem:[#allocation7 + $0xa0] sm:$0xff]  ;;  %v5053_v20 = vld [vmem:[#allocation7 + $0x88] sm:$0xff] }
 0x2ed   : > { %4904 = vmatpush1.bf16.msra.mxu0 %v17045_v37  ;;  %4986 = vmatpush1.bf16.msra.mxu1 %v17047_v38  ;;  %v556_v37 = vld [vmem:[#allocation6 + $0x738] sm:$0xff]  ;;  %v17109_v38 = vcombine.low %v543_v27, %v547_v28  ;;  %v5060_v28 = vld [vmem:[#allocation7 + $0xc0] sm:$0xff] }
 0x2ee   : > { %4905 = vmatprep.subr.bf16.mxu0 %v17054_v39  ;;  %4987 = vmatprep.subr.bf16.mxu1 %v17056_v6  ;;  %v17111_v39 = vcombine.low %v544_v29, %v548_v30  ;;  %v17118_v6 = vcombine.high %v551_v34, %v555_v1  ;;  %v17120_v40 = vcombine.high %v552_v35, %v556_v37  ;;  %v5064_v29 = vld [vmem:[#allocation7 + $0xe0] sm:$0xff]  ;;  %v5061_v30 = vld [vmem:[#allocation7 + $0xc8] sm:$0xff] }
 0x2f1   : > { %4906 = vmatpush1.bf16.msra.mxu0 %v17053_v44  ;;  %4988 = vmatpush1.bf16.msra.mxu1 %v17055_v45  ;;  %v564_v44 = vld [vmem:[#allocation6 + $0x778] sm:$0xff]  ;;  %v17117_v45 = vcombine.low %v551_v34, %v555_v1  ;;  %v5068_v34 = vld [vmem:[#allocation7 + $0x100] sm:$0xff] }
 0x2f2   : > { %4907 = vmatprep.subr.bf16.mxu0 %v17062_v46  ;;  %4989 = vmatprep.subr.bf16.mxu1 %v17064_v25  ;;  %v17119_v46 = vcombine.low %v552_v35, %v556_v37  ;;  %v17126_v25 = vcombine.high %v559_v41, %v563_v42  ;;  %v17128_v47 = vcombine.high %v560_v43, %v564_v44  ;;  %v5072_v1 = vld [vmem:[#allocation7 + $0x120] sm:$0xff]  ;;  %v5069_v35 = vld [vmem:[#allocation7 + $0x108] sm:$0xff] }
 0x2f3   : > { %v5073_v37 = vld [vmem:[#allocation7 + $0x128] sm:$0xff] }
 0x2f5   : > { %4908 = vmatpush1.bf16.msra.mxu0 %v17061_v51  ;;  %4990 = vmatpush1.bf16.msra.mxu1 %v17063_v52  ;;  %v572_v51 = vld [vmem:[#allocation6 + $0x7b8] sm:$0xff]  ;;  %v17125_v52 = vcombine.low %v559_v41, %v563_v42  ;;  %v5076_v41 = vld [vmem:[#allocation7 + $0x140] sm:$0xff] }
 0x2f6   : > { %4909 = vmatprep.subr.bf16.mxu0 %v17070_v54  ;;  %4991 = vmatprep.subr.bf16.mxu1 %v17072_v55  ;;  %v17127_v54 = vcombine.low %v560_v43, %v564_v44  ;;  %v17134_v55 = vcombine.high %v567_v48, %v571_v49  ;;  %v17136_v56 = vcombine.high %v568_v50, %v572_v51  ;;  %v5080_v42 = vld [vmem:[#allocation7 + $0x160] sm:$0xff]  ;;  %v5077_v43 = vld [vmem:[#allocation7 + $0x148] sm:$0xff] }
 0x2f7   : > { %v5081_v44 = vld [vmem:[#allocation7 + $0x168] sm:$0xff] }
 0x2f9   : > { %4910 = vmatpush1.bf16.msra.mxu0 %v17069_v63  ;;  %4992 = vmatpush1.bf16.msra.mxu1 %v17071_v2  ;;  %v580_v63 = vld [vmem:[#allocation6 + $0x7f8] sm:$0xff]  ;;  %v17133_v2 = vcombine.low %v567_v48, %v571_v49  ;;  %v5084_v48 = vld [vmem:[#allocation7 + $0x180] sm:$0xff] }
 0x2fa   : > { %4911 = vmatprep.subr.bf16.mxu0 %v17078_v12  ;;  %4993 = vmatprep.subr.bf16.mxu1 %v17080_v57  ;;  %v17135_v12 = vcombine.low %v568_v50, %v572_v51  ;;  %v17142_v57 = vcombine.high %v575_v59, %v579_v60  ;;  %v17144_v3 = vcombine.high %v576_v62, %v580_v63  ;;  %v5088_v49 = vld [vmem:[#allocation7 + $0x1a0] sm:$0xff]  ;;  %v5085_v50 = vld [vmem:[#allocation7 + $0x188] sm:$0xff] }
 0x2fb   : > { %v5089_v51 = vld [vmem:[#allocation7 + $0x1a8] sm:$0xff] }
 0x2fd   : > { %4912 = vmatpush1.bf16.msra.mxu0 %v17077_v7  ;;  %4994 = vmatpush1.bf16.msra.mxu1 %v17079_v8  ;;  %v5041_v7 = vld [vmem:[#allocation7 + $0x28] sm:$0xff]  ;;  %v17141_v8 = vcombine.low %v575_v59, %v579_v60  ;;  %v5092_v59 = vld [vmem:[#allocation7 + $0x1c0] sm:$0xff] }
 0x2fe   : > { %4913 = vmatprep.subr.bf16.mxu0 %v17086_v9  ;;  %4995 = vmatprep.subr.bf16.mxu1 %v17088_v36  ;;  %v17143_v9 = vcombine.low %v576_v62, %v580_v63  ;;  %v17146_v36 = vcombine.high %v5036_v4, %v5040_v5  ;;  %v17148_v10 = vcombine.high %v5037_v53, %v5041_v7  ;;  %v5096_v60 = vld [vmem:[#allocation7 + $0x1e0] sm:$0xff]  ;;  %v5093_v62 = vld [vmem:[#allocation7 + $0x1c8] sm:$0xff] }
 0x2ff   : > { %v5097_v63 = vld [vmem:[#allocation7 + $0x1e8] sm:$0xff] }
 0x301   : > { %4914 = vmatpush1.bf16.msra.mxu0 %v17085_v14  ;;  %4996 = vmatpush1.bf16.msra.mxu1 %v17087_v0  ;;  %v5049_v14 = vld [vmem:[#allocation7 + $0x68] sm:$0xff]  ;;  %v17145_v0 = vcombine.low %v5036_v4, %v5040_v5  ;;  %v5100_v4 = vld [vmem:[#allocation7 + $0x200] sm:$0xff] }
 0x302   : > { %4915 = vmatprep.subr.bf16.mxu0 %v17094_v16  ;;  %4997 = vmatprep.subr.bf16.mxu1 %v17096_v32  ;;  %v17147_v16 = vcombine.low %v5037_v53, %v5041_v7  ;;  %v17154_v32 = vcombine.high %v5044_v22, %v5048_v11  ;;  %v17156_v17 = vcombine.high %v5045_v13, %v5049_v14  ;;  %v5104_v5 = vld [vmem:[#allocation7 + $0x220] sm:$0xff]  ;;  %v5101_v53 = vld [vmem:[#allocation7 + $0x208] sm:$0xff] }
 0x303   : > { %v5105_v7 = vld [vmem:[#allocation7 + $0x228] sm:$0xff] }
 0x305   : > { %4916 = vmatpush1.bf16.msra.mxu0 %v17093_v21  ;;  %4998 = vmatpush1.bf16.msra.mxu1 %v17095_v23  ;;  %v5057_v21 = vld [vmem:[#allocation7 + $0xa8] sm:$0xff]  ;;  %v17153_v23 = vcombine.low %v5044_v22, %v5048_v11  ;;  %v5108_v22 = vld [vmem:[#allocation7 + $0x240] sm:$0xff] }
 0x306   : > { %4917 = vmatprep.subr.bf16.mxu0 %v17102_v24  ;;  %4999 = vmatprep.subr.bf16.mxu1 %v17104_v26  ;;  %v17155_v24 = vcombine.low %v5045_v13, %v5049_v14  ;;  %v17162_v26 = vcombine.high %v5052_v18, %v5056_v19  ;;  %v17164_v27 = vcombine.high %v5053_v20, %v5057_v21  ;;  %v5112_v11 = vld [vmem:[#allocation7 + $0x260] sm:$0xff]  ;;  %v5109_v13 = vld [vmem:[#allocation7 + $0x248] sm:$0xff] }
 0x307   : > { %v5113_v14 = vld [vmem:[#allocation7 + $0x268] sm:$0xff] }
 0x309   : > { %4918 = vmatpush1.bf16.msra.mxu0 %v17101_v61  ;;  %5000 = vmatpush1.bf16.msra.mxu1 %v17103_v31  ;;  %v5065_v61 = vld [vmem:[#allocation7 + $0xe8] sm:$0xff]  ;;  %v17161_v31 = vcombine.low %v5052_v18, %v5056_v19  ;;  %v5116_v18 = vld [vmem:[#allocation7 + $0x280] sm:$0xff] }
 0x30a   : > { %4919 = vmatprep.subr.bf16.mxu0 %v17110_v15  ;;  %5001 = vmatprep.subr.bf16.mxu1 %v17112_v33  ;;  %v17163_v15 = vcombine.low %v5053_v20, %v5057_v21  ;;  %v17170_v33 = vcombine.high %v5060_v28, %v5064_v29  ;;  %v5120_v19 = vld [vmem:[#allocation7 + $0x2a0] sm:$0xff]  ;;  %v5117_v20 = vld [vmem:[#allocation7 + $0x288] sm:$0xff] }
 0x30b   : > { %v5121_v21 = vld [vmem:[#allocation7 + $0x2a8] sm:$0xff] }
 0x30d   : > { %4920 = vmatpush1.bf16.msra.mxu0 %v17109_v38  ;;  %5002 = vmatpush1.bf16.msra.mxu1 %v17111_v39  ;;  %v17169_v38 = vcombine.low %v5060_v28, %v5064_v29  ;;  %v17171_v39 = vcombine.low %v5061_v30, %v5065_v61  ;;  %v5124_v28 = vld [vmem:[#allocation7 + $0x2c0] sm:$0xff] }
 0x30e   : > { %4921 = vmatprep.subr.bf16.mxu0 %v17118_v6  ;;  %5003 = vmatprep.subr.bf16.mxu1 %v17120_v40  ;;  %v17178_v6 = vcombine.high %v5068_v34, %v5072_v1  ;;  %v17180_v40 = vcombine.high %v5069_v35, %v5073_v37  ;;  %v5128_v29 = vld [vmem:[#allocation7 + $0x2e0] sm:$0xff] }
 0x311   : > { %4922 = vmatpush1.bf16.msra.mxu0 %v17117_v45  ;;  %5004 = vmatpush1.bf16.msra.mxu1 %v17119_v46  ;;  %v17177_v45 = vcombine.low %v5068_v34, %v5072_v1  ;;  %v17179_v46 = vcombine.low %v5069_v35, %v5073_v37  ;;  %v5132_v34 = vld [vmem:[#allocation7 + $0x300] sm:$0xff]  ;;  %v5133_v35 = vld [vmem:[#allocation7 + $0x308] sm:$0xff] }
 0x312   : > { %4923 = vmatprep.subr.bf16.mxu0 %v17126_v25  ;;  %5005 = vmatprep.subr.bf16.mxu1 %v17128_v47  ;;  %v17186_v25 = vcombine.high %v5076_v41, %v5080_v42  ;;  %v17188_v47 = vcombine.high %v5077_v43, %v5081_v44  ;;  %v5136_v1 = vld [vmem:[#allocation7 + $0x320] sm:$0xff]  ;;  %v5137_v37 = vld [vmem:[#allocation7 + $0x328] sm:$0xff] }
 0x315   : > { %4924 = vmatpush1.bf16.msra.mxu0 %v17125_v52  ;;  %5006 = vmatpush1.bf16.msra.mxu1 %v17127_v54  ;;  %v17185_v52 = vcombine.low %v5076_v41, %v5080_v42  ;;  %v17187_v54 = vcombine.low %v5077_v43, %v5081_v44  ;;  %v5140_v41 = vld [vmem:[#allocation7 + $0x340] sm:$0xff]  ;;  %v5141_v43 = vld [vmem:[#allocation7 + $0x348] sm:$0xff] }
 0x316   : > { %4925 = vmatprep.subr.bf16.mxu0 %v17134_v55  ;;  %5007 = vmatprep.subr.bf16.mxu1 %v17136_v56  ;;  %v17194_v55 = vcombine.high %v5084_v48, %v5088_v49  ;;  %v17196_v56 = vcombine.high %v5085_v50, %v5089_v51  ;;  %v5144_v42 = vld [vmem:[#allocation7 + $0x360] sm:$0xff]  ;;  %v5145_v44 = vld [vmem:[#allocation7 + $0x368] sm:$0xff] }
 0x319   : > { %4926 = vmatpush1.bf16.msra.mxu0 %v17133_v2  ;;  %5008 = vmatpush1.bf16.msra.mxu1 %v17135_v12  ;;  %v17193_v2 = vcombine.low %v5084_v48, %v5088_v49  ;;  %v17195_v12 = vcombine.low %v5085_v50, %v5089_v51  ;;  %v5148_v48 = vld [vmem:[#allocation7 + $0x380] sm:$0xff]  ;;  %v5149_v50 = vld [vmem:[#allocation7 + $0x388] sm:$0xff] }
 0x31a   : > { %4927 = vmatprep.subr.bf16.mxu0 %v17142_v57  ;;  %5009 = vmatprep.subr.bf16.mxu1 %v17144_v3  ;;  %v17202_v57 = vcombine.high %v5092_v59, %v5096_v60  ;;  %v17204_v3 = vcombine.high %v5093_v62, %v5097_v63  ;;  %v5152_v49 = vld [vmem:[#allocation7 + $0x3a0] sm:$0xff]  ;;  %v5153_v51 = vld [vmem:[#allocation7 + $0x3a8] sm:$0xff] }
 0x31d   : > { %4928 = vmatpush1.bf16.msra.mxu0 %v17141_v8  ;;  %5010 = vmatpush1.bf16.msra.mxu1 %v17143_v9  ;;  %v17201_v8 = vcombine.low %v5092_v59, %v5096_v60  ;;  %v17203_v9 = vcombine.low %v5093_v62, %v5097_v63  ;;  %v5156_v59 = vld [vmem:[#allocation7 + $0x3c0] sm:$0xff]  ;;  %v5157_v62 = vld [vmem:[#allocation7 + $0x3c8] sm:$0xff] }
 0x31e   : > { %8108 = vmatprep.subr.bf16.mxu0 %v17146_v36  ;;  %8272 = vmatprep.subr.bf16.mxu1 %v17148_v10  ;;  %v17210_v36 = vcombine.high %v5100_v4, %v5104_v5  ;;  %v17212_v10 = vcombine.high %v5101_v53, %v5105_v7  ;;  %v5160_v60 = vld [vmem:[#allocation7 + $0x3e0] sm:$0xff]  ;;  %v5161_v63 = vld [vmem:[#allocation7 + $0x3e8] sm:$0xff] }
 0x320   : > { %4930 = vmatmul.mubr.bf16.vlgmr.msra.gmra.mrb[4].mxu0 %v19528_v58  ;;  %5012 = vmatmul.mubr.bf16.vlgmr.msra.gmra.mrb[4].mxu1 %v19528_v58  ;;  %v17172_v58 = vcombine.high %v5061_v30, %v5065_v61  ;;  %v5125_v30 = vld [vmem:[#allocation7 + $0x2c8] sm:$0xff] }
 0x321   : > { %8109 = vmatpush1.bf16.msra.mxu0 %v17145_v0  ;;  %8273 = vmatpush1.bf16.msra.mxu1 %v17147_v16  ;;  %v17209_v0 = vcombine.low %v5100_v4, %v5104_v5  ;;  %v17211_v16 = vcombine.low %v5101_v53, %v5105_v7  ;;  %v5129_v61 = vld [vmem:[#allocation7 + $0x2e8] sm:$0xff]  ;;  %v5164_v4 = vld [vmem:[#allocation7 + $0x400] sm:$0xff] }
 0x322   : > { %8110 = vmatprep.subr.bf16.mxu0 %v17154_v32  ;;  %8274 = vmatprep.subr.bf16.mxu1 %v17156_v17  ;;  %v17218_v32 = vcombine.high %v5108_v22, %v5112_v11  ;;  %v17220_v17 = vcombine.high %v5109_v13, %v5113_v14  ;;  %v5168_v5 = vld [vmem:[#allocation7 + $0x420] sm:$0xff]  ;;  %v5165_v53 = vld [vmem:[#allocation7 + $0x408] sm:$0xff] }
 0x323   : > { %v5169_v7 = vld [vmem:[#allocation7 + $0x428] sm:$0xff] }
 0x325   : > { %8111 = vmatpush1.bf16.msra.mxu0 %v17153_v23  ;;  %8275 = vmatpush1.bf16.msra.mxu1 %v17155_v24  ;;  %v17217_v23 = vcombine.low %v5108_v22, %v5112_v11  ;;  %v17219_v24 = vcombine.low %v5109_v13, %v5113_v14 }
 0x326   : > { %8112 = vmatprep.subr.bf16.mxu0 %v17162_v26  ;;  %8276 = vmatprep.subr.bf16.mxu1 %v17164_v27  ;;  %v17226_v26 = vcombine.high %v5116_v18, %v5120_v19  ;;  %v17228_v27 = vcombine.high %v5117_v20, %v5121_v21 }
 0x329   : > { %8113 = vmatpush1.bf16.msra.mxu0 %v17161_v31  ;;  %8277 = vmatpush1.bf16.msra.mxu1 %v17163_v15  ;;  %v17225_v31 = vcombine.low %v5116_v18, %v5120_v19  ;;  %v17227_v15 = vcombine.low %v5117_v20, %v5121_v21  ;;  %v5176_v21 = vld [vmem:[#allocation7 + $0x460] sm:$0xff] }
 0x32a   : > { %8114 = vmatprep.subr.bf16.mxu0 %v17170_v33  ;;  %8278 = vmatprep.subr.bf16.mxu1 %v17172_v58  ;;  %v17234_v33 = vcombine.high %v5124_v28, %v5128_v29  ;;  %v17236_v58 = vcombine.high %v5125_v30, %v5129_v61 }
 0x32d   : > { %8115 = vmatpush1.bf16.msra.mxu0 %v17169_v38  ;;  %8279 = vmatpush1.bf16.msra.mxu1 %v17171_v39  ;;  %v17233_v38 = vcombine.low %v5124_v28, %v5128_v29  ;;  %v17235_v39 = vcombine.low %v5125_v30, %v5129_v61  ;;  %v17273_v28 = vcombine.low %v5164_v4, %v5168_v5  ;;  %v5180_v61 = vld [vmem:[#allocation7 + $0x480] sm:$0xff] }
 0x32e   : > { %8116 = vmatprep.subr.bf16.mxu0 %v17178_v6  ;;  %8280 = vmatprep.subr.bf16.mxu1 %v17180_v40  ;;  %v17242_v6 = vcombine.high %v5132_v34, %v5136_v1  ;;  %v17244_v40 = vcombine.high %v5133_v35, %v5137_v37  ;;  %v17275_v29 = vcombine.low %v5165_v53, %v5169_v7 }
 0x331   : > { %8117 = vmatpush1.bf16.msra.mxu0 %v17177_v45  ;;  %8281 = vmatpush1.bf16.msra.mxu1 %v17179_v46  ;;  %v17241_v45 = vcombine.low %v5132_v34, %v5136_v1  ;;  %v17243_v46 = vcombine.low %v5133_v35, %v5137_v37  ;;  %v5185_v34 = vld [vmem:[#allocation7 + $0x4a8] sm:$0xff] }
 0x332   : > { %8118 = vmatprep.subr.bf16.mxu0 %v17186_v25  ;;  %8282 = vmatprep.subr.bf16.mxu1 %v17188_v47  ;;  %v17250_v25 = vcombine.high %v5140_v41, %v5144_v42  ;;  %v17252_v47 = vcombine.high %v5141_v43, %v5145_v44 }
 0x335   : > { %8119 = vmatpush1.bf16.msra.mxu0 %v17185_v52  ;;  %8283 = vmatpush1.bf16.msra.mxu1 %v17187_v54  ;;  %v17249_v52 = vcombine.low %v5140_v41, %v5144_v42  ;;  %v17251_v54 = vcombine.low %v5141_v43, %v5145_v44  ;;  %v5189_v41 = vld [vmem:[#allocation7 + $0x4c8] sm:$0xff] }
 0x336   : > { %8120 = vmatprep.subr.bf16.mxu0 %v17194_v55  ;;  %8284 = vmatprep.subr.bf16.mxu1 %v17196_v56  ;;  %v17258_v55 = vcombine.high %v5148_v48, %v5152_v49  ;;  %v17260_v56 = vcombine.high %v5149_v50, %v5153_v51  ;;  %v5193_v42 = vld [vmem:[#allocation7 + $0x4e8] sm:$0xff] }
 0x339   : > { %8121 = vmatpush1.bf16.msra.mxu0 %v17193_v2  ;;  %8285 = vmatpush1.bf16.msra.mxu1 %v17195_v12  ;;  %v17257_v2 = vcombine.low %v5148_v48, %v5152_v49  ;;  %v17259_v12 = vcombine.low %v5149_v50, %v5153_v51  ;;  %v5197_v48 = vld [vmem:[#allocation7 + $0x508] sm:$0xff]  ;;  %v17299_v51 = vcombine.low %v5189_v41, %v5193_v42 }
 0x33a   : > { %8122 = vmatprep.subr.bf16.mxu0 %v17202_v57  ;;  %8286 = vmatprep.subr.bf16.mxu1 %v17204_v3  ;;  %v17266_v57 = vcombine.high %v5156_v59, %v5160_v60  ;;  %v17268_v3 = vcombine.high %v5157_v62, %v5161_v63  ;;  %v5201_v49 = vld [vmem:[#allocation7 + $0x528] sm:$0xff] }
 0x33d   : > { %8123 = vmatpush1.bf16.msra.mxu0 %v17201_v8  ;;  %8287 = vmatpush1.bf16.msra.mxu1 %v17203_v9  ;;  %v17265_v8 = vcombine.low %v5156_v59, %v5160_v60  ;;  %v17267_v9 = vcombine.low %v5157_v62, %v5161_v63  ;;  %v5205_v59 = vld [vmem:[#allocation7 + $0x548] sm:$0xff]  ;;  %v17307_v63 = vcombine.low %v5197_v48, %v5201_v49 }
 0x33e   : > { %8124 = vmatprep.subr.bf16.mxu0 %v17210_v36  ;;  %8288 = vmatprep.subr.bf16.mxu1 %v17212_v10  ;;  %v17274_v36 = vcombine.high %v5164_v4, %v5168_v5  ;;  %v17276_v10 = vcombine.high %v5165_v53, %v5169_v7  ;;  %v5209_v60 = vld [vmem:[#allocation7 + $0x568] sm:$0xff] }
 0x33f   : > { %v5213_v4 = vld [vmem:[#allocation7 + $0x588] sm:$0xff]  ;;  %v17315_v7 = vcombine.low %v5205_v59, %v5209_v60 }
 0x340   : > { %v5217_v5 = vld [vmem:[#allocation7 + $0x5a8] sm:$0xff] }
 0x341   : > { %8125 = vmatpush1.bf16.msra.mxu0 %v17209_v0  ;;  %8289 = vmatpush1.bf16.msra.mxu1 %v17211_v16 }
 0x342   : > { %8126 = vmatprep.subr.bf16.mxu0 %v17218_v32  ;;  %8290 = vmatprep.subr.bf16.mxu1 %v17220_v17  ;;  %v5172_v17 = vld [vmem:[#allocation7 + $0x440] sm:$0xff] }
 0x343   : > { %v17281_v35 = vcombine.low %v5172_v17, %v5176_v21 }
 0x345   : > { %8127 = vmatpush1.bf16.msra.mxu0 %v17217_v23  ;;  %8291 = vmatpush1.bf16.msra.mxu1 %v17219_v24  ;;  %v5173_v23 = vld [vmem:[#allocation7 + $0x448] sm:$0xff] }
 0x346   : > { %8128 = vmatprep.subr.bf16.mxu0 %v17226_v26  ;;  %8292 = vmatprep.subr.bf16.mxu1 %v17228_v27  ;;  %v5177_v24 = vld [vmem:[#allocation7 + $0x468] sm:$0xff] }
 0x347   : > { %v17283_v37 = vcombine.low %v5173_v23, %v5177_v24 }
 0x349   : > { %8129 = vmatpush1.bf16.msra.mxu0 %v17225_v31  ;;  %8293 = vmatpush1.bf16.msra.mxu1 %v17227_v15  ;;  %v17282_v31 = vcombine.high %v5172_v17, %v5176_v21  ;;  %v17284_v15 = vcombine.high %v5173_v23, %v5177_v24  ;;  %v5228_v17 = vld [vmem:[#allocation7 + $0x600] sm:$0xff] }
 0x34a   : > { %8130 = vmatprep.subr.bf16.mxu0 %v17234_v33  ;;  %8294 = vmatprep.subr.bf16.mxu1 %v17236_v58  ;;  %v5184_v33 = vld [vmem:[#allocation7 + $0x4a0] sm:$0xff]  ;;  %v5181_v58 = vld [vmem:[#allocation7 + $0x488] sm:$0xff] }
 0x34b   : > { %v17289_v43 = vcombine.low %v5180_v61, %v5184_v33  ;;  %v17291_v44 = vcombine.low %v5181_v58, %v5185_v34 }
 0x34d   : > { %8131 = vmatpush1.bf16.msra.mxu0 %v17233_v38  ;;  %8295 = vmatpush1.bf16.msra.mxu1 %v17235_v39  ;;  %v17290_v38 = vcombine.high %v5180_v61, %v5184_v33  ;;  %v17292_v39 = vcombine.high %v5181_v58, %v5185_v34  ;;  %v5237_v61 = vld [vmem:[#allocation7 + $0x648] sm:$0xff] }
 0x34e   : > { %8132 = vmatprep.subr.bf16.mxu0 %v17242_v6  ;;  %8296 = vmatprep.subr.bf16.mxu1 %v17244_v40  ;;  %v5188_v6 = vld [vmem:[#allocation7 + $0x4c0] sm:$0xff] }
 0x34f   : > { %v5192_v40 = vld [vmem:[#allocation7 + $0x4e0] sm:$0xff] }
 0x350   : > { %v17297_v50 = vcombine.low %v5188_v6, %v5192_v40 }
 0x351   : > { %8133 = vmatpush1.bf16.msra.mxu0 %v17241_v45  ;;  %8297 = vmatpush1.bf16.msra.mxu1 %v17243_v46  ;;  %v17298_v45 = vcombine.high %v5188_v6, %v5192_v40  ;;  %v17300_v46 = vcombine.high %v5189_v41, %v5193_v42 }
 0x352   : > { %8134 = vmatprep.subr.bf16.mxu0 %v17250_v25  ;;  %8298 = vmatprep.subr.bf16.mxu1 %v17252_v47  ;;  %v5196_v25 = vld [vmem:[#allocation7 + $0x500] sm:$0xff] }
 0x353   : > { %v5200_v47 = vld [vmem:[#allocation7 + $0x520] sm:$0xff] }
 0x354   : > { %v17305_v62 = vcombine.low %v5196_v25, %v5200_v47 }
 0x355   : > { %8135 = vmatpush1.bf16.msra.mxu0 %v17249_v52  ;;  %8299 = vmatpush1.bf16.msra.mxu1 %v17251_v54  ;;  %v17306_v52 = vcombine.high %v5196_v25, %v5200_v47  ;;  %v17308_v54 = vcombine.high %v5197_v48, %v5201_v49 }
 0x356   : > { %8136 = vmatprep.subr.bf16.mxu0 %v17258_v55  ;;  %8300 = vmatprep.subr.bf16.mxu1 %v17260_v56  ;;  %v5204_v55 = vld [vmem:[#allocation7 + $0x540] sm:$0xff] }
 0x357   : > { %v5208_v56 = vld [vmem:[#allocation7 + $0x560] sm:$0xff] }
 0x358   : > { %v17313_v53 = vcombine.low %v5204_v55, %v5208_v56 }
 0x359   : > { %8137 = vmatpush1.bf16.msra.mxu0 %v17257_v2  ;;  %8301 = vmatpush1.bf16.msra.mxu1 %v17259_v12  ;;  %v17314_v2 = vcombine.high %v5204_v55, %v5208_v56  ;;  %v17316_v12 = vcombine.high %v5205_v59, %v5209_v60 }
 0x35a   : > { %8138 = vmatprep.subr.bf16.mxu0 %v17266_v57  ;;  %8302 = vmatprep.subr.bf16.mxu1 %v17268_v3  ;;  %v5212_v57 = vld [vmem:[#allocation7 + $0x580] sm:$0xff] }
 0x35b   : > { %v5216_v3 = vld [vmem:[#allocation7 + $0x5a0] sm:$0xff] }
 0x35d   : > { %8139 = vmatpush1.bf16.msra.mxu0 %v17265_v8  ;;  %8303 = vmatpush1.bf16.msra.mxu1 %v17267_v9  ;;  %v17322_v8 = vcombine.high %v5212_v57, %v5216_v3  ;;  %v17324_v9 = vcombine.high %v5213_v4, %v5217_v5 }
 0x35e   : > { %8149 = vmatprep.subr.bf16.mxu0 %v17274_v36  ;;  %8313 = vmatprep.subr.bf16.mxu1 %v17276_v10  ;;  %v5220_v36 = vld [vmem:[#allocation7 + $0x5c0] sm:$0xff] }
 0x35f   : > { %v5224_v10 = vld [vmem:[#allocation7 + $0x5e0] sm:$0xff] }
 0x360   : > { %v17329_v21 = vcombine.low %v5220_v36, %v5224_v10 }
 0x373   : > { %v4767_v22 = vpop.f32.mrb[0].mxu0  ;;  %v19540_v13 = vpop.f32.mrb[0].mxu1 }
 0x374   : > { %v5020_v11 = vmax.f32 %v4767_v22, 0.0  ;;  %v4769_v14 = vpop.f32.mrb[1].mxu0  ;;  %v4851_v16 = vpop.f32.mrb[1].mxu1  ;;  %v5221_v22 = vld [vmem:[#allocation7 + $0x5c8] sm:$0xff] }
 0x375   : > { %v5021_v0 = vmax.f32 %v4769_v14, 0.0  ;;  %v4771_v32 = vpop.f32.mrb[2].mxu0  ;;  %v5023_v18 = vmax.f32 %v4851_v16, 0.0  ;;  %v4853_v19 = vpop.f32.mrb[2].mxu1  ;;  %v17321_v14 = vcombine.low %v5212_v57, %v5216_v3  ;;  %v17330_v16 = vcombine.high %v5220_v36, %v5224_v10 }
 0x376   : > { %v4772_v20 = vpop.f32.mrb[3].mxu0  ;;  %v4854_v27 = vpop.f32.mrb[3].mxu1  ;;  %v19544_v30 = vpack.c.bf16 %v5020_v11, %v5020_v11  ;;  %v5225_v11 = vld [vmem:[#allocation7 + $0x5e8] sm:$0xff] }
 0x377   : > { %v19542_v26 = vpack.c.bf16 %v5021_v0, %v5021_v0  ;;  %v19548_v1 = vpack.c.bf16 %v5023_v18, %v5023_v18  ;;  %v17323_v0 = vcombine.low %v5213_v4, %v5217_v5  ;;  %v17332_v32 = vcombine.high %v5221_v22, %v5225_v11  ;;  %v5232_v18 = vld [vmem:[#allocation7 + $0x620] sm:$0xff]  ;;  %v5229_v19 = vld [vmem:[#allocation7 + $0x608] sm:$0xff] }
 0x378   : > { %v5233_v20 = vld [vmem:[#allocation7 + $0x628] sm:$0xff]  ;;  %v17331_v23 = vcombine.low %v5221_v22, %v5225_v11  ;;  %v17338_v24 = vcombine.high %v5228_v17, %v5232_v18 }
 0x379   : > { %8140 = vmatprep.mubr.bf16.mxu0 %v19542_v26  ;;  %8304 = vmatprep.mubr.bf16.mxu1 %v19542_v26  ;;  %v17340_v27 = vcombine.high %v5229_v19, %v5233_v20  ;;  %v17339_v33 = vcombine.low %v5229_v19, %v5233_v20 }
 0x37a   : > { %8141 = vmatmul.mubr.bf16.vlgmr.msra.gmra.mrb[8].mxu0 %v19544_v30  ;;  %8305 = vmatmul.mubr.bf16.vlgmr.msra.gmra.mrb[8].mxu1 %v19544_v30 }
 0x37b   : > { %8150 = vmatpush1.bf16.msra.mxu0 %v17273_v28  ;;  %8314 = vmatpush1.bf16.msra.mxu1 %v17275_v29  ;;  %v5236_v28 = vld [vmem:[#allocation7 + $0x640] sm:$0xff] }
 0x37c   : > { %8181 = vmatprep.mubr.bf16.mxu0 %v19548_v1  ;;  %8345 = vmatprep.mubr.bf16.mxu1 %v19548_v1  ;;  %v5240_v29 = vld [vmem:[#allocation7 + $0x660] sm:$0xff] }
 0x37d   : > { %8151 = vmatprep.subr.bf16.mxu0 %v17282_v31  ;;  %8315 = vmatprep.subr.bf16.mxu1 %v17284_v15  ;;  %v5241_v31 = vld [vmem:[#allocation7 + $0x668] sm:$0xff]  ;;  %v17337_v15 = vcombine.low %v5228_v17, %v5232_v18  ;;  %v17346_v58 = vcombine.high %v5236_v28, %v5240_v29  ;;  %v17345_v6 = vcombine.low %v5236_v28, %v5240_v29 }
 0x37e   : > { %v17348_v34 = vcombine.high %v5237_v61, %v5241_v31  ;;  %v17347_v40 = vcombine.low %v5237_v61, %v5241_v31  ;;  %v5022_v61 = vmax.f32 %v19540_v13, 0.0  ;;  %v5312_v13 = vld [vmem:[#allocation7 + $0x8a0] sm:$0xff] }
 0x37f   : > { %8152 = vmatpush1.bf16.msra.mxu0 %v17281_v35  ;;  %8316 = vmatpush1.bf16.msra.mxu1 %v17283_v37  ;;  %v5244_v35 = vld [vmem:[#allocation7 + $0x680] sm:$0xff] }
 0x380   : > { %8153 = vmatprep.subr.bf16.mxu0 %v17290_v38  ;;  %8317 = vmatprep.subr.bf16.mxu1 %v17292_v39  ;;  %v5248_v37 = vld [vmem:[#allocation7 + $0x6a0] sm:$0xff]  ;;  %v5245_v38 = vld [vmem:[#allocation7 + $0x688] sm:$0xff] }
 0x381   : > { %v5249_v39 = vld [vmem:[#allocation7 + $0x6a8] sm:$0xff]  ;;  %v17354_v41 = vcombine.high %v5244_v35, %v5248_v37  ;;  %v17353_v25 = vcombine.low %v5244_v35, %v5248_v37 }
 0x382   : > { %v17356_v42 = vcombine.high %v5245_v38, %v5249_v39  ;;  %v17355_v47 = vcombine.low %v5245_v38, %v5249_v39  ;;  %v5305_v35 = vld [vmem:[#allocation7 + $0x868] sm:$0xff]  ;;  %v19555_v39 = vpack.c.bf16 %v5022_v61, %v5022_v61  ;;  %v5360_v61 = vld [vmem:[#allocation7 + $0xa20] sm:$0xff] }
 0x383   : > { %8154 = vmatpush1.bf16.msra.mxu0 %v17289_v43  ;;  %8318 = vmatpush1.bf16.msra.mxu1 %v17291_v44  ;;  %v5252_v43 = vld [vmem:[#allocation7 + $0x6c0] sm:$0xff] }
 0x384   : > { %8155 = vmatprep.subr.bf16.mxu0 %v17298_v45  ;;  %8319 = vmatprep.subr.bf16.mxu1 %v17300_v46  ;;  %v5256_v44 = vld [vmem:[#allocation7 + $0x6e0] sm:$0xff]  ;;  %v5253_v45 = vld [vmem:[#allocation7 + $0x6c8] sm:$0xff] }
 0x385   : > { %v5257_v46 = vld [vmem:[#allocation7 + $0x6e8] sm:$0xff]  ;;  %v17362_v48 = vcombine.high %v5252_v43, %v5256_v44  ;;  %v17361_v55 = vcombine.low %v5252_v43, %v5256_v44 }
 0x386   : > { %v17364_v49 = vcombine.high %v5253_v45, %v5257_v46  ;;  %v17363_v56 = vcombine.low %v5253_v45, %v5257_v46  ;;  %v5313_v43 = vld [vmem:[#allocation7 + $0x8a8] sm:$0xff] }
 0x387   : > { %8156 = vmatpush1.bf16.msra.mxu0 %v17297_v50  ;;  %8320 = vmatpush1.bf16.msra.mxu1 %v17299_v51  ;;  %v5260_v50 = vld [vmem:[#allocation7 + $0x700] sm:$0xff] }
 0x388   : > { %8157 = vmatprep.subr.bf16.mxu0 %v17306_v52  ;;  %8321 = vmatprep.subr.bf16.mxu1 %v17308_v54  ;;  %v5264_v51 = vld [vmem:[#allocation7 + $0x720] sm:$0xff]  ;;  %v5261_v52 = vld [vmem:[#allocation7 + $0x708] sm:$0xff] }
 0x389   : > { %v5265_v54 = vld [vmem:[#allocation7 + $0x728] sm:$0xff]  ;;  %v17370_v59 = vcombine.high %v5260_v50, %v5264_v51  ;;  %v17369_v57 = vcombine.low %v5260_v50, %v5264_v51 }
 0x38a   : > { %v17372_v60 = vcombine.high %v5261_v52, %v5265_v54  ;;  %v17371_v3 = vcombine.low %v5261_v52, %v5265_v54  ;;  %v5321_v50 = vld [vmem:[#allocation7 + $0x8e8] sm:$0xff] }
 0x38b   : > { %8158 = vmatpush1.bf16.msra.mxu0 %v17305_v62  ;;  %8322 = vmatpush1.bf16.msra.mxu1 %v17307_v63  ;;  %v5268_v62 = vld [vmem:[#allocation7 + $0x740] sm:$0xff] }
 0x38c   : > { %8159 = vmatprep.subr.bf16.mxu0 %v17314_v2  ;;  %8323 = vmatprep.subr.bf16.mxu1 %v17316_v12  ;;  %v5272_v63 = vld [vmem:[#allocation7 + $0x760] sm:$0xff]  ;;  %v5269_v2 = vld [vmem:[#allocation7 + $0x748] sm:$0xff] }
 0x38d   : > { %v5273_v12 = vld [vmem:[#allocation7 + $0x768] sm:$0xff]  ;;  %v17378_v4 = vcombine.high %v5268_v62, %v5272_v63  ;;  %v17377_v36 = vcombine.low %v5268_v62, %v5272_v63 }
 0x38e   : > { %v17380_v5 = vcombine.high %v5269_v2, %v5273_v12  ;;  %v17379_v10 = vcombine.low %v5269_v2, %v5273_v12  ;;  %v5329_v62 = vld [vmem:[#allocation7 + $0x928] sm:$0xff] }
 0x38f   : > { %8160 = vmatpush1.bf16.msra.mxu0 %v17313_v53  ;;  %8324 = vmatpush1.bf16.msra.mxu1 %v17315_v7  ;;  %v5276_v53 = vld [vmem:[#allocation7 + $0x780] sm:$0xff] }
 0x390   : > { %8161 = vmatprep.subr.bf16.mxu0 %v17322_v8  ;;  %8325 = vmatprep.subr.bf16.mxu1 %v17324_v9  ;;  %v5280_v7 = vld [vmem:[#allocation7 + $0x7a0] sm:$0xff]  ;;  %v5277_v8 = vld [vmem:[#allocation7 + $0x788] sm:$0xff] }
 0x391   : > { %v5281_v9 = vld [vmem:[#allocation7 + $0x7a8] sm:$0xff]  ;;  %v17386_v22 = vcombine.high %v5276_v53, %v5280_v7  ;;  %v17385_v17 = vcombine.low %v5276_v53, %v5280_v7 }
 0x392   : > { %v17388_v11 = vcombine.high %v5277_v8, %v5281_v9  ;;  %v17387_v18 = vcombine.low %v5277_v8, %v5281_v9  ;;  %v5337_v53 = vld [vmem:[#allocation7 + $0x968] sm:$0xff] }
 0x393   : > { %8162 = vmatpush1.bf16.msra.mxu0 %v17321_v14  ;;  %8326 = vmatpush1.bf16.msra.mxu1 %v17323_v0  ;;  %v5284_v14 = vld [vmem:[#allocation7 + $0x7c0] sm:$0xff] }
 0x394   : > { %8163 = vmatprep.subr.bf16.mxu0 %v17330_v16  ;;  %8327 = vmatprep.subr.bf16.mxu1 %v17332_v32  ;;  %v5288_v0 = vld [vmem:[#allocation7 + $0x7e0] sm:$0xff]  ;;  %v5285_v16 = vld [vmem:[#allocation7 + $0x7c8] sm:$0xff] }
 0x395   : > { %v5289_v32 = vld [vmem:[#allocation7 + $0x7e8] sm:$0xff]  ;;  %v17394_v19 = vcombine.high %v5284_v14, %v5288_v0  ;;  %v17393_v28 = vcombine.low %v5284_v14, %v5288_v0 }
 0x396   : > { %v17396_v20 = vcombine.high %v5285_v16, %v5289_v32  ;;  %v17395_v29 = vcombine.low %v5285_v16, %v5289_v32  ;;  %v5345_v14 = vld [vmem:[#allocation7 + $0x9a8] sm:$0xff] }
 0x397   : > { %8164 = vmatpush1.bf16.msra.mxu0 %v17329_v21  ;;  %8328 = vmatpush1.bf16.msra.mxu1 %v17331_v23  ;;  %v5292_v21 = vld [vmem:[#allocation7 + $0x800] sm:$0xff] }
 0x398   : > { %8165 = vmatprep.subr.bf16.mxu0 %v17338_v24  ;;  %8329 = vmatprep.subr.bf16.mxu1 %v17340_v27  ;;  %v5296_v23 = vld [vmem:[#allocation7 + $0x820] sm:$0xff]  ;;  %v5293_v24 = vld [vmem:[#allocation7 + $0x808] sm:$0xff] }
 0x399   : > { %v5297_v27 = vld [vmem:[#allocation7 + $0x828] sm:$0xff]  ;;  %v17402_v31 = vcombine.high %v5292_v21, %v5296_v23  ;;  %v17401_v37 = vcombine.low %v5292_v21, %v5296_v23 }
 0x39a   : > { %v17403_v38 = vcombine.low %v5293_v24, %v5297_v27  ;;  %v5353_v21 = vld [vmem:[#allocation7 + $0x9e8] sm:$0xff] }
 0x39b   : > { %8166 = vmatpush1.bf16.msra.mxu0 %v17337_v15  ;;  %8330 = vmatpush1.bf16.msra.mxu1 %v17339_v33  ;;  %v17404_v15 = vcombine.high %v5293_v24, %v5297_v27  ;;  %v5300_v33 = vld [vmem:[#allocation7 + $0x840] sm:$0xff] }
 0x39c   : > { %8167 = vmatprep.subr.bf16.mxu0 %v17346_v58  ;;  %8331 = vmatprep.subr.bf16.mxu1 %v17348_v34  ;;  %v5304_v58 = vld [vmem:[#allocation7 + $0x860] sm:$0xff]  ;;  %v5301_v34 = vld [vmem:[#allocation7 + $0x848] sm:$0xff] }
 0x39d   : > { %v17409_v44 = vcombine.low %v5300_v33, %v5304_v58  ;;  %v17411_v45 = vcombine.low %v5301_v34, %v5305_v35 }
 0x39f   : > { %8168 = vmatpush1.bf16.msra.mxu0 %v17345_v6  ;;  %8332 = vmatpush1.bf16.msra.mxu1 %v17347_v40  ;;  %v17410_v6 = vcombine.high %v5300_v33, %v5304_v58  ;;  %v17412_v40 = vcombine.high %v5301_v34, %v5305_v35 }
 0x3a0   : > { %8169 = vmatprep.subr.bf16.mxu0 %v17354_v41  ;;  %8333 = vmatprep.subr.bf16.mxu1 %v17356_v42  ;;  %v5308_v41 = vld [vmem:[#allocation7 + $0x880] sm:$0xff]  ;;  %v5309_v42 = vld [vmem:[#allocation7 + $0x888] sm:$0xff] }
 0x3a1   : > { %v17418_v46 = vcombine.high %v5308_v41, %v5312_v13  ;;  %v17417_v51 = vcombine.low %v5308_v41, %v5312_v13  ;;  %v17419_v52 = vcombine.low %v5309_v42, %v5313_v43 }
 0x3a3   : > { %8170 = vmatpush1.bf16.msra.mxu0 %v17353_v25  ;;  %8334 = vmatpush1.bf16.msra.mxu1 %v17355_v47  ;;  %v17420_v25 = vcombine.high %v5309_v42, %v5313_v43  ;;  %v5316_v47 = vld [vmem:[#allocation7 + $0x8c0] sm:$0xff] }
 0x3a4   : > { %8171 = vmatprep.subr.bf16.mxu0 %v17362_v48  ;;  %8335 = vmatprep.subr.bf16.mxu1 %v17364_v49  ;;  %v5320_v48 = vld [vmem:[#allocation7 + $0x8e0] sm:$0xff]  ;;  %v5317_v49 = vld [vmem:[#allocation7 + $0x8c8] sm:$0xff] }
 0x3a5   : > { %v17426_v54 = vcombine.high %v5316_v47, %v5320_v48  ;;  %v17425_v63 = vcombine.low %v5316_v47, %v5320_v48  ;;  %v17427_v2 = vcombine.low %v5317_v49, %v5321_v50 }
 0x3a7   : > { %8172 = vmatpush1.bf16.msra.mxu0 %v17361_v55  ;;  %8336 = vmatpush1.bf16.msra.mxu1 %v17363_v56  ;;  %v17428_v55 = vcombine.high %v5317_v49, %v5321_v50  ;;  %v5324_v56 = vld [vmem:[#allocation7 + $0x900] sm:$0xff] }
 0x3a8   : > { %8173 = vmatprep.subr.bf16.mxu0 %v17370_v59  ;;  %8337 = vmatprep.subr.bf16.mxu1 %v17372_v60  ;;  %v5328_v59 = vld [vmem:[#allocation7 + $0x920] sm:$0xff]  ;;  %v5325_v60 = vld [vmem:[#allocation7 + $0x908] sm:$0xff] }
 0x3a9   : > { %v17434_v12 = vcombine.high %v5324_v56, %v5328_v59  ;;  %v17433_v7 = vcombine.low %v5324_v56, %v5328_v59  ;;  %v17435_v8 = vcombine.low %v5325_v60, %v5329_v62 }
 0x3ab   : > { %8174 = vmatpush1.bf16.msra.mxu0 %v17369_v57  ;;  %8338 = vmatpush1.bf16.msra.mxu1 %v17371_v3  ;;  %v17436_v57 = vcombine.high %v5325_v60, %v5329_v62  ;;  %v5332_v3 = vld [vmem:[#allocation7 + $0x940] sm:$0xff] }
 0x3ac   : > { %8175 = vmatprep.subr.bf16.mxu0 %v17378_v4  ;;  %8339 = vmatprep.subr.bf16.mxu1 %v17380_v5  ;;  %v5336_v4 = vld [vmem:[#allocation7 + $0x960] sm:$0xff]  ;;  %v5333_v5 = vld [vmem:[#allocation7 + $0x948] sm:$0xff] }
 0x3ad   : > { %v17442_v9 = vcombine.high %v5332_v3, %v5336_v4  ;;  %v17441_v0 = vcombine.low %v5332_v3, %v5336_v4  ;;  %v17443_v16 = vcombine.low %v5333_v5, %v5337_v53 }
 0x3af   : > { %8176 = vmatpush1.bf16.msra.mxu0 %v17377_v36  ;;  %8340 = vmatpush1.bf16.msra.mxu1 %v17379_v10  ;;  %v17444_v36 = vcombine.high %v5333_v5, %v5337_v53  ;;  %v5340_v10 = vld [vmem:[#allocation7 + $0x980] sm:$0xff] }
 0x3b0   : > { %8177 = vmatprep.subr.bf16.mxu0 %v17386_v22  ;;  %8341 = vmatprep.subr.bf16.mxu1 %v17388_v11  ;;  %v5344_v22 = vld [vmem:[#allocation7 + $0x9a0] sm:$0xff]  ;;  %v5341_v11 = vld [vmem:[#allocation7 + $0x988] sm:$0xff] }
 0x3b1   : > { %v17450_v32 = vcombine.high %v5340_v10, %v5344_v22  ;;  %v17449_v23 = vcombine.low %v5340_v10, %v5344_v22  ;;  %v17451_v24 = vcombine.low %v5341_v11, %v5345_v14 }
 0x3b3   : > { %8178 = vmatpush1.bf16.msra.mxu0 %v17385_v17  ;;  %8342 = vmatpush1.bf16.msra.mxu1 %v17387_v18  ;;  %v17452_v17 = vcombine.high %v5341_v11, %v5345_v14  ;;  %v5348_v18 = vld [vmem:[#allocation7 + $0x9c0] sm:$0xff] }
 0x3b4   : > { %8179 = vmatprep.subr.bf16.mxu0 %v17394_v19  ;;  %8343 = vmatprep.subr.bf16.mxu1 %v17396_v20  ;;  %v5352_v19 = vld [vmem:[#allocation7 + $0x9e0] sm:$0xff]  ;;  %v5349_v20 = vld [vmem:[#allocation7 + $0x9c8] sm:$0xff] }
 0x3b5   : > { %v17458_v27 = vcombine.high %v5348_v18, %v5352_v19  ;;  %v17457_v33 = vcombine.low %v5348_v18, %v5352_v19  ;;  %v17459_v58 = vcombine.low %v5349_v20, %v5353_v21 }
 0x3b7   : > { %8180 = vmatpush1.bf16.msra.mxu0 %v17393_v28  ;;  %8344 = vmatpush1.bf16.msra.mxu1 %v17395_v29  ;;  %v17460_v28 = vcombine.high %v5349_v20, %v5353_v21  ;;  %v5356_v29 = vld [vmem:[#allocation7 + $0xa00] sm:$0xff] }
 0x3b8   : > { %8190 = vmatprep.subr.bf16.mxu0 %v17402_v31  ;;  %8354 = vmatprep.subr.bf16.mxu1 %v17404_v15  ;;  %v5357_v31 = vld [vmem:[#allocation7 + $0xa08] sm:$0xff]  ;;  %v17466_v34 = vcombine.high %v5356_v29, %v5360_v61  ;;  %v17465_v41 = vcombine.low %v5356_v29, %v5360_v61 }
 0x3b9   : > { %v5361_v15 = vld [vmem:[#allocation7 + $0xa28] sm:$0xff] }
 0x3ba   : > { %8182 = vmatmul.mubr.bf16.vlgmr.msra.gmra.mrb[8].mxu0 %v19555_v39  ;;  %8346 = vmatmul.mubr.bf16.vlgmr.msra.gmra.mrb[8].mxu1 %v19555_v39  ;;  %v17468_v35 = vcombine.high %v5357_v31, %v5361_v15  ;;  %v17467_v13 = vcombine.low %v5357_v31, %v5361_v15 }
 0x3bb   : > { %8191 = vmatpush1.bf16.msra.mxu0 %v17401_v37  ;;  %8355 = vmatpush1.bf16.msra.mxu1 %v17403_v38  ;;  %v5364_v37 = vld [vmem:[#allocation7 + $0xa40] sm:$0xff] }
 0x3bc   : > { %8192 = vmatprep.subr.bf16.mxu0 %v17410_v6  ;;  %8356 = vmatprep.subr.bf16.mxu1 %v17412_v40  ;;  %v5368_v38 = vld [vmem:[#allocation7 + $0xa60] sm:$0xff]  ;;  %v5365_v6 = vld [vmem:[#allocation7 + $0xa48] sm:$0xff] }
 0x3bd   : > { %v5369_v40 = vld [vmem:[#allocation7 + $0xa68] sm:$0xff]  ;;  %v17474_v42 = vcombine.high %v5364_v37, %v5368_v38  ;;  %v17473_v47 = vcombine.low %v5364_v37, %v5368_v38 }
 0x3be   : > { %v17476_v43 = vcombine.high %v5365_v6, %v5369_v40  ;;  %v17475_v48 = vcombine.low %v5365_v6, %v5369_v40 }
 0x3bf   : > { %8193 = vmatpush1.bf16.msra.mxu0 %v17409_v44  ;;  %8357 = vmatpush1.bf16.msra.mxu1 %v17411_v45  ;;  %v5372_v44 = vld [vmem:[#allocation7 + $0xa80] sm:$0xff] }
 0x3c0   : > { %8194 = vmatprep.subr.bf16.mxu0 %v17418_v46  ;;  %8358 = vmatprep.subr.bf16.mxu1 %v17420_v25  ;;  %v5376_v45 = vld [vmem:[#allocation7 + $0xaa0] sm:$0xff]  ;;  %v5373_v46 = vld [vmem:[#allocation7 + $0xa88] sm:$0xff] }
 0x3c1   : > { %v5377_v25 = vld [vmem:[#allocation7 + $0xaa8] sm:$0xff]  ;;  %v17482_v49 = vcombine.high %v5372_v44, %v5376_v45  ;;  %v17481_v56 = vcombine.low %v5372_v44, %v5376_v45 }
 0x3c2   : > { %v17484_v50 = vcombine.high %v5373_v46, %v5377_v25  ;;  %v17483_v59 = vcombine.low %v5373_v46, %v5377_v25  ;;  %v5428_v25 = vld [vmem:[#allocation7 + $0xc40] sm:$0xff] }
 0x3c3   : > { %8195 = vmatpush1.bf16.msra.mxu0 %v17417_v51  ;;  %8359 = vmatpush1.bf16.msra.mxu1 %v17419_v52  ;;  %v5380_v51 = vld [vmem:[#allocation7 + $0xac0] sm:$0xff] }
 0x3c4   : > { %8196 = vmatprep.subr.bf16.mxu0 %v17426_v54  ;;  %8360 = vmatprep.subr.bf16.mxu1 %v17428_v55  ;;  %v5384_v52 = vld [vmem:[#allocation7 + $0xae0] sm:$0xff]  ;;  %v5381_v54 = vld [vmem:[#allocation7 + $0xac8] sm:$0xff] }
 0x3c5   : > { %v5385_v55 = vld [vmem:[#allocation7 + $0xae8] sm:$0xff]  ;;  %v17490_v60 = vcombine.high %v5380_v51, %v5384_v52  ;;  %v17489_v3 = vcombine.low %v5380_v51, %v5384_v52 }
 0x3c6   : > { %v17492_v62 = vcombine.high %v5381_v54, %v5385_v55  ;;  %v17491_v4 = vcombine.low %v5381_v54, %v5385_v55  ;;  %v5429_v51 = vld [vmem:[#allocation7 + $0xc48] sm:$0xff] }
 0x3c7   : > { %8197 = vmatpush1.bf16.msra.mxu0 %v17425_v63  ;;  %8361 = vmatpush1.bf16.msra.mxu1 %v17427_v2  ;;  %v5388_v63 = vld [vmem:[#allocation7 + $0xb00] sm:$0xff]  ;;  %v5433_v52 = vld [vmem:[#allocation7 + $0xc68] sm:$0xff] }
 0x3c8   : > { %8198 = vmatprep.subr.bf16.mxu0 %v17434_v12  ;;  %8362 = vmatprep.subr.bf16.mxu1 %v17436_v57  ;;  %v5392_v2 = vld [vmem:[#allocation7 + $0xb20] sm:$0xff]  ;;  %v5389_v12 = vld [vmem:[#allocation7 + $0xb08] sm:$0xff] }
 0x3c9   : > { %v5393_v57 = vld [vmem:[#allocation7 + $0xb28] sm:$0xff]  ;;  %v17498_v5 = vcombine.high %v5388_v63, %v5392_v2  ;;  %v17497_v10 = vcombine.low %v5388_v63, %v5392_v2  ;;  %v17540_v2 = vcombine.high %v5429_v51, %v5433_v52 }
 0x3ca   : > { %v17500_v53 = vcombine.high %v5389_v12, %v5393_v57  ;;  %v17499_v22 = vcombine.low %v5389_v12, %v5393_v57  ;;  %v5440_v12 = vld [vmem:[#allocation7 + $0xca0] sm:$0xff]  ;;  %v5437_v57 = vld [vmem:[#allocation7 + $0xc88] sm:$0xff] }
 0x3cb   : > { %8199 = vmatpush1.bf16.msra.mxu0 %v17433_v7  ;;  %8363 = vmatpush1.bf16.msra.mxu1 %v17435_v8  ;;  %v5396_v7 = vld [vmem:[#allocation7 + $0xb40] sm:$0xff] }
 0x3cc   : > { %8200 = vmatprep.subr.bf16.mxu0 %v17442_v9  ;;  %8364 = vmatprep.subr.bf16.mxu1 %v17444_v36  ;;  %v5400_v8 = vld [vmem:[#allocation7 + $0xb60] sm:$0xff]  ;;  %v5397_v9 = vld [vmem:[#allocation7 + $0xb48] sm:$0xff] }
 0x3cd   : > { %v5401_v36 = vld [vmem:[#allocation7 + $0xb68] sm:$0xff]  ;;  %v17506_v11 = vcombine.high %v5396_v7, %v5400_v8  ;;  %v17505_v18 = vcombine.low %v5396_v7, %v5400_v8 }
 0x3ce   : > { %v17508_v14 = vcombine.high %v5397_v9, %v5401_v36  ;;  %v17507_v19 = vcombine.low %v5397_v9, %v5401_v36  ;;  %v5444_v9 = vld [vmem:[#allocation7 + $0xcc0] sm:$0xff] }
 0x3cf   : > { %8201 = vmatpush1.bf16.msra.mxu0 %v17441_v0  ;;  %8365 = vmatpush1.bf16.msra.mxu1 %v17443_v16  ;;  %v5404_v0 = vld [vmem:[#allocation7 + $0xb80] sm:$0xff] }
 0x3d0   : > { %8202 = vmatprep.subr.bf16.mxu0 %v17450_v32  ;;  %8366 = vmatprep.subr.bf16.mxu1 %v17452_v17  ;;  %v5408_v16 = vld [vmem:[#allocation7 + $0xba0] sm:$0xff]  ;;  %v5405_v32 = vld [vmem:[#allocation7 + $0xb88] sm:$0xff] }
 0x3d1   : > { %v5409_v17 = vld [vmem:[#allocation7 + $0xba8] sm:$0xff]  ;;  %v17514_v20 = vcombine.high %v5404_v0, %v5408_v16  ;;  %v17513_v29 = vcombine.low %v5404_v0, %v5408_v16  ;;  %v5448_v36 = vld [vmem:[#allocation7 + $0xce0] sm:$0xff] }
 0x3d2   : > { %v17516_v21 = vcombine.high %v5405_v32, %v5409_v17  ;;  %v17515_v61 = vcombine.low %v5405_v32, %v5409_v17  ;;  %v17554_v0 = vcombine.high %v5444_v9, %v5448_v36  ;;  %v5452_v32 = vld [vmem:[#allocation7 + $0xd00] sm:$0xff] }
 0x3d3   : > { %8203 = vmatpush1.bf16.msra.mxu0 %v17449_v23  ;;  %8367 = vmatpush1.bf16.msra.mxu1 %v17451_v24  ;;  %v5412_v23 = vld [vmem:[#allocation7 + $0xbc0] sm:$0xff] }
 0x3d4   : > { %8204 = vmatprep.subr.bf16.mxu0 %v17458_v27  ;;  %8368 = vmatprep.subr.bf16.mxu1 %v17460_v28  ;;  %v5416_v24 = vld [vmem:[#allocation7 + $0xbe0] sm:$0xff]  ;;  %v5413_v27 = vld [vmem:[#allocation7 + $0xbc8] sm:$0xff] }
 0x3d5   : > { %v5417_v28 = vld [vmem:[#allocation7 + $0xbe8] sm:$0xff]  ;;  %v17522_v31 = vcombine.high %v5412_v23, %v5416_v24  ;;  %v17521_v38 = vcombine.low %v5412_v23, %v5416_v24  ;;  %v5456_v17 = vld [vmem:[#allocation7 + $0xd20] sm:$0xff] }
 0x3d6   : > { %v17524_v15 = vcombine.high %v5413_v27, %v5417_v28  ;;  %v17523_v6 = vcombine.low %v5413_v27, %v5417_v28  ;;  %v17562_v23 = vcombine.high %v5452_v32, %v5456_v17  ;;  %v5460_v27 = vld [vmem:[#allocation7 + $0xd40] sm:$0xff] }
 0x3d7   : > { %8205 = vmatpush1.bf16.msra.mxu0 %v17457_v33  ;;  %8369 = vmatpush1.bf16.msra.mxu1 %v17459_v58  ;;  %v5420_v33 = vld [vmem:[#allocation7 + $0xc00] sm:$0xff] }
 0x3d8   : > { %8206 = vmatprep.subr.bf16.mxu0 %v17466_v34  ;;  %8370 = vmatprep.subr.bf16.mxu1 %v17468_v35  ;;  %v5424_v58 = vld [vmem:[#allocation7 + $0xc20] sm:$0xff]  ;;  %v5421_v34 = vld [vmem:[#allocation7 + $0xc08] sm:$0xff] }
 0x3d9   : > { %v5425_v35 = vld [vmem:[#allocation7 + $0xc28] sm:$0xff]  ;;  %v5464_v28 = vld [vmem:[#allocation7 + $0xd60] sm:$0xff] }
 0x3db   : > { %8207 = vmatpush1.bf16.msra.mxu0 %v17465_v41  ;;  %8371 = vmatpush1.bf16.msra.mxu1 %v17467_v13 }
 0x3dc   : > { %8208 = vmatprep.subr.bf16.mxu0 %v17474_v42  ;;  %8372 = vmatprep.subr.bf16.mxu1 %v17476_v43  ;;  %v17530_v42 = vcombine.high %v5420_v33, %v5424_v58  ;;  %v17532_v43 = vcombine.high %v5421_v34, %v5425_v35 }
 0x3df   : > { %8209 = vmatpush1.bf16.msra.mxu0 %v17473_v47  ;;  %8373 = vmatpush1.bf16.msra.mxu1 %v17475_v48 }
 0x3e0   : > { %8210 = vmatprep.subr.bf16.mxu0 %v17482_v49  ;;  %8374 = vmatprep.subr.bf16.mxu1 %v17484_v50  ;;  %v5432_v50 = vld [vmem:[#allocation7 + $0xc60] sm:$0xff] }
 0x3e1   : > { %v17538_v63 = vcombine.high %v5428_v25, %v5432_v50 }
 0x3e3   : > { %8211 = vmatpush1.bf16.msra.mxu0 %v17481_v56  ;;  %8375 = vmatpush1.bf16.msra.mxu1 %v17483_v59  ;;  %v17529_v56 = vcombine.low %v5420_v33, %v5424_v58  ;;  %v17531_v59 = vcombine.low %v5421_v34, %v5425_v35  ;;  %v17570_v33 = vcombine.high %v5460_v27, %v5464_v28  ;;  %v5468_v34 = vld [vmem:[#allocation7 + $0xd80] sm:$0xff] }
 0x3e4   : > { %8212 = vmatprep.subr.bf16.mxu0 %v17490_v60  ;;  %8376 = vmatprep.subr.bf16.mxu1 %v17492_v62  ;;  %v5436_v62 = vld [vmem:[#allocation7 + $0xc80] sm:$0xff] }
 0x3e5   : > { %v17546_v7 = vcombine.high %v5436_v62, %v5440_v12  ;;  %v5472_v35 = vld [vmem:[#allocation7 + $0xda0] sm:$0xff] }
 0x3e7   : > { %8213 = vmatpush1.bf16.msra.mxu0 %v17489_v3  ;;  %8377 = vmatpush1.bf16.msra.mxu1 %v17491_v4  ;;  %v5441_v3 = vld [vmem:[#allocation7 + $0xca8] sm:$0xff] }
 0x3e8   : > { %8214 = vmatprep.subr.bf16.mxu0 %v17498_v5  ;;  %8378 = vmatprep.subr.bf16.mxu1 %v17500_v53  ;;  %v17537_v5 = vcombine.low %v5428_v25, %v5432_v50  ;;  %v17539_v53 = vcombine.low %v5429_v51, %v5433_v52  ;;  %v17548_v8 = vcombine.high %v5437_v57, %v5441_v3  ;;  %v5484_v50 = vld [vmem:[#allocation7 + $0xe00] sm:$0xff]  ;;  %v5485_v52 = vld [vmem:[#allocation7 + $0xe08] sm:$0xff] }
 0x3e9   : > { %v17577_v25 = vcombine.low %v5468_v34, %v5472_v35  ;;  %v5488_v51 = vld [vmem:[#allocation7 + $0xe20] sm:$0xff] }
 0x3eb   : > { %8215 = vmatpush1.bf16.msra.mxu0 %v17497_v10  ;;  %8379 = vmatpush1.bf16.msra.mxu1 %v17499_v22  ;;  %v5445_v10 = vld [vmem:[#allocation7 + $0xcc8] sm:$0xff] }
 0x3ec   : > { %8216 = vmatprep.subr.bf16.mxu0 %v17506_v11  ;;  %8380 = vmatprep.subr.bf16.mxu1 %v17508_v14  ;;  %v5449_v22 = vld [vmem:[#allocation7 + $0xce8] sm:$0xff]  ;;  %v17545_v11 = vcombine.low %v5436_v62, %v5440_v12  ;;  %v17547_v14 = vcombine.low %v5437_v57, %v5441_v3  ;;  %v17594_v62 = vcombine.high %v5484_v50, %v5488_v51  ;;  %v5496_v12 = vld [vmem:[#allocation7 + $0xe60] sm:$0xff] }
 0x3ed   : > { %v17556_v16 = vcombine.high %v5445_v10, %v5449_v22  ;;  %v5493_v57 = vld [vmem:[#allocation7 + $0xe48] sm:$0xff] }
 0x3ee   : > { %v5497_v3 = vld [vmem:[#allocation7 + $0xe68] sm:$0xff] }
 0x3ef   : > { %8217 = vmatpush1.bf16.msra.mxu0 %v17505_v18  ;;  %8381 = vmatpush1.bf16.msra.mxu1 %v17507_v19  ;;  %v5453_v18 = vld [vmem:[#allocation7 + $0xd08] sm:$0xff] }
 0x3f0   : > { %8218 = vmatprep.subr.bf16.mxu0 %v17514_v20  ;;  %8382 = vmatprep.subr.bf16.mxu1 %v17516_v21  ;;  %v5457_v19 = vld [vmem:[#allocation7 + $0xd28] sm:$0xff]  ;;  %v17553_v20 = vcombine.low %v5444_v9, %v5448_v36  ;;  %v17555_v21 = vcombine.low %v5445_v10, %v5449_v22  ;;  %v5500_v9 = vld [vmem:[#allocation7 + $0xe80] sm:$0xff] }
 0x3f1   : > { %v17564_v24 = vcombine.high %v5453_v18, %v5457_v19  ;;  %v5504_v36 = vld [vmem:[#allocation7 + $0xea0] sm:$0xff]  ;;  %v5501_v10 = vld [vmem:[#allocation7 + $0xe88] sm:$0xff] }
 0x3f2   : > { %v5505_v22 = vld [vmem:[#allocation7 + $0xea8] sm:$0xff] }
 0x3f3   : > { %8219 = vmatpush1.bf16.msra.mxu0 %v17513_v29  ;;  %8383 = vmatpush1.bf16.msra.mxu1 %v17515_v61  ;;  %v4931_v37 = vpop.f32.mrb[4].mxu0  ;;  %v19559_v41 = vpop.f32.mrb[4].mxu1  ;;  %v5461_v29 = vld [vmem:[#allocation7 + $0xd48] sm:$0xff] }
 0x3f4   : > { %v5024_v40 = vmax.f32 %v4931_v37, 0.0  ;;  %v4933_v13 = vpop.f32.mrb[5].mxu0  ;;  %8220 = vmatprep.subr.bf16.mxu0 %v17522_v31  ;;  %8384 = vmatprep.subr.bf16.mxu1 %v17524_v15  ;;  %v5015_v45 = vpop.f32.mrb[5].mxu1  ;;  %v5465_v61 = vld [vmem:[#allocation7 + $0xd68] sm:$0xff]  ;;  %v17561_v31 = vcombine.low %v5452_v32, %v5456_v17  ;;  %v17563_v15 = vcombine.low %v5453_v18, %v5457_v19  ;;  %v5508_v32 = vld [vmem:[#allocation7 + $0xec0] sm:$0xff] }
 0x3f5   : > { %v5025_v44 = vmax.f32 %v4933_v13, 0.0  ;;  %v4935_v46 = vpop.f32.mrb[6].mxu0  ;;  %v5027_v47 = vmax.f32 %v5015_v45, 0.0  ;;  %v5017_v48 = vpop.f32.mrb[6].mxu1  ;;  %v17572_v58 = vcombine.high %v5461_v29, %v5465_v61  ;;  %v5469_v37 = vld [vmem:[#allocation7 + $0xd88] sm:$0xff]  ;;  %v17578_v13 = vcombine.high %v5468_v34, %v5472_v35  ;;  %v5512_v17 = vld [vmem:[#allocation7 + $0xee0] sm:$0xff] }
 0x3f6   : > { %v4936_v49 = vpop.f32.mrb[7].mxu0  ;;  %v5018_v55 = vpop.f32.mrb[7].mxu1  ;;  %v19563_v60 = vpack.c.bf16 %v5024_v40, %v5024_v40  ;;  %v17571_v40 = vcombine.low %v5461_v29, %v5465_v61  ;;  %v5477_v45 = vld [vmem:[#allocation7 + $0xdc8] sm:$0xff]  ;;  %v5524_v34 = vld [vmem:[#allocation7 + $0xf40] sm:$0xff] }
 0x3f7   : > { %v19561_v54 = vpack.c.bf16 %v5025_v44, %v5025_v44  ;;  %8221 = vmatpush1.bf16.msra.mxu0 %v17521_v38  ;;  %8385 = vmatpush1.bf16.msra.mxu1 %v17523_v6  ;;  %v19567_v4 = vpack.c.bf16 %v5027_v47, %v5027_v47  ;;  %v5473_v38 = vld [vmem:[#allocation7 + $0xda8] sm:$0xff]  ;;  %v17569_v6 = vcombine.low %v5460_v27, %v5464_v28  ;;  %v5480_v44 = vld [vmem:[#allocation7 + $0xde0] sm:$0xff] }
 0x3f8   : > { %8231 = vmatprep.subr.bf16.mxu0 %v17530_v42  ;;  %8395 = vmatprep.subr.bf16.mxu1 %v17532_v43  ;;  %v17580_v42 = vcombine.high %v5469_v37, %v5473_v38  ;;  %v5476_v43 = vld [vmem:[#allocation7 + $0xdc0] sm:$0xff]  ;;  %v5481_v46 = vld [vmem:[#allocation7 + $0xde8] sm:$0xff]  ;;  %v17579_v47 = vcombine.low %v5469_v37, %v5473_v38 }
 0x3f9   : > { %8222 = vmatprep.mubr.bf16.mxu0 %v19561_v54  ;;  %8386 = vmatprep.mubr.bf16.mxu1 %v19561_v54  ;;  %v17586_v48 = vcombine.high %v5476_v43, %v5480_v44  ;;  %v17588_v49 = vcombine.high %v5477_v45, %v5481_v46  ;;  %v5489_v55 = vld [vmem:[#allocation7 + $0xe28] sm:$0xff]  ;;  %v5516_v27 = vld [vmem:[#allocation7 + $0xf00] sm:$0xff] }
 0x3fa   : > { %8223 = vmatmul.mubr.bf16.vlgmr.msra.gmra.mrb[8].mxu0 %v19563_v60  ;;  %8387 = vmatmul.mubr.bf16.vlgmr.msra.gmra.mrb[8].mxu1 %v19563_v60  ;;  %v5509_v18 = vld [vmem:[#allocation7 + $0xec8] sm:$0xff]  ;;  %v5520_v28 = vld [vmem:[#allocation7 + $0xf20] sm:$0xff] }
 0x3fb   : > { %8232 = vmatpush1.bf16.msra.mxu0 %v17529_v56  ;;  %8396 = vmatpush1.bf16.msra.mxu1 %v17531_v59  ;;  %v17585_v56 = vcombine.low %v5476_v43, %v5480_v44  ;;  %v17587_v59 = vcombine.low %v5477_v45, %v5481_v46  ;;  %v5513_v19 = vld [vmem:[#allocation7 + $0xee8] sm:$0xff]  ;;  %v5528_v35 = vld [vmem:[#allocation7 + $0xf60] sm:$0xff] }
 0x3fc   : > { %8263 = vmatprep.mubr.bf16.mxu0 %v19567_v4  ;;  %8427 = vmatprep.mubr.bf16.mxu1 %v19567_v4  ;;  %v5517_v29 = vld [vmem:[#allocation7 + $0xf08] sm:$0xff]  ;;  %v5532_v43 = vld [vmem:[#allocation7 + $0xf80] sm:$0xff] }
 0x3fd   : > { %8233 = vmatprep.subr.bf16.mxu0 %v17538_v63  ;;  %8397 = vmatprep.subr.bf16.mxu1 %v17540_v2  ;;  %v17596_v63 = vcombine.high %v5485_v52, %v5489_v55  ;;  %v5492_v2 = vld [vmem:[#allocation7 + $0xe40] sm:$0xff]  ;;  %v5521_v61 = vld [vmem:[#allocation7 + $0xf28] sm:$0xff] }
 0x3fe   : > { %v5525_v37 = vld [vmem:[#allocation7 + $0xf48] sm:$0xff]  ;;  %v5536_v44 = vld [vmem:[#allocation7 + $0xfa0] sm:$0xff] }
 0x3ff   : > { %8234 = vmatpush1.bf16.msra.mxu0 %v17537_v5  ;;  %8398 = vmatpush1.bf16.msra.mxu1 %v17539_v53  ;;  %v17593_v5 = vcombine.low %v5484_v50, %v5488_v51  ;;  %v17595_v53 = vcombine.low %v5485_v52, %v5489_v55  ;;  %v5529_v38 = vld [vmem:[#allocation7 + $0xf68] sm:$0xff]  ;;  %v5540_v50 = vld [vmem:[#allocation7 + $0xfc0] sm:$0xff] }
 0x400   : > { %8235 = vmatprep.subr.bf16.mxu0 %v17546_v7  ;;  %8399 = vmatprep.subr.bf16.mxu1 %v17548_v8  ;;  %v17602_v7 = vcombine.high %v5492_v2, %v5496_v12  ;;  %v17604_v8 = vcombine.high %v5493_v57, %v5497_v3  ;;  %v5533_v45 = vld [vmem:[#allocation7 + $0xf88] sm:$0xff]  ;;  %v5544_v51 = vld [vmem:[#allocation7 + $0xfe0] sm:$0xff] }
 0x401   : > { %v5537_v46 = vld [vmem:[#allocation7 + $0xfa8] sm:$0xff] }
 0x402   : > { %v5541_v52 = vld [vmem:[#allocation7 + $0xfc8] sm:$0xff] }
 0x403   : > { %8236 = vmatpush1.bf16.msra.mxu0 %v17545_v11  ;;  %8400 = vmatpush1.bf16.msra.mxu1 %v17547_v14  ;;  %v17601_v11 = vcombine.low %v5492_v2, %v5496_v12  ;;  %v17603_v14 = vcombine.low %v5493_v57, %v5497_v3  ;;  %v5545_v55 = vld [vmem:[#allocation7 + $0xfe8] sm:$0xff]  ;;  %v5038_v2 = vld [vmem:[#allocation7 + $0x10] sm:$0xff]  ;;  %v5039_v57 = vld [vmem:[#allocation7 + $0x18] sm:$0xff] }
 0x404   : > { %8237 = vmatprep.subr.bf16.mxu0 %v17554_v0  ;;  %8401 = vmatprep.subr.bf16.mxu1 %v17556_v16  ;;  %v17610_v0 = vcombine.high %v5500_v9, %v5504_v36  ;;  %v17612_v16 = vcombine.high %v5501_v10, %v5505_v22  ;;  %v5042_v12 = vld [vmem:[#allocation7 + $0x30] sm:$0xff]  ;;  %v5043_v3 = vld [vmem:[#allocation7 + $0x38] sm:$0xff] }
 0x407   : > { %8238 = vmatpush1.bf16.msra.mxu0 %v17553_v20  ;;  %8402 = vmatpush1.bf16.msra.mxu1 %v17555_v21  ;;  %v17609_v20 = vcombine.low %v5500_v9, %v5504_v36  ;;  %v17611_v21 = vcombine.low %v5501_v10, %v5505_v22  ;;  %v17152_v9 = vcombine.high %v5039_v57, %v5043_v3  ;;  %v5046_v36 = vld [vmem:[#allocation7 + $0x50] sm:$0xff]  ;;  %v5047_v22 = vld [vmem:[#allocation7 + $0x58] sm:$0xff] }
 0x408   : > { %8239 = vmatprep.subr.bf16.mxu0 %v17562_v23  ;;  %8403 = vmatprep.subr.bf16.mxu1 %v17564_v24  ;;  %v17618_v23 = vcombine.high %v5508_v32, %v5512_v17  ;;  %v17620_v24 = vcombine.high %v5509_v18, %v5513_v19  ;;  %v5050_v10 = vld [vmem:[#allocation7 + $0x70] sm:$0xff] }
 0x40b   : > { %8240 = vmatpush1.bf16.msra.mxu0 %v17561_v31  ;;  %8404 = vmatpush1.bf16.msra.mxu1 %v17563_v15  ;;  %v17617_v31 = vcombine.low %v5508_v32, %v5512_v17  ;;  %v17619_v15 = vcombine.low %v5509_v18, %v5513_v19  ;;  %v17158_v32 = vcombine.high %v5046_v36, %v5050_v10  ;;  %v5054_v18 = vld [vmem:[#allocation7 + $0x90] sm:$0xff]  ;;  %v5055_v19 = vld [vmem:[#allocation7 + $0x98] sm:$0xff] }
 0x40c   : > { %8241 = vmatprep.subr.bf16.mxu0 %v17570_v33  ;;  %8405 = vmatprep.subr.bf16.mxu1 %v17572_v58  ;;  %v17626_v33 = vcombine.high %v5516_v27, %v5520_v28  ;;  %v17628_v58 = vcombine.high %v5517_v29, %v5521_v61 }
 0x40f   : > { %8242 = vmatpush1.bf16.msra.mxu0 %v17569_v6  ;;  %8406 = vmatpush1.bf16.msra.mxu1 %v17571_v40  ;;  %v17625_v6 = vcombine.low %v5516_v27, %v5520_v28  ;;  %v17627_v40 = vcombine.low %v5517_v29, %v5521_v61  ;;  %v5062_v28 = vld [vmem:[#allocation7 + $0xd0] sm:$0xff]  ;;  %v5063_v61 = vld [vmem:[#allocation7 + $0xd8] sm:$0xff] }
 0x410   : > { %8243 = vmatprep.subr.bf16.mxu0 %v17578_v13  ;;  %8407 = vmatprep.subr.bf16.mxu1 %v17580_v42  ;;  %v17634_v13 = vcombine.high %v5524_v34, %v5528_v35  ;;  %v17636_v42 = vcombine.high %v5525_v37, %v5529_v38  ;;  %v5066_v29 = vld [vmem:[#allocation7 + $0xf0] sm:$0xff] }
 0x413   : > { %8244 = vmatpush1.bf16.msra.mxu0 %v17577_v25  ;;  %8408 = vmatpush1.bf16.msra.mxu1 %v17579_v47  ;;  %v17633_v25 = vcombine.low %v5524_v34, %v5528_v35  ;;  %v17635_v47 = vcombine.low %v5525_v37, %v5529_v38  ;;  %v5070_v35 = vld [vmem:[#allocation7 + $0x110] sm:$0xff]  ;;  %v5075_v38 = vld [vmem:[#allocation7 + $0x138] sm:$0xff] }
 0x414   : > { %8245 = vmatprep.subr.bf16.mxu0 %v17586_v48  ;;  %8409 = vmatprep.subr.bf16.mxu1 %v17588_v49  ;;  %v17642_v48 = vcombine.high %v5532_v43, %v5536_v44  ;;  %v17644_v49 = vcombine.high %v5533_v45, %v5537_v46  ;;  %v5074_v37 = vld [vmem:[#allocation7 + $0x130] sm:$0xff] }
 0x417   : > { %8246 = vmatpush1.bf16.msra.mxu0 %v17585_v56  ;;  %8410 = vmatpush1.bf16.msra.mxu1 %v17587_v59  ;;  %v17641_v56 = vcombine.low %v5532_v43, %v5536_v44  ;;  %v17643_v59 = vcombine.low %v5533_v45, %v5537_v46  ;;  %v5078_v43 = vld [vmem:[#allocation7 + $0x150] sm:$0xff]  ;;  %v5079_v45 = vld [vmem:[#allocation7 + $0x158] sm:$0xff] }
 0x418   : > { %8247 = vmatprep.subr.bf16.mxu0 %v17594_v62  ;;  %8411 = vmatprep.subr.bf16.mxu1 %v17596_v63  ;;  %v17650_v62 = vcombine.high %v5540_v50, %v5544_v51  ;;  %v17652_v63 = vcombine.high %v5541_v52, %v5545_v55  ;;  %v5082_v44 = vld [vmem:[#allocation7 + $0x170] sm:$0xff]  ;;  %v5083_v46 = vld [vmem:[#allocation7 + $0x178] sm:$0xff] }
 0x41b   : > { %8248 = vmatpush1.bf16.msra.mxu0 %v17593_v5  ;;  %8412 = vmatpush1.bf16.msra.mxu1 %v17595_v53  ;;  %v17649_v5 = vcombine.low %v5540_v50, %v5544_v51  ;;  %v17651_v53 = vcombine.low %v5541_v52, %v5545_v55  ;;  %v5086_v50 = vld [vmem:[#allocation7 + $0x190] sm:$0xff]  ;;  %v5087_v52 = vld [vmem:[#allocation7 + $0x198] sm:$0xff] }
 0x41c   : > { %8249 = vmatprep.subr.bf16.mxu0 %v17602_v7  ;;  %8413 = vmatprep.subr.bf16.mxu1 %v17604_v8  ;;  %v5026_v7 = vmax.f32 %v19559_v41, 0.0  ;;  %v17150_v8 = vcombine.high %v5038_v2, %v5042_v12  ;;  %v5058_v41 = vld [vmem:[#allocation7 + $0xb0] sm:$0xff]  ;;  %v5091_v55 = vld [vmem:[#allocation7 + $0x1b8] sm:$0xff] }
 0x41d   : > { %v5090_v51 = vld [vmem:[#allocation7 + $0x1b0] sm:$0xff] }
 0x41f   : > { %8250 = vmatpush1.bf16.msra.mxu0 %v17601_v11  ;;  %8414 = vmatpush1.bf16.msra.mxu1 %v17603_v14  ;;  %v5051_v11 = vld [vmem:[#allocation7 + $0x78] sm:$0xff]  ;;  %v17149_v14 = vcombine.low %v5038_v2, %v5042_v12  ;;  %v5094_v2 = vld [vmem:[#allocation7 + $0x1d0] sm:$0xff] }
 0x420   : > { %8251 = vmatprep.subr.bf16.mxu0 %v17610_v0  ;;  %8415 = vmatprep.subr.bf16.mxu1 %v17612_v16  ;;  %v19574_v0 = vpack.c.bf16 %v5026_v7, %v5026_v7  ;;  %v17151_v16 = vcombine.low %v5039_v57, %v5043_v3  ;;  %v17160_v17 = vcombine.high %v5047_v22, %v5051_v11  ;;  %v5098_v12 = vld [vmem:[#allocation7 + $0x1f0] sm:$0xff]  ;;  %v5095_v57 = vld [vmem:[#allocation7 + $0x1d8] sm:$0xff] }
 0x421   : > { %v5099_v3 = vld [vmem:[#allocation7 + $0x1f8] sm:$0xff]  ;;  %v17206_v7 = vcombine.high %v5094_v2, %v5098_v12 }
 0x423   : > { %8252 = vmatpush1.bf16.msra.mxu0 %v17609_v20  ;;  %8416 = vmatpush1.bf16.msra.mxu1 %v17611_v21  ;;  %v5059_v20 = vld [vmem:[#allocation7 + $0xb8] sm:$0xff]  ;;  %v17157_v21 = vcombine.low %v5046_v36, %v5050_v10  ;;  %v5106_v36 = vld [vmem:[#allocation7 + $0x230] sm:$0xff] }
 0x424   : > { %8253 = vmatprep.subr.bf16.mxu0 %v17618_v23  ;;  %8417 = vmatprep.subr.bf16.mxu1 %v17620_v24  ;;  %v17159_v23 = vcombine.low %v5047_v22, %v5051_v11  ;;  %v17166_v24 = vcombine.high %v5054_v18, %v5058_v41  ;;  %v17168_v27 = vcombine.high %v5055_v19, %v5059_v20  ;;  %v5103_v10 = vld [vmem:[#allocation7 + $0x218] sm:$0xff] }
 0x425   : > { %v5107_v22 = vld [vmem:[#allocation7 + $0x238] sm:$0xff]  ;;  %v17205_v11 = vcombine.low %v5094_v2, %v5098_v12  ;;  %v5154_v2 = vld [vmem:[#allocation7 + $0x3b0] sm:$0xff] }
 0x426   : > { %v5151_v12 = vld [vmem:[#allocation7 + $0x398] sm:$0xff] }
 0x427   : > { %8254 = vmatpush1.bf16.msra.mxu0 %v17617_v31  ;;  %8418 = vmatpush1.bf16.msra.mxu1 %v17619_v15  ;;  %v5067_v31 = vld [vmem:[#allocation7 + $0xf8] sm:$0xff]  ;;  %v17165_v15 = vcombine.low %v5054_v18, %v5058_v41  ;;  %v5114_v18 = vld [vmem:[#allocation7 + $0x270] sm:$0xff] }
 0x428   : > { %8255 = vmatprep.subr.bf16.mxu0 %v17626_v33  ;;  %8419 = vmatprep.subr.bf16.mxu1 %v17628_v58  ;;  %v17167_v33 = vcombine.low %v5055_v19, %v5059_v20  ;;  %v17174_v58 = vcombine.high %v5062_v28, %v5066_v29  ;;  %v17176_v34 = vcombine.high %v5063_v61, %v5067_v31  ;;  %v5111_v41 = vld [vmem:[#allocation7 + $0x258] sm:$0xff] }
 0x429   : > { %v5115_v19 = vld [vmem:[#allocation7 + $0x278] sm:$0xff] }
 0x42b   : > { %8256 = vmatpush1.bf16.msra.mxu0 %v17625_v6  ;;  %8420 = vmatpush1.bf16.msra.mxu1 %v17627_v40  ;;  %v17173_v6 = vcombine.low %v5062_v28, %v5066_v29  ;;  %v17175_v40 = vcombine.low %v5063_v61, %v5067_v31  ;;  %v5122_v28 = vld [vmem:[#allocation7 + $0x2b0] sm:$0xff]  ;;  %v5119_v29 = vld [vmem:[#allocation7 + $0x298] sm:$0xff] }
 0x42c   : > { %8257 = vmatprep.subr.bf16.mxu0 %v17634_v13  ;;  %8421 = vmatprep.subr.bf16.mxu1 %v17636_v42  ;;  %v17182_v13 = vcombine.high %v5070_v35, %v5074_v37  ;;  %v5123_v61 = vld [vmem:[#allocation7 + $0x2b8] sm:$0xff] }
 0x42f   : > { %8258 = vmatpush1.bf16.msra.mxu0 %v17633_v25  ;;  %8422 = vmatpush1.bf16.msra.mxu1 %v17635_v47  ;;  %v17181_v25 = vcombine.low %v5070_v35, %v5074_v37  ;;  %v5130_v35 = vld [vmem:[#allocation7 + $0x2f0] sm:$0xff]  ;;  %v5127_v37 = vld [vmem:[#allocation7 + $0x2d8] sm:$0xff] }
 0x430   : > { %8259 = vmatprep.subr.bf16.mxu0 %v17642_v48  ;;  %8423 = vmatprep.subr.bf16.mxu1 %v17644_v49  ;;  %v17190_v48 = vcombine.high %v5078_v43, %v5082_v44  ;;  %v17192_v49 = vcombine.high %v5079_v45, %v5083_v46 }
 0x433   : > { %8260 = vmatpush1.bf16.msra.mxu0 %v17641_v56  ;;  %8424 = vmatpush1.bf16.msra.mxu1 %v17643_v59  ;;  %v17189_v56 = vcombine.low %v5078_v43, %v5082_v44  ;;  %v17191_v59 = vcombine.low %v5079_v45, %v5083_v46  ;;  %v5138_v43 = vld [vmem:[#allocation7 + $0x330] sm:$0xff]  ;;  %v5135_v44 = vld [vmem:[#allocation7 + $0x318] sm:$0xff] }
 0x434   : > { %8261 = vmatprep.subr.bf16.mxu0 %v17650_v62  ;;  %8425 = vmatprep.subr.bf16.mxu1 %v17652_v63  ;;  %v17198_v62 = vcombine.high %v5086_v50, %v5090_v51  ;;  %v17200_v63 = vcombine.high %v5087_v52, %v5091_v55  ;;  %v5139_v45 = vld [vmem:[#allocation7 + $0x338] sm:$0xff] }
 0x437   : > { %8262 = vmatpush1.bf16.msra.mxu0 %v17649_v5  ;;  %8426 = vmatpush1.bf16.msra.mxu1 %v17651_v53  ;;  %v17197_v5 = vcombine.low %v5086_v50, %v5090_v51  ;;  %v17199_v53 = vcombine.low %v5087_v52, %v5091_v55  ;;  %v5146_v50 = vld [vmem:[#allocation7 + $0x370] sm:$0xff]  ;;  %v5143_v51 = vld [vmem:[#allocation7 + $0x358] sm:$0xff] }
 0x438   : > { %8436 = vmatprep.subr.bf16.mxu0 %v17150_v8  ;;  %8600 = vmatprep.subr.bf16.mxu1 %v17152_v9  ;;  %v17208_v8 = vcombine.high %v5095_v57, %v5099_v3  ;;  %v5102_v9 = vld [vmem:[#allocation7 + $0x210] sm:$0xff]  ;;  %v5147_v52 = vld [vmem:[#allocation7 + $0x378] sm:$0xff] }
 0x439   : > { %v17213_v20 = vcombine.low %v5102_v9, %v5106_v36 }
 0x43a   : > { %8264 = vmatmul.mubr.bf16.vlgmr.msra.gmra.mrb[8].mxu0 %v19574_v0  ;;  %8428 = vmatmul.mubr.bf16.vlgmr.msra.gmra.mrb[8].mxu1 %v19574_v0 }
 0x43b   : > { %8437 = vmatpush1.bf16.msra.mxu0 %v17149_v14  ;;  %8468 = vmatprep.mubr.bf16.mxu0 %v19542_v26  ;;  %v17207_v14 = vcombine.low %v5095_v57, %v5099_v3  ;;  %v5155_v57 = vld [vmem:[#allocation7 + $0x3b8] sm:$0xff] }
 0x43c   : > { %8601 = vmatpush1.bf16.msra.mxu1 %v17151_v16  ;;  %8632 = vmatprep.mubr.bf16.mxu1 %v19542_v26  ;;  %v5071_v26 = vld [vmem:[#allocation7 + $0x118] sm:$0xff]  ;;  %v17214_v16 = vcombine.high %v5102_v9, %v5106_v36  ;;  %v5162_v9 = vld [vmem:[#allocation7 + $0x3f0] sm:$0xff] }
 0x43d   : > { %8438 = vmatprep.subr.bf16.mxu0 %v17158_v32  ;;  %8602 = vmatprep.subr.bf16.mxu1 %v17160_v17  ;;  %v17184_v42 = vcombine.high %v5071_v26, %v5075_v38  ;;  %v17183_v47 = vcombine.low %v5071_v26, %v5075_v38  ;;  %v17216_v32 = vcombine.high %v5103_v10, %v5107_v22  ;;  %v5110_v17 = vld [vmem:[#allocation7 + $0x250] sm:$0xff]  ;;  %v5131_v26 = vld [vmem:[#allocation7 + $0x2f8] sm:$0xff] }
 0x43e   : > { %v17221_v31 = vcombine.low %v5110_v17, %v5114_v18  ;;  %v5159_v36 = vld [vmem:[#allocation7 + $0x3d8] sm:$0xff] }
 0x43f   : > { %8439 = vmatpush1.bf16.msra.mxu0 %v17157_v21  ;;  %v17215_v21 = vcombine.low %v5103_v10, %v5107_v22  ;;  %v5163_v10 = vld [vmem:[#allocation7 + $0x3f8] sm:$0xff] }
 0x440   : > { %8603 = vmatpush1.bf16.msra.mxu1 %v17159_v23  ;;  %8440 = vmatprep.subr.bf16.mxu0 %v17166_v24  ;;  %v17222_v23 = vcombine.high %v5110_v17, %v5114_v18  ;;  %v17224_v24 = vcombine.high %v5111_v41, %v5115_v19  ;;  %v5170_v17 = vld [vmem:[#allocation7 + $0x430] sm:$0xff]  ;;  %v5167_v18 = vld [vmem:[#allocation7 + $0x418] sm:$0xff] }
 0x441   : > { %8604 = vmatprep.subr.bf16.mxu1 %v17168_v27  ;;  %v5118_v27 = vld [vmem:[#allocation7 + $0x290] sm:$0xff] }
 0x442   : > { %v17229_v38 = vcombine.low %v5118_v27, %v5122_v28 }
 0x443   : > { %8441 = vmatpush1.bf16.msra.mxu0 %v17165_v15  ;;  %v17223_v15 = vcombine.low %v5111_v41, %v5115_v19  ;;  %v5171_v41 = vld [vmem:[#allocation7 + $0x438] sm:$0xff] }
 0x444   : > { %8605 = vmatpush1.bf16.msra.mxu1 %v17167_v33  ;;  %8442 = vmatprep.subr.bf16.mxu0 %v17174_v58  ;;  %v17230_v33 = vcombine.high %v5118_v27, %v5122_v28  ;;  %v17232_v58 = vcombine.high %v5119_v29, %v5123_v61  ;;  %v5178_v27 = vld [vmem:[#allocation7 + $0x470] sm:$0xff] }
 0x445   : > { %8606 = vmatprep.subr.bf16.mxu1 %v17176_v34  ;;  %v5126_v34 = vld [vmem:[#allocation7 + $0x2d0] sm:$0xff] }
 0x446   : > { %v17237_v46 = vcombine.low %v5126_v34, %v5130_v35 }
 0x447   : > { %8443 = vmatpush1.bf16.msra.mxu0 %v17173_v6  ;;  %v17231_v6 = vcombine.low %v5119_v29, %v5123_v61  ;;  %v5175_v29 = vld [vmem:[#allocation7 + $0x458] sm:$0xff] }
 0x448   : > { %8607 = vmatpush1.bf16.msra.mxu1 %v17175_v40  ;;  %8444 = vmatprep.subr.bf16.mxu0 %v17182_v13  ;;  %v17238_v40 = vcombine.high %v5126_v34, %v5130_v35  ;;  %v17240_v13 = vcombine.high %v5127_v37, %v5131_v26  ;;  %v5179_v61 = vld [vmem:[#allocation7 + $0x478] sm:$0xff] }
 0x449   : > { %8608 = vmatprep.subr.bf16.mxu1 %v17184_v42  ;;  %v5134_v42 = vld [vmem:[#allocation7 + $0x310] sm:$0xff]  ;;  %v17288_v34 = vcombine.high %v5175_v29, %v5179_v61  ;;  %v5183_v35 = vld [vmem:[#allocation7 + $0x498] sm:$0xff] }
 0x44a   : > { %v17245_v55 = vcombine.low %v5134_v42, %v5138_v43 }
 0x44b   : > { %8445 = vmatpush1.bf16.msra.mxu0 %v17181_v25  ;;  %v17239_v25 = vcombine.low %v5127_v37, %v5131_v26  ;;  %v5187_v37 = vld [vmem:[#allocation7 + $0x4b8] sm:$0xff] }
 0x44c   : > { %8609 = vmatpush1.bf16.msra.mxu1 %v17183_v47  ;;  %8446 = vmatprep.subr.bf16.mxu0 %v17190_v48  ;;  %v17246_v47 = vcombine.high %v5134_v42, %v5138_v43  ;;  %v17248_v48 = vcombine.high %v5135_v44, %v5139_v45  ;;  %v5194_v42 = vld [vmem:[#allocation7 + $0x4f0] sm:$0xff]  ;;  %v5191_v43 = vld [vmem:[#allocation7 + $0x4d8] sm:$0xff] }
 0x44d   : > { %8610 = vmatprep.subr.bf16.mxu1 %v17192_v49  ;;  %v5142_v49 = vld [vmem:[#allocation7 + $0x350] sm:$0xff] }
 0x44e   : > { %v17253_v3 = vcombine.low %v5142_v49, %v5146_v50 }
 0x44f   : > { %8447 = vmatpush1.bf16.msra.mxu0 %v17189_v56  ;;  %v17247_v56 = vcombine.low %v5135_v44, %v5139_v45  ;;  %v5195_v44 = vld [vmem:[#allocation7 + $0x4f8] sm:$0xff] }
 0x450   : > { %8611 = vmatpush1.bf16.msra.mxu1 %v17191_v59  ;;  %8448 = vmatprep.subr.bf16.mxu0 %v17198_v62  ;;  %v17254_v59 = vcombine.high %v5142_v49, %v5146_v50  ;;  %v17256_v62 = vcombine.high %v5143_v51, %v5147_v52  ;;  %v5199_v49 = vld [vmem:[#allocation7 + $0x518] sm:$0xff] }
 0x451   : > { %8612 = vmatprep.subr.bf16.mxu1 %v17200_v63  ;;  %v5150_v63 = vld [vmem:[#allocation7 + $0x390] sm:$0xff]  ;;  %v5203_v50 = vld [vmem:[#allocation7 + $0x538] sm:$0xff] }
 0x452   : > { %v17261_v22 = vcombine.low %v5150_v63, %v5154_v2 }
 0x453   : > { %8449 = vmatpush1.bf16.msra.mxu0 %v17197_v5  ;;  %v17255_v5 = vcombine.low %v5143_v51, %v5147_v52  ;;  %v17303_v51 = vcombine.low %v5191_v43, %v5195_v44 }
 0x454   : > { %8613 = vmatpush1.bf16.msra.mxu1 %v17199_v53  ;;  %8450 = vmatprep.subr.bf16.mxu0 %v17206_v7  ;;  %v17262_v53 = vcombine.high %v5150_v63, %v5154_v2  ;;  %v17264_v7 = vcombine.high %v5151_v12, %v5155_v57  ;;  %v5211_v63 = vld [vmem:[#allocation7 + $0x578] sm:$0xff] }
 0x455   : > { %8614 = vmatprep.subr.bf16.mxu1 %v17208_v8  ;;  %v5158_v8 = vld [vmem:[#allocation7 + $0x3d0] sm:$0xff] }
 0x456   : > { %v17269_v19 = vcombine.low %v5158_v8, %v5162_v9 }
 0x457   : > { %8451 = vmatpush1.bf16.msra.mxu0 %v17205_v11  ;;  %v17263_v11 = vcombine.low %v5151_v12, %v5155_v57  ;;  %v17311_v12 = vcombine.low %v5199_v49, %v5203_v50 }
 0x458   : > { %8615 = vmatpush1.bf16.msra.mxu1 %v17207_v14  ;;  %8452 = vmatprep.subr.bf16.mxu0 %v17214_v16  ;;  %v17270_v14 = vcombine.high %v5158_v8, %v5162_v9  ;;  %v17272_v16 = vcombine.high %v5159_v36, %v5163_v10  ;;  %v5219_v8 = vld [vmem:[#allocation7 + $0x5b8] sm:$0xff] }
 0x459   : > { %8616 = vmatprep.subr.bf16.mxu1 %v17216_v32  ;;  %v5166_v32 = vld [vmem:[#allocation7 + $0x410] sm:$0xff] }
 0x45a   : > { %v17277_v28 = vcombine.low %v5166_v32, %v5170_v17 }
 0x45b   : > { %8453 = vmatpush1.bf16.msra.mxu0 %v17213_v20  ;;  %v17271_v20 = vcombine.low %v5159_v36, %v5163_v10 }
 0x45c   : > { %8617 = vmatpush1.bf16.msra.mxu1 %v17215_v21  ;;  %8454 = vmatprep.subr.bf16.mxu0 %v17222_v23  ;;  %v17278_v21 = vcombine.high %v5166_v32, %v5170_v17  ;;  %v17280_v23 = vcombine.high %v5167_v18, %v5171_v41  ;;  %v5227_v32 = vld [vmem:[#allocation7 + $0x5f8] sm:$0xff] }
 0x45d   : > { %8618 = vmatprep.subr.bf16.mxu1 %v17224_v24  ;;  %v5174_v24 = vld [vmem:[#allocation7 + $0x450] sm:$0xff] }
 0x45e   : > { %v17285_v26 = vcombine.low %v5174_v24, %v5178_v27 }
 0x45f   : > { %8455 = vmatpush1.bf16.msra.mxu0 %v17221_v31  ;;  %v17279_v31 = vcombine.low %v5167_v18, %v5171_v41 }
 0x460   : > { %8619 = vmatpush1.bf16.msra.mxu1 %v17223_v15  ;;  %8456 = vmatprep.subr.bf16.mxu0 %v17230_v33  ;;  %v17286_v15 = vcombine.high %v5174_v24, %v5178_v27  ;;  %v5182_v33 = vld [vmem:[#allocation7 + $0x490] sm:$0xff]  ;;  %v5235_v24 = vld [vmem:[#allocation7 + $0x638] sm:$0xff] }
 0x461   : > { %8620 = vmatprep.subr.bf16.mxu1 %v17232_v58  ;;  %v5186_v58 = vld [vmem:[#allocation7 + $0x4b0] sm:$0xff] }
 0x462   : > { %v17293_v45 = vcombine.low %v5182_v33, %v5186_v58 }
 0x463   : > { %8457 = vmatpush1.bf16.msra.mxu0 %v17229_v38  ;;  %v17287_v38 = vcombine.low %v5175_v29, %v5179_v61 }
 0x464   : > { %8621 = vmatpush1.bf16.msra.mxu1 %v17231_v6  ;;  %8458 = vmatprep.subr.bf16.mxu0 %v17238_v40  ;;  %v17294_v6 = vcombine.high %v5182_v33, %v5186_v58  ;;  %v17296_v40 = vcombine.high %v5183_v35, %v5187_v37  ;;  %v5239_v33 = vld [vmem:[#allocation7 + $0x658] sm:$0xff] }
 0x465   : > { %8622 = vmatprep.subr.bf16.mxu1 %v17240_v13  ;;  %v5190_v13 = vld [vmem:[#allocation7 + $0x4d0] sm:$0xff]  ;;  %v5243_v58 = vld [vmem:[#allocation7 + $0x678] sm:$0xff] }
 0x467   : > { %8459 = vmatpush1.bf16.msra.mxu0 %v17237_v46  ;;  %v17302_v46 = vcombine.high %v5190_v13, %v5194_v42 }
 0x468   : > { %8623 = vmatpush1.bf16.msra.mxu1 %v17239_v25  ;;  %8460 = vmatprep.subr.bf16.mxu0 %v17246_v47  ;;  %v17304_v25 = vcombine.high %v5191_v43, %v5195_v44  ;;  %v5198_v47 = vld [vmem:[#allocation7 + $0x510] sm:$0xff]  ;;  %v17351_v43 = vcombine.low %v5239_v33, %v5243_v58 }
 0x469   : > { %8624 = vmatprep.subr.bf16.mxu1 %v17248_v48  ;;  %v5202_v48 = vld [vmem:[#allocation7 + $0x530] sm:$0xff] }
 0x46a   : > { %v17310_v52 = vcombine.high %v5198_v47, %v5202_v48  ;;  %v17309_v2 = vcombine.low %v5198_v47, %v5202_v48  ;;  %v5259_v47 = vld [vmem:[#allocation7 + $0x6f8] sm:$0xff] }
 0x46b   : > { %8461 = vmatpush1.bf16.msra.mxu0 %v17245_v55  ;;  %v17312_v55 = vcombine.high %v5199_v49, %v5203_v50 }
 0x46c   : > { %8625 = vmatpush1.bf16.msra.mxu1 %v17247_v56  ;;  %8462 = vmatprep.subr.bf16.mxu0 %v17254_v59  ;;  %v5206_v56 = vld [vmem:[#allocation7 + $0x550] sm:$0xff] }
 0x46d   : > { %8626 = vmatprep.subr.bf16.mxu1 %v17256_v62  ;;  %v5210_v59 = vld [vmem:[#allocation7 + $0x570] sm:$0xff]  ;;  %v5207_v62 = vld [vmem:[#allocation7 + $0x558] sm:$0xff] }
 0x46e   : > { %v17318_v57 = vcombine.high %v5206_v56, %v5210_v59  ;;  %v17317_v9 = vcombine.low %v5206_v56, %v5210_v59  ;;  %v17319_v36 = vcombine.low %v5207_v62, %v5211_v63  ;;  %v5267_v56 = vld [vmem:[#allocation7 + $0x738] sm:$0xff] }
 0x46f   : > { %8463 = vmatpush1.bf16.msra.mxu0 %v17253_v3  ;;  %v17320_v3 = vcombine.high %v5207_v62, %v5211_v63 }
 0x470   : > { %8627 = vmatpush1.bf16.msra.mxu1 %v17255_v5  ;;  %8464 = vmatprep.subr.bf16.mxu0 %v17262_v53  ;;  %v5214_v5 = vld [vmem:[#allocation7 + $0x590] sm:$0xff] }
 0x471   : > { %8628 = vmatprep.subr.bf16.mxu1 %v17264_v7  ;;  %v5218_v53 = vld [vmem:[#allocation7 + $0x5b0] sm:$0xff]  ;;  %v5215_v7 = vld [vmem:[#allocation7 + $0x598] sm:$0xff] }
 0x472   : > { %v17326_v10 = vcombine.high %v5214_v5, %v5218_v53  ;;  %v17325_v17 = vcombine.low %v5214_v5, %v5218_v53  ;;  %v17327_v18 = vcombine.low %v5215_v7, %v5219_v8  ;;  %v5275_v5 = vld [vmem:[#allocation7 + $0x778] sm:$0xff] }
 0x473   : > { %8465 = vmatpush1.bf16.msra.mxu0 %v17261_v22  ;;  %v17328_v22 = vcombine.high %v5215_v7, %v5219_v8 }
 0x474   : > { %8629 = vmatpush1.bf16.msra.mxu1 %v17263_v11  ;;  %8466 = vmatprep.subr.bf16.mxu0 %v17270_v14  ;;  %v5222_v11 = vld [vmem:[#allocation7 + $0x5d0] sm:$0xff] }
 0x475   : > { %8630 = vmatprep.subr.bf16.mxu1 %v17272_v16  ;;  %v5226_v14 = vld [vmem:[#allocation7 + $0x5f0] sm:$0xff]  ;;  %v5223_v16 = vld [vmem:[#allocation7 + $0x5d8] sm:$0xff] }
 0x476   : > { %v17334_v41 = vcombine.high %v5222_v11, %v5226_v14  ;;  %v17333_v27 = vcombine.low %v5222_v11, %v5226_v14  ;;  %v5283_v11 = vld [vmem:[#allocation7 + $0x7b8] sm:$0xff] }
 0x477   : > { %8467 = vmatpush1.bf16.msra.mxu0 %v17269_v19  ;;  %v17336_v19 = vcombine.high %v5223_v16, %v5227_v32 }
 0x478   : > { %8631 = vmatpush1.bf16.msra.mxu1 %v17271_v20  ;;  %8477 = vmatprep.subr.bf16.mxu0 %v17278_v21  ;;  %v5230_v20 = vld [vmem:[#allocation7 + $0x610] sm:$0xff] }
 0x479   : > { %8641 = vmatprep.subr.bf16.mxu1 %v17280_v23  ;;  %v5234_v21 = vld [vmem:[#allocation7 + $0x630] sm:$0xff]  ;;  %v5231_v23 = vld [vmem:[#allocation7 + $0x618] sm:$0xff] }
 0x47a   : > { %8469 = vmatmul.mubr.bf16.vlgmr.msra.gmra.mrb[12].mxu0 %v19544_v30  ;;  %v17342_v29 = vcombine.high %v5230_v20, %v5234_v21  ;;  %v17344_v61 = vcombine.high %v5231_v23, %v5235_v24 }
 0x47b   : > { %8633 = vmatmul.mubr.bf16.vlgmr.msra.gmra.mrb[12].mxu1 %v19544_v30  ;;  %8478 = vmatpush1.bf16.msra.mxu0 %v17277_v28  ;;  %v17295_v30 = vcombine.low %v5183_v35, %v5187_v37  ;;  %v17335_v28 = vcombine.low %v5223_v16, %v5227_v32  ;;  %v17343_v35 = vcombine.low %v5231_v23, %v5235_v24 }
 0x47c   : > { %8509 = vmatprep.mubr.bf16.mxu0 %v19548_v1  ;;  %8642 = vmatpush1.bf16.msra.mxu1 %v17279_v31  ;;  %v5238_v31 = vld [vmem:[#allocation7 + $0x650] sm:$0xff] }
 0x47d   : > { %8673 = vmatprep.mubr.bf16.mxu1 %v19548_v1  ;;  %8479 = vmatprep.subr.bf16.mxu0 %v17286_v15  ;;  %v17301_v1 = vcombine.low %v5190_v13, %v5194_v42  ;;  %v5242_v15 = vld [vmem:[#allocation7 + $0x670] sm:$0xff]  ;;  %v5251_v13 = vld [vmem:[#allocation7 + $0x6b8] sm:$0xff] }
 0x47e   : > { %8643 = vmatprep.subr.bf16.mxu1 %v17288_v34  ;;  %v17341_v34 = vcombine.low %v5230_v20, %v5234_v21  ;;  %v17350_v37 = vcombine.high %v5238_v31, %v5242_v15  ;;  %v17349_v42 = vcombine.low %v5238_v31, %v5242_v15  ;;  %v5291_v20 = vld [vmem:[#allocation7 + $0x7f8] sm:$0xff] }
 0x47f   : > { %8480 = vmatpush1.bf16.msra.mxu0 %v17285_v26  ;;  %v17352_v26 = vcombine.high %v5239_v33, %v5243_v58  ;;  %v5299_v31 = vld [vmem:[#allocation7 + $0x838] sm:$0xff] }
 0x480   : > { %8644 = vmatpush1.bf16.msra.mxu1 %v17287_v38  ;;  %8481 = vmatprep.subr.bf16.mxu0 %v17294_v6  ;;  %v5246_v38 = vld [vmem:[#allocation7 + $0x690] sm:$0xff] }
 0x481   : > { %8645 = vmatprep.subr.bf16.mxu1 %v17296_v40  ;;  %v5250_v6 = vld [vmem:[#allocation7 + $0x6b0] sm:$0xff]  ;;  %v5247_v40 = vld [vmem:[#allocation7 + $0x698] sm:$0xff] }
 0x482   : > { %v17358_v44 = vcombine.high %v5246_v38, %v5250_v6  ;;  %v17357_v48 = vcombine.low %v5246_v38, %v5250_v6  ;;  %v17359_v49 = vcombine.low %v5247_v40, %v5251_v13  ;;  %v5303_v38 = vld [vmem:[#allocation7 + $0x858] sm:$0xff] }
 0x483   : > { %8482 = vmatpush1.bf16.msra.mxu0 %v17293_v45  ;;  %v17360_v45 = vcombine.high %v5247_v40, %v5251_v13  ;;  %v5307_v6 = vld [vmem:[#allocation7 + $0x878] sm:$0xff] }
 0x484   : > { %8646 = vmatpush1.bf16.msra.mxu1 %v17295_v30  ;;  %8483 = vmatprep.subr.bf16.mxu0 %v17302_v46  ;;  %v5254_v30 = vld [vmem:[#allocation7 + $0x6d0] sm:$0xff] }
 0x485   : > { %8647 = vmatprep.subr.bf16.mxu1 %v17304_v25  ;;  %v5258_v46 = vld [vmem:[#allocation7 + $0x6f0] sm:$0xff]  ;;  %v5255_v25 = vld [vmem:[#allocation7 + $0x6d8] sm:$0xff] }
 0x486   : > { %v17366_v50 = vcombine.high %v5254_v30, %v5258_v46  ;;  %v17365_v59 = vcombine.low %v5254_v30, %v5258_v46  ;;  %v17367_v62 = vcombine.low %v5255_v25, %v5259_v47  ;;  %v5315_v30 = vld [vmem:[#allocation7 + $0x8b8] sm:$0xff] }
 0x487   : > { %8484 = vmatpush1.bf16.msra.mxu0 %v17301_v1  ;;  %v17368_v1 = vcombine.high %v5255_v25, %v5259_v47  ;;  %v17415_v25 = vcombine.low %v5303_v38, %v5307_v6 }
 0x488   : > { %8648 = vmatpush1.bf16.msra.mxu1 %v17303_v51  ;;  %8485 = vmatprep.subr.bf16.mxu0 %v17310_v52  ;;  %v5262_v51 = vld [vmem:[#allocation7 + $0x710] sm:$0xff] }
 0x489   : > { %8649 = vmatprep.subr.bf16.mxu1 %v17312_v55  ;;  %v5266_v52 = vld [vmem:[#allocation7 + $0x730] sm:$0xff]  ;;  %v5263_v55 = vld [vmem:[#allocation7 + $0x718] sm:$0xff] }
 0x48a   : > { %v17374_v63 = vcombine.high %v5262_v51, %v5266_v52  ;;  %v17373_v53 = vcombine.low %v5262_v51, %v5266_v52  ;;  %v17375_v7 = vcombine.low %v5263_v55, %v5267_v56  ;;  %v5323_v51 = vld [vmem:[#allocation7 + $0x8f8] sm:$0xff] }
 0x48b   : > { %8486 = vmatpush1.bf16.msra.mxu0 %v17309_v2  ;;  %v17376_v2 = vcombine.high %v5263_v55, %v5267_v56 }
 0x48c   : > { %8650 = vmatpush1.bf16.msra.mxu1 %v17311_v12  ;;  %8487 = vmatprep.subr.bf16.mxu0 %v17318_v57  ;;  %v5270_v12 = vld [vmem:[#allocation7 + $0x750] sm:$0xff] }
 0x48d   : > { %8651 = vmatprep.subr.bf16.mxu1 %v17320_v3  ;;  %v5274_v57 = vld [vmem:[#allocation7 + $0x770] sm:$0xff]  ;;  %v5271_v3 = vld [vmem:[#allocation7 + $0x758] sm:$0xff] }
 0x48e   : > { %v17382_v8 = vcombine.high %v5270_v12, %v5274_v57  ;;  %v17381_v14 = vcombine.low %v5270_v12, %v5274_v57  ;;  %v17383_v16 = vcombine.low %v5271_v3, %v5275_v5 }
 0x48f   : > { %8488 = vmatpush1.bf16.msra.mxu0 %v17317_v9  ;;  %v17384_v9 = vcombine.high %v5271_v3, %v5275_v5  ;;  %v5334_v5 = vld [vmem:[#allocation7 + $0x950] sm:$0xff] }
 0x490   : > { %8652 = vmatpush1.bf16.msra.mxu1 %v17319_v36  ;;  %8489 = vmatprep.subr.bf16.mxu0 %v17326_v10  ;;  %v5278_v36 = vld [vmem:[#allocation7 + $0x790] sm:$0xff] }
 0x491   : > { %8653 = vmatprep.subr.bf16.mxu1 %v17328_v22  ;;  %v5282_v10 = vld [vmem:[#allocation7 + $0x7b0] sm:$0xff]  ;;  %v5279_v22 = vld [vmem:[#allocation7 + $0x798] sm:$0xff] }
 0x492   : > { %v17390_v32 = vcombine.high %v5278_v36, %v5282_v10  ;;  %v17389_v21 = vcombine.low %v5278_v36, %v5282_v10  ;;  %v17391_v23 = vcombine.low %v5279_v22, %v5283_v11 }
 0x493   : > { %8490 = vmatpush1.bf16.msra.mxu0 %v17325_v17  ;;  %v17392_v17 = vcombine.high %v5279_v22, %v5283_v11  ;;  %v5342_v11 = vld [vmem:[#allocation7 + $0x990] sm:$0xff] }
 0x494   : > { %8654 = vmatpush1.bf16.msra.mxu1 %v17327_v18  ;;  %8491 = vmatprep.subr.bf16.mxu0 %v17334_v41  ;;  %v5286_v18 = vld [vmem:[#allocation7 + $0x7d0] sm:$0xff] }
 0x495   : > { %8655 = vmatprep.subr.bf16.mxu1 %v17336_v19  ;;  %v5290_v41 = vld [vmem:[#allocation7 + $0x7f0] sm:$0xff]  ;;  %v5287_v19 = vld [vmem:[#allocation7 + $0x7d8] sm:$0xff] }
 0x496   : > { %v17398_v24 = vcombine.high %v5286_v18, %v5290_v41  ;;  %v17397_v15 = vcombine.low %v5286_v18, %v5290_v41  ;;  %v17399_v33 = vcombine.low %v5287_v19, %v5291_v20 }
 0x497   : > { %8492 = vmatpush1.bf16.msra.mxu0 %v17333_v27  ;;  %v17400_v27 = vcombine.high %v5287_v19, %v5291_v20  ;;  %v5350_v20 = vld [vmem:[#allocation7 + $0x9d0] sm:$0xff] }
 0x498   : > { %8656 = vmatpush1.bf16.msra.mxu1 %v17335_v28  ;;  %8493 = vmatprep.subr.bf16.mxu0 %v17342_v29  ;;  %v5294_v28 = vld [vmem:[#allocation7 + $0x810] sm:$0xff] }
 0x499   : > { %8657 = vmatprep.subr.bf16.mxu1 %v17344_v61  ;;  %v5298_v29 = vld [vmem:[#allocation7 + $0x830] sm:$0xff]  ;;  %v5295_v61 = vld [vmem:[#allocation7 + $0x818] sm:$0xff] }
 0x49a   : > { %v17406_v58 = vcombine.high %v5294_v28, %v5298_v29  ;;  %v17407_v40 = vcombine.low %v5295_v61, %v5299_v31 }
 0x49b   : > { %8494 = vmatpush1.bf16.msra.mxu0 %v17341_v34  ;;  %v17408_v34 = vcombine.high %v5295_v61, %v5299_v31  ;;  %v5358_v31 = vld [vmem:[#allocation7 + $0xa10] sm:$0xff] }
 0x49c   : > { %8658 = vmatpush1.bf16.msra.mxu1 %v17343_v35  ;;  %8495 = vmatprep.subr.bf16.mxu0 %v17350_v37  ;;  %v5302_v35 = vld [vmem:[#allocation7 + $0x850] sm:$0xff] }
 0x49d   : > { %8659 = vmatprep.subr.bf16.mxu1 %v17352_v26  ;;  %v5306_v37 = vld [vmem:[#allocation7 + $0x870] sm:$0xff]  ;;  %v17405_v26 = vcombine.low %v5294_v28, %v5298_v29 }
 0x49e   : > { %v17414_v13 = vcombine.high %v5302_v35, %v5306_v37  ;;  %v17413_v46 = vcombine.low %v5302_v35, %v5306_v37 }
 0x49f   : > { %8496 = vmatpush1.bf16.msra.mxu0 %v17349_v42  ;;  %v5310_v42 = vld [vmem:[#allocation7 + $0x890] sm:$0xff] }
 0x4a0   : > { %8660 = vmatpush1.bf16.msra.mxu1 %v17351_v43  ;;  %8497 = vmatprep.subr.bf16.mxu0 %v17358_v44  ;;  %v5314_v43 = vld [vmem:[#allocation7 + $0x8b0] sm:$0xff]  ;;  %v17416_v44 = vcombine.high %v5303_v38, %v5307_v6 }
 0x4a1   : > { %8661 = vmatprep.subr.bf16.mxu1 %v17360_v45  ;;  %v5311_v45 = vld [vmem:[#allocation7 + $0x898] sm:$0xff]  ;;  %v17422_v47 = vcombine.high %v5310_v42, %v5314_v43  ;;  %v17421_v52 = vcombine.low %v5310_v42, %v5314_v43  ;;  %v5366_v38 = vld [vmem:[#allocation7 + $0xa50] sm:$0xff] }
 0x4a2   : > { %v5370_v6 = vld [vmem:[#allocation7 + $0xa70] sm:$0xff] }
 0x4a3   : > { %8498 = vmatpush1.bf16.msra.mxu0 %v17357_v48  ;;  %v17424_v48 = vcombine.high %v5311_v45, %v5315_v30 }
 0x4a4   : > { %8662 = vmatpush1.bf16.msra.mxu1 %v17359_v49  ;;  %8499 = vmatprep.subr.bf16.mxu0 %v17366_v50  ;;  %v5318_v49 = vld [vmem:[#allocation7 + $0x8d0] sm:$0xff] }
 0x4a5   : > { %8663 = vmatprep.subr.bf16.mxu1 %v17368_v1  ;;  %v5322_v50 = vld [vmem:[#allocation7 + $0x8f0] sm:$0xff]  ;;  %v5319_v1 = vld [vmem:[#allocation7 + $0x8d8] sm:$0xff] }
 0x4a6   : > { %v17430_v55 = vcombine.high %v5318_v49, %v5322_v50  ;;  %v17432_v56 = vcombine.high %v5319_v1, %v5323_v51  ;;  %v17431_v12 = vcombine.low %v5319_v1, %v5323_v51  ;;  %v5382_v51 = vld [vmem:[#allocation7 + $0xad0] sm:$0xff] }
 0x4a7   : > { %8500 = vmatpush1.bf16.msra.mxu0 %v17365_v59  ;;  %v5326_v59 = vld [vmem:[#allocation7 + $0x910] sm:$0xff] }
 0x4a8   : > { %8664 = vmatpush1.bf16.msra.mxu1 %v17367_v62  ;;  %8501 = vmatprep.subr.bf16.mxu0 %v17374_v63  ;;  %v5330_v62 = vld [vmem:[#allocation7 + $0x930] sm:$0xff]  ;;  %v5327_v63 = vld [vmem:[#allocation7 + $0x918] sm:$0xff] }
 0x4a9   : > { %8665 = vmatprep.subr.bf16.mxu1 %v17376_v2  ;;  %v5331_v2 = vld [vmem:[#allocation7 + $0x938] sm:$0xff]  ;;  %v17438_v57 = vcombine.high %v5326_v59, %v5330_v62 }
 0x4aa   : > { %v17440_v3 = vcombine.high %v5327_v63, %v5331_v2  ;;  %v17439_v36 = vcombine.low %v5327_v63, %v5331_v2  ;;  %v5390_v2 = vld [vmem:[#allocation7 + $0xb10] sm:$0xff] }
 0x4ab   : > { %8502 = vmatpush1.bf16.msra.mxu0 %v17373_v53  ;;  %v5338_v53 = vld [vmem:[#allocation7 + $0x970] sm:$0xff] }
 0x4ac   : > { %8666 = vmatpush1.bf16.msra.mxu1 %v17375_v7  ;;  %8503 = vmatprep.subr.bf16.mxu0 %v17382_v8  ;;  %v5335_v7 = vld [vmem:[#allocation7 + $0x958] sm:$0xff]  ;;  %v17446_v10 = vcombine.high %v5334_v5, %v5338_v53 }
 0x4ad   : > { %8667 = vmatprep.subr.bf16.mxu1 %v17384_v9  ;;  %v5339_v8 = vld [vmem:[#allocation7 + $0x978] sm:$0xff]  ;;  %v17437_v9 = vcombine.low %v5326_v59, %v5330_v62 }
 0x4ae   : > { %v17448_v22 = vcombine.high %v5335_v7, %v5339_v8  ;;  %v17447_v18 = vcombine.low %v5335_v7, %v5339_v8  ;;  %v5398_v8 = vld [vmem:[#allocation7 + $0xb50] sm:$0xff] }
 0x4af   : > { %8504 = vmatpush1.bf16.msra.mxu0 %v17381_v14  ;;  %v5346_v14 = vld [vmem:[#allocation7 + $0x9b0] sm:$0xff] }
 0x4b0   : > { %8668 = vmatpush1.bf16.msra.mxu1 %v17383_v16  ;;  %8505 = vmatprep.subr.bf16.mxu0 %v17390_v32  ;;  %v5343_v16 = vld [vmem:[#allocation7 + $0x998] sm:$0xff]  ;;  %v17454_v41 = vcombine.high %v5342_v11, %v5346_v14 }
 0x4b1   : > { %8669 = vmatprep.subr.bf16.mxu1 %v17392_v17  ;;  %v5347_v32 = vld [vmem:[#allocation7 + $0x9b8] sm:$0xff]  ;;  %v17445_v17 = vcombine.low %v5334_v5, %v5338_v53 }
 0x4b2   : > { %v17456_v19 = vcombine.high %v5343_v16, %v5347_v32  ;;  %v17455_v28 = vcombine.low %v5343_v16, %v5347_v32  ;;  %v5406_v32 = vld [vmem:[#allocation7 + $0xb90] sm:$0xff] }
 0x4b3   : > { %8506 = vmatpush1.bf16.msra.mxu0 %v17389_v21  ;;  %v5354_v21 = vld [vmem:[#allocation7 + $0x9f0] sm:$0xff] }
 0x4b4   : > { %8670 = vmatpush1.bf16.msra.mxu1 %v17391_v23  ;;  %8507 = vmatprep.subr.bf16.mxu0 %v17398_v24  ;;  %v5351_v23 = vld [vmem:[#allocation7 + $0x9d8] sm:$0xff]  ;;  %v17462_v29 = vcombine.high %v5350_v20, %v5354_v21 }
 0x4b5   : > { %8671 = vmatprep.subr.bf16.mxu1 %v17400_v27  ;;  %v5355_v24 = vld [vmem:[#allocation7 + $0x9f8] sm:$0xff]  ;;  %v17453_v27 = vcombine.low %v5342_v11, %v5346_v14 }
 0x4b6   : > { %v17464_v61 = vcombine.high %v5351_v23, %v5355_v24  ;;  %v17463_v35 = vcombine.low %v5351_v23, %v5355_v24  ;;  %v5414_v24 = vld [vmem:[#allocation7 + $0xbd0] sm:$0xff] }
 0x4b7   : > { %8508 = vmatpush1.bf16.msra.mxu0 %v17397_v15  ;;  %v5362_v15 = vld [vmem:[#allocation7 + $0xa30] sm:$0xff] }
 0x4b8   : > { %8672 = vmatpush1.bf16.msra.mxu1 %v17399_v33  ;;  %8518 = vmatprep.subr.bf16.mxu0 %v17406_v58  ;;  %v5359_v33 = vld [vmem:[#allocation7 + $0xa18] sm:$0xff]  ;;  %v17470_v37 = vcombine.high %v5358_v31, %v5362_v15  ;;  %v17469_v42 = vcombine.low %v5358_v31, %v5362_v15 }
 0x4b9   : > { %8682 = vmatprep.subr.bf16.mxu1 %v17408_v34  ;;  %v5363_v58 = vld [vmem:[#allocation7 + $0xa38] sm:$0xff]  ;;  %v17461_v34 = vcombine.low %v5350_v20, %v5354_v21 }
 0x4ba   : > { %8510 = vmatmul.mubr.bf16.vlgmr.msra.gmra.mrb[12].mxu0 %v19555_v39  ;;  %v17471_v43 = vcombine.low %v5359_v33, %v5363_v58 }
 0x4bb   : > { %8674 = vmatmul.mubr.bf16.vlgmr.msra.gmra.mrb[12].mxu1 %v19555_v39  ;;  %8519 = vmatpush1.bf16.msra.mxu0 %v17405_v26  ;;  %v17423_v39 = vcombine.low %v5311_v45, %v5315_v30  ;;  %v17472_v26 = vcombine.high %v5359_v33, %v5363_v58  ;;  %v5374_v30 = vld [vmem:[#allocation7 + $0xa90] sm:$0xff] }
 0x4bc   : > { %8550 = vmatprep.mubr.bf16.mxu0 %v19561_v54  ;;  %8683 = vmatpush1.bf16.msra.mxu1 %v17407_v40  ;;  %v5367_v40 = vld [vmem:[#allocation7 + $0xa58] sm:$0xff]  ;;  %v5422_v58 = vld [vmem:[#allocation7 + $0xc10] sm:$0xff] }
 0x4bd   : > { %8714 = vmatprep.mubr.bf16.mxu1 %v19561_v54  ;;  %8520 = vmatprep.subr.bf16.mxu0 %v17414_v13  ;;  %v17429_v54 = vcombine.low %v5318_v49, %v5322_v50  ;;  %v5371_v13 = vld [vmem:[#allocation7 + $0xa78] sm:$0xff] }
 0x4be   : > { %8684 = vmatprep.subr.bf16.mxu1 %v17416_v44  ;;  %v17478_v44 = vcombine.high %v5366_v38, %v5370_v6  ;;  %v17480_v45 = vcombine.high %v5367_v40, %v5371_v13  ;;  %v17479_v49 = vcombine.low %v5367_v40, %v5371_v13  ;;  %v5430_v13 = vld [vmem:[#allocation7 + $0xc50] sm:$0xff] }
 0x4bf   : > { %8521 = vmatpush1.bf16.msra.mxu0 %v17413_v46  ;;  %v5378_v46 = vld [vmem:[#allocation7 + $0xab0] sm:$0xff] }
 0x4c0   : > { %8685 = vmatpush1.bf16.msra.mxu1 %v17415_v25  ;;  %8522 = vmatprep.subr.bf16.mxu0 %v17422_v47  ;;  %v5375_v25 = vld [vmem:[#allocation7 + $0xa98] sm:$0xff]  ;;  %v17486_v50 = vcombine.high %v5374_v30, %v5378_v46 }
 0x4c1   : > { %8686 = vmatprep.subr.bf16.mxu1 %v17424_v48  ;;  %v5379_v47 = vld [vmem:[#allocation7 + $0xab8] sm:$0xff]  ;;  %v17477_v48 = vcombine.low %v5366_v38, %v5370_v6 }
 0x4c2   : > { %v17488_v1 = vcombine.high %v5375_v25, %v5379_v47  ;;  %v17487_v59 = vcombine.low %v5375_v25, %v5379_v47  ;;  %v5438_v25 = vld [vmem:[#allocation7 + $0xc90] sm:$0xff] }
 0x4c3   : > { %8523 = vmatpush1.bf16.msra.mxu0 %v17421_v52  ;;  %v5386_v52 = vld [vmem:[#allocation7 + $0xaf0] sm:$0xff] }
 0x4c4   : > { %8687 = vmatpush1.bf16.msra.mxu1 %v17423_v39  ;;  %8524 = vmatprep.subr.bf16.mxu0 %v17430_v55  ;;  %v5383_v39 = vld [vmem:[#allocation7 + $0xad8] sm:$0xff]  ;;  %v17494_v62 = vcombine.high %v5382_v51, %v5386_v52  ;;  %v5442_v47 = vld [vmem:[#allocation7 + $0xcb0] sm:$0xff] }
 0x4c5   : > { %8688 = vmatprep.subr.bf16.mxu1 %v17432_v56  ;;  %v5387_v55 = vld [vmem:[#allocation7 + $0xaf8] sm:$0xff]  ;;  %v17485_v56 = vcombine.low %v5374_v30, %v5378_v46 }
 0x4c6   : > { %v17496_v63 = vcombine.high %v5383_v39, %v5387_v55  ;;  %v17495_v5 = vcombine.low %v5383_v39, %v5387_v55  ;;  %v5446_v55 = vld [vmem:[#allocation7 + $0xcd0] sm:$0xff] }
 0x4c7   : > { %8525 = vmatpush1.bf16.msra.mxu0 %v17429_v54  ;;  %v5394_v54 = vld [vmem:[#allocation7 + $0xb30] sm:$0xff] }
 0x4c8   : > { %8689 = vmatpush1.bf16.msra.mxu1 %v17431_v12  ;;  %8526 = vmatprep.subr.bf16.mxu0 %v17438_v57  ;;  %v5391_v12 = vld [vmem:[#allocation7 + $0xb18] sm:$0xff]  ;;  %v17502_v53 = vcombine.high %v5390_v2, %v5394_v54 }
 0x4c9   : > { %8690 = vmatprep.subr.bf16.mxu1 %v17440_v3  ;;  %v5395_v57 = vld [vmem:[#allocation7 + $0xb38] sm:$0xff]  ;;  %v17493_v3 = vcombine.low %v5382_v51, %v5386_v52  ;;  %v17550_v52 = vcombine.high %v5438_v25, %v5442_v47 }
 0x4ca   : > { %v17504_v7 = vcombine.high %v5391_v12, %v5395_v57  ;;  %v17503_v11 = vcombine.low %v5391_v12, %v5395_v57  ;;  %v5454_v12 = vld [vmem:[#allocation7 + $0xd10] sm:$0xff] }
 0x4cb   : > { %8527 = vmatpush1.bf16.msra.mxu0 %v17437_v9  ;;  %v5402_v9 = vld [vmem:[#allocation7 + $0xb70] sm:$0xff] }
 0x4cc   : > { %8691 = vmatpush1.bf16.msra.mxu1 %v17439_v36  ;;  %8528 = vmatprep.subr.bf16.mxu0 %v17446_v10  ;;  %v5399_v36 = vld [vmem:[#allocation7 + $0xb58] sm:$0xff]  ;;  %v17510_v14 = vcombine.high %v5398_v8, %v5402_v9  ;;  %v5458_v57 = vld [vmem:[#allocation7 + $0xd30] sm:$0xff] }
 0x4cd   : > { %8692 = vmatprep.subr.bf16.mxu1 %v17448_v22  ;;  %v5403_v10 = vld [vmem:[#allocation7 + $0xb78] sm:$0xff]  ;;  %v17501_v22 = vcombine.low %v5390_v2, %v5394_v54 }
 0x4ce   : > { %v17512_v16 = vcombine.high %v5399_v36, %v5403_v10  ;;  %v17511_v20 = vcombine.low %v5399_v36, %v5403_v10  ;;  %v5466_v36 = vld [vmem:[#allocation7 + $0xd70] sm:$0xff]  ;;  %v5463_v10 = vld [vmem:[#allocation7 + $0xd58] sm:$0xff] }
 0x4cf   : > { %8529 = vmatpush1.bf16.msra.mxu0 %v17445_v17  ;;  %v5410_v17 = vld [vmem:[#allocation7 + $0xbb0] sm:$0xff] }
 0x4d0   : > { %8693 = vmatpush1.bf16.msra.mxu1 %v17447_v18  ;;  %8530 = vmatprep.subr.bf16.mxu0 %v17454_v41  ;;  %v5407_v18 = vld [vmem:[#allocation7 + $0xb98] sm:$0xff]  ;;  %v17518_v21 = vcombine.high %v5406_v32, %v5410_v17 }
 0x4d1   : > { %8694 = vmatprep.subr.bf16.mxu1 %v17456_v19  ;;  %v5411_v41 = vld [vmem:[#allocation7 + $0xbb8] sm:$0xff]  ;;  %v17509_v19 = vcombine.low %v5398_v8, %v5402_v9  ;;  %v5462_v9 = vld [vmem:[#allocation7 + $0xd50] sm:$0xff] }
 0x4d2   : > { %v17520_v23 = vcombine.high %v5407_v18, %v5411_v41  ;;  %v17519_v31 = vcombine.low %v5407_v18, %v5411_v41  ;;  %v5474_v18 = vld [vmem:[#allocation7 + $0xdb0] sm:$0xff]  ;;  %v5471_v41 = vld [vmem:[#allocation7 + $0xd98] sm:$0xff] }
 0x4d3   : > { %8531 = vmatpush1.bf16.msra.mxu0 %v17453_v27  ;;  %v5418_v27 = vld [vmem:[#allocation7 + $0xbf0] sm:$0xff] }
 0x4d4   : > { %8695 = vmatpush1.bf16.msra.mxu1 %v17455_v28  ;;  %8532 = vmatprep.subr.bf16.mxu0 %v17462_v29  ;;  %v5415_v28 = vld [vmem:[#allocation7 + $0xbd8] sm:$0xff]  ;;  %v17526_v15 = vcombine.high %v5414_v24, %v5418_v27 }
 0x4d5   : > { %8696 = vmatprep.subr.bf16.mxu1 %v17464_v61  ;;  %v5419_v29 = vld [vmem:[#allocation7 + $0xbf8] sm:$0xff]  ;;  %v17517_v61 = vcombine.low %v5406_v32, %v5410_v17  ;;  %v5470_v17 = vld [vmem:[#allocation7 + $0xd90] sm:$0xff] }
 0x4d6   : > { %v17528_v33 = vcombine.high %v5415_v28, %v5419_v29  ;;  %v17527_v38 = vcombine.low %v5415_v28, %v5419_v29  ;;  %v5478_v29 = vld [vmem:[#allocation7 + $0xdd0] sm:$0xff] }
 0x4d7   : > { %8533 = vmatpush1.bf16.msra.mxu0 %v17461_v34  ;;  %v5426_v34 = vld [vmem:[#allocation7 + $0xc30] sm:$0xff] }
 0x4d8   : > { %8697 = vmatpush1.bf16.msra.mxu1 %v17463_v35  ;;  %8534 = vmatprep.subr.bf16.mxu0 %v17470_v37  ;;  %v5423_v35 = vld [vmem:[#allocation7 + $0xc18] sm:$0xff]  ;;  %v17534_v6 = vcombine.high %v5422_v58, %v5426_v34 }
 0x4d9   : > { %8698 = vmatprep.subr.bf16.mxu1 %v17472_v26  ;;  %v5427_v37 = vld [vmem:[#allocation7 + $0xc38] sm:$0xff]  ;;  %v17525_v26 = vcombine.low %v5414_v24, %v5418_v27 }
 0x4da   : > { %v17536_v40 = vcombine.high %v5423_v35, %v5427_v37  ;;  %v17535_v30 = vcombine.low %v5423_v35, %v5427_v37  ;;  %v17581_v37 = vcombine.low %v5470_v17, %v5474_v18 }
 0x4db   : > { %8535 = vmatpush1.bf16.msra.mxu0 %v17469_v42  ;;  %v5434_v42 = vld [vmem:[#allocation7 + $0xc70] sm:$0xff] }
 0x4dc   : > { %8699 = vmatpush1.bf16.msra.mxu1 %v17471_v43  ;;  %8536 = vmatprep.subr.bf16.mxu0 %v17478_v44  ;;  %v17533_v43 = vcombine.low %v5422_v58, %v5426_v34  ;;  %v5431_v44 = vld [vmem:[#allocation7 + $0xc58] sm:$0xff]  ;;  %v17542_v46 = vcombine.high %v5430_v13, %v5434_v42 }
 0x4dd   : > { %8700 = vmatprep.subr.bf16.mxu1 %v17480_v45  ;;  %v5435_v45 = vld [vmem:[#allocation7 + $0xc78] sm:$0xff] }
 0x4de   : > { %v17543_v51 = vcombine.low %v5431_v44, %v5435_v45  ;;  %v5483_v58 = vld [vmem:[#allocation7 + $0xdf8] sm:$0xff] }
 0x4df   : > { %8537 = vmatpush1.bf16.msra.mxu0 %v17477_v48  ;;  %v17544_v48 = vcombine.high %v5431_v44, %v5435_v45  ;;  %v5487_v44 = vld [vmem:[#allocation7 + $0xe18] sm:$0xff] }
 0x4e0   : > { %8701 = vmatpush1.bf16.msra.mxu1 %v17479_v49  ;;  %8538 = vmatprep.subr.bf16.mxu0 %v17486_v50  ;;  %v5439_v49 = vld [vmem:[#allocation7 + $0xc98] sm:$0xff] }
 0x4e1   : > { %8702 = vmatprep.subr.bf16.mxu1 %v17488_v1  ;;  %v5443_v50 = vld [vmem:[#allocation7 + $0xcb8] sm:$0xff]  ;;  %v17541_v1 = vcombine.low %v5430_v13, %v5434_v42  ;;  %v5486_v42 = vld [vmem:[#allocation7 + $0xe10] sm:$0xff] }
 0x4e2   : > { %v17552_v39 = vcombine.high %v5439_v49, %v5443_v50  ;;  %v5491_v45 = vld [vmem:[#allocation7 + $0xe38] sm:$0xff] }
 0x4e3   : > { %8539 = vmatpush1.bf16.msra.mxu0 %v17485_v56  ;;  %v5450_v56 = vld [vmem:[#allocation7 + $0xcf0] sm:$0xff] }
 0x4e4   : > { %8703 = vmatpush1.bf16.msra.mxu1 %v17487_v59  ;;  %8540 = vmatprep.subr.bf16.mxu0 %v17494_v62  ;;  %v5447_v59 = vld [vmem:[#allocation7 + $0xcd8] sm:$0xff]  ;;  %v17558_v2 = vcombine.high %v5446_v55, %v5450_v56 }
 0x4e5   : > { %8704 = vmatprep.subr.bf16.mxu1 %v17496_v63  ;;  %v5451_v62 = vld [vmem:[#allocation7 + $0xcf8] sm:$0xff]  ;;  %v17549_v63 = vcombine.low %v5438_v25, %v5442_v47  ;;  %v17600_v47 = vcombine.high %v5487_v44, %v5491_v45 }
 0x4e6   : > { %v17560_v54 = vcombine.high %v5447_v59, %v5451_v62 }
 0x4e7   : > { %8541 = vmatpush1.bf16.msra.mxu0 %v17493_v3  ;;  %v5455_v3 = vld [vmem:[#allocation7 + $0xd18] sm:$0xff] }
 0x4e8   : > { %8705 = vmatpush1.bf16.msra.mxu1 %v17495_v5  ;;  %8542 = vmatprep.subr.bf16.mxu0 %v17502_v53  ;;  %v5459_v5 = vld [vmem:[#allocation7 + $0xd38] sm:$0xff]  ;;  %v17559_v53 = vcombine.low %v5447_v59, %v5451_v62  ;;  %v5506_v59 = vld [vmem:[#allocation7 + $0xeb0] sm:$0xff] }
 0x4e9   : > { %8706 = vmatprep.subr.bf16.mxu1 %v17504_v7  ;;  %v17566_v7 = vcombine.high %v5454_v12, %v5458_v57  ;;  %v17568_v8 = vcombine.high %v5455_v3, %v5459_v5  ;;  %v5503_v62 = vld [vmem:[#allocation7 + $0xe98] sm:$0xff] }
 0x4eb   : > { %8543 = vmatpush1.bf16.msra.mxu0 %v17501_v22  ;;  %v5467_v22 = vld [vmem:[#allocation7 + $0xd78] sm:$0xff] }
 0x4ec   : > { %8707 = vmatpush1.bf16.msra.mxu1 %v17503_v11  ;;  %8544 = vmatprep.subr.bf16.mxu0 %v17510_v14  ;;  %v17565_v11 = vcombine.low %v5454_v12, %v5458_v57  ;;  %v17567_v14 = vcombine.low %v5455_v3, %v5459_v5  ;;  %v17576_v32 = vcombine.high %v5463_v10, %v5467_v22  ;;  %v5510_v57 = vld [vmem:[#allocation7 + $0xed0] sm:$0xff]  ;;  %v5511_v5 = vld [vmem:[#allocation7 + $0xed8] sm:$0xff] }
 0x4ed   : > { %8708 = vmatprep.subr.bf16.mxu1 %v17512_v16  ;;  %v17574_v16 = vcombine.high %v5462_v9, %v5466_v36  ;;  %v5514_v3 = vld [vmem:[#allocation7 + $0xef0] sm:$0xff] }
 0x4ef   : > { %8545 = vmatpush1.bf16.msra.mxu0 %v17509_v19  ;;  %v5475_v19 = vld [vmem:[#allocation7 + $0xdb8] sm:$0xff] }
 0x4f0   : > { %8709 = vmatpush1.bf16.msra.mxu1 %v17511_v20  ;;  %8546 = vmatprep.subr.bf16.mxu0 %v17518_v21  ;;  %v17573_v20 = vcombine.low %v5462_v9, %v5466_v36  ;;  %v17575_v21 = vcombine.low %v5463_v10, %v5467_v22  ;;  %v17584_v28 = vcombine.high %v5471_v41, %v5475_v19  ;;  %v5518_v36 = vld [vmem:[#allocation7 + $0xf10] sm:$0xff]  ;;  %v5519_v22 = vld [vmem:[#allocation7 + $0xf18] sm:$0xff] }
 0x4f1   : > { %8710 = vmatprep.subr.bf16.mxu1 %v17520_v23  ;;  %v17582_v23 = vcombine.high %v5470_v17, %v5474_v18  ;;  %v5522_v10 = vld [vmem:[#allocation7 + $0xf30] sm:$0xff] }
 0x4f2   : > { %v5526_v18 = vld [vmem:[#allocation7 + $0xf50] sm:$0xff] }
 0x4f3   : > { %8547 = vmatpush1.bf16.msra.mxu0 %v17517_v61  ;;  %v5482_v61 = vld [vmem:[#allocation7 + $0xdf0] sm:$0xff] }
 0x4f4   : > { %8711 = vmatpush1.bf16.msra.mxu1 %v17519_v31  ;;  %8548 = vmatprep.subr.bf16.mxu0 %v17526_v15 }
 0x4f5   : > { %8712 = vmatprep.subr.bf16.mxu1 %v17528_v33  ;;  %v5479_v33 = vld [vmem:[#allocation7 + $0xdd8] sm:$0xff] }
 0x4f6   : > { %v17592_v13 = vcombine.high %v5479_v33, %v5483_v58 }
 0x4f7   : > { %8549 = vmatpush1.bf16.msra.mxu0 %v17525_v26 }
 0x4f8   : > { %8713 = vmatpush1.bf16.msra.mxu1 %v17527_v38  ;;  %8559 = vmatprep.subr.bf16.mxu0 %v17534_v6  ;;  %v17583_v6 = vcombine.low %v5471_v41, %v5475_v19  ;;  %v5530_v41 = vld [vmem:[#allocation7 + $0xf70] sm:$0xff]  ;;  %v5527_v19 = vld [vmem:[#allocation7 + $0xf58] sm:$0xff] }
 0x4f9   : > { %8723 = vmatprep.subr.bf16.mxu1 %v17536_v40  ;;  %v17590_v40 = vcombine.high %v5478_v29, %v5482_v61 }
 0x4fa   : > { %8551 = vmatmul.mubr.bf16.vlgmr.msra.gmra.mrb[12].mxu0 %v19563_v60 }
 0x4fb   : > { %8715 = vmatmul.mubr.bf16.vlgmr.msra.gmra.mrb[12].mxu1 %v19563_v60  ;;  %8560 = vmatpush1.bf16.msra.mxu0 %v17533_v43  ;;  %v17551_v60 = vcombine.low %v5439_v49, %v5443_v50  ;;  %v5490_v43 = vld [vmem:[#allocation7 + $0xe30] sm:$0xff]  ;;  %v5495_v50 = vld [vmem:[#allocation7 + $0xe58] sm:$0xff] }
 0x4fc   : > { %8591 = vmatprep.mubr.bf16.mxu0 %v19567_v4  ;;  %8724 = vmatpush1.bf16.msra.mxu1 %v17535_v30  ;;  %v17589_v30 = vcombine.low %v5478_v29, %v5482_v61  ;;  %v17598_v25 = vcombine.high %v5486_v42, %v5490_v43  ;;  %v5498_v49 = vld [vmem:[#allocation7 + $0xe70] sm:$0xff] }
 0x4fd   : > { %8755 = vmatprep.mubr.bf16.mxu1 %v19567_v4  ;;  %8561 = vmatprep.subr.bf16.mxu0 %v17542_v46  ;;  %v17557_v4 = vcombine.low %v5446_v55, %v5450_v56  ;;  %v17591_v46 = vcombine.low %v5479_v33, %v5483_v58  ;;  %v5502_v56 = vld [vmem:[#allocation7 + $0xe90] sm:$0xff]  ;;  %v5535_v58 = vld [vmem:[#allocation7 + $0xf98] sm:$0xff] }
 0x4fe   : > { %8725 = vmatprep.subr.bf16.mxu1 %v17544_v48  ;;  %v5494_v48 = vld [vmem:[#allocation7 + $0xe50] sm:$0xff] }
 0x4ff   : > { %8562 = vmatpush1.bf16.msra.mxu0 %v17541_v1  ;;  %v5499_v1 = vld [vmem:[#allocation7 + $0xe78] sm:$0xff]  ;;  %v5534_v61 = vld [vmem:[#allocation7 + $0xf90] sm:$0xff] }
 0x500   : > { %8726 = vmatpush1.bf16.msra.mxu1 %v17543_v51  ;;  %8563 = vmatprep.subr.bf16.mxu0 %v17550_v52  ;;  %v17597_v51 = vcombine.low %v5486_v42, %v5490_v43  ;;  %v17599_v52 = vcombine.low %v5487_v44, %v5491_v45  ;;  %v17608_v55 = vcombine.high %v5495_v50, %v5499_v1  ;;  %v5538_v33 = vld [vmem:[#allocation7 + $0xfb0] sm:$0xff]  ;;  %v5547_v42 = vld [vmem:[#allocation7 + $0xff8] sm:$0xff] }
 0x501   : > { %8727 = vmatprep.subr.bf16.mxu1 %v17552_v39  ;;  %v17606_v39 = vcombine.high %v5494_v48, %v5498_v49  ;;  %v17645_v43 = vcombine.low %v5534_v61, %v5538_v33 }
 0x503   : > { %8564 = vmatpush1.bf16.msra.mxu0 %v17549_v63  ;;  %v5507_v63 = vld [vmem:[#allocation7 + $0xeb8] sm:$0xff] }
 0x504   : > { %8728 = vmatpush1.bf16.msra.mxu1 %v17551_v60  ;;  %8565 = vmatprep.subr.bf16.mxu0 %v17558_v2  ;;  %v17605_v60 = vcombine.low %v5494_v48, %v5498_v49  ;;  %v17607_v2 = vcombine.low %v5495_v50, %v5499_v1  ;;  %v17616_v12 = vcombine.high %v5503_v62, %v5507_v63  ;;  %v8786_v48 = vld [vmem:[#allocation7 + $0x1028] sm:$0xff] }
 0x505   : > { %8729 = vmatprep.subr.bf16.mxu1 %v17560_v54  ;;  %v17614_v54 = vcombine.high %v5502_v56, %v5506_v59 }
 0x507   : > { %8566 = vmatpush1.bf16.msra.mxu0 %v17557_v4  ;;  %v5515_v4 = vld [vmem:[#allocation7 + $0xef8] sm:$0xff] }
 0x508   : > { %8730 = vmatpush1.bf16.msra.mxu1 %v17559_v53  ;;  %8567 = vmatprep.subr.bf16.mxu0 %v17566_v7  ;;  %v17613_v53 = vcombine.low %v5502_v56, %v5506_v59  ;;  %v17615_v7 = vcombine.low %v5503_v62, %v5507_v63  ;;  %v17624_v9 = vcombine.high %v5511_v5, %v5515_v4  ;;  %v8790_v59 = vld [vmem:[#allocation7 + $0x1048] sm:$0xff] }
 0x509   : > { %8731 = vmatprep.subr.bf16.mxu1 %v17568_v8  ;;  %v17622_v8 = vcombine.high %v5510_v57, %v5514_v3  ;;  %v8794_v62 = vld [vmem:[#allocation7 + $0x1068] sm:$0xff] }
 0x50b   : > { %8568 = vmatpush1.bf16.msra.mxu0 %v17565_v11  ;;  %v5523_v11 = vld [vmem:[#allocation7 + $0xf38] sm:$0xff] }
 0x50c   : > { %8732 = vmatpush1.bf16.msra.mxu1 %v17567_v14  ;;  %8569 = vmatprep.subr.bf16.mxu0 %v17574_v16  ;;  %v17621_v14 = vcombine.low %v5510_v57, %v5514_v3  ;;  %v17623_v16 = vcombine.low %v5511_v5, %v5515_v4  ;;  %v17632_v17 = vcombine.high %v5519_v22, %v5523_v11  ;;  %v8798_v3 = vld [vmem:[#allocation7 + $0x1088] sm:$0xff] }
 0x50d   : > { %v19592_v24 = vpop.f32.mrb[8].mxu0  ;;  %v19594_v27 = vpop.f32.mrb[8].mxu1  ;;  %8733 = vmatprep.subr.bf16.mxu1 %v17576_v32  ;;  %v17630_v32 = vcombine.high %v5518_v36, %v5522_v10  ;;  %v17668_v57 = vcombine.high %v8790_v59, %v8794_v62  ;;  %v17667_v4 = vcombine.low %v8790_v59, %v8794_v62  ;;  %v8853_v62 = vld [vmem:[#allocation7 + $0x1240] sm:$0xff] }
 0x50e   : > { %v19596_v31 = vpop.f32.mrb[9].mxu0  ;;  %v19598_v15 = vpop.f32.mrb[9].mxu1 }
 0x50f   : > { %v8269_v34 = vpop.f32.mrb[10].mxu0  ;;  %v8433_v35 = vpop.f32.mrb[10].mxu1  ;;  %8570 = vmatpush1.bf16.msra.mxu0 %v17573_v20  ;;  %v5531_v20 = vld [vmem:[#allocation7 + $0xf78] sm:$0xff] }
 0x510   : > { %8734 = vmatpush1.bf16.msra.mxu1 %v17575_v21  ;;  %v8270_v26 = vpop.f32.mrb[11].mxu0  ;;  %v8434_v38 = vpop.f32.mrb[11].mxu1  ;;  %8571 = vmatprep.subr.bf16.mxu0 %v17582_v23  ;;  %v17629_v21 = vcombine.low %v5518_v36, %v5522_v10  ;;  %v17631_v23 = vcombine.low %v5519_v22, %v5523_v11  ;;  %v17640_v29 = vcombine.high %v5527_v19, %v5531_v20  ;;  %v5539_v34 = vld [vmem:[#allocation7 + $0xfb8] sm:$0xff]  ;;  %v8806_v36 = vld [vmem:[#allocation7 + $0x10c8] sm:$0xff] }
 0x511   : > { %8735 = vmatprep.subr.bf16.mxu1 %v17584_v28  ;;  %v17638_v28 = vcombine.high %v5526_v18, %v5530_v41  ;;  %v17637_v35 = vcombine.low %v5526_v18, %v5530_v41  ;;  %v17646_v26 = vcombine.high %v5534_v61, %v5538_v33  ;;  %v17648_v38 = vcombine.high %v5535_v58, %v5539_v34  ;;  %v8810_v10 = vld [vmem:[#allocation7 + $0x10e8] sm:$0xff] }
 0x512   : > { %v17647_v44 = vcombine.low %v5535_v58, %v5539_v34  ;;  %v8818_v18 = vld [vmem:[#allocation7 + $0x1128] sm:$0xff] }
 0x513   : > { %8572 = vmatpush1.bf16.msra.mxu0 %v17581_v37  ;;  %v17639_v37 = vcombine.low %v5527_v19, %v5531_v20  ;;  %v17683_v19 = vcombine.low %v8806_v36, %v8810_v10  ;;  %v8826_v61 = vld [vmem:[#allocation7 + $0x1168] sm:$0xff] }
 0x514   : > { %8736 = vmatpush1.bf16.msra.mxu1 %v17583_v6  ;;  %8573 = vmatprep.subr.bf16.mxu0 %v17590_v40  ;;  %v5542_v6 = vld [vmem:[#allocation7 + $0xfd0] sm:$0xff] }
 0x515   : > { %8737 = vmatprep.subr.bf16.mxu1 %v17592_v13  ;;  %v5546_v40 = vld [vmem:[#allocation7 + $0xff0] sm:$0xff]  ;;  %v5543_v13 = vld [vmem:[#allocation7 + $0xfd8] sm:$0xff] }
 0x516   : > { %v17654_v45 = vcombine.high %v5542_v6, %v5546_v40  ;;  %v17653_v49 = vcombine.low %v5542_v6, %v5546_v40  ;;  %v17655_v50 = vcombine.low %v5543_v13, %v5547_v42  ;;  %v8834_v6 = vld [vmem:[#allocation7 + $0x11a8] sm:$0xff] }
 0x517   : > { %8574 = vmatpush1.bf16.msra.mxu0 %v17589_v30  ;;  %v17656_v30 = vcombine.high %v5543_v13, %v5547_v42 }
 0x518   : > { %8738 = vmatpush1.bf16.msra.mxu1 %v17591_v46  ;;  %8575 = vmatprep.subr.bf16.mxu0 %v17598_v25  ;;  %v8781_v46 = vld [vmem:[#allocation7 + $0x1000] sm:$0xff] }
 0x519   : > { %8739 = vmatprep.subr.bf16.mxu1 %v17600_v47  ;;  %v8785_v25 = vld [vmem:[#allocation7 + $0x1020] sm:$0xff]  ;;  %v8782_v47 = vld [vmem:[#allocation7 + $0x1008] sm:$0xff] }
 0x51a   : > { %v17658_v1 = vcombine.high %v8781_v46, %v8785_v25  ;;  %v17657_v56 = vcombine.low %v8781_v46, %v8785_v25  ;;  %v17659_v63 = vcombine.low %v8782_v47, %v8786_v48  ;;  %v8842_v46 = vld [vmem:[#allocation7 + $0x11e8] sm:$0xff] }
 0x51b   : > { %8576 = vmatpush1.bf16.msra.mxu0 %v17597_v51  ;;  %v17660_v51 = vcombine.high %v8782_v47, %v8786_v48 }
 0x51c   : > { %8740 = vmatpush1.bf16.msra.mxu1 %v17599_v52  ;;  %8577 = vmatprep.subr.bf16.mxu0 %v17606_v39  ;;  %v8765_v52 = vmax.f32 %v19596_v31, 0.0  ;;  %v8789_v39 = vld [vmem:[#allocation7 + $0x1040] sm:$0xff]  ;;  %v8802_v31 = vld [vmem:[#allocation7 + $0x10a8] sm:$0xff] }
 0x51d   : > { %8741 = vmatprep.subr.bf16.mxu1 %v17608_v55  ;;  %v8793_v55 = vld [vmem:[#allocation7 + $0x1060] sm:$0xff] }
 0x51e   : > { %v17665_v5 = vcombine.low %v8789_v39, %v8793_v55 }
 0x51f   : > { %8578 = vmatpush1.bf16.msra.mxu0 %v17605_v60  ;;  %v17666_v60 = vcombine.high %v8789_v39, %v8793_v55 }
 0x520   : > { %8742 = vmatpush1.bf16.msra.mxu1 %v17607_v2  ;;  %8579 = vmatprep.subr.bf16.mxu0 %v17614_v54  ;;  %v8797_v2 = vld [vmem:[#allocation7 + $0x1080] sm:$0xff] }
 0x521   : > { %8743 = vmatprep.subr.bf16.mxu1 %v17616_v12  ;;  %v8801_v54 = vld [vmem:[#allocation7 + $0x10a0] sm:$0xff]  ;;  %v19601_v12 = vpack.c.bf16 %v8765_v52, %v8765_v52  ;;  %v8850_v52 = vld [vmem:[#allocation7 + $0x1228] sm:$0xff] }
 0x522   : > { %v17673_v22 = vcombine.low %v8797_v2, %v8801_v54 }
 0x523   : > { %8580 = vmatpush1.bf16.msra.mxu0 %v17613_v53  ;;  %v17674_v53 = vcombine.high %v8797_v2, %v8801_v54  ;;  %v8858_v2 = vld [vmem:[#allocation7 + $0x1268] sm:$0xff] }
 0x524   : > { %8744 = vmatpush1.bf16.msra.mxu1 %v17615_v7  ;;  %8581 = vmatprep.subr.bf16.mxu0 %v17622_v8  ;;  %v17676_v7 = vcombine.high %v8798_v3, %v8802_v31  ;;  %v8805_v8 = vld [vmem:[#allocation7 + $0x10c0] sm:$0xff] }
 0x525   : > { %8745 = vmatprep.subr.bf16.mxu1 %v17624_v9  ;;  %v8809_v9 = vld [vmem:[#allocation7 + $0x10e0] sm:$0xff] }
 0x526   : > { %v17682_v11 = vcombine.high %v8805_v8, %v8809_v9  ;;  %v17681_v41 = vcombine.low %v8805_v8, %v8809_v9 }
 0x527   : > { %8582 = vmatpush1.bf16.msra.mxu0 %v17621_v14  ;;  %v17684_v14 = vcombine.high %v8806_v36, %v8810_v10 }
 0x528   : > { %8746 = vmatpush1.bf16.msra.mxu1 %v17623_v16  ;;  %8583 = vmatprep.subr.bf16.mxu0 %v17630_v32  ;;  %v8813_v16 = vld [vmem:[#allocation7 + $0x1100] sm:$0xff] }
 0x529   : > { %8747 = vmatprep.subr.bf16.mxu1 %v17632_v17  ;;  %v8817_v32 = vld [vmem:[#allocation7 + $0x1120] sm:$0xff]  ;;  %v8814_v17 = vld [vmem:[#allocation7 + $0x1108] sm:$0xff] }
 0x52a   : > { %v17690_v20 = vcombine.high %v8813_v16, %v8817_v32  ;;  %v17689_v33 = vcombine.low %v8813_v16, %v8817_v32  ;;  %v17691_v58 = vcombine.low %v8814_v17, %v8818_v18 }
 0x52b   : > { %8584 = vmatpush1.bf16.msra.mxu0 %v17629_v21  ;;  %v17692_v21 = vcombine.high %v8814_v17, %v8818_v18 }
 0x52c   : > { %8748 = vmatpush1.bf16.msra.mxu1 %v17631_v23  ;;  %8585 = vmatprep.subr.bf16.mxu0 %v17638_v28  ;;  %v8821_v23 = vld [vmem:[#allocation7 + $0x1140] sm:$0xff] }
 0x52d   : > { %8749 = vmatprep.subr.bf16.mxu1 %v17640_v29  ;;  %v8825_v28 = vld [vmem:[#allocation7 + $0x1160] sm:$0xff]  ;;  %v8822_v29 = vld [vmem:[#allocation7 + $0x1148] sm:$0xff] }
 0x52e   : > { %v17698_v34 = vcombine.high %v8821_v23, %v8825_v28  ;;  %v17697_v40 = vcombine.low %v8821_v23, %v8825_v28  ;;  %v17699_v13 = vcombine.low %v8822_v29, %v8826_v61 }
 0x52f   : > { %8586 = vmatpush1.bf16.msra.mxu0 %v17637_v35  ;;  %v17700_v35 = vcombine.high %v8822_v29, %v8826_v61 }
 0x530   : > { %8750 = vmatpush1.bf16.msra.mxu1 %v17639_v37  ;;  %8587 = vmatprep.subr.bf16.mxu0 %v17646_v26  ;;  %v8829_v37 = vld [vmem:[#allocation7 + $0x1180] sm:$0xff] }
 0x531   : > { %8751 = vmatprep.subr.bf16.mxu1 %v17648_v38  ;;  %v8833_v26 = vld [vmem:[#allocation7 + $0x11a0] sm:$0xff]  ;;  %v8830_v38 = vld [vmem:[#allocation7 + $0x1188] sm:$0xff] }
 0x532   : > { %v17706_v42 = vcombine.high %v8829_v37, %v8833_v26  ;;  %v17705_v25 = vcombine.low %v8829_v37, %v8833_v26  ;;  %v17707_v47 = vcombine.low %v8830_v38, %v8834_v6 }
 0x533   : > { %8588 = vmatpush1.bf16.msra.mxu0 %v17645_v43  ;;  %v17708_v43 = vcombine.high %v8830_v38, %v8834_v6 }
 0x534   : > { %8752 = vmatpush1.bf16.msra.mxu1 %v17647_v44  ;;  %8589 = vmatprep.subr.bf16.mxu0 %v17654_v45  ;;  %v8837_v44 = vld [vmem:[#allocation7 + $0x11c0] sm:$0xff] }
 0x535   : > { %8753 = vmatprep.subr.bf16.mxu1 %v17656_v30  ;;  %v8841_v45 = vld [vmem:[#allocation7 + $0x11e0] sm:$0xff]  ;;  %v8838_v30 = vld [vmem:[#allocation7 + $0x11c8] sm:$0xff] }
 0x536   : > { %v17714_v48 = vcombine.high %v8837_v44, %v8841_v45  ;;  %v17713_v39 = vcombine.low %v8837_v44, %v8841_v45  ;;  %v17715_v55 = vcombine.low %v8838_v30, %v8842_v46 }
 0x537   : > { %8590 = vmatpush1.bf16.msra.mxu0 %v17653_v49  ;;  %v17716_v49 = vcombine.high %v8838_v30, %v8842_v46 }
 0x538   : > { %8754 = vmatpush1.bf16.msra.mxu1 %v17655_v50  ;;  %11853 = vmatprep.subr.bf16.mxu0 %v17658_v1  ;;  %v8845_v50 = vld [vmem:[#allocation7 + $0x1200] sm:$0xff] }
 0x539   : > { %12017 = vmatprep.subr.bf16.mxu1 %v17660_v51  ;;  %v8849_v1 = vld [vmem:[#allocation7 + $0x1220] sm:$0xff]  ;;  %v8846_v51 = vld [vmem:[#allocation7 + $0x1208] sm:$0xff] }
 0x53a   : > { %8592 = vmatmul.mubr.bf16.vlgmr.msra.gmra.mrb[12].mxu0 %v19574_v0  ;;  %v17724_v59 = vcombine.high %v8846_v51, %v8850_v52  ;;  %v17721_v54 = vcombine.low %v8845_v50, %v8849_v1 }
 0x53b   : > { %8756 = vmatmul.mubr.bf16.vlgmr.msra.gmra.mrb[12].mxu1 %v19574_v0  ;;  %11854 = vmatpush1.bf16.msra.mxu0 %v17657_v56  ;;  %v17675_v0 = vcombine.low %v8798_v3, %v8802_v31  ;;  %v17722_v56 = vcombine.high %v8845_v50, %v8849_v1 }
 0x53c   : > { %11885 = vmatprep.mubr.bf16.mxu0 %v19601_v12  ;;  %12018 = vmatpush1.bf16.msra.mxu1 %v17659_v63  ;;  %v8857_v63 = vld [vmem:[#allocation7 + $0x1260] sm:$0xff] }
 0x53d   : > { %12049 = vmatprep.mubr.bf16.mxu1 %v19601_v12  ;;  %11855 = vmatprep.subr.bf16.mxu0 %v17666_v60  ;;  %v8854_v60 = vld [vmem:[#allocation7 + $0x1248] sm:$0xff]  ;;  %v17730_v3 = vcombine.high %v8853_v62, %v8857_v63  ;;  %v17729_v8 = vcombine.low %v8853_v62, %v8857_v63  ;;  %v8764_v63 = vmax.f32 %v19592_v24, 0.0 }
 0x53e   : > { %12019 = vmatprep.subr.bf16.mxu1 %v17668_v57  ;;  %v17723_v57 = vcombine.low %v8846_v51, %v8850_v52  ;;  %v17732_v31 = vcombine.high %v8854_v60, %v8858_v2  ;;  %v17731_v9 = vcombine.low %v8854_v60, %v8858_v2 }
 0x53f   : > { %11856 = vmatpush1.bf16.msra.mxu0 %v17665_v5  ;;  %v8861_v5 = vld [vmem:[#allocation7 + $0x1280] sm:$0xff] }
 0x540   : > { %12020 = vmatpush1.bf16.msra.mxu1 %v17667_v4  ;;  %11857 = vmatprep.subr.bf16.mxu0 %v17674_v53  ;;  %v8865_v4 = vld [vmem:[#allocation7 + $0x12a0] sm:$0xff]  ;;  %v8862_v53 = vld [vmem:[#allocation7 + $0x1288] sm:$0xff] }
 0x541   : > { %12021 = vmatprep.subr.bf16.mxu1 %v17676_v7  ;;  %v8866_v7 = vld [vmem:[#allocation7 + $0x12a8] sm:$0xff]  ;;  %v17738_v36 = vcombine.high %v8861_v5, %v8865_v4  ;;  %v17737_v16 = vcombine.low %v8861_v5, %v8865_v4 }
 0x542   : > { %v17740_v10 = vcombine.high %v8862_v53, %v8866_v7  ;;  %v17739_v32 = vcombine.low %v8862_v53, %v8866_v7  ;;  %v8918_v4 = vld [vmem:[#allocation7 + $0x1448] sm:$0xff]  ;;  %v19609_v7 = vpack.c.bf16 %v8764_v63, %v8764_v63 }
 0x543   : > { %11858 = vmatpush1.bf16.msra.mxu0 %v17673_v22  ;;  %v8869_v22 = vld [vmem:[#allocation7 + $0x12c0] sm:$0xff]  ;;  %v8922_v53 = vld [vmem:[#allocation7 + $0x1468] sm:$0xff] }
 0x544   : > { %12022 = vmatpush1.bf16.msra.mxu1 %v17675_v0  ;;  %11859 = vmatprep.subr.bf16.mxu0 %v17682_v11  ;;  %v8873_v0 = vld [vmem:[#allocation7 + $0x12e0] sm:$0xff]  ;;  %v8870_v11 = vld [vmem:[#allocation7 + $0x12c8] sm:$0xff] }
 0x545   : > { %12023 = vmatprep.subr.bf16.mxu1 %v17684_v14  ;;  %v8874_v14 = vld [vmem:[#allocation7 + $0x12e8] sm:$0xff]  ;;  %v17746_v17 = vcombine.high %v8869_v22, %v8873_v0  ;;  %v17745_v23 = vcombine.low %v8869_v22, %v8873_v0 }
 0x546   : > { %v17748_v18 = vcombine.high %v8870_v11, %v8874_v14  ;;  %v17747_v28 = vcombine.low %v8870_v11, %v8874_v14  ;;  %v8926_v22 = vld [vmem:[#allocation7 + $0x1488] sm:$0xff]  ;;  %v17795_v14 = vcombine.low %v8918_v4, %v8922_v53 }
 0x547   : > { %11860 = vmatpush1.bf16.msra.mxu0 %v17681_v41  ;;  %v8877_v41 = vld [vmem:[#allocation7 + $0x1300] sm:$0xff]  ;;  %v8930_v0 = vld [vmem:[#allocation7 + $0x14a8] sm:$0xff] }
 0x548   : > { %12024 = vmatpush1.bf16.msra.mxu1 %v17683_v19  ;;  %11861 = vmatprep.subr.bf16.mxu0 %v17690_v20  ;;  %v8881_v19 = vld [vmem:[#allocation7 + $0x1320] sm:$0xff]  ;;  %v8878_v20 = vld [vmem:[#allocation7 + $0x1308] sm:$0xff] }
 0x549   : > { %12025 = vmatprep.subr.bf16.mxu1 %v17692_v21  ;;  %v8882_v21 = vld [vmem:[#allocation7 + $0x1328] sm:$0xff]  ;;  %v17754_v29 = vcombine.high %v8877_v41, %v8881_v19  ;;  %v17753_v37 = vcombine.low %v8877_v41, %v8881_v19 }
 0x54a   : > { %v17756_v61 = vcombine.high %v8878_v20, %v8882_v21  ;;  %v17755_v26 = vcombine.low %v8878_v20, %v8882_v21  ;;  %v8934_v41 = vld [vmem:[#allocation7 + $0x14c8] sm:$0xff]  ;;  %v17803_v21 = vcombine.low %v8926_v22, %v8930_v0 }
 0x54b   : > { %11862 = vmatpush1.bf16.msra.mxu0 %v17689_v33  ;;  %v8885_v33 = vld [vmem:[#allocation7 + $0x1340] sm:$0xff]  ;;  %v8938_v19 = vld [vmem:[#allocation7 + $0x14e8] sm:$0xff] }
 0x54c   : > { %12026 = vmatpush1.bf16.msra.mxu1 %v17691_v58  ;;  %11863 = vmatprep.subr.bf16.mxu0 %v17698_v34  ;;  %v8889_v58 = vld [vmem:[#allocation7 + $0x1360] sm:$0xff]  ;;  %v8886_v34 = vld [vmem:[#allocation7 + $0x1348] sm:$0xff] }
 0x54d   : > { %12027 = vmatprep.subr.bf16.mxu1 %v17700_v35  ;;  %v8890_v35 = vld [vmem:[#allocation7 + $0x1368] sm:$0xff]  ;;  %v17762_v38 = vcombine.high %v8885_v33, %v8889_v58  ;;  %v17761_v44 = vcombine.low %v8885_v33, %v8889_v58 }
 0x54e   : > { %v17764_v6 = vcombine.high %v8886_v34, %v8890_v35  ;;  %v17763_v45 = vcombine.low %v8886_v34, %v8890_v35  ;;  %v8942_v33 = vld [vmem:[#allocation7 + $0x1508] sm:$0xff]  ;;  %v17811_v35 = vcombine.low %v8934_v41, %v8938_v19 }
 0x54f   : > { %11864 = vmatpush1.bf16.msra.mxu0 %v17697_v40  ;;  %v8893_v40 = vld [vmem:[#allocation7 + $0x1380] sm:$0xff]  ;;  %v8946_v58 = vld [vmem:[#allocation7 + $0x1528] sm:$0xff] }
 0x550   : > { %12028 = vmatpush1.bf16.msra.mxu1 %v17699_v13  ;;  %11865 = vmatprep.subr.bf16.mxu0 %v17706_v42  ;;  %v8897_v13 = vld [vmem:[#allocation7 + $0x13a0] sm:$0xff]  ;;  %v8894_v42 = vld [vmem:[#allocation7 + $0x1388] sm:$0xff] }
 0x551   : > { %12029 = vmatprep.subr.bf16.mxu1 %v17708_v43  ;;  %v8898_v43 = vld [vmem:[#allocation7 + $0x13a8] sm:$0xff]  ;;  %v17770_v30 = vcombine.high %v8893_v40, %v8897_v13  ;;  %v17769_v50 = vcombine.low %v8893_v40, %v8897_v13 }
 0x552   : > { %v17772_v46 = vcombine.high %v8894_v42, %v8898_v43  ;;  %v17771_v1 = vcombine.low %v8894_v42, %v8898_v43  ;;  %v8950_v40 = vld [vmem:[#allocation7 + $0x1548] sm:$0xff]  ;;  %v17819_v43 = vcombine.low %v8942_v33, %v8946_v58 }
 0x553   : > { %11866 = vmatpush1.bf16.msra.mxu0 %v17705_v25  ;;  %v8901_v25 = vld [vmem:[#allocation7 + $0x13c0] sm:$0xff]  ;;  %v8954_v13 = vld [vmem:[#allocation7 + $0x1568] sm:$0xff] }
 0x554   : > { %12030 = vmatpush1.bf16.msra.mxu1 %v17707_v47  ;;  %11867 = vmatprep.subr.bf16.mxu0 %v17714_v48  ;;  %v8905_v47 = vld [vmem:[#allocation7 + $0x13e0] sm:$0xff]  ;;  %v8902_v48 = vld [vmem:[#allocation7 + $0x13c8] sm:$0xff] }
 0x555   : > { %12031 = vmatprep.subr.bf16.mxu1 %v17716_v49  ;;  %v8906_v49 = vld [vmem:[#allocation7 + $0x13e8] sm:$0xff]  ;;  %v17778_v51 = vcombine.high %v8901_v25, %v8905_v47  ;;  %v17777_v62 = vcombine.low %v8901_v25, %v8905_v47 }
 0x556   : > { %v17780_v52 = vcombine.high %v8902_v48, %v8906_v49  ;;  %v17779_v60 = vcombine.low %v8902_v48, %v8906_v49  ;;  %v8958_v25 = vld [vmem:[#allocation7 + $0x1588] sm:$0xff]  ;;  %v17827_v49 = vcombine.low %v8950_v40, %v8954_v13 }
 0x557   : > { %11868 = vmatpush1.bf16.msra.mxu0 %v17713_v39  ;;  %v8909_v39 = vld [vmem:[#allocation7 + $0x1400] sm:$0xff]  ;;  %v8962_v47 = vld [vmem:[#allocation7 + $0x15a8] sm:$0xff] }
 0x558   : > { %12032 = vmatpush1.bf16.msra.mxu1 %v17715_v55  ;;  %11869 = vmatprep.subr.bf16.mxu0 %v17722_v56  ;;  %v8913_v55 = vld [vmem:[#allocation7 + $0x1420] sm:$0xff]  ;;  %v8910_v56 = vld [vmem:[#allocation7 + $0x1408] sm:$0xff] }
 0x559   : > { %12033 = vmatprep.subr.bf16.mxu1 %v17724_v59  ;;  %v8914_v59 = vld [vmem:[#allocation7 + $0x1428] sm:$0xff]  ;;  %v17786_v2 = vcombine.high %v8909_v39, %v8913_v55  ;;  %v17785_v5 = vcombine.low %v8909_v39, %v8913_v55 }
 0x55a   : > { %v8966_v39 = vld [vmem:[#allocation7 + $0x15c8] sm:$0xff] }
 0x55b   : > { %11870 = vmatpush1.bf16.msra.mxu0 %v17721_v54  ;;  %v17788_v54 = vcombine.high %v8910_v56, %v8914_v59  ;;  %v8970_v55 = vld [vmem:[#allocation7 + $0x15e8] sm:$0xff] }
 0x55c   : > { %12034 = vmatpush1.bf16.msra.mxu1 %v17723_v57  ;;  %11871 = vmatprep.subr.bf16.mxu0 %v17730_v3  ;;  %v8767_v57 = vmax.f32 %v19598_v15, 0.0  ;;  %v8917_v3 = vld [vmem:[#allocation7 + $0x1440] sm:$0xff]  ;;  %v17796_v15 = vcombine.high %v8918_v4, %v8922_v53  ;;  %v17844_v63 = vcombine.high %v8966_v39, %v8970_v55 }
 0x55d   : > { %12035 = vmatprep.subr.bf16.mxu1 %v17732_v31  ;;  %v8921_v31 = vld [vmem:[#allocation7 + $0x1460] sm:$0xff] }
 0x55e   : > { %v17794_v24 = vcombine.high %v8917_v3, %v8921_v31  ;;  %v17793_v11 = vcombine.low %v8917_v3, %v8921_v31  ;;  %v17843_v31 = vcombine.low %v8966_v39, %v8970_v55  ;;  %v8981_v53 = vld [vmem:[#allocation7 + $0x1640] sm:$0xff] }
 0x55f   : > { %11872 = vmatpush1.bf16.msra.mxu0 %v17729_v8  ;;  %v17787_v8 = vcombine.low %v8910_v56, %v8914_v59  ;;  %v17835_v59 = vcombine.low %v8958_v25, %v8962_v47 }
 0x560   : > { %12036 = vmatpush1.bf16.msra.mxu1 %v17731_v9  ;;  %11873 = vmatprep.subr.bf16.mxu0 %v17738_v36  ;;  %v8925_v9 = vld [vmem:[#allocation7 + $0x1480] sm:$0xff] }
 0x561   : > { %12037 = vmatprep.subr.bf16.mxu1 %v17740_v10  ;;  %v8929_v36 = vld [vmem:[#allocation7 + $0x14a0] sm:$0xff]  ;;  %v19611_v10 = vpack.c.bf16 %v8767_v57, %v8767_v57  ;;  %v8978_v57 = vld [vmem:[#allocation7 + $0x1628] sm:$0xff] }
 0x562   : > { %v17801_v20 = vcombine.low %v8925_v9, %v8929_v36 }
 0x563   : > { %11874 = vmatpush1.bf16.msra.mxu0 %v17737_v16  ;;  %v17802_v16 = vcombine.high %v8925_v9, %v8929_v36  ;;  %v8986_v9 = vld [vmem:[#allocation7 + $0x1668] sm:$0xff] }
 0x564   : > { %12038 = vmatpush1.bf16.msra.mxu1 %v17739_v32  ;;  %11875 = vmatprep.subr.bf16.mxu0 %v17746_v17  ;;  %v17804_v32 = vcombine.high %v8926_v22, %v8930_v0  ;;  %v8933_v17 = vld [vmem:[#allocation7 + $0x14c0] sm:$0xff] }
 0x565   : > { %12039 = vmatprep.subr.bf16.mxu1 %v17748_v18  ;;  %v8937_v18 = vld [vmem:[#allocation7 + $0x14e0] sm:$0xff] }
 0x566   : > { %v17809_v34 = vcombine.low %v8933_v17, %v8937_v18 }
 0x567   : > { %11876 = vmatpush1.bf16.msra.mxu0 %v17745_v23  ;;  %v17810_v23 = vcombine.high %v8933_v17, %v8937_v18 }
 0x568   : > { %12040 = vmatpush1.bf16.msra.mxu1 %v17747_v28  ;;  %11877 = vmatprep.subr.bf16.mxu0 %v17754_v29  ;;  %v17812_v28 = vcombine.high %v8934_v41, %v8938_v19  ;;  %v8941_v29 = vld [vmem:[#allocation7 + $0x1500] sm:$0xff] }
 0x569   : > { %12041 = vmatprep.subr.bf16.mxu1 %v17756_v61  ;;  %v8945_v61 = vld [vmem:[#allocation7 + $0x1520] sm:$0xff] }
 0x56a   : > { %v17817_v42 = vcombine.low %v8941_v29, %v8945_v61 }
 0x56b   : > { %11878 = vmatpush1.bf16.msra.mxu0 %v17753_v37  ;;  %v17818_v37 = vcombine.high %v8941_v29, %v8945_v61 }
 0x56c   : > { %12042 = vmatpush1.bf16.msra.mxu1 %v17755_v26  ;;  %11879 = vmatprep.subr.bf16.mxu0 %v17762_v38  ;;  %v17820_v26 = vcombine.high %v8942_v33, %v8946_v58  ;;  %v8949_v38 = vld [vmem:[#allocation7 + $0x1540] sm:$0xff] }
 0x56d   : > { %12043 = vmatprep.subr.bf16.mxu1 %v17764_v6  ;;  %v8953_v6 = vld [vmem:[#allocation7 + $0x1560] sm:$0xff] }
 0x56e   : > { %v17825_v48 = vcombine.low %v8949_v38, %v8953_v6 }
 0x56f   : > { %11880 = vmatpush1.bf16.msra.mxu0 %v17761_v44  ;;  %v17826_v44 = vcombine.high %v8949_v38, %v8953_v6 }
 0x570   : > { %12044 = vmatpush1.bf16.msra.mxu1 %v17763_v45  ;;  %11881 = vmatprep.subr.bf16.mxu0 %v17770_v30  ;;  %v17828_v45 = vcombine.high %v8950_v40, %v8954_v13  ;;  %v8957_v30 = vld [vmem:[#allocation7 + $0x1580] sm:$0xff] }
 0x571   : > { %12045 = vmatprep.subr.bf16.mxu1 %v17772_v46  ;;  %v8961_v46 = vld [vmem:[#allocation7 + $0x15a0] sm:$0xff] }
 0x572   : > { %v17833_v56 = vcombine.low %v8957_v30, %v8961_v46 }
 0x573   : > { %11882 = vmatpush1.bf16.msra.mxu0 %v17769_v50  ;;  %v17834_v50 = vcombine.high %v8957_v30, %v8961_v46 }
 0x574   : > { %12046 = vmatpush1.bf16.msra.mxu1 %v17771_v1  ;;  %11883 = vmatprep.subr.bf16.mxu0 %v17778_v51  ;;  %v17836_v1 = vcombine.high %v8958_v25, %v8962_v47  ;;  %v8965_v51 = vld [vmem:[#allocation7 + $0x15c0] sm:$0xff] }
 0x575   : > { %12047 = vmatprep.subr.bf16.mxu1 %v17780_v52  ;;  %v8969_v52 = vld [vmem:[#allocation7 + $0x15e0] sm:$0xff] }
 0x576   : > { %v17841_v3 = vcombine.low %v8965_v51, %v8969_v52 }
 0x577   : > { %11884 = vmatpush1.bf16.msra.mxu0 %v17777_v62  ;;  %v17842_v62 = vcombine.high %v8965_v51, %v8969_v52 }
 0x578   : > { %12048 = vmatpush1.bf16.msra.mxu1 %v17779_v60  ;;  %11894 = vmatprep.subr.bf16.mxu0 %v17786_v2  ;;  %v8973_v60 = vld [vmem:[#allocation7 + $0x1600] sm:$0xff] }
 0x579   : > { %12058 = vmatprep.subr.bf16.mxu1 %v17788_v54  ;;  %v8977_v2 = vld [vmem:[#allocation7 + $0x1620] sm:$0xff]  ;;  %v8974_v54 = vld [vmem:[#allocation7 + $0x1608] sm:$0xff] }
 0x57a   : > { %11886 = vmatmul.mubr.bf16.vlgmr.msra.gmra.mrb[16].mxu0 %v19609_v7  ;;  %v17852_v4 = vcombine.high %v8974_v54, %v8978_v57  ;;  %v17849_v36 = vcombine.low %v8973_v60, %v8977_v2 }
 0x57b   : > { %12050 = vmatmul.mubr.bf16.vlgmr.msra.gmra.mrb[16].mxu1 %v19609_v7  ;;  %11895 = vmatpush1.bf16.msra.mxu0 %v17785_v5  ;;  %v17850_v5 = vcombine.high %v8973_v60, %v8977_v2 }
 0x57c   : > { %11926 = vmatprep.mubr.bf16.mxu0 %v19611_v10  ;;  %12059 = vmatpush1.bf16.msra.mxu1 %v17787_v8  ;;  %v8985_v8 = vld [vmem:[#allocation7 + $0x1660] sm:$0xff] }
 0x57d   : > { %12090 = vmatprep.mubr.bf16.mxu1 %v19611_v10  ;;  %11896 = vmatprep.subr.bf16.mxu0 %v17794_v24  ;;  %v8982_v24 = vld [vmem:[#allocation7 + $0x1648] sm:$0xff]  ;;  %v17858_v22 = vcombine.high %v8981_v53, %v8985_v8  ;;  %v17857_v17 = vcombine.low %v8981_v53, %v8985_v8  ;;  %v8766_v8 = vmax.f32 %v19594_v27, 0.0 }
 0x57e   : > { %12060 = vmatprep.subr.bf16.mxu1 %v17796_v15  ;;  %v17851_v15 = vcombine.low %v8974_v54, %v8978_v57  ;;  %v17860_v0 = vcombine.high %v8982_v24, %v8986_v9  ;;  %v17859_v18 = vcombine.low %v8982_v24, %v8986_v9 }
 0x57f   : > { %11897 = vmatpush1.bf16.msra.mxu0 %v17793_v11  ;;  %v8989_v11 = vld [vmem:[#allocation7 + $0x1680] sm:$0xff] }
 0x580   : > { %12061 = vmatpush1.bf16.msra.mxu1 %v17795_v14  ;;  %11898 = vmatprep.subr.bf16.mxu0 %v17802_v16  ;;  %v8993_v14 = vld [vmem:[#allocation7 + $0x16a0] sm:$0xff]  ;;  %v8990_v16 = vld [vmem:[#allocation7 + $0x1688] sm:$0xff] }
 0x581   : > { %12062 = vmatprep.subr.bf16.mxu1 %v17804_v32  ;;  %v8994_v32 = vld [vmem:[#allocation7 + $0x16a8] sm:$0xff]  ;;  %v17866_v41 = vcombine.high %v8989_v11, %v8993_v14  ;;  %v17865_v29 = vcombine.low %v8989_v11, %v8993_v14 }
 0x582   : > { %v17868_v19 = vcombine.high %v8990_v16, %v8994_v32  ;;  %v17867_v61 = vcombine.low %v8990_v16, %v8994_v32  ;;  %v9050_v11 = vld [vmem:[#allocation7 + $0x1868] sm:$0xff]  ;;  %v19618_v16 = vpack.c.bf16 %v8766_v8, %v8766_v8  ;;  %v9101_v8 = vld [vmem:[#allocation7 + $0x1a00] sm:$0xff] }
 0x583   : > { %11899 = vmatpush1.bf16.msra.mxu0 %v17801_v20  ;;  %v8997_v20 = vld [vmem:[#allocation7 + $0x16c0] sm:$0xff] }
 0x584   : > { %12063 = vmatpush1.bf16.msra.mxu1 %v17803_v21  ;;  %11900 = vmatprep.subr.bf16.mxu0 %v17810_v23  ;;  %v9001_v21 = vld [vmem:[#allocation7 + $0x16e0] sm:$0xff]  ;;  %v8998_v23 = vld [vmem:[#allocation7 + $0x16c8] sm:$0xff] }
 0x585   : > { %12064 = vmatprep.subr.bf16.mxu1 %v17812_v28  ;;  %v9002_v28 = vld [vmem:[#allocation7 + $0x16e8] sm:$0xff]  ;;  %v17874_v33 = vcombine.high %v8997_v20, %v9001_v21  ;;  %v17873_v38 = vcombine.low %v8997_v20, %v9001_v21 }
 0x586   : > { %v17876_v58 = vcombine.high %v8998_v23, %v9002_v28  ;;  %v17875_v6 = vcombine.low %v8998_v23, %v9002_v28  ;;  %v9058_v20 = vld [vmem:[#allocation7 + $0x18a8] sm:$0xff] }
 0x587   : > { %11901 = vmatpush1.bf16.msra.mxu0 %v17809_v34  ;;  %v9005_v34 = vld [vmem:[#allocation7 + $0x1700] sm:$0xff] }
 0x588   : > { %12065 = vmatpush1.bf16.msra.mxu1 %v17811_v35  ;;  %11902 = vmatprep.subr.bf16.mxu0 %v17818_v37  ;;  %v9009_v35 = vld [vmem:[#allocation7 + $0x1720] sm:$0xff]  ;;  %v9006_v37 = vld [vmem:[#allocation7 + $0x1708] sm:$0xff] }
 0x589   : > { %12066 = vmatprep.subr.bf16.mxu1 %v17820_v26  ;;  %v9010_v26 = vld [vmem:[#allocation7 + $0x1728] sm:$0xff]  ;;  %v17882_v40 = vcombine.high %v9005_v34, %v9009_v35  ;;  %v17881_v30 = vcombine.low %v9005_v34, %v9009_v35 }
 0x58a   : > { %v17884_v13 = vcombine.high %v9006_v37, %v9010_v26  ;;  %v17883_v46 = vcombine.low %v9006_v37, %v9010_v26  ;;  %v9066_v34 = vld [vmem:[#allocation7 + $0x18e8] sm:$0xff] }
 0x58b   : > { %11903 = vmatpush1.bf16.msra.mxu0 %v17817_v42  ;;  %v9013_v42 = vld [vmem:[#allocation7 + $0x1740] sm:$0xff] }
 0x58c   : > { %12067 = vmatpush1.bf16.msra.mxu1 %v17819_v43  ;;  %11904 = vmatprep.subr.bf16.mxu0 %v17826_v44  ;;  %v9017_v43 = vld [vmem:[#allocation7 + $0x1760] sm:$0xff]  ;;  %v9014_v44 = vld [vmem:[#allocation7 + $0x1748] sm:$0xff] }
 0x58d   : > { %12068 = vmatprep.subr.bf16.mxu1 %v17828_v45  ;;  %v9018_v45 = vld [vmem:[#allocation7 + $0x1768] sm:$0xff]  ;;  %v17890_v25 = vcombine.high %v9013_v42, %v9017_v43  ;;  %v17889_v51 = vcombine.low %v9013_v42, %v9017_v43 }
 0x58e   : > { %v17892_v47 = vcombine.high %v9014_v44, %v9018_v45  ;;  %v17891_v52 = vcombine.low %v9014_v44, %v9018_v45  ;;  %v9074_v42 = vld [vmem:[#allocation7 + $0x1928] sm:$0xff] }
 0x58f   : > { %11905 = vmatpush1.bf16.msra.mxu0 %v17825_v48  ;;  %v9021_v48 = vld [vmem:[#allocation7 + $0x1780] sm:$0xff] }
 0x590   : > { %12069 = vmatpush1.bf16.msra.mxu1 %v17827_v49  ;;  %11906 = vmatprep.subr.bf16.mxu0 %v17834_v50  ;;  %v9025_v49 = vld [vmem:[#allocation7 + $0x17a0] sm:$0xff]  ;;  %v9022_v50 = vld [vmem:[#allocation7 + $0x1788] sm:$0xff] }
 0x591   : > { %12070 = vmatprep.subr.bf16.mxu1 %v17836_v1  ;;  %v9026_v1 = vld [vmem:[#allocation7 + $0x17a8] sm:$0xff]  ;;  %v17898_v39 = vcombine.high %v9021_v48, %v9025_v49  ;;  %v17897_v60 = vcombine.low %v9021_v48, %v9025_v49 }
 0x592   : > { %v17900_v55 = vcombine.high %v9022_v50, %v9026_v1  ;;  %v17899_v2 = vcombine.low %v9022_v50, %v9026_v1  ;;  %v9082_v48 = vld [vmem:[#allocation7 + $0x1968] sm:$0xff] }
 0x593   : > { %11907 = vmatpush1.bf16.msra.mxu0 %v17833_v56  ;;  %v9029_v56 = vld [vmem:[#allocation7 + $0x17c0] sm:$0xff] }
 0x594   : > { %12071 = vmatpush1.bf16.msra.mxu1 %v17835_v59  ;;  %11908 = vmatprep.subr.bf16.mxu0 %v17842_v62  ;;  %v9033_v59 = vld [vmem:[#allocation7 + $0x17e0] sm:$0xff]  ;;  %v9030_v62 = vld [vmem:[#allocation7 + $0x17c8] sm:$0xff] }
 0x595   : > { %12072 = vmatprep.subr.bf16.mxu1 %v17844_v63  ;;  %v9034_v63 = vld [vmem:[#allocation7 + $0x17e8] sm:$0xff]  ;;  %v17906_v54 = vcombine.high %v9029_v56, %v9033_v59  ;;  %v17905_v53 = vcombine.low %v9029_v56, %v9033_v59 }
 0x596   : > { %v17908_v57 = vcombine.high %v9030_v62, %v9034_v63  ;;  %v17907_v24 = vcombine.low %v9030_v62, %v9034_v63  ;;  %v9090_v56 = vld [vmem:[#allocation7 + $0x19a8] sm:$0xff] }
 0x597   : > { %11909 = vmatpush1.bf16.msra.mxu0 %v17841_v3  ;;  %v9037_v3 = vld [vmem:[#allocation7 + $0x1800] sm:$0xff] }
 0x598   : > { %12073 = vmatpush1.bf16.msra.mxu1 %v17843_v31  ;;  %11910 = vmatprep.subr.bf16.mxu0 %v17850_v5  ;;  %v9041_v31 = vld [vmem:[#allocation7 + $0x1820] sm:$0xff]  ;;  %v9038_v5 = vld [vmem:[#allocation7 + $0x1808] sm:$0xff] }
 0x599   : > { %12074 = vmatprep.subr.bf16.mxu1 %v17852_v4  ;;  %v9042_v4 = vld [vmem:[#allocation7 + $0x1828] sm:$0xff]  ;;  %v17914_v9 = vcombine.high %v9037_v3, %v9041_v31  ;;  %v17913_v14 = vcombine.low %v9037_v3, %v9041_v31 }
 0x59a   : > { %v17915_v32 = vcombine.low %v9038_v5, %v9042_v4  ;;  %v9098_v3 = vld [vmem:[#allocation7 + $0x19e8] sm:$0xff] }
 0x59b   : > { %11911 = vmatpush1.bf16.msra.mxu0 %v17849_v36  ;;  %v17916_v36 = vcombine.high %v9038_v5, %v9042_v4 }
 0x59c   : > { %12075 = vmatpush1.bf16.msra.mxu1 %v17851_v15  ;;  %11912 = vmatprep.subr.bf16.mxu0 %v17858_v22  ;;  %v9045_v15 = vld [vmem:[#allocation7 + $0x1840] sm:$0xff] }
 0x59d   : > { %12076 = vmatprep.subr.bf16.mxu1 %v17860_v0  ;;  %v9049_v22 = vld [vmem:[#allocation7 + $0x1860] sm:$0xff]  ;;  %v9046_v0 = vld [vmem:[#allocation7 + $0x1848] sm:$0xff] }
 0x59e   : > { %v17924_v27 = vcombine.high %v9046_v0, %v9050_v11  ;;  %v17921_v21 = vcombine.low %v9045_v15, %v9049_v22  ;;  %v17923_v23 = vcombine.low %v9046_v0, %v9050_v11 }
 0x59f   : > { %11913 = vmatpush1.bf16.msra.mxu0 %v17857_v17  ;;  %v17922_v17 = vcombine.high %v9045_v15, %v9049_v22 }
 0x5a0   : > { %12077 = vmatpush1.bf16.msra.mxu1 %v17859_v18  ;;  %11914 = vmatprep.subr.bf16.mxu0 %v17866_v41  ;;  %v9053_v18 = vld [vmem:[#allocation7 + $0x1880] sm:$0xff] }
 0x5a1   : > { %12078 = vmatprep.subr.bf16.mxu1 %v17868_v19  ;;  %v9057_v41 = vld [vmem:[#allocation7 + $0x18a0] sm:$0xff]  ;;  %v9054_v19 = vld [vmem:[#allocation7 + $0x1888] sm:$0xff] }
 0x5a2   : > { %v17930_v28 = vcombine.high %v9053_v18, %v9057_v41  ;;  %v17929_v35 = vcombine.low %v9053_v18, %v9057_v41  ;;  %v17931_v37 = vcombine.low %v9054_v19, %v9058_v20 }
 0x5a3   : > { %11915 = vmatpush1.bf16.msra.mxu0 %v17865_v29  ;;  %v17932_v29 = vcombine.high %v9054_v19, %v9058_v20 }
 0x5a4   : > { %12079 = vmatpush1.bf16.msra.mxu1 %v17867_v61  ;;  %11916 = vmatprep.subr.bf16.mxu0 %v17874_v33  ;;  %v9061_v61 = vld [vmem:[#allocation7 + $0x18c0] sm:$0xff] }
 0x5a5   : > { %12080 = vmatprep.subr.bf16.mxu1 %v17876_v58  ;;  %v9065_v33 = vld [vmem:[#allocation7 + $0x18e0] sm:$0xff]  ;;  %v9062_v58 = vld [vmem:[#allocation7 + $0x18c8] sm:$0xff] }
 0x5a6   : > { %v17938_v26 = vcombine.high %v9061_v61, %v9065_v33  ;;  %v17937_v43 = vcombine.low %v9061_v61, %v9065_v33  ;;  %v17939_v44 = vcombine.low %v9062_v58, %v9066_v34 }
 0x5a7   : > { %11917 = vmatpush1.bf16.msra.mxu0 %v17873_v38  ;;  %v17940_v38 = vcombine.high %v9062_v58, %v9066_v34 }
 0x5a8   : > { %12081 = vmatpush1.bf16.msra.mxu1 %v17875_v6  ;;  %11918 = vmatprep.subr.bf16.mxu0 %v17882_v40  ;;  %v9069_v6 = vld [vmem:[#allocation7 + $0x1900] sm:$0xff] }
 0x5a9   : > { %12082 = vmatprep.subr.bf16.mxu1 %v17884_v13  ;;  %v9073_v40 = vld [vmem:[#allocation7 + $0x1920] sm:$0xff]  ;;  %v9070_v13 = vld [vmem:[#allocation7 + $0x1908] sm:$0xff] }
 0x5aa   : > { %v17946_v45 = vcombine.high %v9069_v6, %v9073_v40  ;;  %v17945_v49 = vcombine.low %v9069_v6, %v9073_v40  ;;  %v17947_v50 = vcombine.low %v9070_v13, %v9074_v42 }
 0x5ab   : > { %11919 = vmatpush1.bf16.msra.mxu0 %v17881_v30  ;;  %v17948_v30 = vcombine.high %v9070_v13, %v9074_v42 }
 0x5ac   : > { %12083 = vmatpush1.bf16.msra.mxu1 %v17883_v46  ;;  %11920 = vmatprep.subr.bf16.mxu0 %v17890_v25  ;;  %v9077_v46 = vld [vmem:[#allocation7 + $0x1940] sm:$0xff] }
 0x5ad   : > { %12084 = vmatprep.subr.bf16.mxu1 %v17892_v47  ;;  %v9081_v25 = vld [vmem:[#allocation7 + $0x1960] sm:$0xff]  ;;  %v9078_v47 = vld [vmem:[#allocation7 + $0x1948] sm:$0xff] }
 0x5ae   : > { %v17954_v1 = vcombine.high %v9077_v46, %v9081_v25  ;;  %v17953_v59 = vcombine.low %v9077_v46, %v9081_v25  ;;  %v17955_v62 = vcombine.low %v9078_v47, %v9082_v48 }
 0x5af   : > { %11921 = vmatpush1.bf16.msra.mxu0 %v17889_v51  ;;  %v17956_v51 = vcombine.high %v9078_v47, %v9082_v48 }
 0x5b0   : > { %12085 = vmatpush1.bf16.msra.mxu1 %v17891_v52  ;;  %11922 = vmatprep.subr.bf16.mxu0 %v17898_v39  ;;  %v9085_v52 = vld [vmem:[#allocation7 + $0x1980] sm:$0xff] }
 0x5b1   : > { %12086 = vmatprep.subr.bf16.mxu1 %v17900_v55  ;;  %v9089_v39 = vld [vmem:[#allocation7 + $0x19a0] sm:$0xff]  ;;  %v9086_v55 = vld [vmem:[#allocation7 + $0x1988] sm:$0xff] }
 0x5b2   : > { %v17962_v63 = vcombine.high %v9085_v52, %v9089_v39  ;;  %v17961_v31 = vcombine.low %v9085_v52, %v9089_v39  ;;  %v17963_v5 = vcombine.low %v9086_v55, %v9090_v56 }
 0x5b3   : > { %11923 = vmatpush1.bf16.msra.mxu0 %v17897_v60  ;;  %v17964_v60 = vcombine.high %v9086_v55, %v9090_v56 }
 0x5b4   : > { %12087 = vmatpush1.bf16.msra.mxu1 %v17899_v2  ;;  %11924 = vmatprep.subr.bf16.mxu0 %v17906_v54  ;;  %v9093_v2 = vld [vmem:[#allocation7 + $0x19c0] sm:$0xff] }
 0x5b5   : > { %12088 = vmatprep.subr.bf16.mxu1 %v17908_v57  ;;  %v9097_v54 = vld [vmem:[#allocation7 + $0x19e0] sm:$0xff]  ;;  %v9094_v57 = vld [vmem:[#allocation7 + $0x19c8] sm:$0xff] }
 0x5b6   : > { %v17970_v4 = vcombine.high %v9093_v2, %v9097_v54  ;;  %v17969_v15 = vcombine.low %v9093_v2, %v9097_v54  ;;  %v17971_v22 = vcombine.low %v9094_v57, %v9098_v3 }
 0x5b7   : > { %11925 = vmatpush1.bf16.msra.mxu0 %v17905_v53  ;;  %v17972_v53 = vcombine.high %v9094_v57, %v9098_v3 }
 0x5b8   : > { %12089 = vmatpush1.bf16.msra.mxu1 %v17907_v24  ;;  %11935 = vmatprep.subr.bf16.mxu0 %v17914_v9  ;;  %v9105_v24 = vld [vmem:[#allocation7 + $0x1a20] sm:$0xff]  ;;  %v9102_v9 = vld [vmem:[#allocation7 + $0x1a08] sm:$0xff] }
 0x5b9   : > { %12099 = vmatprep.subr.bf16.mxu1 %v17916_v36  ;;  %v9106_v36 = vld [vmem:[#allocation7 + $0x1a28] sm:$0xff]  ;;  %v17978_v0 = vcombine.high %v9101_v8, %v9105_v24  ;;  %v17977_v18 = vcombine.low %v9101_v8, %v9105_v24 }
 0x5ba   : > { %11927 = vmatmul.mubr.bf16.vlgmr.msra.gmra.mrb[16].mxu0 %v19618_v16  ;;  %v17980_v11 = vcombine.high %v9102_v9, %v9106_v36  ;;  %v17979_v41 = vcombine.low %v9102_v9, %v9106_v36 }
 0x5bb   : > { %12091 = vmatmul.mubr.bf16.vlgmr.msra.gmra.mrb[16].mxu1 %v19618_v16  ;;  %11936 = vmatpush1.bf16.msra.mxu0 %v17913_v14  ;;  %v9109_v14 = vld [vmem:[#allocation7 + $0x1a40] sm:$0xff] }
 0x5bc   : > { %12100 = vmatpush1.bf16.msra.mxu1 %v17915_v32  ;;  %11937 = vmatprep.subr.bf16.mxu0 %v17922_v17  ;;  %v9113_v32 = vld [vmem:[#allocation7 + $0x1a60] sm:$0xff]  ;;  %v9110_v17 = vld [vmem:[#allocation7 + $0x1a48] sm:$0xff] }
 0x5bd   : > { %12101 = vmatprep.subr.bf16.mxu1 %v17924_v27  ;;  %v9114_v27 = vld [vmem:[#allocation7 + $0x1a68] sm:$0xff]  ;;  %v17986_v19 = vcombine.high %v9109_v14, %v9113_v32  ;;  %v17985_v61 = vcombine.low %v9109_v14, %v9113_v32 }
 0x5be   : > { %v17988_v20 = vcombine.high %v9110_v17, %v9114_v27  ;;  %v17987_v33 = vcombine.low %v9110_v17, %v9114_v27 }
 0x5bf   : > { %11938 = vmatpush1.bf16.msra.mxu0 %v17921_v21  ;;  %v9117_v21 = vld [vmem:[#allocation7 + $0x1a80] sm:$0xff] }
 0x5c0   : > { %12102 = vmatpush1.bf16.msra.mxu1 %v17923_v23  ;;  %11939 = vmatprep.subr.bf16.mxu0 %v17930_v28  ;;  %v9121_v23 = vld [vmem:[#allocation7 + $0x1aa0] sm:$0xff]  ;;  %v9118_v28 = vld [vmem:[#allocation7 + $0x1a88] sm:$0xff] }
 0x5c1   : > { %12103 = vmatprep.subr.bf16.mxu1 %v17932_v29  ;;  %v9122_v29 = vld [vmem:[#allocation7 + $0x1aa8] sm:$0xff]  ;;  %v17994_v58 = vcombine.high %v9117_v21, %v9121_v23  ;;  %v17993_v6 = vcombine.low %v9117_v21, %v9121_v23 }
 0x5c2   : > { %v17996_v34 = vcombine.high %v9118_v28, %v9122_v29  ;;  %v17995_v40 = vcombine.low %v9118_v28, %v9122_v29  ;;  %v9173_v29 = vld [vmem:[#allocation7 + $0x1c40] sm:$0xff] }
 0x5c3   : > { %11940 = vmatpush1.bf16.msra.mxu0 %v17929_v35  ;;  %v9125_v35 = vld [vmem:[#allocation7 + $0x1ac0] sm:$0xff] }
 0x5c4   : > { %12104 = vmatpush1.bf16.msra.mxu1 %v17931_v37  ;;  %11941 = vmatprep.subr.bf16.mxu0 %v17938_v26  ;;  %v9129_v37 = vld [vmem:[#allocation7 + $0x1ae0] sm:$0xff]  ;;  %v9126_v26 = vld [vmem:[#allocation7 + $0x1ac8] sm:$0xff] }
 0x5c5   : > { %12105 = vmatprep.subr.bf16.mxu1 %v17940_v38  ;;  %v9130_v38 = vld [vmem:[#allocation7 + $0x1ae8] sm:$0xff]  ;;  %v18002_v13 = vcombine.high %v9125_v35, %v9129_v37  ;;  %v18001_v46 = vcombine.low %v9125_v35, %v9129_v37 }
 0x5c6   : > { %v18004_v42 = vcombine.high %v9126_v26, %v9130_v38  ;;  %v18003_v25 = vcombine.low %v9126_v26, %v9130_v38  ;;  %v9174_v35 = vld [vmem:[#allocation7 + $0x1c48] sm:$0xff] }
 0x5c7   : > { %11942 = vmatpush1.bf16.msra.mxu0 %v17937_v43  ;;  %v9133_v43 = vld [vmem:[#allocation7 + $0x1b00] sm:$0xff]  ;;  %v9178_v37 = vld [vmem:[#allocation7 + $0x1c68] sm:$0xff] }
 0x5c8   : > { %12106 = vmatpush1.bf16.msra.mxu1 %v17939_v44  ;;  %11943 = vmatprep.subr.bf16.mxu0 %v17946_v45  ;;  %v9137_v44 = vld [vmem:[#allocation7 + $0x1b20] sm:$0xff]  ;;  %v9134_v45 = vld [vmem:[#allocation7 + $0x1b08] sm:$0xff] }
 0x5c9   : > { %12107 = vmatprep.subr.bf16.mxu1 %v17948_v30  ;;  %v9138_v30 = vld [vmem:[#allocation7 + $0x1b28] sm:$0xff]  ;;  %v18010_v47 = vcombine.high %v9133_v43, %v9137_v44  ;;  %v18009_v52 = vcombine.low %v9133_v43, %v9137_v44  ;;  %v18052_v44 = vcombine.high %v9174_v35, %v9178_v37 }
 0x5ca   : > { %v18012_v48 = vcombine.high %v9134_v45, %v9138_v30  ;;  %v18011_v39 = vcombine.low %v9134_v45, %v9138_v30  ;;  %v9185_v45 = vld [vmem:[#allocation7 + $0x1ca0] sm:$0xff]  ;;  %v9182_v30 = vld [vmem:[#allocation7 + $0x1c88] sm:$0xff] }
 0x5cb   : > { %11944 = vmatpush1.bf16.msra.mxu0 %v17945_v49  ;;  %v9141_v49 = vld [vmem:[#allocation7 + $0x1b40] sm:$0xff] }
 0x5cc   : > { %12108 = vmatpush1.bf16.msra.mxu1 %v17947_v50  ;;  %11945 = vmatprep.subr.bf16.mxu0 %v17954_v1  ;;  %v9145_v50 = vld [vmem:[#allocation7 + $0x1b60] sm:$0xff]  ;;  %v9142_v1 = vld [vmem:[#allocation7 + $0x1b48] sm:$0xff] }
 0x5cd   : > { %12109 = vmatprep.subr.bf16.mxu1 %v17956_v51  ;;  %v9146_v51 = vld [vmem:[#allocation7 + $0x1b68] sm:$0xff]  ;;  %v18018_v55 = vcombine.high %v9141_v49, %v9145_v50  ;;  %v18017_v2 = vcombine.low %v9141_v49, %v9145_v50 }
 0x5ce   : > { %v18020_v56 = vcombine.high %v9142_v1, %v9146_v51  ;;  %v18019_v54 = vcombine.low %v9142_v1, %v9146_v51  ;;  %v9189_v1 = vld [vmem:[#allocation7 + $0x1cc0] sm:$0xff] }
 0x5cf   : > { %11946 = vmatpush1.bf16.msra.mxu0 %v17953_v59  ;;  %v9149_v59 = vld [vmem:[#allocation7 + $0x1b80] sm:$0xff] }
 0x5d0   : > { %12110 = vmatpush1.bf16.msra.mxu1 %v17955_v62  ;;  %11947 = vmatprep.subr.bf16.mxu0 %v17962_v63  ;;  %v9153_v62 = vld [vmem:[#allocation7 + $0x1ba0] sm:$0xff]  ;;  %v9150_v63 = vld [vmem:[#allocation7 + $0x1b88] sm:$0xff] }
 0x5d1   : > { %12111 = vmatprep.subr.bf16.mxu1 %v17964_v60  ;;  %v9154_v60 = vld [vmem:[#allocation7 + $0x1ba8] sm:$0xff]  ;;  %v18026_v57 = vcombine.high %v9149_v59, %v9153_v62  ;;  %v18025_v8 = vcombine.low %v9149_v59, %v9153_v62  ;;  %v9193_v51 = vld [vmem:[#allocation7 + $0x1ce0] sm:$0xff] }
 0x5d2   : > { %v18028_v3 = vcombine.high %v9150_v63, %v9154_v60  ;;  %v18027_v24 = vcombine.low %v9150_v63, %v9154_v60  ;;  %v18066_v59 = vcombine.high %v9189_v1, %v9193_v51  ;;  %v9197_v63 = vld [vmem:[#allocation7 + $0x1d00] sm:$0xff] }
 0x5d3   : > { %11948 = vmatpush1.bf16.msra.mxu0 %v17961_v31  ;;  %v9157_v31 = vld [vmem:[#allocation7 + $0x1bc0] sm:$0xff] }
 0x5d4   : > { %12112 = vmatpush1.bf16.msra.mxu1 %v17963_v5  ;;  %11949 = vmatprep.subr.bf16.mxu0 %v17970_v4  ;;  %v9161_v5 = vld [vmem:[#allocation7 + $0x1be0] sm:$0xff]  ;;  %v9158_v4 = vld [vmem:[#allocation7 + $0x1bc8] sm:$0xff] }
 0x5d5   : > { %12113 = vmatprep.subr.bf16.mxu1 %v17972_v53  ;;  %v9162_v53 = vld [vmem:[#allocation7 + $0x1be8] sm:$0xff]  ;;  %v18034_v9 = vcombine.high %v9157_v31, %v9161_v5  ;;  %v18033_v14 = vcombine.low %v9157_v31, %v9161_v5  ;;  %v9201_v60 = vld [vmem:[#allocation7 + $0x1d20] sm:$0xff] }
 0x5d6   : > { %v18036_v36 = vcombine.high %v9158_v4, %v9162_v53  ;;  %v18035_v32 = vcombine.low %v9158_v4, %v9162_v53  ;;  %v18074_v31 = vcombine.high %v9197_v63, %v9201_v60  ;;  %v9205_v4 = vld [vmem:[#allocation7 + $0x1d40] sm:$0xff] }
 0x5d7   : > { %11950 = vmatpush1.bf16.msra.mxu0 %v17969_v15  ;;  %v9165_v15 = vld [vmem:[#allocation7 + $0x1c00] sm:$0xff] }
 0x5d8   : > { %12114 = vmatpush1.bf16.msra.mxu1 %v17971_v22  ;;  %11951 = vmatprep.subr.bf16.mxu0 %v17978_v0  ;;  %v9169_v22 = vld [vmem:[#allocation7 + $0x1c20] sm:$0xff]  ;;  %v9166_v0 = vld [vmem:[#allocation7 + $0x1c08] sm:$0xff] }
 0x5d9   : > { %12115 = vmatprep.subr.bf16.mxu1 %v17980_v11  ;;  %v9170_v11 = vld [vmem:[#allocation7 + $0x1c28] sm:$0xff]  ;;  %v18042_v17 = vcombine.high %v9165_v15, %v9169_v22  ;;  %v9209_v53 = vld [vmem:[#allocation7 + $0x1d60] sm:$0xff] }
 0x5da   : > { %v18044_v27 = vcombine.high %v9166_v0, %v9170_v11 }
 0x5db   : > { %11952 = vmatpush1.bf16.msra.mxu0 %v17977_v18 }
 0x5dc   : > { %12116 = vmatpush1.bf16.msra.mxu1 %v17979_v41  ;;  %11953 = vmatprep.subr.bf16.mxu0 %v17986_v19 }
 0x5dd   : > { %12117 = vmatprep.subr.bf16.mxu1 %v17988_v20 }
 0x5df   : > { %11954 = vmatpush1.bf16.msra.mxu0 %v17985_v61 }
 0x5e0   : > { %12118 = vmatpush1.bf16.msra.mxu1 %v17987_v33  ;;  %11955 = vmatprep.subr.bf16.mxu0 %v17994_v58 }
 0x5e1   : > { %12119 = vmatprep.subr.bf16.mxu1 %v17996_v34  ;;  %v9177_v34 = vld [vmem:[#allocation7 + $0x1c60] sm:$0xff] }
 0x5e2   : > { %v18050_v43 = vcombine.high %v9173_v29, %v9177_v34 }
 0x5e3   : > { %11956 = vmatpush1.bf16.msra.mxu0 %v17993_v6  ;;  %v18041_v6 = vcombine.low %v9165_v15, %v9169_v22  ;;  %v18082_v15 = vcombine.high %v9205_v4, %v9209_v53 }
 0x5e4   : > { %12120 = vmatpush1.bf16.msra.mxu1 %v17995_v40  ;;  %11957 = vmatprep.subr.bf16.mxu0 %v18002_v13  ;;  %v18043_v40 = vcombine.low %v9166_v0, %v9170_v11  ;;  %v9213_v0 = vld [vmem:[#allocation7 + $0x1d80] sm:$0xff] }
 0x5e5   : > { %12121 = vmatprep.subr.bf16.mxu1 %v18004_v42  ;;  %v9181_v42 = vld [vmem:[#allocation7 + $0x1c80] sm:$0xff] }
 0x5e6   : > { %v18058_v49 = vcombine.high %v9181_v42, %v9185_v45  ;;  %v9217_v11 = vld [vmem:[#allocation7 + $0x1da0] sm:$0xff] }
 0x5e7   : > { %11958 = vmatpush1.bf16.msra.mxu0 %v18001_v46  ;;  %v9186_v46 = vld [vmem:[#allocation7 + $0x1ca8] sm:$0xff] }
 0x5e8   : > { %12122 = vmatpush1.bf16.msra.mxu1 %v18003_v25  ;;  %11959 = vmatprep.subr.bf16.mxu0 %v18010_v47  ;;  %v18049_v47 = vcombine.low %v9173_v29, %v9177_v34  ;;  %v18060_v50 = vcombine.high %v9182_v30, %v9186_v46  ;;  %v18089_v29 = vcombine.low %v9213_v0, %v9217_v11  ;;  %v9229_v34 = vld [vmem:[#allocation7 + $0x1e00] sm:$0xff] }
 0x5e9   : > { %12123 = vmatprep.subr.bf16.mxu1 %v18012_v48  ;;  %v18051_v48 = vcombine.low %v9174_v35, %v9178_v37  ;;  %v9233_v35 = vld [vmem:[#allocation7 + $0x1e20] sm:$0xff]  ;;  %v9230_v37 = vld [vmem:[#allocation7 + $0x1e08] sm:$0xff] }
 0x5eb   : > { %11960 = vmatpush1.bf16.msra.mxu0 %v18009_v52  ;;  %v9190_v52 = vld [vmem:[#allocation7 + $0x1cc8] sm:$0xff] }
 0x5ec   : > { %12124 = vmatpush1.bf16.msra.mxu1 %v18011_v39  ;;  %11961 = vmatprep.subr.bf16.mxu0 %v18018_v55  ;;  %v9194_v39 = vld [vmem:[#allocation7 + $0x1ce8] sm:$0xff]  ;;  %v18057_v55 = vcombine.low %v9181_v42, %v9185_v45  ;;  %v18106_v42 = vcombine.high %v9229_v34, %v9233_v35  ;;  %v9241_v45 = vld [vmem:[#allocation7 + $0x1e60] sm:$0xff] }
 0x5ed   : > { %12125 = vmatprep.subr.bf16.mxu1 %v18020_v56  ;;  %v18059_v56 = vcombine.low %v9182_v30, %v9186_v46  ;;  %v18068_v62 = vcombine.high %v9190_v52, %v9194_v39  ;;  %v9238_v30 = vld [vmem:[#allocation7 + $0x1e48] sm:$0xff] }
 0x5ee   : > { %v9242_v46 = vld [vmem:[#allocation7 + $0x1e68] sm:$0xff] }
 0x5ef   : > { %11962 = vmatpush1.bf16.msra.mxu0 %v18017_v2  ;;  %v9198_v2 = vld [vmem:[#allocation7 + $0x1d08] sm:$0xff] }
 0x5f0   : > { %12126 = vmatpush1.bf16.msra.mxu1 %v18019_v54  ;;  %11963 = vmatprep.subr.bf16.mxu0 %v18026_v57  ;;  %v9202_v54 = vld [vmem:[#allocation7 + $0x1d28] sm:$0xff]  ;;  %v18065_v57 = vcombine.low %v9189_v1, %v9193_v51  ;;  %v9245_v1 = vld [vmem:[#allocation7 + $0x1e80] sm:$0xff] }
 0x5f1   : > { %12127 = vmatprep.subr.bf16.mxu1 %v18028_v3  ;;  %v18067_v3 = vcombine.low %v9190_v52, %v9194_v39  ;;  %v18076_v5 = vcombine.high %v9198_v2, %v9202_v54  ;;  %v9249_v51 = vld [vmem:[#allocation7 + $0x1ea0] sm:$0xff]  ;;  %v9246_v52 = vld [vmem:[#allocation7 + $0x1e88] sm:$0xff] }
 0x5f2   : > { %v9250_v39 = vld [vmem:[#allocation7 + $0x1ea8] sm:$0xff] }
 0x5f3   : > { %11964 = vmatpush1.bf16.msra.mxu0 %v18025_v8  ;;  %v9206_v8 = vld [vmem:[#allocation7 + $0x1d48] sm:$0xff] }
 0x5f4   : > { %12128 = vmatpush1.bf16.msra.mxu1 %v18027_v24  ;;  %11965 = vmatprep.subr.bf16.mxu0 %v18034_v9  ;;  %v9210_v24 = vld [vmem:[#allocation7 + $0x1d68] sm:$0xff]  ;;  %v18073_v9 = vcombine.low %v9197_v63, %v9201_v60  ;;  %v9253_v63 = vld [vmem:[#allocation7 + $0x1ec0] sm:$0xff] }
 0x5f5   : > { %12129 = vmatprep.subr.bf16.mxu1 %v18036_v36  ;;  %v18075_v36 = vcombine.low %v9198_v2, %v9202_v54  ;;  %v18084_v22 = vcombine.high %v9206_v8, %v9210_v24  ;;  %v9257_v60 = vld [vmem:[#allocation7 + $0x1ee0] sm:$0xff]  ;;  %v9254_v2 = vld [vmem:[#allocation7 + $0x1ec8] sm:$0xff] }
 0x5f6   : > { %v9258_v54 = vld [vmem:[#allocation7 + $0x1ee8] sm:$0xff] }
 0x5f7   : > { %11966 = vmatpush1.bf16.msra.mxu0 %v18033_v14  ;;  %v9214_v14 = vld [vmem:[#allocation7 + $0x1d88] sm:$0xff] }
 0x5f8   : > { %12130 = vmatpush1.bf16.msra.mxu1 %v18035_v32  ;;  %11976 = vmatprep.subr.bf16.mxu0 %v18042_v17  ;;  %v9218_v32 = vld [vmem:[#allocation7 + $0x1da8] sm:$0xff]  ;;  %v18081_v17 = vcombine.low %v9205_v4, %v9209_v53  ;;  %v9261_v4 = vld [vmem:[#allocation7 + $0x1f00] sm:$0xff] }
 0x5f9   : > { %12140 = vmatprep.subr.bf16.mxu1 %v18044_v27  ;;  %v18083_v27 = vcombine.low %v9206_v8, %v9210_v24  ;;  %v9265_v53 = vld [vmem:[#allocation7 + $0x1f20] sm:$0xff]  ;;  %v9262_v8 = vld [vmem:[#allocation7 + $0x1f08] sm:$0xff] }
 0x5fa   : > { %v9266_v24 = vld [vmem:[#allocation7 + $0x1f28] sm:$0xff] }
 0x60d   : > { %v8593_v18 = vpop.f32.mrb[12].mxu0 }
 0x60e   : > { %v8768_v41 = vmax.f32 %v8593_v18, 0.0  ;;  %v19622_v19 = vpop.f32.mrb[12].mxu1  ;;  %v8595_v20 = vpop.f32.mrb[13].mxu0  ;;  %v18090_v18 = vcombine.high %v9213_v0, %v9217_v11  ;;  %v9269_v0 = vld [vmem:[#allocation7 + $0x1f40] sm:$0xff] }
 0x60f   : > { %v8769_v21 = vmax.f32 %v8595_v20, 0.0  ;;  %v8759_v23 = vpop.f32.mrb[13].mxu1  ;;  %v8597_v28 = vpop.f32.mrb[14].mxu0  ;;  %v9221_v20 = vld [vmem:[#allocation7 + $0x1dc0] sm:$0xff] }
 0x610   : > { %v8771_v61 = vmax.f32 %v8759_v23, 0.0  ;;  %v8761_v33 = vpop.f32.mrb[14].mxu1  ;;  %v8598_v58 = vpop.f32.mrb[15].mxu0  ;;  %v19626_v13 = vpack.c.bf16 %v8768_v41, %v8768_v41  ;;  %v18092_v41 = vcombine.high %v9214_v14, %v9218_v32  ;;  %v9222_v23 = vld [vmem:[#allocation7 + $0x1dc8] sm:$0xff]  ;;  %v9273_v11 = vld [vmem:[#allocation7 + $0x1f60] sm:$0xff] }
 0x611   : > { %v19624_v26 = vpack.c.bf16 %v8769_v21, %v8769_v21  ;;  %v8762_v38 = vpop.f32.mrb[15].mxu1  ;;  %v9225_v21 = vld [vmem:[#allocation7 + $0x1de0] sm:$0xff]  ;;  %v9226_v28 = vld [vmem:[#allocation7 + $0x1de8] sm:$0xff] }
 0x612   : > { %v19630_v25 = vpack.c.bf16 %v8771_v61, %v8771_v61  ;;  %v18091_v61 = vcombine.low %v9214_v14, %v9218_v32  ;;  %v18098_v33 = vcombine.high %v9221_v20, %v9225_v21  ;;  %v18100_v58 = vcombine.high %v9222_v23, %v9226_v28  ;;  %v9234_v38 = vld [vmem:[#allocation7 + $0x1e28] sm:$0xff] }
 0x613   : > { %11967 = vmatprep.mubr.bf16.mxu0 %v19624_v26  ;;  %12131 = vmatprep.mubr.bf16.mxu1 %v19624_v26  ;;  %v9270_v14 = vld [vmem:[#allocation7 + $0x1f48] sm:$0xff] }
 0x614   : > { %11968 = vmatmul.mubr.bf16.vlgmr.msra.gmra.mrb[16].mxu0 %v19626_v13  ;;  %12132 = vmatmul.mubr.bf16.vlgmr.msra.gmra.mrb[16].mxu1 %v19626_v13  ;;  %v9274_v32 = vld [vmem:[#allocation7 + $0x1f68] sm:$0xff] }
 0x615   : > { %11977 = vmatpush1.bf16.msra.mxu0 %v18041_v6  ;;  %12141 = vmatpush1.bf16.msra.mxu1 %v18043_v40  ;;  %v18097_v6 = vcombine.low %v9221_v20, %v9225_v21  ;;  %v18099_v40 = vcombine.low %v9222_v23, %v9226_v28  ;;  %v9277_v20 = vld [vmem:[#allocation7 + $0x1f80] sm:$0xff]  ;;  %v9278_v23 = vld [vmem:[#allocation7 + $0x1f88] sm:$0xff] }
 0x616   : > { %12008 = vmatprep.mubr.bf16.mxu0 %v19630_v25  ;;  %12172 = vmatprep.mubr.bf16.mxu1 %v19630_v25  ;;  %v9281_v21 = vld [vmem:[#allocation7 + $0x1fa0] sm:$0xff]  ;;  %v9282_v28 = vld [vmem:[#allocation7 + $0x1fa8] sm:$0xff] }
 0x617   : > { %11978 = vmatprep.subr.bf16.mxu0 %v18050_v43  ;;  %12142 = vmatprep.subr.bf16.mxu1 %v18052_v44  ;;  %v18108_v43 = vcombine.high %v9230_v37, %v9234_v38  ;;  %v9237_v44 = vld [vmem:[#allocation7 + $0x1e40] sm:$0xff] }
 0x619   : > { %11979 = vmatpush1.bf16.msra.mxu0 %v18049_v47  ;;  %12143 = vmatpush1.bf16.msra.mxu1 %v18051_v48  ;;  %v18105_v47 = vcombine.low %v9229_v34, %v9233_v35  ;;  %v18107_v48 = vcombine.low %v9230_v37, %v9234_v38  ;;  %v9285_v34 = vld [vmem:[#allocation7 + $0x1fc0] sm:$0xff]  ;;  %v9286_v37 = vld [vmem:[#allocation7 + $0x1fc8] sm:$0xff] }
 0x61a   : > { %11980 = vmatprep.subr.bf16.mxu0 %v18058_v49  ;;  %12144 = vmatprep.subr.bf16.mxu1 %v18060_v50  ;;  %v18114_v49 = vcombine.high %v9237_v44, %v9241_v45  ;;  %v18116_v50 = vcombine.high %v9238_v30, %v9242_v46  ;;  %v9289_v35 = vld [vmem:[#allocation7 + $0x1fe0] sm:$0xff]  ;;  %v9290_v38 = vld [vmem:[#allocation7 + $0x1fe8] sm:$0xff] }
 0x61d   : > { %11981 = vmatpush1.bf16.msra.mxu0 %v18057_v55  ;;  %12145 = vmatpush1.bf16.msra.mxu1 %v18059_v56  ;;  %v18113_v55 = vcombine.low %v9237_v44, %v9241_v45  ;;  %v18115_v56 = vcombine.low %v9238_v30, %v9242_v46  ;;  %v8783_v44 = vld [vmem:[#allocation7 + $0x1010] sm:$0xff]  ;;  %v8784_v30 = vld [vmem:[#allocation7 + $0x1018] sm:$0xff] }
 0x61e   : > { %11982 = vmatprep.subr.bf16.mxu0 %v18066_v59  ;;  %12146 = vmatprep.subr.bf16.mxu1 %v18068_v62  ;;  %v18122_v59 = vcombine.high %v9245_v1, %v9249_v51  ;;  %v18124_v62 = vcombine.high %v9246_v52, %v9250_v39  ;;  %v8787_v45 = vld [vmem:[#allocation7 + $0x1030] sm:$0xff]  ;;  %v8788_v46 = vld [vmem:[#allocation7 + $0x1038] sm:$0xff] }
 0x621   : > { %11983 = vmatpush1.bf16.msra.mxu0 %v18065_v57  ;;  %12147 = vmatpush1.bf16.msra.mxu1 %v18067_v3  ;;  %v18121_v57 = vcombine.low %v9245_v1, %v9249_v51  ;;  %v18123_v3 = vcombine.low %v9246_v52, %v9250_v39  ;;  %v17664_v1 = vcombine.high %v8784_v30, %v8788_v46  ;;  %v8791_v51 = vld [vmem:[#allocation7 + $0x1050] sm:$0xff]  ;;  %v8792_v39 = vld [vmem:[#allocation7 + $0x1058] sm:$0xff] }
 0x622   : > { %11984 = vmatprep.subr.bf16.mxu0 %v18074_v31  ;;  %12148 = vmatprep.subr.bf16.mxu1 %v18076_v5  ;;  %v18130_v31 = vcombine.high %v9253_v63, %v9257_v60  ;;  %v18132_v5 = vcombine.high %v9254_v2, %v9258_v54  ;;  %v8795_v52 = vld [vmem:[#allocation7 + $0x1070] sm:$0xff] }
 0x625   : > { %11985 = vmatpush1.bf16.msra.mxu0 %v18073_v9  ;;  %12149 = vmatpush1.bf16.msra.mxu1 %v18075_v36  ;;  %v18129_v9 = vcombine.low %v9253_v63, %v9257_v60  ;;  %v18131_v36 = vcombine.low %v9254_v2, %v9258_v54  ;;  %v17670_v63 = vcombine.high %v8791_v51, %v8795_v52  ;;  %v8799_v2 = vld [vmem:[#allocation7 + $0x1090] sm:$0xff]  ;;  %v8800_v54 = vld [vmem:[#allocation7 + $0x1098] sm:$0xff] }
 0x626   : > { %11986 = vmatprep.subr.bf16.mxu0 %v18082_v15  ;;  %12150 = vmatprep.subr.bf16.mxu1 %v18084_v22  ;;  %v18138_v15 = vcombine.high %v9261_v4, %v9265_v53  ;;  %v18140_v22 = vcombine.high %v9262_v8, %v9266_v24 }
 0x629   : > { %11987 = vmatpush1.bf16.msra.mxu0 %v18081_v17  ;;  %12151 = vmatpush1.bf16.msra.mxu1 %v18083_v27  ;;  %v18137_v17 = vcombine.low %v9261_v4, %v9265_v53  ;;  %v18139_v27 = vcombine.low %v9262_v8, %v9266_v24  ;;  %v8807_v53 = vld [vmem:[#allocation7 + $0x10d0] sm:$0xff]  ;;  %v8808_v24 = vld [vmem:[#allocation7 + $0x10d8] sm:$0xff] }
 0x62a   : > { %11988 = vmatprep.subr.bf16.mxu0 %v18090_v18  ;;  %12152 = vmatprep.subr.bf16.mxu1 %v18092_v41  ;;  %v18146_v18 = vcombine.high %v9269_v0, %v9273_v11  ;;  %v18148_v41 = vcombine.high %v9270_v14, %v9274_v32  ;;  %v8811_v8 = vld [vmem:[#allocation7 + $0x10f0] sm:$0xff] }
 0x62d   : > { %11989 = vmatpush1.bf16.msra.mxu0 %v18089_v29  ;;  %12153 = vmatpush1.bf16.msra.mxu1 %v18091_v61  ;;  %v18145_v29 = vcombine.low %v9269_v0, %v9273_v11  ;;  %v18147_v61 = vcombine.low %v9270_v14, %v9274_v32  ;;  %v8815_v11 = vld [vmem:[#allocation7 + $0x1110] sm:$0xff]  ;;  %v8820_v32 = vld [vmem:[#allocation7 + $0x1138] sm:$0xff] }
 0x62e   : > { %11990 = vmatprep.subr.bf16.mxu0 %v18098_v33  ;;  %12154 = vmatprep.subr.bf16.mxu1 %v18100_v58  ;;  %v18154_v33 = vcombine.high %v9277_v20, %v9281_v21  ;;  %v18156_v58 = vcombine.high %v9278_v23, %v9282_v28  ;;  %v8819_v14 = vld [vmem:[#allocation7 + $0x1130] sm:$0xff] }
 0x631   : > { %11991 = vmatpush1.bf16.msra.mxu0 %v18097_v6  ;;  %12155 = vmatpush1.bf16.msra.mxu1 %v18099_v40  ;;  %v18153_v6 = vcombine.low %v9277_v20, %v9281_v21  ;;  %v18155_v40 = vcombine.low %v9278_v23, %v9282_v28  ;;  %v8823_v20 = vld [vmem:[#allocation7 + $0x1150] sm:$0xff]  ;;  %v8824_v23 = vld [vmem:[#allocation7 + $0x1158] sm:$0xff] }
 0x632   : > { %11992 = vmatprep.subr.bf16.mxu0 %v18106_v42  ;;  %12156 = vmatprep.subr.bf16.mxu1 %v18108_v43  ;;  %v18162_v42 = vcombine.high %v9285_v34, %v9289_v35  ;;  %v18164_v43 = vcombine.high %v9286_v37, %v9290_v38  ;;  %v8827_v21 = vld [vmem:[#allocation7 + $0x1170] sm:$0xff]  ;;  %v8828_v28 = vld [vmem:[#allocation7 + $0x1178] sm:$0xff] }
 0x635   : > { %11993 = vmatpush1.bf16.msra.mxu0 %v18105_v47  ;;  %12157 = vmatpush1.bf16.msra.mxu1 %v18107_v48  ;;  %v18161_v47 = vcombine.low %v9285_v34, %v9289_v35  ;;  %v18163_v48 = vcombine.low %v9286_v37, %v9290_v38  ;;  %v8831_v34 = vld [vmem:[#allocation7 + $0x1190] sm:$0xff]  ;;  %v8832_v37 = vld [vmem:[#allocation7 + $0x1198] sm:$0xff] }
 0x636   : > { %11994 = vmatprep.subr.bf16.mxu0 %v18114_v49  ;;  %12158 = vmatprep.subr.bf16.mxu1 %v18116_v50  ;;  %v8770_v49 = vmax.f32 %v19622_v19, 0.0  ;;  %v17662_v50 = vcombine.high %v8783_v44, %v8787_v45  ;;  %v8803_v19 = vld [vmem:[#allocation7 + $0x10b0] sm:$0xff]  ;;  %v8836_v38 = vld [vmem:[#allocation7 + $0x11b8] sm:$0xff] }
 0x637   : > { %v8835_v35 = vld [vmem:[#allocation7 + $0x11b0] sm:$0xff] }
 0x639   : > { %11995 = vmatpush1.bf16.msra.mxu0 %v18113_v55  ;;  %12159 = vmatpush1.bf16.msra.mxu1 %v18115_v56  ;;  %v8796_v55 = vld [vmem:[#allocation7 + $0x1078] sm:$0xff]  ;;  %v17661_v56 = vcombine.low %v8783_v44, %v8787_v45  ;;  %v8839_v44 = vld [vmem:[#allocation7 + $0x11d0] sm:$0xff] }
 0x63a   : > { %11996 = vmatprep.subr.bf16.mxu0 %v18122_v59  ;;  %12160 = vmatprep.subr.bf16.mxu1 %v18124_v62  ;;  %v19637_v59 = vpack.c.bf16 %v8770_v49, %v8770_v49  ;;  %v17663_v62 = vcombine.low %v8784_v30, %v8788_v46  ;;  %v17672_v60 = vcombine.high %v8792_v39, %v8796_v55  ;;  %v8843_v45 = vld [vmem:[#allocation7 + $0x11f0] sm:$0xff]  ;;  %v8840_v30 = vld [vmem:[#allocation7 + $0x11d8] sm:$0xff] }
 0x63b   : > { %v8844_v46 = vld [vmem:[#allocation7 + $0x11f8] sm:$0xff]  ;;  %v17718_v49 = vcombine.high %v8839_v44, %v8843_v45 }
 0x63d   : > { %11997 = vmatpush1.bf16.msra.mxu0 %v18121_v57  ;;  %12161 = vmatpush1.bf16.msra.mxu1 %v18123_v3  ;;  %v8804_v57 = vld [vmem:[#allocation7 + $0x10b8] sm:$0xff]  ;;  %v17669_v3 = vcombine.low %v8791_v51, %v8795_v52  ;;  %v8851_v51 = vld [vmem:[#allocation7 + $0x1230] sm:$0xff] }
 0x63e   : > { %11998 = vmatprep.subr.bf16.mxu0 %v18130_v31  ;;  %12162 = vmatprep.subr.bf16.mxu1 %v18132_v5  ;;  %v17671_v31 = vcombine.low %v8792_v39, %v8796_v55  ;;  %v17678_v5 = vcombine.high %v8799_v2, %v8803_v19  ;;  %v17680_v4 = vcombine.high %v8800_v54, %v8804_v57  ;;  %v8848_v52 = vld [vmem:[#allocation7 + $0x1218] sm:$0xff] }
 0x63f   : > { %v8852_v39 = vld [vmem:[#allocation7 + $0x1238] sm:$0xff]  ;;  %v17717_v55 = vcombine.low %v8839_v44, %v8843_v45  ;;  %v8899_v44 = vld [vmem:[#allocation7 + $0x13b0] sm:$0xff] }
 0x640   : > { %v8896_v45 = vld [vmem:[#allocation7 + $0x1398] sm:$0xff] }
 0x641   : > { %11999 = vmatpush1.bf16.msra.mxu0 %v18129_v9  ;;  %12163 = vmatpush1.bf16.msra.mxu1 %v18131_v36  ;;  %v8812_v9 = vld [vmem:[#allocation7 + $0x10f8] sm:$0xff]  ;;  %v17677_v36 = vcombine.low %v8799_v2, %v8803_v19  ;;  %v8859_v2 = vld [vmem:[#allocation7 + $0x1270] sm:$0xff] }
 0x642   : > { %12000 = vmatprep.subr.bf16.mxu0 %v18138_v15  ;;  %12164 = vmatprep.subr.bf16.mxu1 %v18140_v22  ;;  %v17679_v15 = vcombine.low %v8800_v54, %v8804_v57  ;;  %v17686_v22 = vcombine.high %v8807_v53, %v8811_v8  ;;  %v17688_v0 = vcombine.high %v8808_v24, %v8812_v9  ;;  %v8856_v19 = vld [vmem:[#allocation7 + $0x1258] sm:$0xff] }
 0x643   : > { %v8860_v54 = vld [vmem:[#allocation7 + $0x1278] sm:$0xff] }
 0x645   : > { %12001 = vmatpush1.bf16.msra.mxu0 %v18137_v17  ;;  %12165 = vmatpush1.bf16.msra.mxu1 %v18139_v27  ;;  %v17685_v17 = vcombine.low %v8807_v53, %v8811_v8  ;;  %v17687_v27 = vcombine.low %v8808_v24, %v8812_v9  ;;  %v8867_v53 = vld [vmem:[#allocation7 + $0x12b0] sm:$0xff]  ;;  %v8864_v8 = vld [vmem:[#allocation7 + $0x1298] sm:$0xff] }
 0x646   : > { %12002 = vmatprep.subr.bf16.mxu0 %v18146_v18  ;;  %12166 = vmatprep.subr.bf16.mxu1 %v18148_v41  ;;  %v17694_v18 = vcombine.high %v8815_v11, %v8819_v14  ;;  %v8868_v24 = vld [vmem:[#allocation7 + $0x12b8] sm:$0xff] }
 0x649   : > { %12003 = vmatpush1.bf16.msra.mxu0 %v18145_v29  ;;  %12167 = vmatpush1.bf16.msra.mxu1 %v18147_v61  ;;  %v17693_v29 = vcombine.low %v8815_v11, %v8819_v14  ;;  %v8875_v11 = vld [vmem:[#allocation7 + $0x12f0] sm:$0xff]  ;;  %v8872_v14 = vld [vmem:[#allocation7 + $0x12d8] sm:$0xff] }
 0x64a   : > { %12004 = vmatprep.subr.bf16.mxu0 %v18154_v33  ;;  %12168 = vmatprep.subr.bf16.mxu1 %v18156_v58  ;;  %v17702_v33 = vcombine.high %v8823_v20, %v8827_v21  ;;  %v17704_v58 = vcombine.high %v8824_v23, %v8828_v28 }
 0x64d   : > { %12005 = vmatpush1.bf16.msra.mxu0 %v18153_v6  ;;  %12169 = vmatpush1.bf16.msra.mxu1 %v18155_v40  ;;  %v17701_v6 = vcombine.low %v8823_v20, %v8827_v21  ;;  %v17703_v40 = vcombine.low %v8824_v23, %v8828_v28  ;;  %v8883_v20 = vld [vmem:[#allocation7 + $0x1330] sm:$0xff]  ;;  %v8880_v21 = vld [vmem:[#allocation7 + $0x1318] sm:$0xff] }
 0x64e   : > { %12006 = vmatprep.subr.bf16.mxu0 %v18162_v42  ;;  %12170 = vmatprep.subr.bf16.mxu1 %v18164_v43  ;;  %v17710_v42 = vcombine.high %v8831_v34, %v8835_v35  ;;  %v17712_v43 = vcombine.high %v8832_v37, %v8836_v38  ;;  %v8884_v23 = vld [vmem:[#allocation7 + $0x1338] sm:$0xff] }
 0x651   : > { %12007 = vmatpush1.bf16.msra.mxu0 %v18161_v47  ;;  %12171 = vmatpush1.bf16.msra.mxu1 %v18163_v48  ;;  %v17709_v47 = vcombine.low %v8831_v34, %v8835_v35  ;;  %v17711_v48 = vcombine.low %v8832_v37, %v8836_v38  ;;  %v8891_v34 = vld [vmem:[#allocation7 + $0x1370] sm:$0xff]  ;;  %v8888_v35 = vld [vmem:[#allocation7 + $0x1358] sm:$0xff] }
 0x652   : > { %12181 = vmatprep.subr.bf16.mxu0 %v17662_v50  ;;  %12345 = vmatprep.subr.bf16.mxu1 %v17664_v1  ;;  %v17720_v50 = vcombine.high %v8840_v30, %v8844_v46  ;;  %v8847_v1 = vld [vmem:[#allocation7 + $0x1210] sm:$0xff]  ;;  %v8892_v37 = vld [vmem:[#allocation7 + $0x1378] sm:$0xff] }
 0x653   : > { %v17725_v57 = vcombine.low %v8847_v1, %v8851_v51 }
 0x654   : > { %12009 = vmatmul.mubr.bf16.vlgmr.msra.gmra.mrb[16].mxu0 %v19637_v59  ;;  %12173 = vmatmul.mubr.bf16.vlgmr.msra.gmra.mrb[16].mxu1 %v19637_v59 }
 0x655   : > { %12182 = vmatpush1.bf16.msra.mxu0 %v17661_v56  ;;  %12213 = vmatprep.mubr.bf16.mxu0 %v19601_v12  ;;  %v17719_v56 = vcombine.low %v8840_v30, %v8844_v46  ;;  %v8900_v30 = vld [vmem:[#allocation7 + $0x13b8] sm:$0xff] }
 0x656   : > { %12346 = vmatpush1.bf16.msra.mxu1 %v17663_v62  ;;  %12377 = vmatprep.mubr.bf16.mxu1 %v19601_v12  ;;  %v8816_v12 = vld [vmem:[#allocation7 + $0x1118] sm:$0xff]  ;;  %v17726_v62 = vcombine.high %v8847_v1, %v8851_v51  ;;  %v8907_v1 = vld [vmem:[#allocation7 + $0x13f0] sm:$0xff] }
 0x657   : > { %12183 = vmatprep.subr.bf16.mxu0 %v17670_v63  ;;  %12347 = vmatprep.subr.bf16.mxu1 %v17672_v60  ;;  %v17696_v41 = vcombine.high %v8816_v12, %v8820_v32  ;;  %v17695_v61 = vcombine.low %v8816_v12, %v8820_v32  ;;  %v17728_v63 = vcombine.high %v8848_v52, %v8852_v39  ;;  %v8855_v60 = vld [vmem:[#allocation7 + $0x1250] sm:$0xff]  ;;  %v8876_v12 = vld [vmem:[#allocation7 + $0x12f8] sm:$0xff] }
 0x658   : > { %v17733_v9 = vcombine.low %v8855_v60, %v8859_v2  ;;  %v8904_v51 = vld [vmem:[#allocation7 + $0x13d8] sm:$0xff] }
 0x659   : > { %12184 = vmatpush1.bf16.msra.mxu0 %v17669_v3  ;;  %v17727_v3 = vcombine.low %v8848_v52, %v8852_v39  ;;  %v8908_v52 = vld [vmem:[#allocation7 + $0x13f8] sm:$0xff] }
 0x65a   : > { %12348 = vmatpush1.bf16.msra.mxu1 %v17671_v31  ;;  %12185 = vmatprep.subr.bf16.mxu0 %v17678_v5  ;;  %v17734_v31 = vcombine.high %v8855_v60, %v8859_v2  ;;  %v17736_v5 = vcombine.high %v8856_v19, %v8860_v54  ;;  %v8915_v60 = vld [vmem:[#allocation7 + $0x1430] sm:$0xff]  ;;  %v8912_v2 = vld [vmem:[#allocation7 + $0x1418] sm:$0xff] }
 0x65b   : > { %12349 = vmatprep.subr.bf16.mxu1 %v17680_v4  ;;  %v8863_v4 = vld [vmem:[#allocation7 + $0x1290] sm:$0xff] }
 0x65c   : > { %v17741_v32 = vcombine.low %v8863_v4, %v8867_v53 }
 0x65d   : > { %12186 = vmatpush1.bf16.msra.mxu0 %v17677_v36  ;;  %v17735_v36 = vcombine.low %v8856_v19, %v8860_v54  ;;  %v8916_v19 = vld [vmem:[#allocation7 + $0x1438] sm:$0xff] }
 0x65e   : > { %12350 = vmatpush1.bf16.msra.mxu1 %v17679_v15  ;;  %12187 = vmatprep.subr.bf16.mxu0 %v17686_v22  ;;  %v17742_v15 = vcombine.high %v8863_v4, %v8867_v53  ;;  %v17744_v22 = vcombine.high %v8864_v8, %v8868_v24  ;;  %v8923_v4 = vld [vmem:[#allocation7 + $0x1470] sm:$0xff] }
 0x65f   : > { %12351 = vmatprep.subr.bf16.mxu1 %v17688_v0  ;;  %v8871_v0 = vld [vmem:[#allocation7 + $0x12d0] sm:$0xff] }
 0x660   : > { %v17749_v28 = vcombine.low %v8871_v0, %v8875_v11 }
 0x661   : > { %12188 = vmatpush1.bf16.msra.mxu0 %v17685_v17  ;;  %v17743_v17 = vcombine.low %v8864_v8, %v8868_v24  ;;  %v8920_v8 = vld [vmem:[#allocation7 + $0x1458] sm:$0xff] }
 0x662   : > { %12352 = vmatpush1.bf16.msra.mxu1 %v17687_v27  ;;  %12189 = vmatprep.subr.bf16.mxu0 %v17694_v18  ;;  %v17750_v27 = vcombine.high %v8871_v0, %v8875_v11  ;;  %v17752_v18 = vcombine.high %v8872_v14, %v8876_v12  ;;  %v8924_v24 = vld [vmem:[#allocation7 + $0x1478] sm:$0xff] }
 0x663   : > { %12353 = vmatprep.subr.bf16.mxu1 %v17696_v41  ;;  %v8879_v41 = vld [vmem:[#allocation7 + $0x1310] sm:$0xff]  ;;  %v17800_v0 = vcombine.high %v8920_v8, %v8924_v24  ;;  %v8928_v11 = vld [vmem:[#allocation7 + $0x1498] sm:$0xff] }
 0x664   : > { %v17757_v38 = vcombine.low %v8879_v41, %v8883_v20 }
 0x665   : > { %12190 = vmatpush1.bf16.msra.mxu0 %v17693_v29  ;;  %v17751_v29 = vcombine.low %v8872_v14, %v8876_v12  ;;  %v8932_v14 = vld [vmem:[#allocation7 + $0x14b8] sm:$0xff] }
 0x666   : > { %12354 = vmatpush1.bf16.msra.mxu1 %v17695_v61  ;;  %12191 = vmatprep.subr.bf16.mxu0 %v17702_v33  ;;  %v17758_v61 = vcombine.high %v8879_v41, %v8883_v20  ;;  %v17760_v33 = vcombine.high %v8880_v21, %v8884_v23  ;;  %v8939_v41 = vld [vmem:[#allocation7 + $0x14f0] sm:$0xff]  ;;  %v8936_v20 = vld [vmem:[#allocation7 + $0x14d8] sm:$0xff] }
 0x667   : > { %12355 = vmatprep.subr.bf16.mxu1 %v17704_v58  ;;  %v8887_v58 = vld [vmem:[#allocation7 + $0x1350] sm:$0xff] }
 0x668   : > { %v17765_v46 = vcombine.low %v8887_v58, %v8891_v34 }
 0x669   : > { %12192 = vmatpush1.bf16.msra.mxu0 %v17701_v6  ;;  %v17759_v6 = vcombine.low %v8880_v21, %v8884_v23  ;;  %v8940_v21 = vld [vmem:[#allocation7 + $0x14f8] sm:$0xff] }
 0x66a   : > { %12356 = vmatpush1.bf16.msra.mxu1 %v17703_v40  ;;  %12193 = vmatprep.subr.bf16.mxu0 %v17710_v42  ;;  %v17766_v40 = vcombine.high %v8887_v58, %v8891_v34  ;;  %v17768_v42 = vcombine.high %v8888_v35, %v8892_v37  ;;  %v8944_v58 = vld [vmem:[#allocation7 + $0x1518] sm:$0xff] }
 0x66b   : > { %12357 = vmatprep.subr.bf16.mxu1 %v17712_v43  ;;  %v8895_v43 = vld [vmem:[#allocation7 + $0x1390] sm:$0xff]  ;;  %v8948_v34 = vld [vmem:[#allocation7 + $0x1538] sm:$0xff] }
 0x66c   : > { %v17773_v39 = vcombine.low %v8895_v43, %v8899_v44 }
 0x66d   : > { %12194 = vmatpush1.bf16.msra.mxu0 %v17709_v47  ;;  %v17767_v47 = vcombine.low %v8888_v35, %v8892_v37  ;;  %v17815_v35 = vcombine.low %v8936_v20, %v8940_v21 }
 0x66e   : > { %12358 = vmatpush1.bf16.msra.mxu1 %v17711_v48  ;;  %12195 = vmatprep.subr.bf16.mxu0 %v17718_v49  ;;  %v17774_v48 = vcombine.high %v8895_v43, %v8899_v44  ;;  %v17776_v49 = vcombine.high %v8896_v45, %v8900_v30  ;;  %v8956_v43 = vld [vmem:[#allocation7 + $0x1578] sm:$0xff] }
 0x66f   : > { %12359 = vmatprep.subr.bf16.mxu1 %v17720_v50  ;;  %v8903_v50 = vld [vmem:[#allocation7 + $0x13d0] sm:$0xff] }
 0x670   : > { %v17781_v54 = vcombine.low %v8903_v50, %v8907_v1 }
 0x671   : > { %12196 = vmatpush1.bf16.msra.mxu0 %v17717_v55  ;;  %v17775_v55 = vcombine.low %v8896_v45, %v8900_v30  ;;  %v17823_v45 = vcombine.low %v8944_v58, %v8948_v34 }
 0x672   : > { %12360 = vmatpush1.bf16.msra.mxu1 %v17719_v56  ;;  %12197 = vmatprep.subr.bf16.mxu0 %v17726_v62  ;;  %v17782_v56 = vcombine.high %v8903_v50, %v8907_v1  ;;  %v17784_v62 = vcombine.high %v8904_v51, %v8908_v52  ;;  %v8964_v50 = vld [vmem:[#allocation7 + $0x15b8] sm:$0xff] }
 0x673   : > { %12361 = vmatprep.subr.bf16.mxu1 %v17728_v63  ;;  %v8911_v63 = vld [vmem:[#allocation7 + $0x1410] sm:$0xff] }
 0x674   : > { %v17789_v53 = vcombine.low %v8911_v63, %v8915_v60 }
 0x675   : > { %12198 = vmatpush1.bf16.msra.mxu0 %v17725_v57  ;;  %v17783_v57 = vcombine.low %v8904_v51, %v8908_v52 }
 0x676   : > { %12362 = vmatpush1.bf16.msra.mxu1 %v17727_v3  ;;  %12199 = vmatprep.subr.bf16.mxu0 %v17734_v31  ;;  %v17790_v3 = vcombine.high %v8911_v63, %v8915_v60  ;;  %v17792_v31 = vcombine.high %v8912_v2, %v8916_v19  ;;  %v8972_v63 = vld [vmem:[#allocation7 + $0x15f8] sm:$0xff] }
 0x677   : > { %12363 = vmatprep.subr.bf16.mxu1 %v17736_v5  ;;  %v8919_v5 = vld [vmem:[#allocation7 + $0x1450] sm:$0xff] }
 0x678   : > { %v17797_v12 = vcombine.low %v8919_v5, %v8923_v4 }
 0x679   : > { %12200 = vmatpush1.bf16.msra.mxu0 %v17733_v9  ;;  %v17791_v9 = vcombine.low %v8912_v2, %v8916_v19 }
 0x67a   : > { %12364 = vmatpush1.bf16.msra.mxu1 %v17735_v36  ;;  %12201 = vmatprep.subr.bf16.mxu0 %v17742_v15  ;;  %v17798_v36 = vcombine.high %v8919_v5, %v8923_v4  ;;  %v8927_v15 = vld [vmem:[#allocation7 + $0x1490] sm:$0xff]  ;;  %v8980_v5 = vld [vmem:[#allocation7 + $0x1638] sm:$0xff] }
 0x67b   : > { %12365 = vmatprep.subr.bf16.mxu1 %v17744_v22  ;;  %v8931_v22 = vld [vmem:[#allocation7 + $0x14b0] sm:$0xff] }
 0x67c   : > { %v17805_v23 = vcombine.low %v8927_v15, %v8931_v22 }
 0x67d   : > { %12202 = vmatpush1.bf16.msra.mxu0 %v17741_v32  ;;  %v17799_v32 = vcombine.low %v8920_v8, %v8924_v24 }
 0x67e   : > { %12366 = vmatpush1.bf16.msra.mxu1 %v17743_v17  ;;  %12203 = vmatprep.subr.bf16.mxu0 %v17750_v27  ;;  %v17806_v17 = vcombine.high %v8927_v15, %v8931_v22  ;;  %v17808_v27 = vcombine.high %v8928_v11, %v8932_v14  ;;  %v8984_v15 = vld [vmem:[#allocation7 + $0x1658] sm:$0xff] }
 0x67f   : > { %12367 = vmatprep.subr.bf16.mxu1 %v17752_v18  ;;  %v8935_v18 = vld [vmem:[#allocation7 + $0x14d0] sm:$0xff]  ;;  %v8988_v22 = vld [vmem:[#allocation7 + $0x1678] sm:$0xff] }
 0x681   : > { %12204 = vmatpush1.bf16.msra.mxu0 %v17749_v28  ;;  %v17814_v28 = vcombine.high %v8935_v18, %v8939_v41 }
 0x682   : > { %12368 = vmatpush1.bf16.msra.mxu1 %v17751_v29  ;;  %12205 = vmatprep.subr.bf16.mxu0 %v17758_v61  ;;  %v17816_v29 = vcombine.high %v8936_v20, %v8940_v21  ;;  %v8943_v61 = vld [vmem:[#allocation7 + $0x1510] sm:$0xff]  ;;  %v17863_v20 = vcombine.low %v8984_v15, %v8988_v22 }
 0x683   : > { %12369 = vmatprep.subr.bf16.mxu1 %v17760_v33  ;;  %v8947_v33 = vld [vmem:[#allocation7 + $0x1530] sm:$0xff] }
 0x684   : > { %v17822_v37 = vcombine.high %v8943_v61, %v8947_v33  ;;  %v17821_v44 = vcombine.low %v8943_v61, %v8947_v33  ;;  %v9004_v61 = vld [vmem:[#allocation7 + $0x16f8] sm:$0xff] }
 0x685   : > { %12206 = vmatpush1.bf16.msra.mxu0 %v17757_v38  ;;  %v17824_v38 = vcombine.high %v8944_v58, %v8948_v34 }
 0x686   : > { %12370 = vmatpush1.bf16.msra.mxu1 %v17759_v6  ;;  %12207 = vmatprep.subr.bf16.mxu0 %v17766_v40  ;;  %v8951_v6 = vld [vmem:[#allocation7 + $0x1550] sm:$0xff] }
 0x687   : > { %12371 = vmatprep.subr.bf16.mxu1 %v17768_v42  ;;  %v8955_v40 = vld [vmem:[#allocation7 + $0x1570] sm:$0xff]  ;;  %v8952_v42 = vld [vmem:[#allocation7 + $0x1558] sm:$0xff] }
 0x688   : > { %v17830_v30 = vcombine.high %v8951_v6, %v8955_v40  ;;  %v17829_v1 = vcombine.low %v8951_v6, %v8955_v40  ;;  %v17831_v51 = vcombine.low %v8952_v42, %v8956_v43  ;;  %v9012_v6 = vld [vmem:[#allocation7 + $0x1738] sm:$0xff] }
 0x689   : > { %12208 = vmatpush1.bf16.msra.mxu0 %v17765_v46  ;;  %v17832_v46 = vcombine.high %v8952_v42, %v8956_v43 }
 0x68a   : > { %12372 = vmatpush1.bf16.msra.mxu1 %v17767_v47  ;;  %12209 = vmatprep.subr.bf16.mxu0 %v17774_v48  ;;  %v8959_v47 = vld [vmem:[#allocation7 + $0x1590] sm:$0xff] }
 0x68b   : > { %12373 = vmatprep.subr.bf16.mxu1 %v17776_v49  ;;  %v8963_v48 = vld [vmem:[#allocation7 + $0x15b0] sm:$0xff]  ;;  %v8960_v49 = vld [vmem:[#allocation7 + $0x1598] sm:$0xff] }
 0x68c   : > { %v17838_v52 = vcombine.high %v8959_v47, %v8963_v48  ;;  %v17837_v60 = vcombine.low %v8959_v47, %v8963_v48  ;;  %v17839_v2 = vcombine.low %v8960_v49, %v8964_v50  ;;  %v9020_v47 = vld [vmem:[#allocation7 + $0x1778] sm:$0xff] }
 0x68d   : > { %12210 = vmatpush1.bf16.msra.mxu0 %v17773_v39  ;;  %v17840_v39 = vcombine.high %v8960_v49, %v8964_v50 }
 0x68e   : > { %12374 = vmatpush1.bf16.msra.mxu1 %v17775_v55  ;;  %12211 = vmatprep.subr.bf16.mxu0 %v17782_v56  ;;  %v8967_v55 = vld [vmem:[#allocation7 + $0x15d0] sm:$0xff] }
 0x68f   : > { %12375 = vmatprep.subr.bf16.mxu1 %v17784_v62  ;;  %v8971_v56 = vld [vmem:[#allocation7 + $0x15f0] sm:$0xff]  ;;  %v8968_v62 = vld [vmem:[#allocation7 + $0x15d8] sm:$0xff] }
 0x690   : > { %v17846_v19 = vcombine.high %v8967_v55, %v8971_v56  ;;  %v17845_v4 = vcombine.low %v8967_v55, %v8971_v56  ;;  %v9028_v55 = vld [vmem:[#allocation7 + $0x17b8] sm:$0xff] }
 0x691   : > { %12212 = vmatpush1.bf16.msra.mxu0 %v17781_v54  ;;  %v17848_v54 = vcombine.high %v8968_v62, %v8972_v63 }
 0x692   : > { %12376 = vmatpush1.bf16.msra.mxu1 %v17783_v57  ;;  %12222 = vmatprep.subr.bf16.mxu0 %v17790_v3  ;;  %v8975_v57 = vld [vmem:[#allocation7 + $0x1610] sm:$0xff] }
 0x693   : > { %12386 = vmatprep.subr.bf16.mxu1 %v17792_v31  ;;  %v8979_v3 = vld [vmem:[#allocation7 + $0x1630] sm:$0xff]  ;;  %v8976_v31 = vld [vmem:[#allocation7 + $0x1618] sm:$0xff] }
 0x694   : > { %12214 = vmatmul.mubr.bf16.vlgmr.msra.gmra.mrb[20].mxu0 %v19609_v7  ;;  %v17854_v8 = vcombine.high %v8975_v57, %v8979_v3  ;;  %v17856_v24 = vcombine.high %v8976_v31, %v8980_v5 }
 0x695   : > { %12378 = vmatmul.mubr.bf16.vlgmr.msra.gmra.mrb[20].mxu1 %v19609_v7  ;;  %12223 = vmatpush1.bf16.msra.mxu0 %v17789_v53  ;;  %v17807_v7 = vcombine.low %v8928_v11, %v8932_v14  ;;  %v17847_v53 = vcombine.low %v8968_v62, %v8972_v63  ;;  %v17855_v11 = vcombine.low %v8976_v31, %v8980_v5 }
 0x696   : > { %12254 = vmatprep.mubr.bf16.mxu0 %v19611_v10  ;;  %12387 = vmatpush1.bf16.msra.mxu1 %v17791_v9  ;;  %v8983_v9 = vld [vmem:[#allocation7 + $0x1650] sm:$0xff] }
 0x697   : > { %12418 = vmatprep.mubr.bf16.mxu1 %v19611_v10  ;;  %12224 = vmatprep.subr.bf16.mxu0 %v17798_v36  ;;  %v17813_v10 = vcombine.low %v8935_v18, %v8939_v41  ;;  %v8987_v36 = vld [vmem:[#allocation7 + $0x1670] sm:$0xff]  ;;  %v8996_v18 = vld [vmem:[#allocation7 + $0x16b8] sm:$0xff] }
 0x698   : > { %12388 = vmatprep.subr.bf16.mxu1 %v17800_v0  ;;  %v17853_v0 = vcombine.low %v8975_v57, %v8979_v3  ;;  %v17862_v14 = vcombine.high %v8983_v9, %v8987_v36  ;;  %v17861_v41 = vcombine.low %v8983_v9, %v8987_v36  ;;  %v9036_v57 = vld [vmem:[#allocation7 + $0x17f8] sm:$0xff] }
 0x699   : > { %12225 = vmatpush1.bf16.msra.mxu0 %v17797_v12  ;;  %v17864_v12 = vcombine.high %v8984_v15, %v8988_v22  ;;  %v9044_v9 = vld [vmem:[#allocation7 + $0x1838] sm:$0xff] }
 0x69a   : > { %12389 = vmatpush1.bf16.msra.mxu1 %v17799_v32  ;;  %12226 = vmatprep.subr.bf16.mxu0 %v17806_v17  ;;  %v8991_v32 = vld [vmem:[#allocation7 + $0x1690] sm:$0xff] }
 0x69b   : > { %12390 = vmatprep.subr.bf16.mxu1 %v17808_v27  ;;  %v8995_v17 = vld [vmem:[#allocation7 + $0x16b0] sm:$0xff]  ;;  %v8992_v27 = vld [vmem:[#allocation7 + $0x1698] sm:$0xff] }
 0x69c   : > { %v17870_v21 = vcombine.high %v8991_v32, %v8995_v17  ;;  %v17869_v33 = vcombine.low %v8991_v32, %v8995_v17  ;;  %v17871_v58 = vcombine.low %v8992_v27, %v8996_v18  ;;  %v9048_v32 = vld [vmem:[#allocation7 + $0x1858] sm:$0xff] }
 0x69d   : > { %12227 = vmatpush1.bf16.msra.mxu0 %v17805_v23  ;;  %v17872_v23 = vcombine.high %v8992_v27, %v8996_v18  ;;  %v9052_v17 = vld [vmem:[#allocation7 + $0x1878] sm:$0xff] }
 0x69e   : > { %12391 = vmatpush1.bf16.msra.mxu1 %v17807_v7  ;;  %12228 = vmatprep.subr.bf16.mxu0 %v17814_v28  ;;  %v8999_v7 = vld [vmem:[#allocation7 + $0x16d0] sm:$0xff] }
 0x69f   : > { %12392 = vmatprep.subr.bf16.mxu1 %v17816_v29  ;;  %v9003_v28 = vld [vmem:[#allocation7 + $0x16f0] sm:$0xff]  ;;  %v9000_v29 = vld [vmem:[#allocation7 + $0x16d8] sm:$0xff] }
 0x6a0   : > { %v17878_v34 = vcombine.high %v8999_v7, %v9003_v28  ;;  %v17877_v40 = vcombine.low %v8999_v7, %v9003_v28  ;;  %v17879_v42 = vcombine.low %v9000_v29, %v9004_v61  ;;  %v9060_v7 = vld [vmem:[#allocation7 + $0x18b8] sm:$0xff] }
 0x6a1   : > { %12229 = vmatpush1.bf16.msra.mxu0 %v17813_v10  ;;  %v17880_v10 = vcombine.high %v9000_v29, %v9004_v61  ;;  %v17927_v29 = vcombine.low %v9048_v32, %v9052_v17 }
 0x6a2   : > { %12393 = vmatpush1.bf16.msra.mxu1 %v17815_v35  ;;  %12230 = vmatprep.subr.bf16.mxu0 %v17822_v37  ;;  %v9007_v35 = vld [vmem:[#allocation7 + $0x1710] sm:$0xff] }
 0x6a3   : > { %12394 = vmatprep.subr.bf16.mxu1 %v17824_v38  ;;  %v9011_v37 = vld [vmem:[#allocation7 + $0x1730] sm:$0xff]  ;;  %v9008_v38 = vld [vmem:[#allocation7 + $0x1718] sm:$0xff] }
 0x6a4   : > { %v17886_v43 = vcombine.high %v9007_v35, %v9011_v37  ;;  %v17885_v48 = vcombine.low %v9007_v35, %v9011_v37  ;;  %v17887_v49 = vcombine.low %v9008_v38, %v9012_v6  ;;  %v9068_v35 = vld [vmem:[#allocation7 + $0x18f8] sm:$0xff] }
 0x6a5   : > { %12231 = vmatpush1.bf16.msra.mxu0 %v17821_v44  ;;  %v17888_v44 = vcombine.high %v9008_v38, %v9012_v6 }
 0x6a6   : > { %12395 = vmatpush1.bf16.msra.mxu1 %v17823_v45  ;;  %12232 = vmatprep.subr.bf16.mxu0 %v17830_v30  ;;  %v9015_v45 = vld [vmem:[#allocation7 + $0x1750] sm:$0xff] }
 0x6a7   : > { %12396 = vmatprep.subr.bf16.mxu1 %v17832_v46  ;;  %v9019_v30 = vld [vmem:[#allocation7 + $0x1770] sm:$0xff]  ;;  %v9016_v46 = vld [vmem:[#allocation7 + $0x1758] sm:$0xff] }
 0x6a8   : > { %v17894_v50 = vcombine.high %v9015_v45, %v9019_v30  ;;  %v17893_v56 = vcombine.low %v9015_v45, %v9019_v30  ;;  %v17895_v62 = vcombine.low %v9016_v46, %v9020_v47 }
 0x6a9   : > { %12233 = vmatpush1.bf16.msra.mxu0 %v17829_v1  ;;  %v17896_v1 = vcombine.high %v9016_v46, %v9020_v47  ;;  %v9079_v47 = vld [vmem:[#allocation7 + $0x1950] sm:$0xff] }
 0x6aa   : > { %12397 = vmatpush1.bf16.msra.mxu1 %v17831_v51  ;;  %12234 = vmatprep.subr.bf16.mxu0 %v17838_v52  ;;  %v9023_v51 = vld [vmem:[#allocation7 + $0x1790] sm:$0xff] }
 0x6ab   : > { %12398 = vmatprep.subr.bf16.mxu1 %v17840_v39  ;;  %v9027_v52 = vld [vmem:[#allocation7 + $0x17b0] sm:$0xff]  ;;  %v9024_v39 = vld [vmem:[#allocation7 + $0x1798] sm:$0xff] }
 0x6ac   : > { %v17902_v63 = vcombine.high %v9023_v51, %v9027_v52  ;;  %v17901_v3 = vcombine.low %v9023_v51, %v9027_v52  ;;  %v17903_v31 = vcombine.low %v9024_v39, %v9028_v55 }
 0x6ad   : > { %12235 = vmatpush1.bf16.msra.mxu0 %v17837_v60  ;;  %v17904_v60 = vcombine.high %v9024_v39, %v9028_v55  ;;  %v9087_v55 = vld [vmem:[#allocation7 + $0x1990] sm:$0xff] }
 0x6ae   : > { %12399 = vmatpush1.bf16.msra.mxu1 %v17839_v2  ;;  %12236 = vmatprep.subr.bf16.mxu0 %v17846_v19  ;;  %v9031_v2 = vld [vmem:[#allocation7 + $0x17d0] sm:$0xff] }
 0x6af   : > { %12400 = vmatprep.subr.bf16.mxu1 %v17848_v54  ;;  %v9035_v19 = vld [vmem:[#allocation7 + $0x17f0] sm:$0xff]  ;;  %v9032_v54 = vld [vmem:[#allocation7 + $0x17d8] sm:$0xff] }
 0x6b0   : > { %v17910_v5 = vcombine.high %v9031_v2, %v9035_v19  ;;  %v17909_v36 = vcombine.low %v9031_v2, %v9035_v19  ;;  %v17911_v15 = vcombine.low %v9032_v54, %v9036_v57 }
 0x6b1   : > { %12237 = vmatpush1.bf16.msra.mxu0 %v17845_v4  ;;  %v17912_v4 = vcombine.high %v9032_v54, %v9036_v57  ;;  %v9095_v57 = vld [vmem:[#allocation7 + $0x19d0] sm:$0xff] }
 0x6b2   : > { %12401 = vmatpush1.bf16.msra.mxu1 %v17847_v53  ;;  %12238 = vmatprep.subr.bf16.mxu0 %v17854_v8  ;;  %v9039_v53 = vld [vmem:[#allocation7 + $0x1810] sm:$0xff] }
 0x6b3   : > { %12402 = vmatprep.subr.bf16.mxu1 %v17856_v24  ;;  %v9043_v8 = vld [vmem:[#allocation7 + $0x1830] sm:$0xff]  ;;  %v9040_v24 = vld [vmem:[#allocation7 + $0x1818] sm:$0xff] }
 0x6b4   : > { %v17918_v22 = vcombine.high %v9039_v53, %v9043_v8  ;;  %v17919_v27 = vcombine.low %v9040_v24, %v9044_v9 }
 0x6b5   : > { %12239 = vmatpush1.bf16.msra.mxu0 %v17853_v0  ;;  %v17920_v0 = vcombine.high %v9040_v24, %v9044_v9  ;;  %v9103_v9 = vld [vmem:[#allocation7 + $0x1a10] sm:$0xff] }
 0x6b6   : > { %12403 = vmatpush1.bf16.msra.mxu1 %v17855_v11  ;;  %12240 = vmatprep.subr.bf16.mxu0 %v17862_v14  ;;  %v9047_v11 = vld [vmem:[#allocation7 + $0x1850] sm:$0xff] }
 0x6b7   : > { %12404 = vmatprep.subr.bf16.mxu1 %v17864_v12  ;;  %v9051_v14 = vld [vmem:[#allocation7 + $0x1870] sm:$0xff]  ;;  %v17917_v12 = vcombine.low %v9039_v53, %v9043_v8 }
 0x6b8   : > { %v17926_v18 = vcombine.high %v9047_v11, %v9051_v14  ;;  %v17925_v28 = vcombine.low %v9047_v11, %v9051_v14 }
 0x6b9   : > { %12241 = vmatpush1.bf16.msra.mxu0 %v17861_v41  ;;  %v9055_v41 = vld [vmem:[#allocation7 + $0x1890] sm:$0xff] }
 0x6ba   : > { %12405 = vmatpush1.bf16.msra.mxu1 %v17863_v20  ;;  %12242 = vmatprep.subr.bf16.mxu0 %v17870_v21  ;;  %v9059_v20 = vld [vmem:[#allocation7 + $0x18b0] sm:$0xff]  ;;  %v17928_v21 = vcombine.high %v9048_v32, %v9052_v17 }
 0x6bb   : > { %12406 = vmatprep.subr.bf16.mxu1 %v17872_v23  ;;  %v9056_v23 = vld [vmem:[#allocation7 + $0x1898] sm:$0xff]  ;;  %v17934_v61 = vcombine.high %v9055_v41, %v9059_v20  ;;  %v17933_v37 = vcombine.low %v9055_v41, %v9059_v20  ;;  %v9111_v32 = vld [vmem:[#allocation7 + $0x1a50] sm:$0xff] }
 0x6bc   : > { %v9115_v17 = vld [vmem:[#allocation7 + $0x1a70] sm:$0xff] }
 0x6bd   : > { %12243 = vmatpush1.bf16.msra.mxu0 %v17869_v33  ;;  %v17936_v33 = vcombine.high %v9056_v23, %v9060_v7 }
 0x6be   : > { %12407 = vmatpush1.bf16.msra.mxu1 %v17871_v58  ;;  %12244 = vmatprep.subr.bf16.mxu0 %v17878_v34  ;;  %v9063_v58 = vld [vmem:[#allocation7 + $0x18d0] sm:$0xff] }
 0x6bf   : > { %12408 = vmatprep.subr.bf16.mxu1 %v17880_v10  ;;  %v9067_v34 = vld [vmem:[#allocation7 + $0x18f0] sm:$0xff]  ;;  %v9064_v10 = vld [vmem:[#allocation7 + $0x18d8] sm:$0xff] }
 0x6c0   : > { %v17942_v38 = vcombine.high %v9063_v58, %v9067_v34  ;;  %v17944_v6 = vcombine.high %v9064_v10, %v9068_v35  ;;  %v17943_v45 = vcombine.low %v9064_v10, %v9068_v35  ;;  %v9127_v35 = vld [vmem:[#allocation7 + $0x1ad0] sm:$0xff] }
 0x6c1   : > { %12245 = vmatpush1.bf16.msra.mxu0 %v17877_v40  ;;  %v9071_v40 = vld [vmem:[#allocation7 + $0x1910] sm:$0xff] }
 0x6c2   : > { %12409 = vmatpush1.bf16.msra.mxu1 %v17879_v42  ;;  %12246 = vmatprep.subr.bf16.mxu0 %v17886_v43  ;;  %v9075_v42 = vld [vmem:[#allocation7 + $0x1930] sm:$0xff]  ;;  %v9072_v43 = vld [vmem:[#allocation7 + $0x1918] sm:$0xff] }
 0x6c3   : > { %12410 = vmatprep.subr.bf16.mxu1 %v17888_v44  ;;  %v9076_v44 = vld [vmem:[#allocation7 + $0x1938] sm:$0xff]  ;;  %v17950_v30 = vcombine.high %v9071_v40, %v9075_v42 }
 0x6c4   : > { %v17952_v46 = vcombine.high %v9072_v43, %v9076_v44  ;;  %v17951_v51 = vcombine.low %v9072_v43, %v9076_v44  ;;  %v9135_v44 = vld [vmem:[#allocation7 + $0x1b10] sm:$0xff] }
 0x6c5   : > { %12247 = vmatpush1.bf16.msra.mxu0 %v17885_v48  ;;  %v9083_v48 = vld [vmem:[#allocation7 + $0x1970] sm:$0xff] }
 0x6c6   : > { %12411 = vmatpush1.bf16.msra.mxu1 %v17887_v49  ;;  %12248 = vmatprep.subr.bf16.mxu0 %v17894_v50  ;;  %v9080_v49 = vld [vmem:[#allocation7 + $0x1958] sm:$0xff]  ;;  %v17958_v52 = vcombine.high %v9079_v47, %v9083_v48 }
 0x6c7   : > { %12412 = vmatprep.subr.bf16.mxu1 %v17896_v1  ;;  %v9084_v50 = vld [vmem:[#allocation7 + $0x1978] sm:$0xff]  ;;  %v17949_v1 = vcombine.low %v9071_v40, %v9075_v42 }
 0x6c8   : > { %v17960_v39 = vcombine.high %v9080_v49, %v9084_v50  ;;  %v17959_v2 = vcombine.low %v9080_v49, %v9084_v50  ;;  %v9143_v50 = vld [vmem:[#allocation7 + $0x1b50] sm:$0xff] }
 0x6c9   : > { %12249 = vmatpush1.bf16.msra.mxu0 %v17893_v56  ;;  %v9091_v56 = vld [vmem:[#allocation7 + $0x19b0] sm:$0xff] }
 0x6ca   : > { %12413 = vmatpush1.bf16.msra.mxu1 %v17895_v62  ;;  %12250 = vmatprep.subr.bf16.mxu0 %v17902_v63  ;;  %v9088_v62 = vld [vmem:[#allocation7 + $0x1998] sm:$0xff]  ;;  %v17966_v19 = vcombine.high %v9087_v55, %v9091_v56 }
 0x6cb   : > { %12414 = vmatprep.subr.bf16.mxu1 %v17904_v60  ;;  %v9092_v63 = vld [vmem:[#allocation7 + $0x19b8] sm:$0xff]  ;;  %v17957_v60 = vcombine.low %v9079_v47, %v9083_v48 }
 0x6cc   : > { %v17968_v54 = vcombine.high %v9088_v62, %v9092_v63  ;;  %v17967_v53 = vcombine.low %v9088_v62, %v9092_v63  ;;  %v9151_v63 = vld [vmem:[#allocation7 + $0x1b90] sm:$0xff] }
 0x6cd   : > { %12251 = vmatpush1.bf16.msra.mxu0 %v17901_v3  ;;  %v9099_v3 = vld [vmem:[#allocation7 + $0x19f0] sm:$0xff] }
 0x6ce   : > { %12415 = vmatpush1.bf16.msra.mxu1 %v17903_v31  ;;  %12252 = vmatprep.subr.bf16.mxu0 %v17910_v5  ;;  %v9096_v31 = vld [vmem:[#allocation7 + $0x19d8] sm:$0xff]  ;;  %v17974_v8 = vcombine.high %v9095_v57, %v9099_v3 }
 0x6cf   : > { %12416 = vmatprep.subr.bf16.mxu1 %v17912_v4  ;;  %v9100_v5 = vld [vmem:[#allocation7 + $0x19f8] sm:$0xff]  ;;  %v17965_v4 = vcombine.low %v9087_v55, %v9091_v56 }
 0x6d0   : > { %v17976_v24 = vcombine.high %v9096_v31, %v9100_v5  ;;  %v17975_v11 = vcombine.low %v9096_v31, %v9100_v5  ;;  %v9159_v5 = vld [vmem:[#allocation7 + $0x1bd0] sm:$0xff] }
 0x6d1   : > { %12253 = vmatpush1.bf16.msra.mxu0 %v17909_v36  ;;  %v9107_v36 = vld [vmem:[#allocation7 + $0x1a30] sm:$0xff] }
 0x6d2   : > { %12417 = vmatpush1.bf16.msra.mxu1 %v17911_v15  ;;  %12263 = vmatprep.subr.bf16.mxu0 %v17918_v22  ;;  %v9104_v15 = vld [vmem:[#allocation7 + $0x1a18] sm:$0xff]  ;;  %v17982_v14 = vcombine.high %v9103_v9, %v9107_v36  ;;  %v17981_v41 = vcombine.low %v9103_v9, %v9107_v36 }
 0x6d3   : > { %12427 = vmatprep.subr.bf16.mxu1 %v17920_v0  ;;  %v9108_v22 = vld [vmem:[#allocation7 + $0x1a38] sm:$0xff]  ;;  %v17973_v0 = vcombine.low %v9095_v57, %v9099_v3 }
 0x6d4   : > { %12255 = vmatmul.mubr.bf16.vlgmr.msra.gmra.mrb[20].mxu0 %v19618_v16  ;;  %v17983_v20 = vcombine.low %v9104_v15, %v9108_v22 }
 0x6d5   : > { %12419 = vmatmul.mubr.bf16.vlgmr.msra.gmra.mrb[20].mxu1 %v19618_v16  ;;  %12264 = vmatpush1.bf16.msra.mxu0 %v17917_v12  ;;  %v17935_v16 = vcombine.low %v9056_v23, %v9060_v7  ;;  %v17984_v12 = vcombine.high %v9104_v15, %v9108_v22  ;;  %v9119_v7 = vld [vmem:[#allocation7 + $0x1a90] sm:$0xff] }
 0x6d6   : > { %12295 = vmatprep.mubr.bf16.mxu0 %v19624_v26  ;;  %12428 = vmatpush1.bf16.msra.mxu1 %v17919_v27  ;;  %v9112_v27 = vld [vmem:[#allocation7 + $0x1a58] sm:$0xff]  ;;  %v9167_v22 = vld [vmem:[#allocation7 + $0x1c10] sm:$0xff] }
 0x6d7   : > { %12459 = vmatprep.mubr.bf16.mxu1 %v19624_v26  ;;  %12265 = vmatprep.subr.bf16.mxu0 %v17926_v18  ;;  %v17941_v26 = vcombine.low %v9063_v58, %v9067_v34  ;;  %v9116_v18 = vld [vmem:[#allocation7 + $0x1a78] sm:$0xff] }
 0x6d8   : > { %12429 = vmatprep.subr.bf16.mxu1 %v17928_v21  ;;  %v17990_v21 = vcombine.high %v9111_v32, %v9115_v17  ;;  %v17992_v23 = vcombine.high %v9112_v27, %v9116_v18  ;;  %v17991_v58 = vcombine.low %v9112_v27, %v9116_v18  ;;  %v9175_v18 = vld [vmem:[#allocation7 + $0x1c50] sm:$0xff] }
 0x6d9   : > { %12266 = vmatpush1.bf16.msra.mxu0 %v17925_v28  ;;  %v9123_v28 = vld [vmem:[#allocation7 + $0x1ab0] sm:$0xff] }
 0x6da   : > { %12430 = vmatpush1.bf16.msra.mxu1 %v17927_v29  ;;  %12267 = vmatprep.subr.bf16.mxu0 %v17934_v61  ;;  %v9120_v29 = vld [vmem:[#allocation7 + $0x1a98] sm:$0xff]  ;;  %v17998_v34 = vcombine.high %v9119_v7, %v9123_v28 }
 0x6db   : > { %12431 = vmatprep.subr.bf16.mxu1 %v17936_v33  ;;  %v9124_v61 = vld [vmem:[#allocation7 + $0x1ab8] sm:$0xff]  ;;  %v17989_v33 = vcombine.low %v9111_v32, %v9115_v17 }
 0x6dc   : > { %v18000_v10 = vcombine.high %v9120_v29, %v9124_v61  ;;  %v17999_v40 = vcombine.low %v9120_v29, %v9124_v61  ;;  %v9183_v29 = vld [vmem:[#allocation7 + $0x1c90] sm:$0xff] }
 0x6dd   : > { %12268 = vmatpush1.bf16.msra.mxu0 %v17933_v37  ;;  %v9131_v37 = vld [vmem:[#allocation7 + $0x1af0] sm:$0xff] }
 0x6de   : > { %12432 = vmatpush1.bf16.msra.mxu1 %v17935_v16  ;;  %12269 = vmatprep.subr.bf16.mxu0 %v17942_v38  ;;  %v9128_v16 = vld [vmem:[#allocation7 + $0x1ad8] sm:$0xff]  ;;  %v18006_v42 = vcombine.high %v9127_v35, %v9131_v37  ;;  %v9187_v61 = vld [vmem:[#allocation7 + $0x1cb0] sm:$0xff] }
 0x6df   : > { %12433 = vmatprep.subr.bf16.mxu1 %v17944_v6  ;;  %v9132_v38 = vld [vmem:[#allocation7 + $0x1af8] sm:$0xff]  ;;  %v17997_v6 = vcombine.low %v9119_v7, %v9123_v28 }
 0x6e0   : > { %v18008_v43 = vcombine.high %v9128_v16, %v9132_v38  ;;  %v18007_v47 = vcombine.low %v9128_v16, %v9132_v38  ;;  %v9191_v38 = vld [vmem:[#allocation7 + $0x1cd0] sm:$0xff] }
 0x6e1   : > { %12270 = vmatpush1.bf16.msra.mxu0 %v17941_v26  ;;  %v9139_v26 = vld [vmem:[#allocation7 + $0x1b30] sm:$0xff] }
 0x6e2   : > { %12434 = vmatpush1.bf16.msra.mxu1 %v17943_v45  ;;  %12271 = vmatprep.subr.bf16.mxu0 %v17950_v30  ;;  %v9136_v45 = vld [vmem:[#allocation7 + $0x1b18] sm:$0xff]  ;;  %v18014_v48 = vcombine.high %v9135_v44, %v9139_v26 }
 0x6e3   : > { %12435 = vmatprep.subr.bf16.mxu1 %v17952_v46  ;;  %v9140_v30 = vld [vmem:[#allocation7 + $0x1b38] sm:$0xff]  ;;  %v18005_v46 = vcombine.low %v9127_v35, %v9131_v37  ;;  %v18062_v37 = vcombine.high %v9183_v29, %v9187_v61 }
 0x6e4   : > { %v18016_v49 = vcombine.high %v9136_v45, %v9140_v30  ;;  %v18015_v55 = vcombine.low %v9136_v45, %v9140_v30  ;;  %v9199_v45 = vld [vmem:[#allocation7 + $0x1d10] sm:$0xff] }
 0x6e5   : > { %12272 = vmatpush1.bf16.msra.mxu0 %v17949_v1  ;;  %v9147_v1 = vld [vmem:[#allocation7 + $0x1b70] sm:$0xff] }
 0x6e6   : > { %12436 = vmatpush1.bf16.msra.mxu1 %v17951_v51  ;;  %12273 = vmatprep.subr.bf16.mxu0 %v17958_v52  ;;  %v9144_v51 = vld [vmem:[#allocation7 + $0x1b58] sm:$0xff]  ;;  %v18022_v56 = vcombine.high %v9143_v50, %v9147_v1  ;;  %v9203_v30 = vld [vmem:[#allocation7 + $0x1d30] sm:$0xff] }
 0x6e7   : > { %12437 = vmatprep.subr.bf16.mxu1 %v17960_v39  ;;  %v9148_v52 = vld [vmem:[#allocation7 + $0x1b78] sm:$0xff]  ;;  %v18013_v39 = vcombine.low %v9135_v44, %v9139_v26 }
 0x6e8   : > { %v18024_v62 = vcombine.high %v9144_v51, %v9148_v52  ;;  %v18023_v57 = vcombine.low %v9144_v51, %v9148_v52  ;;  %v9211_v51 = vld [vmem:[#allocation7 + $0x1d70] sm:$0xff]  ;;  %v9208_v52 = vld [vmem:[#allocation7 + $0x1d58] sm:$0xff] }
 0x6e9   : > { %12274 = vmatpush1.bf16.msra.mxu0 %v17957_v60  ;;  %v9155_v60 = vld [vmem:[#allocation7 + $0x1bb0] sm:$0xff] }
 0x6ea   : > { %12438 = vmatpush1.bf16.msra.mxu1 %v17959_v2  ;;  %12275 = vmatprep.subr.bf16.mxu0 %v17966_v19  ;;  %v9152_v2 = vld [vmem:[#allocation7 + $0x1b98] sm:$0xff]  ;;  %v18030_v3 = vcombine.high %v9151_v63, %v9155_v60 }
 0x6eb   : > { %12439 = vmatprep.subr.bf16.mxu1 %v17968_v54  ;;  %v9156_v19 = vld [vmem:[#allocation7 + $0x1bb8] sm:$0xff]  ;;  %v18021_v54 = vcombine.low %v9143_v50, %v9147_v1  ;;  %v9207_v1 = vld [vmem:[#allocation7 + $0x1d50] sm:$0xff] }
 0x6ec   : > { %v18032_v31 = vcombine.high %v9152_v2, %v9156_v19  ;;  %v18031_v9 = vcombine.low %v9152_v2, %v9156_v19  ;;  %v9219_v2 = vld [vmem:[#allocation7 + $0x1db0] sm:$0xff]  ;;  %v9216_v19 = vld [vmem:[#allocation7 + $0x1d98] sm:$0xff] }
 0x6ed   : > { %12276 = vmatpush1.bf16.msra.mxu0 %v17965_v4  ;;  %v9163_v4 = vld [vmem:[#allocation7 + $0x1bf0] sm:$0xff] }
 0x6ee   : > { %12440 = vmatpush1.bf16.msra.mxu1 %v17967_v53  ;;  %12277 = vmatprep.subr.bf16.mxu0 %v17974_v8  ;;  %v9160_v53 = vld [vmem:[#allocation7 + $0x1bd8] sm:$0xff]  ;;  %v18038_v36 = vcombine.high %v9159_v5, %v9163_v4 }
 0x6ef   : > { %12441 = vmatprep.subr.bf16.mxu1 %v17976_v24  ;;  %v9164_v8 = vld [vmem:[#allocation7 + $0x1bf8] sm:$0xff]  ;;  %v18029_v24 = vcombine.low %v9151_v63, %v9155_v60  ;;  %v9215_v60 = vld [vmem:[#allocation7 + $0x1d90] sm:$0xff] }
 0x6f0   : > { %v18040_v15 = vcombine.high %v9160_v53, %v9164_v8  ;;  %v18039_v32 = vcombine.low %v9160_v53, %v9164_v8  ;;  %v9223_v8 = vld [vmem:[#allocation7 + $0x1dd0] sm:$0xff] }
 0x6f1   : > { %12278 = vmatpush1.bf16.msra.mxu0 %v17973_v0  ;;  %v9171_v0 = vld [vmem:[#allocation7 + $0x1c30] sm:$0xff] }
 0x6f2   : > { %12442 = vmatpush1.bf16.msra.mxu1 %v17975_v11  ;;  %12279 = vmatprep.subr.bf16.mxu0 %v17982_v14  ;;  %v9168_v11 = vld [vmem:[#allocation7 + $0x1c18] sm:$0xff]  ;;  %v18046_v17 = vcombine.high %v9167_v22, %v9171_v0 }
 0x6f3   : > { %12443 = vmatprep.subr.bf16.mxu1 %v17984_v12  ;;  %v9172_v14 = vld [vmem:[#allocation7 + $0x1c38] sm:$0xff]  ;;  %v18037_v12 = vcombine.low %v9159_v5, %v9163_v4 }
 0x6f4   : > { %v18048_v27 = vcombine.high %v9168_v11, %v9172_v14  ;;  %v18047_v7 = vcombine.low %v9168_v11, %v9172_v14  ;;  %v18093_v14 = vcombine.low %v9215_v60, %v9219_v2 }
 0x6f5   : > { %12280 = vmatpush1.bf16.msra.mxu0 %v17981_v41  ;;  %v9179_v41 = vld [vmem:[#allocation7 + $0x1c70] sm:$0xff] }
 0x6f6   : > { %12444 = vmatpush1.bf16.msra.mxu1 %v17983_v20  ;;  %12281 = vmatprep.subr.bf16.mxu0 %v17990_v21  ;;  %v18045_v20 = vcombine.low %v9167_v22, %v9171_v0  ;;  %v9176_v21 = vld [vmem:[#allocation7 + $0x1c58] sm:$0xff]  ;;  %v18054_v28 = vcombine.high %v9175_v18, %v9179_v41 }
 0x6f7   : > { %12445 = vmatprep.subr.bf16.mxu1 %v17992_v23  ;;  %v9180_v23 = vld [vmem:[#allocation7 + $0x1c78] sm:$0xff] }
 0x6f8   : > { %v18055_v35 = vcombine.low %v9176_v21, %v9180_v23  ;;  %v9228_v22 = vld [vmem:[#allocation7 + $0x1df8] sm:$0xff] }
 0x6f9   : > { %12282 = vmatpush1.bf16.msra.mxu0 %v17989_v33  ;;  %v18056_v33 = vcombine.high %v9176_v21, %v9180_v23  ;;  %v9232_v21 = vld [vmem:[#allocation7 + $0x1e18] sm:$0xff] }
 0x6fa   : > { %12446 = vmatpush1.bf16.msra.mxu1 %v17991_v58  ;;  %12283 = vmatprep.subr.bf16.mxu0 %v17998_v34  ;;  %v9184_v58 = vld [vmem:[#allocation7 + $0x1c98] sm:$0xff] }
 0x6fb   : > { %12447 = vmatprep.subr.bf16.mxu1 %v18000_v10  ;;  %v9188_v34 = vld [vmem:[#allocation7 + $0x1cb8] sm:$0xff]  ;;  %v18053_v10 = vcombine.low %v9175_v18, %v9179_v41  ;;  %v9231_v41 = vld [vmem:[#allocation7 + $0x1e10] sm:$0xff] }
 0x6fc   : > { %v18064_v16 = vcombine.high %v9184_v58, %v9188_v34  ;;  %v9236_v23 = vld [vmem:[#allocation7 + $0x1e38] sm:$0xff] }
 0x6fd   : > { %12284 = vmatpush1.bf16.msra.mxu0 %v17997_v6  ;;  %v9195_v6 = vld [vmem:[#allocation7 + $0x1cf0] sm:$0xff] }
 0x6fe   : > { %12448 = vmatpush1.bf16.msra.mxu1 %v17999_v40  ;;  %12285 = vmatprep.subr.bf16.mxu0 %v18006_v42  ;;  %v9192_v40 = vld [vmem:[#allocation7 + $0x1cd8] sm:$0xff]  ;;  %v18070_v44 = vcombine.high %v9191_v38, %v9195_v6 }
 0x6ff   : > { %12449 = vmatprep.subr.bf16.mxu1 %v18008_v43  ;;  %v9196_v42 = vld [vmem:[#allocation7 + $0x1cf8] sm:$0xff]  ;;  %v18061_v43 = vcombine.low %v9183_v29, %v9187_v61  ;;  %v18112_v61 = vcombine.high %v9232_v21, %v9236_v23 }
 0x700   : > { %v18072_v26 = vcombine.high %v9192_v40, %v9196_v42 }
 0x701   : > { %12286 = vmatpush1.bf16.msra.mxu0 %v18005_v46  ;;  %v9200_v46 = vld [vmem:[#allocation7 + $0x1d18] sm:$0xff] }
 0x702   : > { %12450 = vmatpush1.bf16.msra.mxu1 %v18007_v47  ;;  %12287 = vmatprep.subr.bf16.mxu0 %v18014_v48  ;;  %v9204_v47 = vld [vmem:[#allocation7 + $0x1d38] sm:$0xff]  ;;  %v18071_v48 = vcombine.low %v9192_v40, %v9196_v42  ;;  %v9251_v40 = vld [vmem:[#allocation7 + $0x1eb0] sm:$0xff] }
 0x703   : > { %12451 = vmatprep.subr.bf16.mxu1 %v18016_v49  ;;  %v18078_v49 = vcombine.high %v9199_v45, %v9203_v30  ;;  %v18080_v50 = vcombine.high %v9200_v46, %v9204_v47  ;;  %v9248_v42 = vld [vmem:[#allocation7 + $0x1e98] sm:$0xff] }
 0x705   : > { %12288 = vmatpush1.bf16.msra.mxu0 %v18013_v39  ;;  %v9212_v39 = vld [vmem:[#allocation7 + $0x1d78] sm:$0xff] }
 0x706   : > { %12452 = vmatpush1.bf16.msra.mxu1 %v18015_v55  ;;  %12289 = vmatprep.subr.bf16.mxu0 %v18022_v56  ;;  %v18077_v55 = vcombine.low %v9199_v45, %v9203_v30  ;;  %v18079_v56 = vcombine.low %v9200_v46, %v9204_v47  ;;  %v18088_v63 = vcombine.high %v9208_v52, %v9212_v39  ;;  %v9255_v30 = vld [vmem:[#allocation7 + $0x1ed0] sm:$0xff]  ;;  %v9256_v47 = vld [vmem:[#allocation7 + $0x1ed8] sm:$0xff] }
 0x707   : > { %12453 = vmatprep.subr.bf16.mxu1 %v18024_v62  ;;  %v18086_v62 = vcombine.high %v9207_v1, %v9211_v51  ;;  %v9259_v46 = vld [vmem:[#allocation7 + $0x1ef0] sm:$0xff] }
 0x709   : > { %12290 = vmatpush1.bf16.msra.mxu0 %v18021_v54  ;;  %v9220_v54 = vld [vmem:[#allocation7 + $0x1db8] sm:$0xff] }
 0x70a   : > { %12454 = vmatpush1.bf16.msra.mxu1 %v18023_v57  ;;  %12291 = vmatprep.subr.bf16.mxu0 %v18030_v3  ;;  %v18085_v57 = vcombine.low %v9207_v1, %v9211_v51  ;;  %v18087_v3 = vcombine.low %v9208_v52, %v9212_v39  ;;  %v18096_v53 = vcombine.high %v9216_v19, %v9220_v54  ;;  %v9263_v51 = vld [vmem:[#allocation7 + $0x1f10] sm:$0xff]  ;;  %v9264_v39 = vld [vmem:[#allocation7 + $0x1f18] sm:$0xff] }
 0x70b   : > { %12455 = vmatprep.subr.bf16.mxu1 %v18032_v31  ;;  %v18094_v31 = vcombine.high %v9215_v60, %v9219_v2  ;;  %v9267_v52 = vld [vmem:[#allocation7 + $0x1f30] sm:$0xff] }
 0x70c   : > { %v9271_v2 = vld [vmem:[#allocation7 + $0x1f50] sm:$0xff] }
 0x70d   : > { %12292 = vmatpush1.bf16.msra.mxu0 %v18029_v24  ;;  %v9227_v24 = vld [vmem:[#allocation7 + $0x1df0] sm:$0xff] }
 0x70e   : > { %12456 = vmatpush1.bf16.msra.mxu1 %v18031_v9  ;;  %12293 = vmatprep.subr.bf16.mxu0 %v18038_v36 }
 0x70f   : > { %12457 = vmatprep.subr.bf16.mxu1 %v18040_v15  ;;  %v9224_v15 = vld [vmem:[#allocation7 + $0x1dd8] sm:$0xff] }
 0x710   : > { %v18104_v18 = vcombine.high %v9224_v15, %v9228_v22 }
 0x711   : > { %12294 = vmatpush1.bf16.msra.mxu0 %v18037_v12 }
 0x712   : > { %12458 = vmatpush1.bf16.msra.mxu1 %v18039_v32  ;;  %12304 = vmatprep.subr.bf16.mxu0 %v18046_v17  ;;  %v18095_v17 = vcombine.low %v9216_v19, %v9220_v54  ;;  %v9275_v19 = vld [vmem:[#allocation7 + $0x1f70] sm:$0xff]  ;;  %v9272_v54 = vld [vmem:[#allocation7 + $0x1f58] sm:$0xff] }
 0x713   : > { %12468 = vmatprep.subr.bf16.mxu1 %v18048_v27  ;;  %v18102_v27 = vcombine.high %v9223_v8, %v9227_v24 }
 0x714   : > { %12296 = vmatmul.mubr.bf16.vlgmr.msra.gmra.mrb[20].mxu0 %v19626_v13 }
 0x715   : > { %12460 = vmatmul.mubr.bf16.vlgmr.msra.gmra.mrb[20].mxu1 %v19626_v13  ;;  %12305 = vmatpush1.bf16.msra.mxu0 %v18045_v20  ;;  %v18063_v13 = vcombine.low %v9184_v58, %v9188_v34  ;;  %v9235_v20 = vld [vmem:[#allocation7 + $0x1e30] sm:$0xff]  ;;  %v9240_v34 = vld [vmem:[#allocation7 + $0x1e58] sm:$0xff] }
 0x716   : > { %12336 = vmatprep.mubr.bf16.mxu0 %v19630_v25  ;;  %12469 = vmatpush1.bf16.msra.mxu1 %v18047_v7  ;;  %v18101_v7 = vcombine.low %v9223_v8, %v9227_v24  ;;  %v18110_v29 = vcombine.high %v9231_v41, %v9235_v20  ;;  %v9243_v58 = vld [vmem:[#allocation7 + $0x1e70] sm:$0xff] }
 0x717   : > { %12500 = vmatprep.mubr.bf16.mxu1 %v19630_v25  ;;  %12306 = vmatprep.subr.bf16.mxu0 %v18054_v28  ;;  %v18069_v25 = vcombine.low %v9191_v38, %v9195_v6  ;;  %v18103_v28 = vcombine.low %v9224_v15, %v9228_v22  ;;  %v9247_v6 = vld [vmem:[#allocation7 + $0x1e90] sm:$0xff]  ;;  %v9280_v22 = vld [vmem:[#allocation7 + $0x1f98] sm:$0xff] }
 0x718   : > { %12470 = vmatprep.subr.bf16.mxu1 %v18056_v33  ;;  %v9239_v33 = vld [vmem:[#allocation7 + $0x1e50] sm:$0xff] }
 0x719   : > { %12307 = vmatpush1.bf16.msra.mxu0 %v18053_v10  ;;  %v9244_v10 = vld [vmem:[#allocation7 + $0x1e78] sm:$0xff]  ;;  %v9279_v24 = vld [vmem:[#allocation7 + $0x1f90] sm:$0xff] }
 0x71a   : > { %12471 = vmatpush1.bf16.msra.mxu1 %v18055_v35  ;;  %12308 = vmatprep.subr.bf16.mxu0 %v18062_v37  ;;  %v18109_v35 = vcombine.low %v9231_v41, %v9235_v20  ;;  %v18111_v37 = vcombine.low %v9232_v21, %v9236_v23  ;;  %v18120_v38 = vcombine.high %v9240_v34, %v9244_v10  ;;  %v9283_v15 = vld [vmem:[#allocation7 + $0x1fb0] sm:$0xff]  ;;  %v9292_v41 = vld [vmem:[#allocation7 + $0x1ff8] sm:$0xff] }
 0x71b   : > { %12472 = vmatprep.subr.bf16.mxu1 %v18064_v16  ;;  %v18118_v16 = vcombine.high %v9239_v33, %v9243_v58  ;;  %v18157_v20 = vcombine.low %v9279_v24, %v9283_v15 }
 0x71d   : > { %12309 = vmatpush1.bf16.msra.mxu0 %v18061_v43  ;;  %v9252_v43 = vld [vmem:[#allocation7 + $0x1eb8] sm:$0xff] }
 0x71e   : > { %12473 = vmatpush1.bf16.msra.mxu1 %v18063_v13  ;;  %12310 = vmatprep.subr.bf16.mxu0 %v18070_v44  ;;  %v18117_v13 = vcombine.low %v9239_v33, %v9243_v58  ;;  %v18119_v44 = vcombine.low %v9240_v34, %v9244_v10  ;;  %v18128_v45 = vcombine.high %v9248_v42, %v9252_v43  ;;  %v12531_v33 = vld [vmem:[#allocation7 + $0x2028] sm:$0xff] }
 0x71f   : > { %12474 = vmatprep.subr.bf16.mxu1 %v18072_v26  ;;  %v18126_v26 = vcombine.high %v9247_v6, %v9251_v40 }
 0x721   : > { %12311 = vmatpush1.bf16.msra.mxu0 %v18069_v25  ;;  %v9260_v25 = vld [vmem:[#allocation7 + $0x1ef8] sm:$0xff] }
 0x722   : > { %12475 = vmatpush1.bf16.msra.mxu1 %v18071_v48  ;;  %12312 = vmatprep.subr.bf16.mxu0 %v18078_v49  ;;  %v18125_v48 = vcombine.low %v9247_v6, %v9251_v40  ;;  %v18127_v49 = vcombine.low %v9248_v42, %v9252_v43  ;;  %v18136_v1 = vcombine.high %v9256_v47, %v9260_v25  ;;  %v12535_v40 = vld [vmem:[#allocation7 + $0x2048] sm:$0xff] }
 0x723   : > { %12476 = vmatprep.subr.bf16.mxu1 %v18080_v50  ;;  %v18134_v50 = vcombine.high %v9255_v30, %v9259_v46  ;;  %v12539_v42 = vld [vmem:[#allocation7 + $0x2068] sm:$0xff] }
 0x725   : > { %12313 = vmatpush1.bf16.msra.mxu0 %v18077_v55  ;;  %v9268_v55 = vld [vmem:[#allocation7 + $0x1f38] sm:$0xff] }
 0x726   : > { %12477 = vmatpush1.bf16.msra.mxu1 %v18079_v56  ;;  %12314 = vmatprep.subr.bf16.mxu0 %v18086_v62  ;;  %v18133_v56 = vcombine.low %v9255_v30, %v9259_v46  ;;  %v18135_v62 = vcombine.low %v9256_v47, %v9260_v25  ;;  %v18144_v60 = vcombine.high %v9264_v39, %v9268_v55  ;;  %v12543_v46 = vld [vmem:[#allocation7 + $0x2088] sm:$0xff] }
 0x727   : > { %v19655_v5 = vpop.f32.mrb[16].mxu0  ;;  %v19657_v4 = vpop.f32.mrb[16].mxu1  ;;  %12478 = vmatprep.subr.bf16.mxu1 %v18088_v63  ;;  %v18142_v63 = vcombine.high %v9263_v51, %v9267_v52  ;;  %v18180_v30 = vcombine.high %v12535_v40, %v12539_v42  ;;  %v18179_v25 = vcombine.low %v12535_v40, %v12539_v42  ;;  %v12598_v42 = vld [vmem:[#allocation7 + $0x2240] sm:$0xff] }
 0x728   : > { %v19659_v9 = vpop.f32.mrb[17].mxu0  ;;  %v19661_v36 = vpop.f32.mrb[17].mxu1 }
 0x729   : > { %v12014_v0 = vpop.f32.mrb[18].mxu0  ;;  %v12178_v11 = vpop.f32.mrb[18].mxu1  ;;  %12315 = vmatpush1.bf16.msra.mxu0 %v18085_v57  ;;  %v9276_v57 = vld [vmem:[#allocation7 + $0x1f78] sm:$0xff] }
 0x72a   : > { %12479 = vmatpush1.bf16.msra.mxu1 %v18087_v3  ;;  %v12015_v12 = vpop.f32.mrb[19].mxu0  ;;  %v12179_v32 = vpop.f32.mrb[19].mxu1  ;;  %12316 = vmatprep.subr.bf16.mxu0 %v18094_v31  ;;  %v18141_v3 = vcombine.low %v9263_v51, %v9267_v52  ;;  %v18143_v31 = vcombine.low %v9264_v39, %v9268_v55  ;;  %v18152_v8 = vcombine.high %v9272_v54, %v9276_v57  ;;  %v9284_v0 = vld [vmem:[#allocation7 + $0x1fb8] sm:$0xff]  ;;  %v12551_v51 = vld [vmem:[#allocation7 + $0x20c8] sm:$0xff] }
 0x72b   : > { %12480 = vmatprep.subr.bf16.mxu1 %v18096_v53  ;;  %v18150_v53 = vcombine.high %v9271_v2, %v9275_v19  ;;  %v18149_v11 = vcombine.low %v9271_v2, %v9275_v19  ;;  %v18158_v12 = vcombine.high %v9279_v24, %v9283_v15  ;;  %v18160_v32 = vcombine.high %v9280_v22, %v9284_v0  ;;  %v12555_v52 = vld [vmem:[#allocation7 + $0x20e8] sm:$0xff] }
 0x72c   : > { %v18159_v21 = vcombine.low %v9280_v22, %v9284_v0  ;;  %v12563_v2 = vld [vmem:[#allocation7 + $0x2128] sm:$0xff] }
 0x72d   : > { %12317 = vmatpush1.bf16.msra.mxu0 %v18093_v14  ;;  %v18151_v14 = vcombine.low %v9272_v54, %v9276_v57  ;;  %v18195_v54 = vcombine.low %v12551_v51, %v12555_v52  ;;  %v12571_v24 = vld [vmem:[#allocation7 + $0x2168] sm:$0xff] }
 0x72e   : > { %12481 = vmatpush1.bf16.msra.mxu1 %v18095_v17  ;;  %12318 = vmatprep.subr.bf16.mxu0 %v18102_v27  ;;  %v9287_v17 = vld [vmem:[#allocation7 + $0x1fd0] sm:$0xff] }
 0x72f   : > { %12482 = vmatprep.subr.bf16.mxu1 %v18104_v18  ;;  %v9291_v27 = vld [vmem:[#allocation7 + $0x1ff0] sm:$0xff]  ;;  %v9288_v18 = vld [vmem:[#allocation7 + $0x1fd8] sm:$0xff] }
 0x730   : > { %v18166_v23 = vcombine.high %v9287_v17, %v9291_v27  ;;  %v18165_v58 = vcombine.low %v9287_v17, %v9291_v27  ;;  %v18167_v34 = vcombine.low %v9288_v18, %v9292_v41  ;;  %v12579_v17 = vld [vmem:[#allocation7 + $0x21a8] sm:$0xff] }
 0x731   : > { %12319 = vmatpush1.bf16.msra.mxu0 %v18101_v7  ;;  %v18168_v7 = vcombine.high %v9288_v18, %v9292_v41 }
 0x732   : > { %12483 = vmatpush1.bf16.msra.mxu1 %v18103_v28  ;;  %12320 = vmatprep.subr.bf16.mxu0 %v18110_v29  ;;  %v12526_v28 = vld [vmem:[#allocation7 + $0x2000] sm:$0xff] }
 0x733   : > { %12484 = vmatprep.subr.bf16.mxu1 %v18112_v61  ;;  %v12530_v29 = vld [vmem:[#allocation7 + $0x2020] sm:$0xff]  ;;  %v12527_v61 = vld [vmem:[#allocation7 + $0x2008] sm:$0xff] }
 0x734   : > { %v18170_v10 = vcombine.high %v12526_v28, %v12530_v29  ;;  %v18169_v6 = vcombine.low %v12526_v28, %v12530_v29  ;;  %v18171_v43 = vcombine.low %v12527_v61, %v12531_v33  ;;  %v12587_v28 = vld [vmem:[#allocation7 + $0x21e8] sm:$0xff] }
 0x735   : > { %12321 = vmatpush1.bf16.msra.mxu0 %v18109_v35  ;;  %v18172_v35 = vcombine.high %v12527_v61, %v12531_v33 }
 0x736   : > { %12485 = vmatpush1.bf16.msra.mxu1 %v18111_v37  ;;  %12322 = vmatprep.subr.bf16.mxu0 %v18118_v16  ;;  %v12510_v37 = vmax.f32 %v19659_v9, 0.0  ;;  %v12534_v16 = vld [vmem:[#allocation7 + $0x2040] sm:$0xff]  ;;  %v12547_v9 = vld [vmem:[#allocation7 + $0x20a8] sm:$0xff] }
 0x737   : > { %12486 = vmatprep.subr.bf16.mxu1 %v18120_v38  ;;  %v12538_v38 = vld [vmem:[#allocation7 + $0x2060] sm:$0xff] }
 0x738   : > { %v18177_v47 = vcombine.low %v12534_v16, %v12538_v38 }
 0x739   : > { %12323 = vmatpush1.bf16.msra.mxu0 %v18117_v13  ;;  %v18178_v13 = vcombine.high %v12534_v16, %v12538_v38 }
 0x73a   : > { %12487 = vmatpush1.bf16.msra.mxu1 %v18119_v44  ;;  %12324 = vmatprep.subr.bf16.mxu0 %v18126_v26  ;;  %v12542_v44 = vld [vmem:[#allocation7 + $0x2080] sm:$0xff] }
 0x73b   : > { %12488 = vmatprep.subr.bf16.mxu1 %v18128_v45  ;;  %v12546_v26 = vld [vmem:[#allocation7 + $0x20a0] sm:$0xff]  ;;  %v19664_v45 = vpack.c.bf16 %v12510_v37, %v12510_v37  ;;  %v12595_v37 = vld [vmem:[#allocation7 + $0x2228] sm:$0xff] }
 0x73c   : > { %v18185_v39 = vcombine.low %v12542_v44, %v12546_v26 }
 0x73d   : > { %12325 = vmatpush1.bf16.msra.mxu0 %v18125_v48  ;;  %v18186_v48 = vcombine.high %v12542_v44, %v12546_v26  ;;  %v12603_v44 = vld [vmem:[#allocation7 + $0x2268] sm:$0xff] }
 0x73e   : > { %12489 = vmatpush1.bf16.msra.mxu1 %v18127_v49  ;;  %12326 = vmatprep.subr.bf16.mxu0 %v18134_v50  ;;  %v18188_v49 = vcombine.high %v12543_v46, %v12547_v9  ;;  %v12550_v50 = vld [vmem:[#allocation7 + $0x20c0] sm:$0xff] }
 0x73f   : > { %12490 = vmatprep.subr.bf16.mxu1 %v18136_v1  ;;  %v12554_v1 = vld [vmem:[#allocation7 + $0x20e0] sm:$0xff] }
 0x740   : > { %v18194_v55 = vcombine.high %v12550_v50, %v12554_v1  ;;  %v18193_v19 = vcombine.low %v12550_v50, %v12554_v1 }
 0x741   : > { %12327 = vmatpush1.bf16.msra.mxu0 %v18133_v56  ;;  %v18196_v56 = vcombine.high %v12551_v51, %v12555_v52 }
 0x742   : > { %12491 = vmatpush1.bf16.msra.mxu1 %v18135_v62  ;;  %12328 = vmatprep.subr.bf16.mxu0 %v18142_v63  ;;  %v12558_v62 = vld [vmem:[#allocation7 + $0x2100] sm:$0xff] }
 0x743   : > { %12492 = vmatprep.subr.bf16.mxu1 %v18144_v60  ;;  %v12562_v63 = vld [vmem:[#allocation7 + $0x2120] sm:$0xff]  ;;  %v12559_v60 = vld [vmem:[#allocation7 + $0x2108] sm:$0xff] }
 0x744   : > { %v18202_v57 = vcombine.high %v12558_v62, %v12562_v63  ;;  %v18201_v15 = vcombine.low %v12558_v62, %v12562_v63  ;;  %v18203_v22 = vcombine.low %v12559_v60, %v12563_v2 }
 0x745   : > { %12329 = vmatpush1.bf16.msra.mxu0 %v18141_v3  ;;  %v18204_v3 = vcombine.high %v12559_v60, %v12563_v2 }
 0x746   : > { %12493 = vmatpush1.bf16.msra.mxu1 %v18143_v31  ;;  %12330 = vmatprep.subr.bf16.mxu0 %v18150_v53  ;;  %v12566_v31 = vld [vmem:[#allocation7 + $0x2140] sm:$0xff] }
 0x747   : > { %12494 = vmatprep.subr.bf16.mxu1 %v18152_v8  ;;  %v12570_v53 = vld [vmem:[#allocation7 + $0x2160] sm:$0xff]  ;;  %v12567_v8 = vld [vmem:[#allocation7 + $0x2148] sm:$0xff] }
 0x748   : > { %v18210_v0 = vcombine.high %v12566_v31, %v12570_v53  ;;  %v18209_v27 = vcombine.low %v12566_v31, %v12570_v53  ;;  %v18211_v18 = vcombine.low %v12567_v8, %v12571_v24 }
 0x749   : > { %12331 = vmatpush1.bf16.msra.mxu0 %v18149_v11  ;;  %v18212_v11 = vcombine.high %v12567_v8, %v12571_v24 }
 0x74a   : > { %12495 = vmatpush1.bf16.msra.mxu1 %v18151_v14  ;;  %12332 = vmatprep.subr.bf16.mxu0 %v18158_v12  ;;  %v12574_v14 = vld [vmem:[#allocation7 + $0x2180] sm:$0xff] }
 0x74b   : > { %12496 = vmatprep.subr.bf16.mxu1 %v18160_v32  ;;  %v12578_v12 = vld [vmem:[#allocation7 + $0x21a0] sm:$0xff]  ;;  %v12575_v32 = vld [vmem:[#allocation7 + $0x2188] sm:$0xff] }
 0x74c   : > { %v18218_v41 = vcombine.high %v12574_v14, %v12578_v12  ;;  %v18217_v29 = vcombine.low %v12574_v14, %v12578_v12  ;;  %v18219_v61 = vcombine.low %v12575_v32, %v12579_v17 }
 0x74d   : > { %12333 = vmatpush1.bf16.msra.mxu0 %v18157_v20  ;;  %v18220_v20 = vcombine.high %v12575_v32, %v12579_v17 }
 0x74e   : > { %12497 = vmatpush1.bf16.msra.mxu1 %v18159_v21  ;;  %12334 = vmatprep.subr.bf16.mxu0 %v18166_v23  ;;  %v12582_v21 = vld [vmem:[#allocation7 + $0x21c0] sm:$0xff] }
 0x74f   : > { %12498 = vmatprep.subr.bf16.mxu1 %v18168_v7  ;;  %v12586_v23 = vld [vmem:[#allocation7 + $0x21e0] sm:$0xff]  ;;  %v12583_v7 = vld [vmem:[#allocation7 + $0x21c8] sm:$0xff] }
 0x750   : > { %v18226_v33 = vcombine.high %v12582_v21, %v12586_v23  ;;  %v18225_v16 = vcombine.low %v12582_v21, %v12586_v23  ;;  %v18227_v38 = vcombine.low %v12583_v7, %v12587_v28 }
 0x751   : > { %12335 = vmatpush1.bf16.msra.mxu0 %v18165_v58  ;;  %v18228_v58 = vcombine.high %v12583_v7, %v12587_v28 }
 0x752   : > { %12499 = vmatpush1.bf16.msra.mxu1 %v18167_v34  ;;  %15598 = vmatprep.subr.bf16.mxu0 %v18170_v10  ;;  %v12590_v34 = vld [vmem:[#allocation7 + $0x2200] sm:$0xff] }
 0x753   : > { %15762 = vmatprep.subr.bf16.mxu1 %v18172_v35  ;;  %v12594_v10 = vld [vmem:[#allocation7 + $0x2220] sm:$0xff]  ;;  %v12591_v35 = vld [vmem:[#allocation7 + $0x2208] sm:$0xff] }
 0x754   : > { %12337 = vmatmul.mubr.bf16.vlgmr.msra.gmra.mrb[20].mxu0 %v19637_v59  ;;  %v18236_v40 = vcombine.high %v12591_v35, %v12595_v37  ;;  %v18233_v26 = vcombine.low %v12590_v34, %v12594_v10 }
 0x755   : > { %12501 = vmatmul.mubr.bf16.vlgmr.msra.gmra.mrb[20].mxu1 %v19637_v59  ;;  %15599 = vmatpush1.bf16.msra.mxu0 %v18169_v6  ;;  %v18187_v59 = vcombine.low %v12543_v46, %v12547_v9  ;;  %v18234_v6 = vcombine.high %v12590_v34, %v12594_v10 }
 0x756   : > { %15630 = vmatprep.mubr.bf16.mxu0 %v19664_v45  ;;  %15763 = vmatpush1.bf16.msra.mxu1 %v18171_v43  ;;  %v12602_v43 = vld [vmem:[#allocation7 + $0x2260] sm:$0xff] }
 0x757   : > { %15794 = vmatprep.mubr.bf16.mxu1 %v19664_v45  ;;  %15600 = vmatprep.subr.bf16.mxu0 %v18178_v13  ;;  %v12599_v13 = vld [vmem:[#allocation7 + $0x2248] sm:$0xff]  ;;  %v18242_v46 = vcombine.high %v12598_v42, %v12602_v43  ;;  %v18241_v50 = vcombine.low %v12598_v42, %v12602_v43  ;;  %v12509_v43 = vmax.f32 %v19655_v5, 0.0 }
 0x758   : > { %15764 = vmatprep.subr.bf16.mxu1 %v18180_v30  ;;  %v18235_v30 = vcombine.low %v12591_v35, %v12595_v37  ;;  %v18244_v9 = vcombine.high %v12599_v13, %v12603_v44  ;;  %v18243_v1 = vcombine.low %v12599_v13, %v12603_v44 }
 0x759   : > { %15601 = vmatpush1.bf16.msra.mxu0 %v18177_v47  ;;  %v12606_v47 = vld [vmem:[#allocation7 + $0x2280] sm:$0xff] }
 0x75a   : > { %15765 = vmatpush1.bf16.msra.mxu1 %v18179_v25  ;;  %15602 = vmatprep.subr.bf16.mxu0 %v18186_v48  ;;  %v12610_v25 = vld [vmem:[#allocation7 + $0x22a0] sm:$0xff]  ;;  %v12607_v48 = vld [vmem:[#allocation7 + $0x2288] sm:$0xff] }
 0x75b   : > { %15766 = vmatprep.subr.bf16.mxu1 %v18188_v49  ;;  %v12611_v49 = vld [vmem:[#allocation7 + $0x22a8] sm:$0xff]  ;;  %v18250_v51 = vcombine.high %v12606_v47, %v12610_v25  ;;  %v18249_v62 = vcombine.low %v12606_v47, %v12610_v25 }
 0x75c   : > { %v18252_v52 = vcombine.high %v12607_v48, %v12611_v49  ;;  %v18251_v63 = vcombine.low %v12607_v48, %v12611_v49  ;;  %v12663_v25 = vld [vmem:[#allocation7 + $0x2448] sm:$0xff]  ;;  %v19672_v49 = vpack.c.bf16 %v12509_v43, %v12509_v43 }
 0x75d   : > { %15603 = vmatpush1.bf16.msra.mxu0 %v18185_v39  ;;  %v12614_v39 = vld [vmem:[#allocation7 + $0x22c0] sm:$0xff]  ;;  %v12667_v48 = vld [vmem:[#allocation7 + $0x2468] sm:$0xff] }
 0x75e   : > { %15767 = vmatpush1.bf16.msra.mxu1 %v18187_v59  ;;  %15604 = vmatprep.subr.bf16.mxu0 %v18194_v55  ;;  %v12618_v59 = vld [vmem:[#allocation7 + $0x22e0] sm:$0xff]  ;;  %v12615_v55 = vld [vmem:[#allocation7 + $0x22c8] sm:$0xff] }
 0x75f   : > { %15768 = vmatprep.subr.bf16.mxu1 %v18196_v56  ;;  %v12619_v56 = vld [vmem:[#allocation7 + $0x22e8] sm:$0xff]  ;;  %v18258_v60 = vcombine.high %v12614_v39, %v12618_v59  ;;  %v18257_v31 = vcombine.low %v12614_v39, %v12618_v59 }
 0x760   : > { %v18260_v2 = vcombine.high %v12615_v55, %v12619_v56  ;;  %v18259_v53 = vcombine.low %v12615_v55, %v12619_v56  ;;  %v12671_v39 = vld [vmem:[#allocation7 + $0x2488] sm:$0xff]  ;;  %v18307_v56 = vcombine.low %v12663_v25, %v12667_v48 }
 0x761   : > { %15605 = vmatpush1.bf16.msra.mxu0 %v18193_v19  ;;  %v12622_v19 = vld [vmem:[#allocation7 + $0x2300] sm:$0xff]  ;;  %v12675_v59 = vld [vmem:[#allocation7 + $0x24a8] sm:$0xff] }
 0x762   : > { %15769 = vmatpush1.bf16.msra.mxu1 %v18195_v54  ;;  %15606 = vmatprep.subr.bf16.mxu0 %v18202_v57  ;;  %v12626_v54 = vld [vmem:[#allocation7 + $0x2320] sm:$0xff]  ;;  %v12623_v57 = vld [vmem:[#allocation7 + $0x2308] sm:$0xff] }
 0x763   : > { %15770 = vmatprep.subr.bf16.mxu1 %v18204_v3  ;;  %v12627_v3 = vld [vmem:[#allocation7 + $0x2328] sm:$0xff]  ;;  %v18266_v8 = vcombine.high %v12622_v19, %v12626_v54  ;;  %v18265_v14 = vcombine.low %v12622_v19, %v12626_v54 }
 0x764   : > { %v18268_v24 = vcombine.high %v12623_v57, %v12627_v3  ;;  %v18267_v12 = vcombine.low %v12623_v57, %v12627_v3  ;;  %v12679_v19 = vld [vmem:[#allocation7 + $0x24c8] sm:$0xff]  ;;  %v18315_v3 = vcombine.low %v12671_v39, %v12675_v59 }
 0x765   : > { %15607 = vmatpush1.bf16.msra.mxu0 %v18201_v15  ;;  %v12630_v15 = vld [vmem:[#allocation7 + $0x2340] sm:$0xff]  ;;  %v12683_v54 = vld [vmem:[#allocation7 + $0x24e8] sm:$0xff] }
 0x766   : > { %15771 = vmatpush1.bf16.msra.mxu1 %v18203_v22  ;;  %15608 = vmatprep.subr.bf16.mxu0 %v18210_v0  ;;  %v12634_v22 = vld [vmem:[#allocation7 + $0x2360] sm:$0xff]  ;;  %v12631_v0 = vld [vmem:[#allocation7 + $0x2348] sm:$0xff] }
 0x767   : > { %15772 = vmatprep.subr.bf16.mxu1 %v18212_v11  ;;  %v12635_v11 = vld [vmem:[#allocation7 + $0x2368] sm:$0xff]  ;;  %v18274_v32 = vcombine.high %v12630_v15, %v12634_v22  ;;  %v18273_v21 = vcombine.low %v12630_v15, %v12634_v22 }
 0x768   : > { %v18276_v17 = vcombine.high %v12631_v0, %v12635_v11  ;;  %v18275_v23 = vcombine.low %v12631_v0, %v12635_v11  ;;  %v12687_v15 = vld [vmem:[#allocation7 + $0x2508] sm:$0xff]  ;;  %v18323_v11 = vcombine.low %v12679_v19, %v12683_v54 }
 0x769   : > { %15609 = vmatpush1.bf16.msra.mxu0 %v18209_v27  ;;  %v12638_v27 = vld [vmem:[#allocation7 + $0x2380] sm:$0xff]  ;;  %v12691_v22 = vld [vmem:[#allocation7 + $0x2528] sm:$0xff] }
 0x76a   : > { %15773 = vmatpush1.bf16.msra.mxu1 %v18211_v18  ;;  %15610 = vmatprep.subr.bf16.mxu0 %v18218_v41  ;;  %v12642_v18 = vld [vmem:[#allocation7 + $0x23a0] sm:$0xff]  ;;  %v12639_v41 = vld [vmem:[#allocation7 + $0x2388] sm:$0xff] }
 0x76b   : > { %15774 = vmatprep.subr.bf16.mxu1 %v18220_v20  ;;  %v12643_v20 = vld [vmem:[#allocation7 + $0x23a8] sm:$0xff]  ;;  %v18282_v7 = vcombine.high %v12638_v27, %v12642_v18  ;;  %v18281_v34 = vcombine.low %v12638_v27, %v12642_v18 }
 0x76c   : > { %v18284_v28 = vcombine.high %v12639_v41, %v12643_v20  ;;  %v18283_v10 = vcombine.low %v12639_v41, %v12643_v20  ;;  %v12695_v27 = vld [vmem:[#allocation7 + $0x2548] sm:$0xff]  ;;  %v18331_v20 = vcombine.low %v12687_v15, %v12691_v22 }
 0x76d   : > { %15611 = vmatpush1.bf16.msra.mxu0 %v18217_v29  ;;  %v12646_v29 = vld [vmem:[#allocation7 + $0x23c0] sm:$0xff]  ;;  %v12699_v18 = vld [vmem:[#allocation7 + $0x2568] sm:$0xff] }
 0x76e   : > { %15775 = vmatpush1.bf16.msra.mxu1 %v18219_v61  ;;  %15612 = vmatprep.subr.bf16.mxu0 %v18226_v33  ;;  %v12650_v61 = vld [vmem:[#allocation7 + $0x23e0] sm:$0xff]  ;;  %v12647_v33 = vld [vmem:[#allocation7 + $0x23c8] sm:$0xff] }
 0x76f   : > { %15776 = vmatprep.subr.bf16.mxu1 %v18228_v58  ;;  %v12651_v58 = vld [vmem:[#allocation7 + $0x23e8] sm:$0xff]  ;;  %v18290_v35 = vcombine.high %v12646_v29, %v12650_v61  ;;  %v18289_v42 = vcombine.low %v12646_v29, %v12650_v61 }
 0x770   : > { %v18292_v37 = vcombine.high %v12647_v33, %v12651_v58  ;;  %v18291_v13 = vcombine.low %v12647_v33, %v12651_v58  ;;  %v12703_v29 = vld [vmem:[#allocation7 + $0x2588] sm:$0xff]  ;;  %v18339_v58 = vcombine.low %v12695_v27, %v12699_v18 }
 0x771   : > { %15613 = vmatpush1.bf16.msra.mxu0 %v18225_v16  ;;  %v12654_v16 = vld [vmem:[#allocation7 + $0x2400] sm:$0xff]  ;;  %v12707_v61 = vld [vmem:[#allocation7 + $0x25a8] sm:$0xff] }
 0x772   : > { %15777 = vmatpush1.bf16.msra.mxu1 %v18227_v38  ;;  %15614 = vmatprep.subr.bf16.mxu0 %v18234_v6  ;;  %v12658_v38 = vld [vmem:[#allocation7 + $0x2420] sm:$0xff]  ;;  %v12655_v6 = vld [vmem:[#allocation7 + $0x2408] sm:$0xff] }
 0x773   : > { %15778 = vmatprep.subr.bf16.mxu1 %v18236_v40  ;;  %v12659_v40 = vld [vmem:[#allocation7 + $0x2428] sm:$0xff]  ;;  %v18298_v44 = vcombine.high %v12654_v16, %v12658_v38  ;;  %v18297_v47 = vcombine.low %v12654_v16, %v12658_v38 }
 0x774   : > { %v12711_v16 = vld [vmem:[#allocation7 + $0x25c8] sm:$0xff] }
 0x775   : > { %15615 = vmatpush1.bf16.msra.mxu0 %v18233_v26  ;;  %v18300_v26 = vcombine.high %v12655_v6, %v12659_v40  ;;  %v12715_v38 = vld [vmem:[#allocation7 + $0x25e8] sm:$0xff] }
 0x776   : > { %15779 = vmatpush1.bf16.msra.mxu1 %v18235_v30  ;;  %15616 = vmatprep.subr.bf16.mxu0 %v18242_v46  ;;  %v12512_v30 = vmax.f32 %v19661_v36, 0.0  ;;  %v12662_v46 = vld [vmem:[#allocation7 + $0x2440] sm:$0xff]  ;;  %v18308_v36 = vcombine.high %v12663_v25, %v12667_v48  ;;  %v18356_v43 = vcombine.high %v12711_v16, %v12715_v38 }
 0x777   : > { %15780 = vmatprep.subr.bf16.mxu1 %v18244_v9  ;;  %v12666_v9 = vld [vmem:[#allocation7 + $0x2460] sm:$0xff] }
 0x778   : > { %v18306_v5 = vcombine.high %v12662_v46, %v12666_v9  ;;  %v18305_v55 = vcombine.low %v12662_v46, %v12666_v9  ;;  %v18355_v9 = vcombine.low %v12711_v16, %v12715_v38  ;;  %v12726_v48 = vld [vmem:[#allocation7 + $0x2640] sm:$0xff] }
 0x779   : > { %15617 = vmatpush1.bf16.msra.mxu0 %v18241_v50  ;;  %v18299_v50 = vcombine.low %v12655_v6, %v12659_v40  ;;  %v18347_v40 = vcombine.low %v12703_v29, %v12707_v61 }
 0x77a   : > { %15781 = vmatpush1.bf16.msra.mxu1 %v18243_v1  ;;  %15618 = vmatprep.subr.bf16.mxu0 %v18250_v51  ;;  %v12670_v1 = vld [vmem:[#allocation7 + $0x2480] sm:$0xff] }
 0x77b   : > { %15782 = vmatprep.subr.bf16.mxu1 %v18252_v52  ;;  %v12674_v51 = vld [vmem:[#allocation7 + $0x24a0] sm:$0xff]  ;;  %v19674_v52 = vpack.c.bf16 %v12512_v30, %v12512_v30  ;;  %v12723_v30 = vld [vmem:[#allocation7 + $0x2628] sm:$0xff] }
 0x77c   : > { %v18313_v57 = vcombine.low %v12670_v1, %v12674_v51 }
 0x77d   : > { %15619 = vmatpush1.bf16.msra.mxu0 %v18249_v62  ;;  %v18314_v62 = vcombine.high %v12670_v1, %v12674_v51  ;;  %v12731_v1 = vld [vmem:[#allocation7 + $0x2668] sm:$0xff] }
 0x77e   : > { %15783 = vmatpush1.bf16.msra.mxu1 %v18251_v63  ;;  %15620 = vmatprep.subr.bf16.mxu0 %v18258_v60  ;;  %v18316_v63 = vcombine.high %v12671_v39, %v12675_v59  ;;  %v12678_v60 = vld [vmem:[#allocation7 + $0x24c0] sm:$0xff] }
 0x77f   : > { %15784 = vmatprep.subr.bf16.mxu1 %v18260_v2  ;;  %v12682_v2 = vld [vmem:[#allocation7 + $0x24e0] sm:$0xff] }
 0x780   : > { %v18321_v0 = vcombine.low %v12678_v60, %v12682_v2 }
 0x781   : > { %15621 = vmatpush1.bf16.msra.mxu0 %v18257_v31  ;;  %v18322_v31 = vcombine.high %v12678_v60, %v12682_v2 }
 0x782   : > { %15785 = vmatpush1.bf16.msra.mxu1 %v18259_v53  ;;  %15622 = vmatprep.subr.bf16.mxu0 %v18266_v8  ;;  %v18324_v53 = vcombine.high %v12679_v19, %v12683_v54  ;;  %v12686_v8 = vld [vmem:[#allocation7 + $0x2500] sm:$0xff] }
 0x783   : > { %15786 = vmatprep.subr.bf16.mxu1 %v18268_v24  ;;  %v12690_v24 = vld [vmem:[#allocation7 + $0x2520] sm:$0xff] }
 0x784   : > { %v18329_v41 = vcombine.low %v12686_v8, %v12690_v24 }
 0x785   : > { %15623 = vmatpush1.bf16.msra.mxu0 %v18265_v14  ;;  %v18330_v14 = vcombine.high %v12686_v8, %v12690_v24 }
 0x786   : > { %15787 = vmatpush1.bf16.msra.mxu1 %v18267_v12  ;;  %15624 = vmatprep.subr.bf16.mxu0 %v18274_v32  ;;  %v18332_v12 = vcombine.high %v12687_v15, %v12691_v22  ;;  %v12694_v32 = vld [vmem:[#allocation7 + $0x2540] sm:$0xff] }
 0x787   : > { %15788 = vmatprep.subr.bf16.mxu1 %v18276_v17  ;;  %v12698_v17 = vld [vmem:[#allocation7 + $0x2560] sm:$0xff] }
 0x788   : > { %v18337_v33 = vcombine.low %v12694_v32, %v12698_v17 }
 0x789   : > { %15625 = vmatpush1.bf16.msra.mxu0 %v18273_v21  ;;  %v18338_v21 = vcombine.high %v12694_v32, %v12698_v17 }
 0x78a   : > { %15789 = vmatpush1.bf16.msra.mxu1 %v18275_v23  ;;  %15626 = vmatprep.subr.bf16.mxu0 %v18282_v7  ;;  %v18340_v23 = vcombine.high %v12695_v27, %v12699_v18  ;;  %v12702_v7 = vld [vmem:[#allocation7 + $0x2580] sm:$0xff] }
 0x78b   : > { %15790 = vmatprep.subr.bf16.mxu1 %v18284_v28  ;;  %v12706_v28 = vld [vmem:[#allocation7 + $0x25a0] sm:$0xff] }
 0x78c   : > { %v18345_v6 = vcombine.low %v12702_v7, %v12706_v28 }
 0x78d   : > { %15627 = vmatpush1.bf16.msra.mxu0 %v18281_v34  ;;  %v18346_v34 = vcombine.high %v12702_v7, %v12706_v28 }
 0x78e   : > { %15791 = vmatpush1.bf16.msra.mxu1 %v18283_v10  ;;  %15628 = vmatprep.subr.bf16.mxu0 %v18290_v35  ;;  %v18348_v10 = vcombine.high %v12703_v29, %v12707_v61  ;;  %v12710_v35 = vld [vmem:[#allocation7 + $0x25c0] sm:$0xff] }
 0x78f   : > { %15792 = vmatprep.subr.bf16.mxu1 %v18292_v37  ;;  %v12714_v37 = vld [vmem:[#allocation7 + $0x25e0] sm:$0xff] }
 0x790   : > { %v18353_v46 = vcombine.low %v12710_v35, %v12714_v37 }
 0x791   : > { %15629 = vmatpush1.bf16.msra.mxu0 %v18289_v42  ;;  %v18354_v42 = vcombine.high %v12710_v35, %v12714_v37 }
 0x792   : > { %15793 = vmatpush1.bf16.msra.mxu1 %v18291_v13  ;;  %15639 = vmatprep.subr.bf16.mxu0 %v18298_v44  ;;  %v12718_v13 = vld [vmem:[#allocation7 + $0x2600] sm:$0xff] }
 0x793   : > { %15803 = vmatprep.subr.bf16.mxu1 %v18300_v26  ;;  %v12722_v44 = vld [vmem:[#allocation7 + $0x2620] sm:$0xff]  ;;  %v12719_v26 = vld [vmem:[#allocation7 + $0x2608] sm:$0xff] }
 0x794   : > { %15631 = vmatmul.mubr.bf16.vlgmr.msra.gmra.mrb[24].mxu0 %v19672_v49  ;;  %v18364_v25 = vcombine.high %v12719_v26, %v12723_v30  ;;  %v18361_v51 = vcombine.low %v12718_v13, %v12722_v44 }
 0x795   : > { %15795 = vmatmul.mubr.bf16.vlgmr.msra.gmra.mrb[24].mxu1 %v19672_v49  ;;  %15640 = vmatpush1.bf16.msra.mxu0 %v18297_v47  ;;  %v18362_v47 = vcombine.high %v12718_v13, %v12722_v44 }
 0x796   : > { %15671 = vmatprep.mubr.bf16.mxu0 %v19674_v52  ;;  %15804 = vmatpush1.bf16.msra.mxu1 %v18299_v50  ;;  %v12730_v50 = vld [vmem:[#allocation7 + $0x2660] sm:$0xff] }
 0x797   : > { %15835 = vmatprep.mubr.bf16.mxu1 %v19674_v52  ;;  %15641 = vmatprep.subr.bf16.mxu0 %v18306_v5  ;;  %v12727_v5 = vld [vmem:[#allocation7 + $0x2648] sm:$0xff]  ;;  %v18370_v39 = vcombine.high %v12726_v48, %v12730_v50  ;;  %v18369_v60 = vcombine.low %v12726_v48, %v12730_v50  ;;  %v12511_v50 = vmax.f32 %v19657_v4, 0.0 }
 0x798   : > { %15805 = vmatprep.subr.bf16.mxu1 %v18308_v36  ;;  %v18363_v36 = vcombine.low %v12719_v26, %v12723_v30  ;;  %v18372_v59 = vcombine.high %v12727_v5, %v12731_v1  ;;  %v18371_v2 = vcombine.low %v12727_v5, %v12731_v1 }
 0x799   : > { %15642 = vmatpush1.bf16.msra.mxu0 %v18305_v55  ;;  %v12734_v55 = vld [vmem:[#allocation7 + $0x2680] sm:$0xff] }
 0x79a   : > { %15806 = vmatpush1.bf16.msra.mxu1 %v18307_v56  ;;  %15643 = vmatprep.subr.bf16.mxu0 %v18314_v62  ;;  %v12738_v56 = vld [vmem:[#allocation7 + $0x26a0] sm:$0xff]  ;;  %v12735_v62 = vld [vmem:[#allocation7 + $0x2688] sm:$0xff] }
 0x79b   : > { %15807 = vmatprep.subr.bf16.mxu1 %v18316_v63  ;;  %v12739_v63 = vld [vmem:[#allocation7 + $0x26a8] sm:$0xff]  ;;  %v18378_v19 = vcombine.high %v12734_v55, %v12738_v56  ;;  %v18377_v8 = vcombine.low %v12734_v55, %v12738_v56 }
 0x79c   : > { %v18380_v54 = vcombine.high %v12735_v62, %v12739_v63  ;;  %v18379_v24 = vcombine.low %v12735_v62, %v12739_v63  ;;  %v12795_v55 = vld [vmem:[#allocation7 + $0x2868] sm:$0xff]  ;;  %v19681_v62 = vpack.c.bf16 %v12511_v50, %v12511_v50  ;;  %v12846_v50 = vld [vmem:[#allocation7 + $0x2a00] sm:$0xff] }
 0x79d   : > { %15644 = vmatpush1.bf16.msra.mxu0 %v18313_v57  ;;  %v12742_v57 = vld [vmem:[#allocation7 + $0x26c0] sm:$0xff] }
 0x79e   : > { %15808 = vmatpush1.bf16.msra.mxu1 %v18315_v3  ;;  %15645 = vmatprep.subr.bf16.mxu0 %v18322_v31  ;;  %v12746_v3 = vld [vmem:[#allocation7 + $0x26e0] sm:$0xff]  ;;  %v12743_v31 = vld [vmem:[#allocation7 + $0x26c8] sm:$0xff] }
 0x79f   : > { %15809 = vmatprep.subr.bf16.mxu1 %v18324_v53  ;;  %v12747_v53 = vld [vmem:[#allocation7 + $0x26e8] sm:$0xff]  ;;  %v18386_v15 = vcombine.high %v12742_v57, %v12746_v3  ;;  %v18385_v32 = vcombine.low %v12742_v57, %v12746_v3 }
 0x7a0   : > { %v18388_v22 = vcombine.high %v12743_v31, %v12747_v53  ;;  %v18387_v17 = vcombine.low %v12743_v31, %v12747_v53  ;;  %v12803_v57 = vld [vmem:[#allocation7 + $0x28a8] sm:$0xff] }
 0x7a1   : > { %15646 = vmatpush1.bf16.msra.mxu0 %v18321_v0  ;;  %v12750_v0 = vld [vmem:[#allocation7 + $0x2700] sm:$0xff] }
 0x7a2   : > { %15810 = vmatpush1.bf16.msra.mxu1 %v18323_v11  ;;  %15647 = vmatprep.subr.bf16.mxu0 %v18330_v14  ;;  %v12754_v11 = vld [vmem:[#allocation7 + $0x2720] sm:$0xff]  ;;  %v12751_v14 = vld [vmem:[#allocation7 + $0x2708] sm:$0xff] }
 0x7a3   : > { %15811 = vmatprep.subr.bf16.mxu1 %v18332_v12  ;;  %v12755_v12 = vld [vmem:[#allocation7 + $0x2728] sm:$0xff]  ;;  %v18394_v27 = vcombine.high %v12750_v0, %v12754_v11  ;;  %v18393_v7 = vcombine.low %v12750_v0, %v12754_v11 }
 0x7a4   : > { %v18396_v18 = vcombine.high %v12751_v14, %v12755_v12  ;;  %v18395_v28 = vcombine.low %v12751_v14, %v12755_v12  ;;  %v12811_v0 = vld [vmem:[#allocation7 + $0x28e8] sm:$0xff] }
 0x7a5   : > { %15648 = vmatpush1.bf16.msra.mxu0 %v18329_v41  ;;  %v12758_v41 = vld [vmem:[#allocation7 + $0x2740] sm:$0xff] }
 0x7a6   : > { %15812 = vmatpush1.bf16.msra.mxu1 %v18331_v20  ;;  %15649 = vmatprep.subr.bf16.mxu0 %v18338_v21  ;;  %v12762_v20 = vld [vmem:[#allocation7 + $0x2760] sm:$0xff]  ;;  %v12759_v21 = vld [vmem:[#allocation7 + $0x2748] sm:$0xff] }
 0x7a7   : > { %15813 = vmatprep.subr.bf16.mxu1 %v18340_v23  ;;  %v12763_v23 = vld [vmem:[#allocation7 + $0x2768] sm:$0xff]  ;;  %v18402_v29 = vcombine.high %v12758_v41, %v12762_v20  ;;  %v18401_v35 = vcombine.low %v12758_v41, %v12762_v20 }
 0x7a8   : > { %v18404_v61 = vcombine.high %v12759_v21, %v12763_v23  ;;  %v18403_v37 = vcombine.low %v12759_v21, %v12763_v23  ;;  %v12819_v41 = vld [vmem:[#allocation7 + $0x2928] sm:$0xff] }
 0x7a9   : > { %15650 = vmatpush1.bf16.msra.mxu0 %v18337_v33  ;;  %v12766_v33 = vld [vmem:[#allocation7 + $0x2780] sm:$0xff] }
 0x7aa   : > { %15814 = vmatpush1.bf16.msra.mxu1 %v18339_v58  ;;  %15651 = vmatprep.subr.bf16.mxu0 %v18346_v34  ;;  %v12770_v58 = vld [vmem:[#allocation7 + $0x27a0] sm:$0xff]  ;;  %v12767_v34 = vld [vmem:[#allocation7 + $0x2788] sm:$0xff] }
 0x7ab   : > { %15815 = vmatprep.subr.bf16.mxu1 %v18348_v10  ;;  %v12771_v10 = vld [vmem:[#allocation7 + $0x27a8] sm:$0xff]  ;;  %v18410_v16 = vcombine.high %v12766_v33, %v12770_v58  ;;  %v18409_v13 = vcombine.low %v12766_v33, %v12770_v58 }
 0x7ac   : > { %v18412_v38 = vcombine.high %v12767_v34, %v12771_v10  ;;  %v18411_v44 = vcombine.low %v12767_v34, %v12771_v10  ;;  %v12827_v33 = vld [vmem:[#allocation7 + $0x2968] sm:$0xff] }
 0x7ad   : > { %15652 = vmatpush1.bf16.msra.mxu0 %v18345_v6  ;;  %v12774_v6 = vld [vmem:[#allocation7 + $0x27c0] sm:$0xff] }
 0x7ae   : > { %15816 = vmatpush1.bf16.msra.mxu1 %v18347_v40  ;;  %15653 = vmatprep.subr.bf16.mxu0 %v18354_v42  ;;  %v12778_v40 = vld [vmem:[#allocation7 + $0x27e0] sm:$0xff]  ;;  %v12775_v42 = vld [vmem:[#allocation7 + $0x27c8] sm:$0xff] }
 0x7af   : > { %15817 = vmatprep.subr.bf16.mxu1 %v18356_v43  ;;  %v12779_v43 = vld [vmem:[#allocation7 + $0x27e8] sm:$0xff]  ;;  %v18418_v26 = vcombine.high %v12774_v6, %v12778_v40  ;;  %v18417_v48 = vcombine.low %v12774_v6, %v12778_v40 }
 0x7b0   : > { %v18420_v30 = vcombine.high %v12775_v42, %v12779_v43  ;;  %v18419_v5 = vcombine.low %v12775_v42, %v12779_v43  ;;  %v12835_v6 = vld [vmem:[#allocation7 + $0x29a8] sm:$0xff] }
 0x7b1   : > { %15654 = vmatpush1.bf16.msra.mxu0 %v18353_v46  ;;  %v12782_v46 = vld [vmem:[#allocation7 + $0x2800] sm:$0xff] }
 0x7b2   : > { %15818 = vmatpush1.bf16.msra.mxu1 %v18355_v9  ;;  %15655 = vmatprep.subr.bf16.mxu0 %v18362_v47  ;;  %v12786_v9 = vld [vmem:[#allocation7 + $0x2820] sm:$0xff]  ;;  %v12783_v47 = vld [vmem:[#allocation7 + $0x2808] sm:$0xff] }
 0x7b3   : > { %15819 = vmatprep.subr.bf16.mxu1 %v18364_v25  ;;  %v12787_v25 = vld [vmem:[#allocation7 + $0x2828] sm:$0xff]  ;;  %v18426_v1 = vcombine.high %v12782_v46, %v12786_v9  ;;  %v18425_v56 = vcombine.low %v12782_v46, %v12786_v9 }
 0x7b4   : > { %v18427_v63 = vcombine.low %v12783_v47, %v12787_v25  ;;  %v12843_v46 = vld [vmem:[#allocation7 + $0x29e8] sm:$0xff] }
 0x7b5   : > { %15656 = vmatpush1.bf16.msra.mxu0 %v18361_v51  ;;  %v18428_v51 = vcombine.high %v12783_v47, %v12787_v25 }
 0x7b6   : > { %15820 = vmatpush1.bf16.msra.mxu1 %v18363_v36  ;;  %15657 = vmatprep.subr.bf16.mxu0 %v18370_v39  ;;  %v12790_v36 = vld [vmem:[#allocation7 + $0x2840] sm:$0xff] }
 0x7b7   : > { %15821 = vmatprep.subr.bf16.mxu1 %v18372_v59  ;;  %v12794_v39 = vld [vmem:[#allocation7 + $0x2860] sm:$0xff]  ;;  %v12791_v59 = vld [vmem:[#allocation7 + $0x2848] sm:$0xff] }
 0x7b8   : > { %v18436_v4 = vcombine.high %v12791_v59, %v12795_v55  ;;  %v18433_v3 = vcombine.low %v12790_v36, %v12794_v39  ;;  %v18435_v31 = vcombine.low %v12791_v59, %v12795_v55 }
 0x7b9   : > { %15658 = vmatpush1.bf16.msra.mxu0 %v18369_v60  ;;  %v18434_v60 = vcombine.high %v12790_v36, %v12794_v39 }
 0x7ba   : > { %15822 = vmatpush1.bf16.msra.mxu1 %v18371_v2  ;;  %15659 = vmatprep.subr.bf16.mxu0 %v18378_v19  ;;  %v12798_v2 = vld [vmem:[#allocation7 + $0x2880] sm:$0xff] }
 0x7bb   : > { %15823 = vmatprep.subr.bf16.mxu1 %v18380_v54  ;;  %v12802_v19 = vld [vmem:[#allocation7 + $0x28a0] sm:$0xff]  ;;  %v12799_v54 = vld [vmem:[#allocation7 + $0x2888] sm:$0xff] }
 0x7bc   : > { %v18442_v53 = vcombine.high %v12798_v2, %v12802_v19  ;;  %v18441_v11 = vcombine.low %v12798_v2, %v12802_v19  ;;  %v18443_v14 = vcombine.low %v12799_v54, %v12803_v57 }
 0x7bd   : > { %15660 = vmatpush1.bf16.msra.mxu0 %v18377_v8  ;;  %v18444_v8 = vcombine.high %v12799_v54, %v12803_v57 }
 0x7be   : > { %15824 = vmatpush1.bf16.msra.mxu1 %v18379_v24  ;;  %15661 = vmatprep.subr.bf16.mxu0 %v18386_v15  ;;  %v12806_v24 = vld [vmem:[#allocation7 + $0x28c0] sm:$0xff] }
 0x7bf   : > { %15825 = vmatprep.subr.bf16.mxu1 %v18388_v22  ;;  %v12810_v15 = vld [vmem:[#allocation7 + $0x28e0] sm:$0xff]  ;;  %v12807_v22 = vld [vmem:[#allocation7 + $0x28c8] sm:$0xff] }
 0x7c0   : > { %v18450_v12 = vcombine.high %v12806_v24, %v12810_v15  ;;  %v18449_v20 = vcombine.low %v12806_v24, %v12810_v15  ;;  %v18451_v21 = vcombine.low %v12807_v22, %v12811_v0 }
 0x7c1   : > { %15662 = vmatpush1.bf16.msra.mxu0 %v18385_v32  ;;  %v18452_v32 = vcombine.high %v12807_v22, %v12811_v0 }
 0x7c2   : > { %15826 = vmatpush1.bf16.msra.mxu1 %v18387_v17  ;;  %15663 = vmatprep.subr.bf16.mxu0 %v18394_v27  ;;  %v12814_v17 = vld [vmem:[#allocation7 + $0x2900] sm:$0xff] }
 0x7c3   : > { %15827 = vmatprep.subr.bf16.mxu1 %v18396_v18  ;;  %v12818_v27 = vld [vmem:[#allocation7 + $0x2920] sm:$0xff]  ;;  %v12815_v18 = vld [vmem:[#allocation7 + $0x2908] sm:$0xff] }
 0x7c4   : > { %v18458_v23 = vcombine.high %v12814_v17, %v12818_v27  ;;  %v18457_v58 = vcombine.low %v12814_v17, %v12818_v27  ;;  %v18459_v34 = vcombine.low %v12815_v18, %v12819_v41 }
 0x7c5   : > { %15664 = vmatpush1.bf16.msra.mxu0 %v18393_v7  ;;  %v18460_v7 = vcombine.high %v12815_v18, %v12819_v41 }
 0x7c6   : > { %15828 = vmatpush1.bf16.msra.mxu1 %v18395_v28  ;;  %15665 = vmatprep.subr.bf16.mxu0 %v18402_v29  ;;  %v12822_v28 = vld [vmem:[#allocation7 + $0x2940] sm:$0xff] }
 0x7c7   : > { %15829 = vmatprep.subr.bf16.mxu1 %v18404_v61  ;;  %v12826_v29 = vld [vmem:[#allocation7 + $0x2960] sm:$0xff]  ;;  %v12823_v61 = vld [vmem:[#allocation7 + $0x2948] sm:$0xff] }
 0x7c8   : > { %v18466_v10 = vcombine.high %v12822_v28, %v12826_v29  ;;  %v18465_v40 = vcombine.low %v12822_v28, %v12826_v29  ;;  %v18467_v42 = vcombine.low %v12823_v61, %v12827_v33 }
 0x7c9   : > { %15666 = vmatpush1.bf16.msra.mxu0 %v18401_v35  ;;  %v18468_v35 = vcombine.high %v12823_v61, %v12827_v33 }
 0x7ca   : > { %15830 = vmatpush1.bf16.msra.mxu1 %v18403_v37  ;;  %15667 = vmatprep.subr.bf16.mxu0 %v18410_v16  ;;  %v12830_v37 = vld [vmem:[#allocation7 + $0x2980] sm:$0xff] }
 0x7cb   : > { %15831 = vmatprep.subr.bf16.mxu1 %v18412_v38  ;;  %v12834_v16 = vld [vmem:[#allocation7 + $0x29a0] sm:$0xff]  ;;  %v12831_v38 = vld [vmem:[#allocation7 + $0x2988] sm:$0xff] }
 0x7cc   : > { %v18474_v43 = vcombine.high %v12830_v37, %v12834_v16  ;;  %v18473_v9 = vcombine.low %v12830_v37, %v12834_v16  ;;  %v18475_v47 = vcombine.low %v12831_v38, %v12835_v6 }
 0x7cd   : > { %15668 = vmatpush1.bf16.msra.mxu0 %v18409_v13  ;;  %v18476_v13 = vcombine.high %v12831_v38, %v12835_v6 }
 0x7ce   : > { %15832 = vmatpush1.bf16.msra.mxu1 %v18411_v44  ;;  %15669 = vmatprep.subr.bf16.mxu0 %v18418_v26  ;;  %v12838_v44 = vld [vmem:[#allocation7 + $0x29c0] sm:$0xff] }
 0x7cf   : > { %15833 = vmatprep.subr.bf16.mxu1 %v18420_v30  ;;  %v12842_v26 = vld [vmem:[#allocation7 + $0x29e0] sm:$0xff]  ;;  %v12839_v30 = vld [vmem:[#allocation7 + $0x29c8] sm:$0xff] }
 0x7d0   : > { %v18482_v25 = vcombine.high %v12838_v44, %v12842_v26  ;;  %v18481_v36 = vcombine.low %v12838_v44, %v12842_v26  ;;  %v18483_v39 = vcombine.low %v12839_v30, %v12843_v46 }
 0x7d1   : > { %15670 = vmatpush1.bf16.msra.mxu0 %v18417_v48  ;;  %v18484_v48 = vcombine.high %v12839_v30, %v12843_v46 }
 0x7d2   : > { %15834 = vmatpush1.bf16.msra.mxu1 %v18419_v5  ;;  %15680 = vmatprep.subr.bf16.mxu0 %v18426_v1  ;;  %v12850_v5 = vld [vmem:[#allocation7 + $0x2a20] sm:$0xff]  ;;  %v12847_v1 = vld [vmem:[#allocation7 + $0x2a08] sm:$0xff] }
 0x7d3   : > { %15844 = vmatprep.subr.bf16.mxu1 %v18428_v51  ;;  %v12851_v51 = vld [vmem:[#allocation7 + $0x2a28] sm:$0xff]  ;;  %v18490_v59 = vcombine.high %v12846_v50, %v12850_v5  ;;  %v18489_v2 = vcombine.low %v12846_v50, %v12850_v5 }
 0x7d4   : > { %15672 = vmatmul.mubr.bf16.vlgmr.msra.gmra.mrb[24].mxu0 %v19681_v62  ;;  %v18492_v55 = vcombine.high %v12847_v1, %v12851_v51  ;;  %v18491_v19 = vcombine.low %v12847_v1, %v12851_v51 }
 0x7d5   : > { %15836 = vmatmul.mubr.bf16.vlgmr.msra.gmra.mrb[24].mxu1 %v19681_v62  ;;  %15681 = vmatpush1.bf16.msra.mxu0 %v18425_v56  ;;  %v12854_v56 = vld [vmem:[#allocation7 + $0x2a40] sm:$0xff] }
 0x7d6   : > { %15845 = vmatpush1.bf16.msra.mxu1 %v18427_v63  ;;  %15682 = vmatprep.subr.bf16.mxu0 %v18434_v60  ;;  %v12858_v63 = vld [vmem:[#allocation7 + $0x2a60] sm:$0xff]  ;;  %v12855_v60 = vld [vmem:[#allocation7 + $0x2a48] sm:$0xff] }
 0x7d7   : > { %15846 = vmatprep.subr.bf16.mxu1 %v18436_v4  ;;  %v12859_v4 = vld [vmem:[#allocation7 + $0x2a68] sm:$0xff]  ;;  %v18498_v54 = vcombine.high %v12854_v56, %v12858_v63  ;;  %v18497_v24 = vcombine.low %v12854_v56, %v12858_v63 }
 0x7d8   : > { %v18500_v57 = vcombine.high %v12855_v60, %v12859_v4  ;;  %v18499_v15 = vcombine.low %v12855_v60, %v12859_v4 }
 0x7d9   : > { %15683 = vmatpush1.bf16.msra.mxu0 %v18433_v3  ;;  %v12862_v3 = vld [vmem:[#allocation7 + $0x2a80] sm:$0xff] }
 0x7da   : > { %15847 = vmatpush1.bf16.msra.mxu1 %v18435_v31  ;;  %15684 = vmatprep.subr.bf16.mxu0 %v18442_v53  ;;  %v12866_v31 = vld [vmem:[#allocation7 + $0x2aa0] sm:$0xff]  ;;  %v12863_v53 = vld [vmem:[#allocation7 + $0x2a88] sm:$0xff] }
 0x7db   : > { %15848 = vmatprep.subr.bf16.mxu1 %v18444_v8  ;;  %v12867_v8 = vld [vmem:[#allocation7 + $0x2aa8] sm:$0xff]  ;;  %v18506_v22 = vcombine.high %v12862_v3, %v12866_v31  ;;  %v18505_v17 = vcombine.low %v12862_v3, %v12866_v31 }
 0x7dc   : > { %v18508_v0 = vcombine.high %v12863_v53, %v12867_v8  ;;  %v18507_v27 = vcombine.low %v12863_v53, %v12867_v8  ;;  %v12918_v8 = vld [vmem:[#allocation7 + $0x2c40] sm:$0xff] }
 0x7dd   : > { %15685 = vmatpush1.bf16.msra.mxu0 %v18441_v11  ;;  %v12870_v11 = vld [vmem:[#allocation7 + $0x2ac0] sm:$0xff] }
 0x7de   : > { %15849 = vmatpush1.bf16.msra.mxu1 %v18443_v14  ;;  %15686 = vmatprep.subr.bf16.mxu0 %v18450_v12  ;;  %v12874_v14 = vld [vmem:[#allocation7 + $0x2ae0] sm:$0xff]  ;;  %v12871_v12 = vld [vmem:[#allocation7 + $0x2ac8] sm:$0xff] }
 0x7df   : > { %15850 = vmatprep.subr.bf16.mxu1 %v18452_v32  ;;  %v12875_v32 = vld [vmem:[#allocation7 + $0x2ae8] sm:$0xff]  ;;  %v18514_v18 = vcombine.high %v12870_v11, %v12874_v14  ;;  %v18513_v28 = vcombine.low %v12870_v11, %v12874_v14 }
 0x7e0   : > { %v18516_v41 = vcombine.high %v12871_v12, %v12875_v32  ;;  %v18515_v29 = vcombine.low %v12871_v12, %v12875_v32  ;;  %v12919_v11 = vld [vmem:[#allocation7 + $0x2c48] sm:$0xff] }
 0x7e1   : > { %15687 = vmatpush1.bf16.msra.mxu0 %v18449_v20  ;;  %v12878_v20 = vld [vmem:[#allocation7 + $0x2b00] sm:$0xff]  ;;  %v12923_v14 = vld [vmem:[#allocation7 + $0x2c68] sm:$0xff] }
 0x7e2   : > { %15851 = vmatpush1.bf16.msra.mxu1 %v18451_v21  ;;  %15688 = vmatprep.subr.bf16.mxu0 %v18458_v23  ;;  %v12882_v21 = vld [vmem:[#allocation7 + $0x2b20] sm:$0xff]  ;;  %v12879_v23 = vld [vmem:[#allocation7 + $0x2b08] sm:$0xff] }
 0x7e3   : > { %15852 = vmatprep.subr.bf16.mxu1 %v18460_v7  ;;  %v12883_v7 = vld [vmem:[#allocation7 + $0x2b28] sm:$0xff]  ;;  %v18522_v61 = vcombine.high %v12878_v20, %v12882_v21  ;;  %v18521_v37 = vcombine.low %v12878_v20, %v12882_v21  ;;  %v18564_v21 = vcombine.high %v12919_v11, %v12923_v14 }
 0x7e4   : > { %v18524_v33 = vcombine.high %v12879_v23, %v12883_v7  ;;  %v18523_v16 = vcombine.low %v12879_v23, %v12883_v7  ;;  %v12930_v23 = vld [vmem:[#allocation7 + $0x2ca0] sm:$0xff]  ;;  %v12927_v7 = vld [vmem:[#allocation7 + $0x2c88] sm:$0xff] }
 0x7e5   : > { %15689 = vmatpush1.bf16.msra.mxu0 %v18457_v58  ;;  %v12886_v58 = vld [vmem:[#allocation7 + $0x2b40] sm:$0xff] }
 0x7e6   : > { %15853 = vmatpush1.bf16.msra.mxu1 %v18459_v34  ;;  %15690 = vmatprep.subr.bf16.mxu0 %v18466_v10  ;;  %v12890_v34 = vld [vmem:[#allocation7 + $0x2b60] sm:$0xff]  ;;  %v12887_v10 = vld [vmem:[#allocation7 + $0x2b48] sm:$0xff] }
 0x7e7   : > { %15854 = vmatprep.subr.bf16.mxu1 %v18468_v35  ;;  %v12891_v35 = vld [vmem:[#allocation7 + $0x2b68] sm:$0xff]  ;;  %v18530_v38 = vcombine.high %v12886_v58, %v12890_v34  ;;  %v18529_v44 = vcombine.low %v12886_v58, %v12890_v34 }
 0x7e8   : > { %v18532_v6 = vcombine.high %v12887_v10, %v12891_v35  ;;  %v18531_v26 = vcombine.low %v12887_v10, %v12891_v35  ;;  %v12934_v10 = vld [vmem:[#allocation7 + $0x2cc0] sm:$0xff] }
 0x7e9   : > { %15691 = vmatpush1.bf16.msra.mxu0 %v18465_v40  ;;  %v12894_v40 = vld [vmem:[#allocation7 + $0x2b80] sm:$0xff] }
 0x7ea   : > { %15855 = vmatpush1.bf16.msra.mxu1 %v18467_v42  ;;  %15692 = vmatprep.subr.bf16.mxu0 %v18474_v43  ;;  %v12898_v42 = vld [vmem:[#allocation7 + $0x2ba0] sm:$0xff]  ;;  %v12895_v43 = vld [vmem:[#allocation7 + $0x2b88] sm:$0xff] }
 0x7eb   : > { %15856 = vmatprep.subr.bf16.mxu1 %v18476_v13  ;;  %v12899_v13 = vld [vmem:[#allocation7 + $0x2ba8] sm:$0xff]  ;;  %v18538_v30 = vcombine.high %v12894_v40, %v12898_v42  ;;  %v18537_v50 = vcombine.low %v12894_v40, %v12898_v42  ;;  %v12938_v35 = vld [vmem:[#allocation7 + $0x2ce0] sm:$0xff] }
 0x7ec   : > { %v18540_v46 = vcombine.high %v12895_v43, %v12899_v13  ;;  %v18539_v5 = vcombine.low %v12895_v43, %v12899_v13  ;;  %v18578_v40 = vcombine.high %v12934_v10, %v12938_v35  ;;  %v12942_v43 = vld [vmem:[#allocation7 + $0x2d00] sm:$0xff] }
 0x7ed   : > { %15693 = vmatpush1.bf16.msra.mxu0 %v18473_v9  ;;  %v12902_v9 = vld [vmem:[#allocation7 + $0x2bc0] sm:$0xff] }
 0x7ee   : > { %15857 = vmatpush1.bf16.msra.mxu1 %v18475_v47  ;;  %15694 = vmatprep.subr.bf16.mxu0 %v18482_v25  ;;  %v12906_v47 = vld [vmem:[#allocation7 + $0x2be0] sm:$0xff]  ;;  %v12903_v25 = vld [vmem:[#allocation7 + $0x2bc8] sm:$0xff] }
 0x7ef   : > { %15858 = vmatprep.subr.bf16.mxu1 %v18484_v48  ;;  %v12907_v48 = vld [vmem:[#allocation7 + $0x2be8] sm:$0xff]  ;;  %v18546_v1 = vcombine.high %v12902_v9, %v12906_v47  ;;  %v18545_v56 = vcombine.low %v12902_v9, %v12906_v47  ;;  %v12946_v13 = vld [vmem:[#allocation7 + $0x2d20] sm:$0xff] }
 0x7f0   : > { %v18548_v51 = vcombine.high %v12903_v25, %v12907_v48  ;;  %v18547_v63 = vcombine.low %v12903_v25, %v12907_v48  ;;  %v18586_v9 = vcombine.high %v12942_v43, %v12946_v13  ;;  %v12950_v25 = vld [vmem:[#allocation7 + $0x2d40] sm:$0xff] }
 0x7f1   : > { %15695 = vmatpush1.bf16.msra.mxu0 %v18481_v36  ;;  %v12910_v36 = vld [vmem:[#allocation7 + $0x2c00] sm:$0xff] }
 0x7f2   : > { %15859 = vmatpush1.bf16.msra.mxu1 %v18483_v39  ;;  %15696 = vmatprep.subr.bf16.mxu0 %v18490_v59  ;;  %v12914_v39 = vld [vmem:[#allocation7 + $0x2c20] sm:$0xff]  ;;  %v12911_v59 = vld [vmem:[#allocation7 + $0x2c08] sm:$0xff] }
 0x7f3   : > { %15860 = vmatprep.subr.bf16.mxu1 %v18492_v55  ;;  %v12915_v55 = vld [vmem:[#allocation7 + $0x2c28] sm:$0xff]  ;;  %v18554_v60 = vcombine.high %v12910_v36, %v12914_v39  ;;  %v12954_v48 = vld [vmem:[#allocation7 + $0x2d60] sm:$0xff] }
 0x7f4   : > { %v18556_v4 = vcombine.high %v12911_v59, %v12915_v55 }
 0x7f5   : > { %15697 = vmatpush1.bf16.msra.mxu0 %v18489_v2 }
 0x7f6   : > { %15861 = vmatpush1.bf16.msra.mxu1 %v18491_v19  ;;  %15698 = vmatprep.subr.bf16.mxu0 %v18498_v54 }
 0x7f7   : > { %15862 = vmatprep.subr.bf16.mxu1 %v18500_v57 }
 0x7f9   : > { %15699 = vmatpush1.bf16.msra.mxu0 %v18497_v24 }
 0x7fa   : > { %15863 = vmatpush1.bf16.msra.mxu1 %v18499_v15  ;;  %15700 = vmatprep.subr.bf16.mxu0 %v18506_v22 }
 0x7fb   : > { %15864 = vmatprep.subr.bf16.mxu1 %v18508_v0  ;;  %v12922_v0 = vld [vmem:[#allocation7 + $0x2c60] sm:$0xff] }
 0x7fc   : > { %v18562_v20 = vcombine.high %v12918_v8, %v12922_v0 }
 0x7fd   : > { %15701 = vmatpush1.bf16.msra.mxu0 %v18505_v17  ;;  %v18553_v17 = vcombine.low %v12910_v36, %v12914_v39  ;;  %v18594_v36 = vcombine.high %v12950_v25, %v12954_v48 }
 0x7fe   : > { %15865 = vmatpush1.bf16.msra.mxu1 %v18507_v27  ;;  %15702 = vmatprep.subr.bf16.mxu0 %v18514_v18  ;;  %v18555_v27 = vcombine.low %v12911_v59, %v12915_v55  ;;  %v12958_v59 = vld [vmem:[#allocation7 + $0x2d80] sm:$0xff] }
 0x7ff   : > { %15866 = vmatprep.subr.bf16.mxu1 %v18516_v41  ;;  %v12926_v41 = vld [vmem:[#allocation7 + $0x2c80] sm:$0xff] }
 0x800   : > { %v18570_v58 = vcombine.high %v12926_v41, %v12930_v23  ;;  %v12962_v55 = vld [vmem:[#allocation7 + $0x2da0] sm:$0xff] }
 0x801   : > { %15703 = vmatpush1.bf16.msra.mxu0 %v18513_v28  ;;  %v12931_v28 = vld [vmem:[#allocation7 + $0x2ca8] sm:$0xff] }
 0x802   : > { %15867 = vmatpush1.bf16.msra.mxu1 %v18515_v29  ;;  %15704 = vmatprep.subr.bf16.mxu0 %v18522_v61  ;;  %v18561_v61 = vcombine.low %v12918_v8, %v12922_v0  ;;  %v18572_v34 = vcombine.high %v12927_v7, %v12931_v28  ;;  %v18601_v8 = vcombine.low %v12958_v59, %v12962_v55  ;;  %v12974_v0 = vld [vmem:[#allocation7 + $0x2e00] sm:$0xff] }
 0x803   : > { %15868 = vmatprep.subr.bf16.mxu1 %v18524_v33  ;;  %v18563_v33 = vcombine.low %v12919_v11, %v12923_v14  ;;  %v12978_v11 = vld [vmem:[#allocation7 + $0x2e20] sm:$0xff]  ;;  %v12975_v14 = vld [vmem:[#allocation7 + $0x2e08] sm:$0xff] }
 0x805   : > { %15705 = vmatpush1.bf16.msra.mxu0 %v18521_v37  ;;  %v12935_v37 = vld [vmem:[#allocation7 + $0x2cc8] sm:$0xff] }
 0x806   : > { %15869 = vmatpush1.bf16.msra.mxu1 %v18523_v16  ;;  %15706 = vmatprep.subr.bf16.mxu0 %v18530_v38  ;;  %v12939_v16 = vld [vmem:[#allocation7 + $0x2ce8] sm:$0xff]  ;;  %v18569_v38 = vcombine.low %v12926_v41, %v12930_v23  ;;  %v18618_v41 = vcombine.high %v12974_v0, %v12978_v11  ;;  %v12986_v23 = vld [vmem:[#allocation7 + $0x2e60] sm:$0xff] }
 0x807   : > { %15870 = vmatprep.subr.bf16.mxu1 %v18532_v6  ;;  %v18571_v6 = vcombine.low %v12927_v7, %v12931_v28  ;;  %v18580_v42 = vcombine.high %v12935_v37, %v12939_v16  ;;  %v12983_v7 = vld [vmem:[#allocation7 + $0x2e48] sm:$0xff] }
 0x808   : > { %v12987_v28 = vld [vmem:[#allocation7 + $0x2e68] sm:$0xff] }
 0x809   : > { %15707 = vmatpush1.bf16.msra.mxu0 %v18529_v44  ;;  %v12943_v44 = vld [vmem:[#allocation7 + $0x2d08] sm:$0xff] }
 0x80a   : > { %15871 = vmatpush1.bf16.msra.mxu1 %v18531_v26  ;;  %15708 = vmatprep.subr.bf16.mxu0 %v18538_v30  ;;  %v12947_v26 = vld [vmem:[#allocation7 + $0x2d28] sm:$0xff]  ;;  %v18577_v30 = vcombine.low %v12934_v10, %v12938_v35  ;;  %v12990_v10 = vld [vmem:[#allocation7 + $0x2e80] sm:$0xff] }
 0x80b   : > { %15872 = vmatprep.subr.bf16.mxu1 %v18540_v46  ;;  %v18579_v46 = vcombine.low %v12935_v37, %v12939_v16  ;;  %v18588_v47 = vcombine.high %v12943_v44, %v12947_v26  ;;  %v12994_v35 = vld [vmem:[#allocation7 + $0x2ea0] sm:$0xff]  ;;  %v12991_v37 = vld [vmem:[#allocation7 + $0x2e88] sm:$0xff] }
 0x80c   : > { %v12995_v16 = vld [vmem:[#allocation7 + $0x2ea8] sm:$0xff] }
 0x80d   : > { %15709 = vmatpush1.bf16.msra.mxu0 %v18537_v50  ;;  %v12951_v50 = vld [vmem:[#allocation7 + $0x2d48] sm:$0xff] }
 0x80e   : > { %15873 = vmatpush1.bf16.msra.mxu1 %v18539_v5  ;;  %15710 = vmatprep.subr.bf16.mxu0 %v18546_v1  ;;  %v12955_v5 = vld [vmem:[#allocation7 + $0x2d68] sm:$0xff]  ;;  %v18585_v1 = vcombine.low %v12942_v43, %v12946_v13  ;;  %v12998_v43 = vld [vmem:[#allocation7 + $0x2ec0] sm:$0xff] }
 0x80f   : > { %15874 = vmatprep.subr.bf16.mxu1 %v18548_v51  ;;  %v18587_v51 = vcombine.low %v12943_v44, %v12947_v26  ;;  %v18596_v39 = vcombine.high %v12951_v50, %v12955_v5  ;;  %v13002_v13 = vld [vmem:[#allocation7 + $0x2ee0] sm:$0xff]  ;;  %v12999_v44 = vld [vmem:[#allocation7 + $0x2ec8] sm:$0xff] }
 0x810   : > { %v13003_v26 = vld [vmem:[#allocation7 + $0x2ee8] sm:$0xff] }
 0x811   : > { %15711 = vmatpush1.bf16.msra.mxu0 %v18545_v56  ;;  %v12959_v56 = vld [vmem:[#allocation7 + $0x2d88] sm:$0xff] }
 0x812   : > { %15875 = vmatpush1.bf16.msra.mxu1 %v18547_v63  ;;  %15721 = vmatprep.subr.bf16.mxu0 %v18554_v60  ;;  %v12963_v63 = vld [vmem:[#allocation7 + $0x2da8] sm:$0xff]  ;;  %v18593_v60 = vcombine.low %v12950_v25, %v12954_v48  ;;  %v13006_v25 = vld [vmem:[#allocation7 + $0x2f00] sm:$0xff] }
 0x813   : > { %15885 = vmatprep.subr.bf16.mxu1 %v18556_v4  ;;  %v18595_v4 = vcombine.low %v12951_v50, %v12955_v5  ;;  %v13010_v48 = vld [vmem:[#allocation7 + $0x2f20] sm:$0xff]  ;;  %v13007_v50 = vld [vmem:[#allocation7 + $0x2f08] sm:$0xff] }
 0x814   : > { %v13011_v5 = vld [vmem:[#allocation7 + $0x2f28] sm:$0xff] }
 0x827   : > { %v12338_v2 = vpop.f32.mrb[20].mxu0 }
 0x828   : > { %v12513_v19 = vmax.f32 %v12338_v2, 0.0  ;;  %v19685_v54 = vpop.f32.mrb[20].mxu1  ;;  %v12340_v57 = vpop.f32.mrb[21].mxu0  ;;  %v18602_v2 = vcombine.high %v12958_v59, %v12962_v55  ;;  %v13014_v59 = vld [vmem:[#allocation7 + $0x2f40] sm:$0xff] }
 0x829   : > { %v12514_v3 = vmax.f32 %v12340_v57, 0.0  ;;  %v12504_v31 = vpop.f32.mrb[21].mxu1  ;;  %v12342_v53 = vpop.f32.mrb[22].mxu0  ;;  %v12966_v57 = vld [vmem:[#allocation7 + $0x2dc0] sm:$0xff] }
 0x82a   : > { %v12516_v24 = vmax.f32 %v12504_v31, 0.0  ;;  %v12506_v15 = vpop.f32.mrb[22].mxu1  ;;  %v12343_v22 = vpop.f32.mrb[23].mxu0  ;;  %v19689_v18 = vpack.c.bf16 %v12513_v19, %v12513_v19  ;;  %v18604_v19 = vcombine.high %v12959_v56, %v12963_v63  ;;  %v12967_v31 = vld [vmem:[#allocation7 + $0x2dc8] sm:$0xff]  ;;  %v13018_v55 = vld [vmem:[#allocation7 + $0x2f60] sm:$0xff] }
 0x82b   : > { %v19687_v12 = vpack.c.bf16 %v12514_v3, %v12514_v3  ;;  %v12507_v32 = vpop.f32.mrb[23].mxu1  ;;  %v12970_v3 = vld [vmem:[#allocation7 + $0x2de0] sm:$0xff]  ;;  %v12971_v53 = vld [vmem:[#allocation7 + $0x2de8] sm:$0xff] }
 0x82c   : > { %v19693_v29 = vpack.c.bf16 %v12516_v24, %v12516_v24  ;;  %v18603_v24 = vcombine.low %v12959_v56, %v12963_v63  ;;  %v18610_v15 = vcombine.high %v12966_v57, %v12970_v3  ;;  %v18612_v22 = vcombine.high %v12967_v31, %v12971_v53  ;;  %v12979_v32 = vld [vmem:[#allocation7 + $0x2e28] sm:$0xff] }
 0x82d   : > { %15712 = vmatprep.mubr.bf16.mxu0 %v19687_v12  ;;  %15876 = vmatprep.mubr.bf16.mxu1 %v19687_v12  ;;  %v13015_v56 = vld [vmem:[#allocation7 + $0x2f48] sm:$0xff] }
 0x82e   : > { %15713 = vmatmul.mubr.bf16.vlgmr.msra.gmra.mrb[24].mxu0 %v19689_v18  ;;  %15877 = vmatmul.mubr.bf16.vlgmr.msra.gmra.mrb[24].mxu1 %v19689_v18  ;;  %v13019_v63 = vld [vmem:[#allocation7 + $0x2f68] sm:$0xff] }
 0x82f   : > { %15722 = vmatpush1.bf16.msra.mxu0 %v18553_v17  ;;  %15886 = vmatpush1.bf16.msra.mxu1 %v18555_v27  ;;  %v18609_v17 = vcombine.low %v12966_v57, %v12970_v3  ;;  %v18611_v27 = vcombine.low %v12967_v31, %v12971_v53  ;;  %v13022_v57 = vld [vmem:[#allocation7 + $0x2f80] sm:$0xff]  ;;  %v13023_v31 = vld [vmem:[#allocation7 + $0x2f88] sm:$0xff] }
 0x830   : > { %15753 = vmatprep.mubr.bf16.mxu0 %v19693_v29  ;;  %15917 = vmatprep.mubr.bf16.mxu1 %v19693_v29  ;;  %v13026_v3 = vld [vmem:[#allocation7 + $0x2fa0] sm:$0xff]  ;;  %v13027_v53 = vld [vmem:[#allocation7 + $0x2fa8] sm:$0xff] }
 0x831   : > { %15723 = vmatprep.subr.bf16.mxu0 %v18562_v20  ;;  %15887 = vmatprep.subr.bf16.mxu1 %v18564_v21  ;;  %v18620_v20 = vcombine.high %v12975_v14, %v12979_v32  ;;  %v12982_v21 = vld [vmem:[#allocation7 + $0x2e40] sm:$0xff] }
 0x833   : > { %15724 = vmatpush1.bf16.msra.mxu0 %v18561_v61  ;;  %15888 = vmatpush1.bf16.msra.mxu1 %v18563_v33  ;;  %v18617_v61 = vcombine.low %v12974_v0, %v12978_v11  ;;  %v18619_v33 = vcombine.low %v12975_v14, %v12979_v32  ;;  %v13030_v0 = vld [vmem:[#allocation7 + $0x2fc0] sm:$0xff]  ;;  %v13031_v14 = vld [vmem:[#allocation7 + $0x2fc8] sm:$0xff] }
 0x834   : > { %15725 = vmatprep.subr.bf16.mxu0 %v18570_v58  ;;  %15889 = vmatprep.subr.bf16.mxu1 %v18572_v34  ;;  %v18626_v58 = vcombine.high %v12982_v21, %v12986_v23  ;;  %v18628_v34 = vcombine.high %v12983_v7, %v12987_v28  ;;  %v13034_v11 = vld [vmem:[#allocation7 + $0x2fe0] sm:$0xff]  ;;  %v13035_v32 = vld [vmem:[#allocation7 + $0x2fe8] sm:$0xff] }
 0x837   : > { %15726 = vmatpush1.bf16.msra.mxu0 %v18569_v38  ;;  %15890 = vmatpush1.bf16.msra.mxu1 %v18571_v6  ;;  %v18625_v38 = vcombine.low %v12982_v21, %v12986_v23  ;;  %v18627_v6 = vcombine.low %v12983_v7, %v12987_v28  ;;  %v12528_v21 = vld [vmem:[#allocation7 + $0x2010] sm:$0xff]  ;;  %v12529_v7 = vld [vmem:[#allocation7 + $0x2018] sm:$0xff] }
 0x838   : > { %15727 = vmatprep.subr.bf16.mxu0 %v18578_v40  ;;  %15891 = vmatprep.subr.bf16.mxu1 %v18580_v42  ;;  %v18634_v40 = vcombine.high %v12990_v10, %v12994_v35  ;;  %v18636_v42 = vcombine.high %v12991_v37, %v12995_v16  ;;  %v12532_v23 = vld [vmem:[#allocation7 + $0x2030] sm:$0xff]  ;;  %v12533_v28 = vld [vmem:[#allocation7 + $0x2038] sm:$0xff] }
 0x83b   : > { %15728 = vmatpush1.bf16.msra.mxu0 %v18577_v30  ;;  %15892 = vmatpush1.bf16.msra.mxu1 %v18579_v46  ;;  %v18633_v30 = vcombine.low %v12990_v10, %v12994_v35  ;;  %v18635_v46 = vcombine.low %v12991_v37, %v12995_v16  ;;  %v18176_v10 = vcombine.high %v12529_v7, %v12533_v28  ;;  %v12536_v35 = vld [vmem:[#allocation7 + $0x2050] sm:$0xff]  ;;  %v12537_v16 = vld [vmem:[#allocation7 + $0x2058] sm:$0xff] }
 0x83c   : > { %15729 = vmatprep.subr.bf16.mxu0 %v18586_v9  ;;  %15893 = vmatprep.subr.bf16.mxu1 %v18588_v47  ;;  %v18642_v9 = vcombine.high %v12998_v43, %v13002_v13  ;;  %v18644_v47 = vcombine.high %v12999_v44, %v13003_v26  ;;  %v12540_v37 = vld [vmem:[#allocation7 + $0x2070] sm:$0xff] }
 0x83f   : > { %15730 = vmatpush1.bf16.msra.mxu0 %v18585_v1  ;;  %15894 = vmatpush1.bf16.msra.mxu1 %v18587_v51  ;;  %v18641_v1 = vcombine.low %v12998_v43, %v13002_v13  ;;  %v18643_v51 = vcombine.low %v12999_v44, %v13003_v26  ;;  %v18182_v43 = vcombine.high %v12536_v35, %v12540_v37  ;;  %v12544_v44 = vld [vmem:[#allocation7 + $0x2090] sm:$0xff]  ;;  %v12545_v26 = vld [vmem:[#allocation7 + $0x2098] sm:$0xff] }
 0x840   : > { %15731 = vmatprep.subr.bf16.mxu0 %v18594_v36  ;;  %15895 = vmatprep.subr.bf16.mxu1 %v18596_v39  ;;  %v18650_v36 = vcombine.high %v13006_v25, %v13010_v48  ;;  %v18652_v39 = vcombine.high %v13007_v50, %v13011_v5 }
 0x843   : > { %15732 = vmatpush1.bf16.msra.mxu0 %v18593_v60  ;;  %15896 = vmatpush1.bf16.msra.mxu1 %v18595_v4  ;;  %v18649_v60 = vcombine.low %v13006_v25, %v13010_v48  ;;  %v18651_v4 = vcombine.low %v13007_v50, %v13011_v5  ;;  %v12552_v48 = vld [vmem:[#allocation7 + $0x20d0] sm:$0xff]  ;;  %v12553_v5 = vld [vmem:[#allocation7 + $0x20d8] sm:$0xff] }
 0x844   : > { %15733 = vmatprep.subr.bf16.mxu0 %v18602_v2  ;;  %15897 = vmatprep.subr.bf16.mxu1 %v18604_v19  ;;  %v18658_v2 = vcombine.high %v13014_v59, %v13018_v55  ;;  %v18660_v19 = vcombine.high %v13015_v56, %v13019_v63  ;;  %v12556_v50 = vld [vmem:[#allocation7 + $0x20f0] sm:$0xff] }
 0x847   : > { %15734 = vmatpush1.bf16.msra.mxu0 %v18601_v8  ;;  %15898 = vmatpush1.bf16.msra.mxu1 %v18603_v24  ;;  %v18657_v8 = vcombine.low %v13014_v59, %v13018_v55  ;;  %v18659_v24 = vcombine.low %v13015_v56, %v13019_v63  ;;  %v12560_v55 = vld [vmem:[#allocation7 + $0x2110] sm:$0xff]  ;;  %v12565_v63 = vld [vmem:[#allocation7 + $0x2138] sm:$0xff] }
 0x848   : > { %15735 = vmatprep.subr.bf16.mxu0 %v18610_v15  ;;  %15899 = vmatprep.subr.bf16.mxu1 %v18612_v22  ;;  %v18666_v15 = vcombine.high %v13022_v57, %v13026_v3  ;;  %v18668_v22 = vcombine.high %v13023_v31, %v13027_v53  ;;  %v12564_v56 = vld [vmem:[#allocation7 + $0x2130] sm:$0xff] }
 0x84b   : > { %15736 = vmatpush1.bf16.msra.mxu0 %v18609_v17  ;;  %15900 = vmatpush1.bf16.msra.mxu1 %v18611_v27  ;;  %v18665_v17 = vcombine.low %v13022_v57, %v13026_v3  ;;  %v18667_v27 = vcombine.low %v13023_v31, %v13027_v53  ;;  %v12568_v57 = vld [vmem:[#allocation7 + $0x2150] sm:$0xff]  ;;  %v12569_v31 = vld [vmem:[#allocation7 + $0x2158] sm:$0xff] }
 0x84c   : > { %15737 = vmatprep.subr.bf16.mxu0 %v18618_v41  ;;  %15901 = vmatprep.subr.bf16.mxu1 %v18620_v20  ;;  %v18674_v41 = vcombine.high %v13030_v0, %v13034_v11  ;;  %v18676_v20 = vcombine.high %v13031_v14, %v13035_v32  ;;  %v12572_v3 = vld [vmem:[#allocation7 + $0x2170] sm:$0xff]  ;;  %v12573_v53 = vld [vmem:[#allocation7 + $0x2178] sm:$0xff] }
 0x84f   : > { %15738 = vmatpush1.bf16.msra.mxu0 %v18617_v61  ;;  %15902 = vmatpush1.bf16.msra.mxu1 %v18619_v33  ;;  %v18673_v61 = vcombine.low %v13030_v0, %v13034_v11  ;;  %v18675_v33 = vcombine.low %v13031_v14, %v13035_v32  ;;  %v12576_v0 = vld [vmem:[#allocation7 + $0x2190] sm:$0xff]  ;;  %v12577_v14 = vld [vmem:[#allocation7 + $0x2198] sm:$0xff] }
 0x850   : > { %15739 = vmatprep.subr.bf16.mxu0 %v18626_v58  ;;  %15903 = vmatprep.subr.bf16.mxu1 %v18628_v34  ;;  %v12515_v58 = vmax.f32 %v19685_v54, 0.0  ;;  %v18174_v34 = vcombine.high %v12528_v21, %v12532_v23  ;;  %v12548_v54 = vld [vmem:[#allocation7 + $0x20b0] sm:$0xff]  ;;  %v12581_v32 = vld [vmem:[#allocation7 + $0x21b8] sm:$0xff] }
 0x851   : > { %v12580_v11 = vld [vmem:[#allocation7 + $0x21b0] sm:$0xff] }
 0x853   : > { %15740 = vmatpush1.bf16.msra.mxu0 %v18625_v38  ;;  %15904 = vmatpush1.bf16.msra.mxu1 %v18627_v6  ;;  %v12541_v38 = vld [vmem:[#allocation7 + $0x2078] sm:$0xff]  ;;  %v18173_v6 = vcombine.low %v12528_v21, %v12532_v23  ;;  %v12584_v21 = vld [vmem:[#allocation7 + $0x21d0] sm:$0xff] }
 0x854   : > { %15741 = vmatprep.subr.bf16.mxu0 %v18634_v40  ;;  %15905 = vmatprep.subr.bf16.mxu1 %v18636_v42  ;;  %v19700_v40 = vpack.c.bf16 %v12515_v58, %v12515_v58  ;;  %v18175_v42 = vcombine.low %v12529_v7, %v12533_v28  ;;  %v18184_v13 = vcombine.high %v12537_v16, %v12541_v38  ;;  %v12588_v23 = vld [vmem:[#allocation7 + $0x21f0] sm:$0xff]  ;;  %v12585_v7 = vld [vmem:[#allocation7 + $0x21d8] sm:$0xff] }
 0x855   : > { %v12589_v28 = vld [vmem:[#allocation7 + $0x21f8] sm:$0xff]  ;;  %v18230_v58 = vcombine.high %v12584_v21, %v12588_v23 }
 0x857   : > { %15742 = vmatpush1.bf16.msra.mxu0 %v18633_v30  ;;  %15906 = vmatpush1.bf16.msra.mxu1 %v18635_v46  ;;  %v12549_v30 = vld [vmem:[#allocation7 + $0x20b8] sm:$0xff]  ;;  %v18181_v46 = vcombine.low %v12536_v35, %v12540_v37  ;;  %v12596_v35 = vld [vmem:[#allocation7 + $0x2230] sm:$0xff] }
 0x858   : > { %15743 = vmatprep.subr.bf16.mxu0 %v18642_v9  ;;  %15907 = vmatprep.subr.bf16.mxu1 %v18644_v47  ;;  %v18183_v9 = vcombine.low %v12537_v16, %v12541_v38  ;;  %v18190_v47 = vcombine.high %v12544_v44, %v12548_v54  ;;  %v18192_v25 = vcombine.high %v12545_v26, %v12549_v30  ;;  %v12593_v37 = vld [vmem:[#allocation7 + $0x2218] sm:$0xff] }
 0x859   : > { %v12597_v16 = vld [vmem:[#allocation7 + $0x2238] sm:$0xff]  ;;  %v18229_v38 = vcombine.low %v12584_v21, %v12588_v23  ;;  %v12644_v21 = vld [vmem:[#allocation7 + $0x23b0] sm:$0xff] }
 0x85a   : > { %v12641_v23 = vld [vmem:[#allocation7 + $0x2398] sm:$0xff] }
 0x85b   : > { %15744 = vmatpush1.bf16.msra.mxu0 %v18641_v1  ;;  %15908 = vmatpush1.bf16.msra.mxu1 %v18643_v51  ;;  %v12557_v1 = vld [vmem:[#allocation7 + $0x20f8] sm:$0xff]  ;;  %v18189_v51 = vcombine.low %v12544_v44, %v12548_v54  ;;  %v12604_v44 = vld [vmem:[#allocation7 + $0x2270] sm:$0xff] }
 0x85c   : > { %15745 = vmatprep.subr.bf16.mxu0 %v18650_v36  ;;  %15909 = vmatprep.subr.bf16.mxu1 %v18652_v39  ;;  %v18191_v36 = vcombine.low %v12545_v26, %v12549_v30  ;;  %v18198_v39 = vcombine.high %v12552_v48, %v12556_v50  ;;  %v18200_v59 = vcombine.high %v12553_v5, %v12557_v1  ;;  %v12601_v54 = vld [vmem:[#allocation7 + $0x2258] sm:$0xff] }
 0x85d   : > { %v12605_v26 = vld [vmem:[#allocation7 + $0x2278] sm:$0xff] }
 0x85f   : > { %15746 = vmatpush1.bf16.msra.mxu0 %v18649_v60  ;;  %15910 = vmatpush1.bf16.msra.mxu1 %v18651_v4  ;;  %v18197_v60 = vcombine.low %v12552_v48, %v12556_v50  ;;  %v18199_v4 = vcombine.low %v12553_v5, %v12557_v1  ;;  %v12612_v48 = vld [vmem:[#allocation7 + $0x22b0] sm:$0xff]  ;;  %v12609_v50 = vld [vmem:[#allocation7 + $0x2298] sm:$0xff] }
 0x860   : > { %15747 = vmatprep.subr.bf16.mxu0 %v18658_v2  ;;  %15911 = vmatprep.subr.bf16.mxu1 %v18660_v19  ;;  %v18206_v2 = vcombine.high %v12560_v55, %v12564_v56  ;;  %v12613_v5 = vld [vmem:[#allocation7 + $0x22b8] sm:$0xff] }
 0x863   : > { %15748 = vmatpush1.bf16.msra.mxu0 %v18657_v8  ;;  %15912 = vmatpush1.bf16.msra.mxu1 %v18659_v24  ;;  %v18205_v8 = vcombine.low %v12560_v55, %v12564_v56  ;;  %v12620_v55 = vld [vmem:[#allocation7 + $0x22f0] sm:$0xff]  ;;  %v12617_v56 = vld [vmem:[#allocation7 + $0x22d8] sm:$0xff] }
 0x864   : > { %15749 = vmatprep.subr.bf16.mxu0 %v18666_v15  ;;  %15913 = vmatprep.subr.bf16.mxu1 %v18668_v22  ;;  %v18214_v15 = vcombine.high %v12568_v57, %v12572_v3  ;;  %v18216_v22 = vcombine.high %v12569_v31, %v12573_v53 }
 0x867   : > { %15750 = vmatpush1.bf16.msra.mxu0 %v18665_v17  ;;  %15914 = vmatpush1.bf16.msra.mxu1 %v18667_v27  ;;  %v18213_v17 = vcombine.low %v12568_v57, %v12572_v3  ;;  %v18215_v27 = vcombine.low %v12569_v31, %v12573_v53  ;;  %v12628_v57 = vld [vmem:[#allocation7 + $0x2330] sm:$0xff]  ;;  %v12625_v3 = vld [vmem:[#allocation7 + $0x2318] sm:$0xff] }
 0x868   : > { %15751 = vmatprep.subr.bf16.mxu0 %v18674_v41  ;;  %15915 = vmatprep.subr.bf16.mxu1 %v18676_v20  ;;  %v18222_v41 = vcombine.high %v12576_v0, %v12580_v11  ;;  %v18224_v20 = vcombine.high %v12577_v14, %v12581_v32  ;;  %v12629_v31 = vld [vmem:[#allocation7 + $0x2338] sm:$0xff] }
 0x86b   : > { %15752 = vmatpush1.bf16.msra.mxu0 %v18673_v61  ;;  %15916 = vmatpush1.bf16.msra.mxu1 %v18675_v33  ;;  %v18221_v61 = vcombine.low %v12576_v0, %v12580_v11  ;;  %v18223_v33 = vcombine.low %v12577_v14, %v12581_v32  ;;  %v12636_v0 = vld [vmem:[#allocation7 + $0x2370] sm:$0xff]  ;;  %v12633_v11 = vld [vmem:[#allocation7 + $0x2358] sm:$0xff] }
 0x86c   : > { %15926 = vmatprep.subr.bf16.mxu0 %v18174_v34  ;;  %16090 = vmatprep.subr.bf16.mxu1 %v18176_v10  ;;  %v18232_v34 = vcombine.high %v12585_v7, %v12589_v28  ;;  %v12592_v10 = vld [vmem:[#allocation7 + $0x2210] sm:$0xff]  ;;  %v12637_v14 = vld [vmem:[#allocation7 + $0x2378] sm:$0xff] }
 0x86d   : > { %v18237_v30 = vcombine.low %v12592_v10, %v12596_v35 }
 0x86e   : > { %15754 = vmatmul.mubr.bf16.vlgmr.msra.gmra.mrb[24].mxu0 %v19700_v40  ;;  %15918 = vmatmul.mubr.bf16.vlgmr.msra.gmra.mrb[24].mxu1 %v19700_v40 }
 0x86f   : > { %15927 = vmatpush1.bf16.msra.mxu0 %v18173_v6  ;;  %15958 = vmatprep.mubr.bf16.mxu0 %v19664_v45  ;;  %v18231_v6 = vcombine.low %v12585_v7, %v12589_v28  ;;  %v12645_v7 = vld [vmem:[#allocation7 + $0x23b8] sm:$0xff] }
 0x870   : > { %16091 = vmatpush1.bf16.msra.mxu1 %v18175_v42  ;;  %16122 = vmatprep.mubr.bf16.mxu1 %v19664_v45  ;;  %v12561_v45 = vld [vmem:[#allocation7 + $0x2118] sm:$0xff]  ;;  %v18238_v42 = vcombine.high %v12592_v10, %v12596_v35  ;;  %v12652_v10 = vld [vmem:[#allocation7 + $0x23f0] sm:$0xff] }
 0x871   : > { %15928 = vmatprep.subr.bf16.mxu0 %v18182_v43  ;;  %16092 = vmatprep.subr.bf16.mxu1 %v18184_v13  ;;  %v18208_v19 = vcombine.high %v12561_v45, %v12565_v63  ;;  %v18207_v24 = vcombine.low %v12561_v45, %v12565_v63  ;;  %v18240_v43 = vcombine.high %v12593_v37, %v12597_v16  ;;  %v12600_v13 = vld [vmem:[#allocation7 + $0x2250] sm:$0xff]  ;;  %v12621_v45 = vld [vmem:[#allocation7 + $0x22f8] sm:$0xff] }
 0x872   : > { %v18245_v1 = vcombine.low %v12600_v13, %v12604_v44  ;;  %v12649_v35 = vld [vmem:[#allocation7 + $0x23d8] sm:$0xff] }
 0x873   : > { %15929 = vmatpush1.bf16.msra.mxu0 %v18181_v46  ;;  %v18239_v46 = vcombine.low %v12593_v37, %v12597_v16  ;;  %v12653_v37 = vld [vmem:[#allocation7 + $0x23f8] sm:$0xff] }
 0x874   : > { %16093 = vmatpush1.bf16.msra.mxu1 %v18183_v9  ;;  %15930 = vmatprep.subr.bf16.mxu0 %v18190_v47  ;;  %v18246_v9 = vcombine.high %v12600_v13, %v12604_v44  ;;  %v18248_v47 = vcombine.high %v12601_v54, %v12605_v26  ;;  %v12660_v13 = vld [vmem:[#allocation7 + $0x2430] sm:$0xff]  ;;  %v12657_v44 = vld [vmem:[#allocation7 + $0x2418] sm:$0xff] }
 0x875   : > { %16094 = vmatprep.subr.bf16.mxu1 %v18192_v25  ;;  %v12608_v25 = vld [vmem:[#allocation7 + $0x2290] sm:$0xff] }
 0x876   : > { %v18253_v63 = vcombine.low %v12608_v25, %v12612_v48 }
 0x877   : > { %15931 = vmatpush1.bf16.msra.mxu0 %v18189_v51  ;;  %v18247_v51 = vcombine.low %v12601_v54, %v12605_v26  ;;  %v12661_v54 = vld [vmem:[#allocation7 + $0x2438] sm:$0xff] }
 0x878   : > { %16095 = vmatpush1.bf16.msra.mxu1 %v18191_v36  ;;  %15932 = vmatprep.subr.bf16.mxu0 %v18198_v39  ;;  %v18254_v36 = vcombine.high %v12608_v25, %v12612_v48  ;;  %v18256_v39 = vcombine.high %v12609_v50, %v12613_v5  ;;  %v12668_v25 = vld [vmem:[#allocation7 + $0x2470] sm:$0xff] }
 0x879   : > { %16096 = vmatprep.subr.bf16.mxu1 %v18200_v59  ;;  %v12616_v59 = vld [vmem:[#allocation7 + $0x22d0] sm:$0xff] }
 0x87a   : > { %v18261_v53 = vcombine.low %v12616_v59, %v12620_v55 }
 0x87b   : > { %15933 = vmatpush1.bf16.msra.mxu0 %v18197_v60  ;;  %v18255_v60 = vcombine.low %v12609_v50, %v12613_v5  ;;  %v12665_v50 = vld [vmem:[#allocation7 + $0x2458] sm:$0xff] }
 0x87c   : > { %16097 = vmatpush1.bf16.msra.mxu1 %v18199_v4  ;;  %15934 = vmatprep.subr.bf16.mxu0 %v18206_v2  ;;  %v18262_v4 = vcombine.high %v12616_v59, %v12620_v55  ;;  %v18264_v2 = vcombine.high %v12617_v56, %v12621_v45  ;;  %v12669_v5 = vld [vmem:[#allocation7 + $0x2478] sm:$0xff] }
 0x87d   : > { %16098 = vmatprep.subr.bf16.mxu1 %v18208_v19  ;;  %v12624_v19 = vld [vmem:[#allocation7 + $0x2310] sm:$0xff]  ;;  %v18312_v59 = vcombine.high %v12665_v50, %v12669_v5  ;;  %v12673_v55 = vld [vmem:[#allocation7 + $0x2498] sm:$0xff] }
 0x87e   : > { %v18269_v32 = vcombine.low %v12624_v19, %v12628_v57 }
 0x87f   : > { %15935 = vmatpush1.bf16.msra.mxu0 %v18205_v8  ;;  %v18263_v8 = vcombine.low %v12617_v56, %v12621_v45  ;;  %v12677_v56 = vld [vmem:[#allocation7 + $0x24b8] sm:$0xff] }
 0x880   : > { %16099 = vmatpush1.bf16.msra.mxu1 %v18207_v24  ;;  %15936 = vmatprep.subr.bf16.mxu0 %v18214_v15  ;;  %v18270_v24 = vcombine.high %v12624_v19, %v12628_v57  ;;  %v18272_v15 = vcombine.high %v12625_v3, %v12629_v31  ;;  %v12684_v19 = vld [vmem:[#allocation7 + $0x24f0] sm:$0xff]  ;;  %v12681_v57 = vld [vmem:[#allocation7 + $0x24d8] sm:$0xff] }
 0x881   : > { %16100 = vmatprep.subr.bf16.mxu1 %v18216_v22  ;;  %v12632_v22 = vld [vmem:[#allocation7 + $0x2350] sm:$0xff] }
 0x882   : > { %v18277_v28 = vcombine.low %v12632_v22, %v12636_v0 }
 0x883   : > { %15937 = vmatpush1.bf16.msra.mxu0 %v18213_v17  ;;  %v18271_v17 = vcombine.low %v12625_v3, %v12629_v31  ;;  %v12685_v3 = vld [vmem:[#allocation7 + $0x24f8] sm:$0xff] }
 0x884   : > { %16101 = vmatpush1.bf16.msra.mxu1 %v18215_v27  ;;  %15938 = vmatprep.subr.bf16.mxu0 %v18222_v41  ;;  %v18278_v27 = vcombine.high %v12632_v22, %v12636_v0  ;;  %v18280_v41 = vcombine.high %v12633_v11, %v12637_v14  ;;  %v12689_v22 = vld [vmem:[#allocation7 + $0x2518] sm:$0xff] }
 0x885   : > { %16102 = vmatprep.subr.bf16.mxu1 %v18224_v20  ;;  %v12640_v20 = vld [vmem:[#allocation7 + $0x2390] sm:$0xff]  ;;  %v12693_v0 = vld [vmem:[#allocation7 + $0x2538] sm:$0xff] }
 0x886   : > { %v18285_v16 = vcombine.low %v12640_v20, %v12644_v21 }
 0x887   : > { %15939 = vmatpush1.bf16.msra.mxu0 %v18221_v61  ;;  %v18279_v61 = vcombine.low %v12633_v11, %v12637_v14  ;;  %v18327_v11 = vcombine.low %v12681_v57, %v12685_v3 }
 0x888   : > { %16103 = vmatpush1.bf16.msra.mxu1 %v18223_v33  ;;  %15940 = vmatprep.subr.bf16.mxu0 %v18230_v58  ;;  %v18286_v33 = vcombine.high %v12640_v20, %v12644_v21  ;;  %v18288_v58 = vcombine.high %v12641_v23, %v12645_v7  ;;  %v12701_v20 = vld [vmem:[#allocation7 + $0x2578] sm:$0xff] }
 0x889   : > { %16104 = vmatprep.subr.bf16.mxu1 %v18232_v34  ;;  %v12648_v34 = vld [vmem:[#allocation7 + $0x23d0] sm:$0xff] }
 0x88a   : > { %v18293_v26 = vcombine.low %v12648_v34, %v12652_v10 }
 0x88b   : > { %15941 = vmatpush1.bf16.msra.mxu0 %v18229_v38  ;;  %v18287_v38 = vcombine.low %v12641_v23, %v12645_v7  ;;  %v18335_v23 = vcombine.low %v12689_v22, %v12693_v0 }
 0x88c   : > { %16105 = vmatpush1.bf16.msra.mxu1 %v18231_v6  ;;  %15942 = vmatprep.subr.bf16.mxu0 %v18238_v42  ;;  %v18294_v6 = vcombine.high %v12648_v34, %v12652_v10  ;;  %v18296_v42 = vcombine.high %v12649_v35, %v12653_v37  ;;  %v12709_v34 = vld [vmem:[#allocation7 + $0x25b8] sm:$0xff] }
 0x88d   : > { %16106 = vmatprep.subr.bf16.mxu1 %v18240_v43  ;;  %v12656_v43 = vld [vmem:[#allocation7 + $0x2410] sm:$0xff] }
 0x88e   : > { %v18301_v48 = vcombine.low %v12656_v43, %v12660_v13 }
 0x88f   : > { %15943 = vmatpush1.bf16.msra.mxu0 %v18237_v30  ;;  %v18295_v30 = vcombine.low %v12649_v35, %v12653_v37 }
 0x890   : > { %16107 = vmatpush1.bf16.msra.mxu1 %v18239_v46  ;;  %15944 = vmatprep.subr.bf16.mxu0 %v18246_v9  ;;  %v18302_v46 = vcombine.high %v12656_v43, %v12660_v13  ;;  %v18304_v9 = vcombine.high %v12657_v44, %v12661_v54  ;;  %v12717_v43 = vld [vmem:[#allocation7 + $0x25f8] sm:$0xff] }
 0x891   : > { %16108 = vmatprep.subr.bf16.mxu1 %v18248_v47  ;;  %v12664_v47 = vld [vmem:[#allocation7 + $0x2450] sm:$0xff] }
 0x892   : > { %v18309_v45 = vcombine.low %v12664_v47, %v12668_v25 }
 0x893   : > { %15945 = vmatpush1.bf16.msra.mxu0 %v18245_v1  ;;  %v18303_v1 = vcombine.low %v12657_v44, %v12661_v54 }
 0x894   : > { %16109 = vmatpush1.bf16.msra.mxu1 %v18247_v51  ;;  %15946 = vmatprep.subr.bf16.mxu0 %v18254_v36  ;;  %v18310_v51 = vcombine.high %v12664_v47, %v12668_v25  ;;  %v12672_v36 = vld [vmem:[#allocation7 + $0x2490] sm:$0xff]  ;;  %v12725_v47 = vld [vmem:[#allocation7 + $0x2638] sm:$0xff] }
 0x895   : > { %16110 = vmatprep.subr.bf16.mxu1 %v18256_v39  ;;  %v12676_v39 = vld [vmem:[#allocation7 + $0x24b0] sm:$0xff] }
 0x896   : > { %v18317_v31 = vcombine.low %v12672_v36, %v12676_v39 }
 0x897   : > { %15947 = vmatpush1.bf16.msra.mxu0 %v18253_v63  ;;  %v18311_v63 = vcombine.low %v12665_v50, %v12669_v5 }
 0x898   : > { %16111 = vmatpush1.bf16.msra.mxu1 %v18255_v60  ;;  %15948 = vmatprep.subr.bf16.mxu0 %v18262_v4  ;;  %v18318_v60 = vcombine.high %v12672_v36, %v12676_v39  ;;  %v18320_v4 = vcombine.high %v12673_v55, %v12677_v56  ;;  %v12729_v36 = vld [vmem:[#allocation7 + $0x2658] sm:$0xff] }
 0x899   : > { %16112 = vmatprep.subr.bf16.mxu1 %v18264_v2  ;;  %v12680_v2 = vld [vmem:[#allocation7 + $0x24d0] sm:$0xff]  ;;  %v12733_v39 = vld [vmem:[#allocation7 + $0x2678] sm:$0xff] }
 0x89b   : > { %15949 = vmatpush1.bf16.msra.mxu0 %v18261_v53  ;;  %v18326_v53 = vcombine.high %v12680_v2, %v12684_v19 }
 0x89c   : > { %16113 = vmatpush1.bf16.msra.mxu1 %v18263_v8  ;;  %15950 = vmatprep.subr.bf16.mxu0 %v18270_v24  ;;  %v18328_v8 = vcombine.high %v12681_v57, %v12685_v3  ;;  %v12688_v24 = vld [vmem:[#allocation7 + $0x2510] sm:$0xff]  ;;  %v18375_v57 = vcombine.low %v12729_v36, %v12733_v39 }
 0x89d   : > { %16114 = vmatprep.subr.bf16.mxu1 %v18272_v15  ;;  %v12692_v15 = vld [vmem:[#allocation7 + $0x2530] sm:$0xff] }
 0x89e   : > { %v18334_v14 = vcombine.high %v12688_v24, %v12692_v15  ;;  %v18333_v21 = vcombine.low %v12688_v24, %v12692_v15  ;;  %v12749_v24 = vld [vmem:[#allocation7 + $0x26f8] sm:$0xff] }
 0x89f   : > { %15951 = vmatpush1.bf16.msra.mxu0 %v18269_v32  ;;  %v18336_v32 = vcombine.high %v12689_v22, %v12693_v0 }
 0x8a0   : > { %16115 = vmatpush1.bf16.msra.mxu1 %v18271_v17  ;;  %15952 = vmatprep.subr.bf16.mxu0 %v18278_v27  ;;  %v12696_v17 = vld [vmem:[#allocation7 + $0x2550] sm:$0xff] }
 0x8a1   : > { %16116 = vmatprep.subr.bf16.mxu1 %v18280_v41  ;;  %v12700_v27 = vld [vmem:[#allocation7 + $0x2570] sm:$0xff]  ;;  %v12697_v41 = vld [vmem:[#allocation7 + $0x2558] sm:$0xff] }
 0x8a2   : > { %v18342_v7 = vcombine.high %v12696_v17, %v12700_v27  ;;  %v18341_v10 = vcombine.low %v12696_v17, %v12700_v27  ;;  %v18343_v35 = vcombine.low %v12697_v41, %v12701_v20  ;;  %v12757_v17 = vld [vmem:[#allocation7 + $0x2738] sm:$0xff] }
 0x8a3   : > { %15953 = vmatpush1.bf16.msra.mxu0 %v18277_v28  ;;  %v18344_v28 = vcombine.high %v12697_v41, %v12701_v20 }
 0x8a4   : > { %16117 = vmatpush1.bf16.msra.mxu1 %v18279_v61  ;;  %15954 = vmatprep.subr.bf16.mxu0 %v18286_v33  ;;  %v12704_v61 = vld [vmem:[#allocation7 + $0x2590] sm:$0xff] }
 0x8a5   : > { %16118 = vmatprep.subr.bf16.mxu1 %v18288_v58  ;;  %v12708_v33 = vld [vmem:[#allocation7 + $0x25b0] sm:$0xff]  ;;  %v12705_v58 = vld [vmem:[#allocation7 + $0x2598] sm:$0xff] }
 0x8a6   : > { %v18350_v37 = vcombine.high %v12704_v61, %v12708_v33  ;;  %v18349_v13 = vcombine.low %v12704_v61, %v12708_v33  ;;  %v18351_v44 = vcombine.low %v12705_v58, %v12709_v34  ;;  %v12765_v61 = vld [vmem:[#allocation7 + $0x2778] sm:$0xff] }
 0x8a7   : > { %15955 = vmatpush1.bf16.msra.mxu0 %v18285_v16  ;;  %v18352_v16 = vcombine.high %v12705_v58, %v12709_v34 }
 0x8a8   : > { %16119 = vmatpush1.bf16.msra.mxu1 %v18287_v38  ;;  %15956 = vmatprep.subr.bf16.mxu0 %v18294_v6  ;;  %v12712_v38 = vld [vmem:[#allocation7 + $0x25d0] sm:$0xff] }
 0x8a9   : > { %16120 = vmatprep.subr.bf16.mxu1 %v18296_v42  ;;  %v12716_v6 = vld [vmem:[#allocation7 + $0x25f0] sm:$0xff]  ;;  %v12713_v42 = vld [vmem:[#allocation7 + $0x25d8] sm:$0xff] }
 0x8aa   : > { %v18358_v54 = vcombine.high %v12712_v38, %v12716_v6  ;;  %v18357_v25 = vcombine.low %v12712_v38, %v12716_v6  ;;  %v12773_v38 = vld [vmem:[#allocation7 + $0x27b8] sm:$0xff] }
 0x8ab   : > { %15957 = vmatpush1.bf16.msra.mxu0 %v18293_v26  ;;  %v18360_v26 = vcombine.high %v12713_v42, %v12717_v43 }
 0x8ac   : > { %16121 = vmatpush1.bf16.msra.mxu1 %v18295_v30  ;;  %15967 = vmatprep.subr.bf16.mxu0 %v18302_v46  ;;  %v12720_v30 = vld [vmem:[#allocation7 + $0x2610] sm:$0xff] }
 0x8ad   : > { %16131 = vmatprep.subr.bf16.mxu1 %v18304_v9  ;;  %v12724_v46 = vld [vmem:[#allocation7 + $0x2630] sm:$0xff]  ;;  %v12721_v9 = vld [vmem:[#allocation7 + $0x2618] sm:$0xff] }
 0x8ae   : > { %15959 = vmatmul.mubr.bf16.vlgmr.msra.gmra.mrb[28].mxu0 %v19672_v49  ;;  %v18366_v50 = vcombine.high %v12720_v30, %v12724_v46  ;;  %v18368_v5 = vcombine.high %v12721_v9, %v12725_v47 }
 0x8af   : > { %16123 = vmatmul.mubr.bf16.vlgmr.msra.gmra.mrb[28].mxu1 %v19672_v49  ;;  %15968 = vmatpush1.bf16.msra.mxu0 %v18301_v48  ;;  %v18319_v49 = vcombine.low %v12673_v55, %v12677_v56  ;;  %v18359_v48 = vcombine.low %v12713_v42, %v12717_v43  ;;  %v18367_v55 = vcombine.low %v12721_v9, %v12725_v47 }
 0x8b0   : > { %15999 = vmatprep.mubr.bf16.mxu0 %v19674_v52  ;;  %16132 = vmatpush1.bf16.msra.mxu1 %v18303_v1  ;;  %v12728_v1 = vld [vmem:[#allocation7 + $0x2650] sm:$0xff] }
 0x8b1   : > { %16163 = vmatprep.mubr.bf16.mxu1 %v19674_v52  ;;  %15969 = vmatprep.subr.bf16.mxu0 %v18310_v51  ;;  %v18325_v52 = vcombine.low %v12680_v2, %v12684_v19  ;;  %v12732_v51 = vld [vmem:[#allocation7 + $0x2670] sm:$0xff]  ;;  %v12741_v2 = vld [vmem:[#allocation7 + $0x26b8] sm:$0xff] }
 0x8b2   : > { %16133 = vmatprep.subr.bf16.mxu1 %v18312_v59  ;;  %v18365_v59 = vcombine.low %v12720_v30, %v12724_v46  ;;  %v18374_v56 = vcombine.high %v12728_v1, %v12732_v51  ;;  %v18373_v19 = vcombine.low %v12728_v1, %v12732_v51  ;;  %v12781_v30 = vld [vmem:[#allocation7 + $0x27f8] sm:$0xff] }
 0x8b3   : > { %15970 = vmatpush1.bf16.msra.mxu0 %v18309_v45  ;;  %v18376_v45 = vcombine.high %v12729_v36, %v12733_v39  ;;  %v12789_v1 = vld [vmem:[#allocation7 + $0x2838] sm:$0xff] }
 0x8b4   : > { %16134 = vmatpush1.bf16.msra.mxu1 %v18311_v63  ;;  %15971 = vmatprep.subr.bf16.mxu0 %v18318_v60  ;;  %v12736_v63 = vld [vmem:[#allocation7 + $0x2690] sm:$0xff] }
 0x8b5   : > { %16135 = vmatprep.subr.bf16.mxu1 %v18320_v4  ;;  %v12740_v60 = vld [vmem:[#allocation7 + $0x26b0] sm:$0xff]  ;;  %v12737_v4 = vld [vmem:[#allocation7 + $0x2698] sm:$0xff] }
 0x8b6   : > { %v18382_v3 = vcombine.high %v12736_v63, %v12740_v60  ;;  %v18381_v15 = vcombine.low %v12736_v63, %v12740_v60  ;;  %v18383_v22 = vcombine.low %v12737_v4, %v12741_v2  ;;  %v12793_v63 = vld [vmem:[#allocation7 + $0x2858] sm:$0xff] }
 0x8b7   : > { %15972 = vmatpush1.bf16.msra.mxu0 %v18317_v31  ;;  %v18384_v31 = vcombine.high %v12737_v4, %v12741_v2  ;;  %v12797_v60 = vld [vmem:[#allocation7 + $0x2878] sm:$0xff] }
 0x8b8   : > { %16136 = vmatpush1.bf16.msra.mxu1 %v18319_v49  ;;  %15973 = vmatprep.subr.bf16.mxu0 %v18326_v53  ;;  %v12744_v49 = vld [vmem:[#allocation7 + $0x26d0] sm:$0xff] }
 0x8b9   : > { %16137 = vmatprep.subr.bf16.mxu1 %v18328_v8  ;;  %v12748_v53 = vld [vmem:[#allocation7 + $0x26f0] sm:$0xff]  ;;  %v12745_v8 = vld [vmem:[#allocation7 + $0x26d8] sm:$0xff] }
 0x8ba   : > { %v18390_v0 = vcombine.high %v12744_v49, %v12748_v53  ;;  %v18389_v27 = vcombine.low %v12744_v49, %v12748_v53  ;;  %v18391_v41 = vcombine.low %v12745_v8, %v12749_v24  ;;  %v12805_v49 = vld [vmem:[#allocation7 + $0x28b8] sm:$0xff] }
 0x8bb   : > { %15974 = vmatpush1.bf16.msra.mxu0 %v18325_v52  ;;  %v18392_v52 = vcombine.high %v12745_v8, %v12749_v24  ;;  %v18439_v8 = vcombine.low %v12793_v63, %v12797_v60 }
 0x8bc   : > { %16138 = vmatpush1.bf16.msra.mxu1 %v18327_v11  ;;  %15975 = vmatprep.subr.bf16.mxu0 %v18334_v14  ;;  %v12752_v11 = vld [vmem:[#allocation7 + $0x2710] sm:$0xff] }
 0x8bd   : > { %16139 = vmatprep.subr.bf16.mxu1 %v18336_v32  ;;  %v12756_v14 = vld [vmem:[#allocation7 + $0x2730] sm:$0xff]  ;;  %v12753_v32 = vld [vmem:[#allocation7 + $0x2718] sm:$0xff] }
 0x8be   : > { %v18398_v20 = vcombine.high %v12752_v11, %v12756_v14  ;;  %v18397_v33 = vcombine.low %v12752_v11, %v12756_v14  ;;  %v18399_v58 = vcombine.low %v12753_v32, %v12757_v17  ;;  %v12813_v11 = vld [vmem:[#allocation7 + $0x28f8] sm:$0xff] }
 0x8bf   : > { %15976 = vmatpush1.bf16.msra.mxu0 %v18333_v21  ;;  %v18400_v21 = vcombine.high %v12753_v32, %v12757_v17 }
 0x8c0   : > { %16140 = vmatpush1.bf16.msra.mxu1 %v18335_v23  ;;  %15977 = vmatprep.subr.bf16.mxu0 %v18342_v7  ;;  %v12760_v23 = vld [vmem:[#allocation7 + $0x2750] sm:$0xff] }
 0x8c1   : > { %16141 = vmatprep.subr.bf16.mxu1 %v18344_v28  ;;  %v12764_v7 = vld [vmem:[#allocation7 + $0x2770] sm:$0xff]  ;;  %v12761_v28 = vld [vmem:[#allocation7 + $0x2758] sm:$0xff] }
 0x8c2   : > { %v18406_v34 = vcombine.high %v12760_v23, %v12764_v7  ;;  %v18405_v6 = vcombine.low %v12760_v23, %v12764_v7  ;;  %v18407_v42 = vcombine.low %v12761_v28, %v12765_v61 }
 0x8c3   : > { %15978 = vmatpush1.bf16.msra.mxu0 %v18341_v10  ;;  %v18408_v10 = vcombine.high %v12761_v28, %v12765_v61  ;;  %v12824_v61 = vld [vmem:[#allocation7 + $0x2950] sm:$0xff] }
 0x8c4   : > { %16142 = vmatpush1.bf16.msra.mxu1 %v18343_v35  ;;  %15979 = vmatprep.subr.bf16.mxu0 %v18350_v37  ;;  %v12768_v35 = vld [vmem:[#allocation7 + $0x2790] sm:$0xff] }
 0x8c5   : > { %16143 = vmatprep.subr.bf16.mxu1 %v18352_v16  ;;  %v12772_v37 = vld [vmem:[#allocation7 + $0x27b0] sm:$0xff]  ;;  %v12769_v16 = vld [vmem:[#allocation7 + $0x2798] sm:$0xff] }
 0x8c6   : > { %v18414_v43 = vcombine.high %v12768_v35, %v12772_v37  ;;  %v18413_v46 = vcombine.low %v12768_v35, %v12772_v37  ;;  %v18415_v9 = vcombine.low %v12769_v16, %v12773_v38 }
 0x8c7   : > { %15980 = vmatpush1.bf16.msra.mxu0 %v18349_v13  ;;  %v18416_v13 = vcombine.high %v12769_v16, %v12773_v38  ;;  %v12832_v38 = vld [vmem:[#allocation7 + $0x2990] sm:$0xff] }
 0x8c8   : > { %16144 = vmatpush1.bf16.msra.mxu1 %v18351_v44  ;;  %15981 = vmatprep.subr.bf16.mxu0 %v18358_v54  ;;  %v12776_v44 = vld [vmem:[#allocation7 + $0x27d0] sm:$0xff] }
 0x8c9   : > { %16145 = vmatprep.subr.bf16.mxu1 %v18360_v26  ;;  %v12780_v54 = vld [vmem:[#allocation7 + $0x27f0] sm:$0xff]  ;;  %v12777_v26 = vld [vmem:[#allocation7 + $0x27d8] sm:$0xff] }
 0x8ca   : > { %v18422_v47 = vcombine.high %v12776_v44, %v12780_v54  ;;  %v18421_v51 = vcombine.low %v12776_v44, %v12780_v54  ;;  %v18423_v36 = vcombine.low %v12777_v26, %v12781_v30 }
 0x8cb   : > { %15982 = vmatpush1.bf16.msra.mxu0 %v18357_v25  ;;  %v18424_v25 = vcombine.high %v12777_v26, %v12781_v30  ;;  %v12840_v30 = vld [vmem:[#allocation7 + $0x29d0] sm:$0xff] }
 0x8cc   : > { %16146 = vmatpush1.bf16.msra.mxu1 %v18359_v48  ;;  %15983 = vmatprep.subr.bf16.mxu0 %v18366_v50  ;;  %v12784_v48 = vld [vmem:[#allocation7 + $0x2810] sm:$0xff] }
 0x8cd   : > { %16147 = vmatprep.subr.bf16.mxu1 %v18368_v5  ;;  %v12788_v50 = vld [vmem:[#allocation7 + $0x2830] sm:$0xff]  ;;  %v12785_v5 = vld [vmem:[#allocation7 + $0x2818] sm:$0xff] }
 0x8ce   : > { %v18430_v39 = vcombine.high %v12784_v48, %v12788_v50  ;;  %v18431_v4 = vcombine.low %v12785_v5, %v12789_v1 }
 0x8cf   : > { %15984 = vmatpush1.bf16.msra.mxu0 %v18365_v59  ;;  %v18432_v59 = vcombine.high %v12785_v5, %v12789_v1  ;;  %v12848_v1 = vld [vmem:[#allocation7 + $0x2a10] sm:$0xff] }
 0x8d0   : > { %16148 = vmatpush1.bf16.msra.mxu1 %v18367_v55  ;;  %15985 = vmatprep.subr.bf16.mxu0 %v18374_v56  ;;  %v12792_v55 = vld [vmem:[#allocation7 + $0x2850] sm:$0xff] }
 0x8d1   : > { %16149 = vmatprep.subr.bf16.mxu1 %v18376_v45  ;;  %v12796_v56 = vld [vmem:[#allocation7 + $0x2870] sm:$0xff]  ;;  %v18429_v45 = vcombine.low %v12784_v48, %v12788_v50 }
 0x8d2   : > { %v18438_v2 = vcombine.high %v12792_v55, %v12796_v56  ;;  %v18437_v53 = vcombine.low %v12792_v55, %v12796_v56 }
 0x8d3   : > { %15986 = vmatpush1.bf16.msra.mxu0 %v18373_v19  ;;  %v12800_v19 = vld [vmem:[#allocation7 + $0x2890] sm:$0xff] }
 0x8d4   : > { %16150 = vmatpush1.bf16.msra.mxu1 %v18375_v57  ;;  %15987 = vmatprep.subr.bf16.mxu0 %v18382_v3  ;;  %v12804_v57 = vld [vmem:[#allocation7 + $0x28b0] sm:$0xff]  ;;  %v18440_v3 = vcombine.high %v12793_v63, %v12797_v60 }
 0x8d5   : > { %16151 = vmatprep.subr.bf16.mxu1 %v18384_v31  ;;  %v12801_v31 = vld [vmem:[#allocation7 + $0x2898] sm:$0xff]  ;;  %v18446_v24 = vcombine.high %v12800_v19, %v12804_v57  ;;  %v18445_v14 = vcombine.low %v12800_v19, %v12804_v57  ;;  %v12856_v63 = vld [vmem:[#allocation7 + $0x2a50] sm:$0xff] }
 0x8d6   : > { %v12860_v60 = vld [vmem:[#allocation7 + $0x2a70] sm:$0xff] }
 0x8d7   : > { %15988 = vmatpush1.bf16.msra.mxu0 %v18381_v15  ;;  %v18448_v15 = vcombine.high %v12801_v31, %v12805_v49 }
 0x8d8   : > { %16152 = vmatpush1.bf16.msra.mxu1 %v18383_v22  ;;  %15989 = vmatprep.subr.bf16.mxu0 %v18390_v0  ;;  %v12808_v22 = vld [vmem:[#allocation7 + $0x28d0] sm:$0xff] }
 0x8d9   : > { %16153 = vmatprep.subr.bf16.mxu1 %v18392_v52  ;;  %v12812_v0 = vld [vmem:[#allocation7 + $0x28f0] sm:$0xff]  ;;  %v12809_v52 = vld [vmem:[#allocation7 + $0x28d8] sm:$0xff] }
 0x8da   : > { %v18454_v32 = vcombine.high %v12808_v22, %v12812_v0  ;;  %v18456_v17 = vcombine.high %v12809_v52, %v12813_v11  ;;  %v18455_v23 = vcombine.low %v12809_v52, %v12813_v11  ;;  %v12872_v11 = vld [vmem:[#allocation7 + $0x2ad0] sm:$0xff] }
 0x8db   : > { %15990 = vmatpush1.bf16.msra.mxu0 %v18389_v27  ;;  %v12816_v27 = vld [vmem:[#allocation7 + $0x2910] sm:$0xff] }
 0x8dc   : > { %16154 = vmatpush1.bf16.msra.mxu1 %v18391_v41  ;;  %15991 = vmatprep.subr.bf16.mxu0 %v18398_v20  ;;  %v12820_v41 = vld [vmem:[#allocation7 + $0x2930] sm:$0xff]  ;;  %v12817_v20 = vld [vmem:[#allocation7 + $0x2918] sm:$0xff] }
 0x8dd   : > { %16155 = vmatprep.subr.bf16.mxu1 %v18400_v21  ;;  %v12821_v21 = vld [vmem:[#allocation7 + $0x2938] sm:$0xff]  ;;  %v18462_v7 = vcombine.high %v12816_v27, %v12820_v41 }
 0x8de   : > { %v18464_v28 = vcombine.high %v12817_v20, %v12821_v21  ;;  %v18463_v35 = vcombine.low %v12817_v20, %v12821_v21  ;;  %v12880_v21 = vld [vmem:[#allocation7 + $0x2b10] sm:$0xff] }
 0x8df   : > { %15992 = vmatpush1.bf16.msra.mxu0 %v18397_v33  ;;  %v12828_v33 = vld [vmem:[#allocation7 + $0x2970] sm:$0xff] }
 0x8e0   : > { %16156 = vmatpush1.bf16.msra.mxu1 %v18399_v58  ;;  %15993 = vmatprep.subr.bf16.mxu0 %v18406_v34  ;;  %v12825_v58 = vld [vmem:[#allocation7 + $0x2958] sm:$0xff]  ;;  %v18470_v37 = vcombine.high %v12824_v61, %v12828_v33 }
 0x8e1   : > { %16157 = vmatprep.subr.bf16.mxu1 %v18408_v10  ;;  %v12829_v34 = vld [vmem:[#allocation7 + $0x2978] sm:$0xff]  ;;  %v18461_v10 = vcombine.low %v12816_v27, %v12820_v41 }
 0x8e2   : > { %v18472_v16 = vcombine.high %v12825_v58, %v12829_v34  ;;  %v18471_v44 = vcombine.low %v12825_v58, %v12829_v34  ;;  %v12888_v34 = vld [vmem:[#allocation7 + $0x2b50] sm:$0xff] }
 0x8e3   : > { %15994 = vmatpush1.bf16.msra.mxu0 %v18405_v6  ;;  %v12836_v6 = vld [vmem:[#allocation7 + $0x29b0] sm:$0xff] }
 0x8e4   : > { %16158 = vmatpush1.bf16.msra.mxu1 %v18407_v42  ;;  %15995 = vmatprep.subr.bf16.mxu0 %v18414_v43  ;;  %v12833_v42 = vld [vmem:[#allocation7 + $0x2998] sm:$0xff]  ;;  %v18478_v54 = vcombine.high %v12832_v38, %v12836_v6 }
 0x8e5   : > { %16159 = vmatprep.subr.bf16.mxu1 %v18416_v13  ;;  %v12837_v43 = vld [vmem:[#allocation7 + $0x29b8] sm:$0xff]  ;;  %v18469_v13 = vcombine.low %v12824_v61, %v12828_v33 }
 0x8e6   : > { %v18480_v26 = vcombine.high %v12833_v42, %v12837_v43  ;;  %v18479_v48 = vcombine.low %v12833_v42, %v12837_v43  ;;  %v12896_v43 = vld [vmem:[#allocation7 + $0x2b90] sm:$0xff] }
 0x8e7   : > { %15996 = vmatpush1.bf16.msra.mxu0 %v18413_v46  ;;  %v12844_v46 = vld [vmem:[#allocation7 + $0x29f0] sm:$0xff] }
 0x8e8   : > { %16160 = vmatpush1.bf16.msra.mxu1 %v18415_v9  ;;  %15997 = vmatprep.subr.bf16.mxu0 %v18422_v47  ;;  %v12841_v9 = vld [vmem:[#allocation7 + $0x29d8] sm:$0xff]  ;;  %v18486_v50 = vcombine.high %v12840_v30, %v12844_v46 }
 0x8e9   : > { %16161 = vmatprep.subr.bf16.mxu1 %v18424_v25  ;;  %v12845_v47 = vld [vmem:[#allocation7 + $0x29f8] sm:$0xff]  ;;  %v18477_v25 = vcombine.low %v12832_v38, %v12836_v6 }
 0x8ea   : > { %v18488_v5 = vcombine.high %v12841_v9, %v12845_v47  ;;  %v18487_v55 = vcombine.low %v12841_v9, %v12845_v47  ;;  %v12904_v47 = vld [vmem:[#allocation7 + $0x2bd0] sm:$0xff] }
 0x8eb   : > { %15998 = vmatpush1.bf16.msra.mxu0 %v18421_v51  ;;  %v12852_v51 = vld [vmem:[#allocation7 + $0x2a30] sm:$0xff] }
 0x8ec   : > { %16162 = vmatpush1.bf16.msra.mxu1 %v18423_v36  ;;  %16008 = vmatprep.subr.bf16.mxu0 %v18430_v39  ;;  %v12849_v36 = vld [vmem:[#allocation7 + $0x2a18] sm:$0xff]  ;;  %v18494_v56 = vcombine.high %v12848_v1, %v12852_v51  ;;  %v18493_v19 = vcombine.low %v12848_v1, %v12852_v51 }
 0x8ed   : > { %16172 = vmatprep.subr.bf16.mxu1 %v18432_v59  ;;  %v12853_v39 = vld [vmem:[#allocation7 + $0x2a38] sm:$0xff]  ;;  %v18485_v59 = vcombine.low %v12840_v30, %v12844_v46 }
 0x8ee   : > { %16000 = vmatmul.mubr.bf16.vlgmr.msra.gmra.mrb[28].mxu0 %v19681_v62  ;;  %v18495_v57 = vcombine.low %v12849_v36, %v12853_v39 }
 0x8ef   : > { %16164 = vmatmul.mubr.bf16.vlgmr.msra.gmra.mrb[28].mxu1 %v19681_v62  ;;  %16009 = vmatpush1.bf16.msra.mxu0 %v18429_v45  ;;  %v18447_v62 = vcombine.low %v12801_v31, %v12805_v49  ;;  %v18496_v45 = vcombine.high %v12849_v36, %v12853_v39  ;;  %v12864_v49 = vld [vmem:[#allocation7 + $0x2a90] sm:$0xff] }
 0x8f0   : > { %16040 = vmatprep.mubr.bf16.mxu0 %v19687_v12  ;;  %16173 = vmatpush1.bf16.msra.mxu1 %v18431_v4  ;;  %v12857_v4 = vld [vmem:[#allocation7 + $0x2a58] sm:$0xff]  ;;  %v12912_v39 = vld [vmem:[#allocation7 + $0x2c10] sm:$0xff] }
 0x8f1   : > { %16204 = vmatprep.mubr.bf16.mxu1 %v19687_v12  ;;  %16010 = vmatprep.subr.bf16.mxu0 %v18438_v2  ;;  %v18453_v12 = vcombine.low %v12808_v22, %v12812_v0  ;;  %v12861_v2 = vld [vmem:[#allocation7 + $0x2a78] sm:$0xff] }
 0x8f2   : > { %16174 = vmatprep.subr.bf16.mxu1 %v18440_v3  ;;  %v18502_v3 = vcombine.high %v12856_v63, %v12860_v60  ;;  %v18504_v31 = vcombine.high %v12857_v4, %v12861_v2  ;;  %v18503_v22 = vcombine.low %v12857_v4, %v12861_v2  ;;  %v12920_v2 = vld [vmem:[#allocation7 + $0x2c50] sm:$0xff] }
 0x8f3   : > { %16011 = vmatpush1.bf16.msra.mxu0 %v18437_v53  ;;  %v12868_v53 = vld [vmem:[#allocation7 + $0x2ab0] sm:$0xff] }
 0x8f4   : > { %16175 = vmatpush1.bf16.msra.mxu1 %v18439_v8  ;;  %16012 = vmatprep.subr.bf16.mxu0 %v18446_v24  ;;  %v12865_v8 = vld [vmem:[#allocation7 + $0x2a98] sm:$0xff]  ;;  %v18510_v0 = vcombine.high %v12864_v49, %v12868_v53 }
 0x8f5   : > { %16176 = vmatprep.subr.bf16.mxu1 %v18448_v15  ;;  %v12869_v24 = vld [vmem:[#allocation7 + $0x2ab8] sm:$0xff]  ;;  %v18501_v15 = vcombine.low %v12856_v63, %v12860_v60 }
 0x8f6   : > { %v18512_v52 = vcombine.high %v12865_v8, %v12869_v24  ;;  %v18511_v27 = vcombine.low %v12865_v8, %v12869_v24  ;;  %v12928_v8 = vld [vmem:[#allocation7 + $0x2c90] sm:$0xff] }
 0x8f7   : > { %16013 = vmatpush1.bf16.msra.mxu0 %v18445_v14  ;;  %v12876_v14 = vld [vmem:[#allocation7 + $0x2af0] sm:$0xff] }
 0x8f8   : > { %16177 = vmatpush1.bf16.msra.mxu1 %v18447_v62  ;;  %16014 = vmatprep.subr.bf16.mxu0 %v18454_v32  ;;  %v12873_v62 = vld [vmem:[#allocation7 + $0x2ad8] sm:$0xff]  ;;  %v18518_v41 = vcombine.high %v12872_v11, %v12876_v14  ;;  %v12932_v24 = vld [vmem:[#allocation7 + $0x2cb0] sm:$0xff] }
 0x8f9   : > { %16178 = vmatprep.subr.bf16.mxu1 %v18456_v17  ;;  %v12877_v32 = vld [vmem:[#allocation7 + $0x2af8] sm:$0xff]  ;;  %v18509_v17 = vcombine.low %v12864_v49, %v12868_v53 }
 0x8fa   : > { %v18520_v20 = vcombine.high %v12873_v62, %v12877_v32  ;;  %v18519_v61 = vcombine.low %v12873_v62, %v12877_v32  ;;  %v16267_v62 = vlaneseq }
 0x8fb   : > { %16015 = vmatpush1.bf16.msra.mxu0 %v18453_v12  ;;  %v12884_v12 = vld [vmem:[#allocation7 + $0x2b30] sm:$0xff] }
 0x8fc   : > { %16179 = vmatpush1.bf16.msra.mxu1 %v18455_v23  ;;  %16016 = vmatprep.subr.bf16.mxu0 %v18462_v7  ;;  %v12881_v23 = vld [vmem:[#allocation7 + $0x2b18] sm:$0xff]  ;;  %v18526_v33 = vcombine.high %v12880_v21, %v12884_v12 }
 0x8fd   : > { %16180 = vmatprep.subr.bf16.mxu1 %v18464_v28  ;;  %v12885_v7 = vld [vmem:[#allocation7 + $0x2b38] sm:$0xff]  ;;  %v18517_v28 = vcombine.low %v12872_v11, %v12876_v14  ;;  %v18574_v14 = vcombine.high %v12928_v8, %v12932_v24 }
 0x8fe   : > { %v18528_v58 = vcombine.high %v12881_v23, %v12885_v7  ;;  %v18527_v38 = vcombine.low %v12881_v23, %v12885_v7  ;;  %v19718_v23 = vshrl.u32 %v16267_v62, 7 }
 0x8ff   : > { %16017 = vmatpush1.bf16.msra.mxu0 %v18461_v10  ;;  %v12892_v10 = vld [vmem:[#allocation7 + $0x2b70] sm:$0xff] }
 0x900   : > { %16181 = vmatpush1.bf16.msra.mxu1 %v18463_v35  ;;  %16018 = vmatprep.subr.bf16.mxu0 %v18470_v37  ;;  %v12889_v35 = vld [vmem:[#allocation7 + $0x2b58] sm:$0xff]  ;;  %v18534_v6 = vcombine.high %v12888_v34, %v12892_v10 }
 0x901   : > { %16182 = vmatprep.subr.bf16.mxu1 %v18472_v16  ;;  %v12893_v37 = vld [vmem:[#allocation7 + $0x2b78] sm:$0xff]  ;;  %v18525_v16 = vcombine.low %v12880_v21, %v12884_v12  ;;  %v18573_v21 = vcombine.low %v12928_v8, %v12932_v24 }
 0x902   : > { %v18536_v42 = vcombine.high %v12889_v35, %v12893_v37  ;;  %v18535_v30 = vcombine.low %v12889_v35, %v12893_v37  ;;  %v12973_v8 = vld [vmem:[#allocation7 + $0x2df8] sm:$0xff] }
 0x903   : > { %16019 = vmatpush1.bf16.msra.mxu0 %v18469_v13  ;;  %v12900_v13 = vld [vmem:[#allocation7 + $0x2bb0] sm:$0xff] }
 0x904   : > { %16183 = vmatpush1.bf16.msra.mxu1 %v18471_v44  ;;  %16020 = vmatprep.subr.bf16.mxu0 %v18478_v54  ;;  %v12897_v44 = vld [vmem:[#allocation7 + $0x2b98] sm:$0xff]  ;;  %v18542_v46 = vcombine.high %v12896_v43, %v12900_v13 }
 0x905   : > { %16184 = vmatprep.subr.bf16.mxu1 %v18480_v26  ;;  %v12901_v54 = vld [vmem:[#allocation7 + $0x2bb8] sm:$0xff]  ;;  %v18533_v26 = vcombine.low %v12888_v34, %v12892_v10 }
 0x906   : > { %v18544_v9 = vcombine.high %v12897_v44, %v12901_v54  ;;  %v18543_v1 = vcombine.low %v12897_v44, %v12901_v54  ;;  %v12957_v44 = vld [vmem:[#allocation7 + $0x2d78] sm:$0xff] }
 0x907   : > { %16021 = vmatpush1.bf16.msra.mxu0 %v18477_v25  ;;  %v12908_v25 = vld [vmem:[#allocation7 + $0x2bf0] sm:$0xff] }
 0x908   : > { %16185 = vmatpush1.bf16.msra.mxu1 %v18479_v48  ;;  %16022 = vmatprep.subr.bf16.mxu0 %v18486_v50  ;;  %v12905_v48 = vld [vmem:[#allocation7 + $0x2bd8] sm:$0xff]  ;;  %v18550_v51 = vcombine.high %v12904_v47, %v12908_v25 }
 0x909   : > { %16186 = vmatprep.subr.bf16.mxu1 %v18488_v5  ;;  %v12909_v50 = vld [vmem:[#allocation7 + $0x2bf8] sm:$0xff]  ;;  %v18541_v5 = vcombine.low %v12896_v43, %v12900_v13  ;;  %v12956_v43 = vld [vmem:[#allocation7 + $0x2d70] sm:$0xff] }
 0x90a   : > { %v18552_v36 = vcombine.high %v12905_v48, %v12909_v50  ;;  %v18551_v63 = vcombine.low %v12905_v48, %v12909_v50  ;;  %v12953_v13 = vld [vmem:[#allocation7 + $0x2d58] sm:$0xff]  ;;  %v12960_v50 = vld [vmem:[#allocation7 + $0x2d90] sm:$0xff] }
 0x90b   : > { %16023 = vmatpush1.bf16.msra.mxu0 %v18485_v59  ;;  %v12916_v59 = vld [vmem:[#allocation7 + $0x2c30] sm:$0xff]  ;;  %v18600_v48 = vcombine.high %v12953_v13, %v12957_v44 }
 0x90c   : > { %16187 = vmatpush1.bf16.msra.mxu1 %v18487_v55  ;;  %16024 = vmatprep.subr.bf16.mxu0 %v18494_v56  ;;  %v12913_v55 = vld [vmem:[#allocation7 + $0x2c18] sm:$0xff]  ;;  %v18558_v60 = vcombine.high %v12912_v39, %v12916_v59 }
 0x90d   : > { %16188 = vmatprep.subr.bf16.mxu1 %v18496_v45  ;;  %v12917_v56 = vld [vmem:[#allocation7 + $0x2c38] sm:$0xff]  ;;  %v18549_v45 = vcombine.low %v12904_v47, %v12908_v25  ;;  %v16281_v25 = vsub.s32 6, %v19718_v23 }
 0x90e   : > { %v18560_v4 = vcombine.high %v12913_v55, %v12917_v56  ;;  %v18559_v49 = vcombine.low %v12913_v55, %v12917_v56  ;;  %v18599_v55 = vcombine.low %v12953_v13, %v12957_v44  ;;  %v12988_v13 = vld [vmem:[#allocation7 + $0x2e70] sm:$0xff]  ;;  %v12985_v44 = vld [vmem:[#allocation7 + $0x2e58] sm:$0xff] }
 0x90f   : > { %16025 = vmatpush1.bf16.msra.mxu0 %v18493_v19  ;;  %v12924_v19 = vld [vmem:[#allocation7 + $0x2c70] sm:$0xff] }
 0x910   : > { %16189 = vmatpush1.bf16.msra.mxu1 %v18495_v57  ;;  %16026 = vmatprep.subr.bf16.mxu0 %v18502_v3  ;;  %v18557_v57 = vcombine.low %v12912_v39, %v12916_v59  ;;  %v12921_v3 = vld [vmem:[#allocation7 + $0x2c58] sm:$0xff]  ;;  %v18566_v53 = vcombine.high %v12920_v2, %v12924_v19 }
 0x911   : > { %16190 = vmatprep.subr.bf16.mxu1 %v18504_v31  ;;  %v12925_v31 = vld [vmem:[#allocation7 + $0x2c78] sm:$0xff] }
 0x912   : > { %v18567_v11 = vcombine.low %v12921_v3, %v12925_v31 }
 0x913   : > { %16027 = vmatpush1.bf16.msra.mxu0 %v18501_v15  ;;  %v18568_v15 = vcombine.high %v12921_v3, %v12925_v31 }
 0x914   : > { %16191 = vmatpush1.bf16.msra.mxu1 %v18503_v22  ;;  %16028 = vmatprep.subr.bf16.mxu0 %v18510_v0  ;;  %v12929_v22 = vld [vmem:[#allocation7 + $0x2c98] sm:$0xff] }
 0x915   : > { %16192 = vmatprep.subr.bf16.mxu1 %v18512_v52  ;;  %v12933_v0 = vld [vmem:[#allocation7 + $0x2cb8] sm:$0xff]  ;;  %v18565_v52 = vcombine.low %v12920_v2, %v12924_v19  ;;  %v12968_v19 = vld [vmem:[#allocation7 + $0x2dd0] sm:$0xff] }
 0x916   : > { %v18576_v32 = vcombine.high %v12929_v22, %v12933_v0 }
 0x917   : > { %16029 = vmatpush1.bf16.msra.mxu0 %v18509_v17  ;;  %v12936_v17 = vld [vmem:[#allocation7 + $0x2cd0] sm:$0xff] }
 0x918   : > { %16193 = vmatpush1.bf16.msra.mxu1 %v18511_v27  ;;  %16030 = vmatprep.subr.bf16.mxu0 %v18518_v41  ;;  %v12940_v27 = vld [vmem:[#allocation7 + $0x2cf0] sm:$0xff]  ;;  %v12937_v41 = vld [vmem:[#allocation7 + $0x2cd8] sm:$0xff] }
 0x919   : > { %16194 = vmatprep.subr.bf16.mxu1 %v18520_v20  ;;  %v12941_v20 = vld [vmem:[#allocation7 + $0x2cf8] sm:$0xff]  ;;  %v18582_v12 = vcombine.high %v12936_v17, %v12940_v27  ;;  %v18581_v34 = vcombine.low %v12936_v17, %v12940_v27 }
 0x91a   : > { %v18584_v7 = vcombine.high %v12937_v41, %v12941_v20  ;;  %v18583_v10 = vcombine.low %v12937_v41, %v12941_v20 }
 0x91b   : > { %16031 = vmatpush1.bf16.msra.mxu0 %v18517_v28  ;;  %v12944_v28 = vld [vmem:[#allocation7 + $0x2d10] sm:$0xff] }
 0x91c   : > { %16195 = vmatpush1.bf16.msra.mxu1 %v18519_v61  ;;  %16032 = vmatprep.subr.bf16.mxu0 %v18526_v33  ;;  %v12948_v61 = vld [vmem:[#allocation7 + $0x2d30] sm:$0xff]  ;;  %v12945_v33 = vld [vmem:[#allocation7 + $0x2d18] sm:$0xff] }
 0x91d   : > { %16196 = vmatprep.subr.bf16.mxu1 %v18528_v58  ;;  %v12949_v58 = vld [vmem:[#allocation7 + $0x2d38] sm:$0xff]  ;;  %v18590_v35 = vcombine.high %v12944_v28, %v12948_v61  ;;  %v18589_v54 = vcombine.low %v12944_v28, %v12948_v61 }
 0x91e   : > { %v12977_v28 = vld [vmem:[#allocation7 + $0x2e18] sm:$0xff] }
 0x91f   : > { %16033 = vmatpush1.bf16.msra.mxu0 %v18525_v16  ;;  %v19724_v16 = vsub.s32 0, %v19718_v23  ;;  %v12981_v61 = vld [vmem:[#allocation7 + $0x2e38] sm:$0xff] }
 0x920   : > { %16197 = vmatpush1.bf16.msra.mxu1 %v18527_v38  ;;  %16034 = vmatprep.subr.bf16.mxu0 %v18534_v6  ;;  %v18592_v38 = vcombine.high %v12945_v33, %v12949_v58  ;;  %v16273_v6 = vsub.s32 2, %v19718_v23 }
 0x921   : > { %16198 = vmatprep.subr.bf16.mxu1 %v18536_v42  ;;  %v12952_v42 = vld [vmem:[#allocation7 + $0x2d50] sm:$0xff] }
 0x922   : > { %v18597_v39 = vcombine.low %v12952_v42, %v12956_v43 }
 0x923   : > { %16035 = vmatpush1.bf16.msra.mxu0 %v18533_v26  ;;  %v16277_v26 = vsub.s32 4, %v19718_v23 }
 0x924   : > { %16199 = vmatpush1.bf16.msra.mxu1 %v18535_v30  ;;  %16036 = vmatprep.subr.bf16.mxu0 %v18542_v46  ;;  %v18591_v30 = vcombine.low %v12945_v33, %v12949_v58 }
 0x925   : > { %16200 = vmatprep.subr.bf16.mxu1 %v18544_v9  ;;  %v18598_v9 = vcombine.high %v12952_v42, %v12956_v43  ;;  %v18624_v42 = vcombine.high %v12977_v28, %v12981_v61  ;;  %v12984_v43 = vld [vmem:[#allocation7 + $0x2e50] sm:$0xff] }
 0x927   : > { %16037 = vmatpush1.bf16.msra.mxu0 %v18541_v5  ;;  %v12964_v5 = vld [vmem:[#allocation7 + $0x2db0] sm:$0xff] }
 0x928   : > { %16201 = vmatpush1.bf16.msra.mxu1 %v18543_v1  ;;  %16038 = vmatprep.subr.bf16.mxu0 %v18550_v51  ;;  %v12961_v1 = vld [vmem:[#allocation7 + $0x2d98] sm:$0xff]  ;;  %v18606_v56 = vcombine.high %v12960_v50, %v12964_v5 }
 0x929   : > { %16202 = vmatprep.subr.bf16.mxu1 %v18552_v36  ;;  %v12965_v51 = vld [vmem:[#allocation7 + $0x2db8] sm:$0xff] }
 0x92a   : > { %v18608_v2 = vcombine.high %v12961_v1, %v12965_v51  ;;  %v18607_v17 = vcombine.low %v12961_v1, %v12965_v51  ;;  %v12993_v1 = vld [vmem:[#allocation7 + $0x2e98] sm:$0xff] }
 0x92b   : > { %16039 = vmatpush1.bf16.msra.mxu0 %v18549_v45  ;;  %v12997_v51 = vld [vmem:[#allocation7 + $0x2eb8] sm:$0xff] }
 0x92c   : > { %16203 = vmatpush1.bf16.msra.mxu1 %v18551_v63  ;;  %16049 = vmatprep.subr.bf16.mxu0 %v18558_v60 }
 0x92d   : > { %16213 = vmatprep.subr.bf16.mxu1 %v18560_v4 }
 0x92e   : > { %16041 = vmatmul.mubr.bf16.vlgmr.msra.gmra.mrb[28].mxu0 %v19689_v18 }
 0x92f   : > { %16205 = vmatmul.mubr.bf16.vlgmr.msra.gmra.mrb[28].mxu1 %v19689_v18  ;;  %16050 = vmatpush1.bf16.msra.mxu0 %v18557_v57  ;;  %v18575_v18 = vcombine.low %v12929_v22, %v12933_v0  ;;  %v12972_v57 = vld [vmem:[#allocation7 + $0x2df0] sm:$0xff] }
 0x930   : > { %16081 = vmatprep.mubr.bf16.mxu0 %v19693_v29  ;;  %16214 = vmatpush1.bf16.msra.mxu1 %v18559_v49  ;;  %v18614_v27 = vcombine.high %v12968_v19, %v12972_v57 }
 0x931   : > { %16245 = vmatprep.mubr.bf16.mxu1 %v19693_v29  ;;  %16051 = vmatprep.subr.bf16.mxu0 %v18566_v53  ;;  %v19720_v29 = vld [vmem:[#allocation9] sm:$0xff]  ;;  %v12969_v53 = vld [vmem:[#allocation7 + $0x2dd8] sm:$0xff] }
 0x932   : > { %16215 = vmatprep.subr.bf16.mxu1 %v18568_v15  ;;  %v16263_v37 = vunpack.c.l.bf16 %v19720_v29 }
 0x933   : > { %16052 = vmatpush1.bf16.msra.mxu0 %v18565_v52 }
 0x934   : > { %16216 = vmatpush1.bf16.msra.mxu1 %v18567_v11  ;;  %16053 = vmatprep.subr.bf16.mxu0 %v18574_v14  ;;  %v16270_v46 = vrot.slane %v16263_v37, %v19724_v16  ;;  %v16274_v47 = vrot.slane %v16263_v37, %v16273_v6  ;;  %v16278_v36 = vrot.slane %v16263_v37, %v16277_v26 }
 0x935   : > { %16217 = vmatprep.subr.bf16.mxu1 %v18576_v32  ;;  %v16282_v4 = vrot.slane %v16263_v37, %v16281_v25  ;;  %v18605_v11 = vcombine.low %v12960_v50, %v12964_v5  ;;  %v12992_v50 = vld [vmem:[#allocation7 + $0x2e90] sm:$0xff] }
 0x936   : > { %v16310_v59 = vrot.slane %v16270_v46, %v19724_v16  ;;  %v16314_v60 = vrot.slane %v16274_v47, %v19724_v16  ;;  %v16318_v15 = vrot.slane %v16278_v36, %v19724_v16  ;;  %v18630_v47 = vcombine.high %v12984_v43, %v12988_v13  ;;  %v12996_v5 = vld [vmem:[#allocation7 + $0x2eb0] sm:$0xff] }
 0x937   : > { %16054 = vmatpush1.bf16.msra.mxu0 %v18573_v21  ;;  %v16322_v21 = vrot.slane %v16282_v4, %v19724_v16  ;;  %v18629_v36 = vcombine.low %v12984_v43, %v12988_v13  ;;  %v18637_v4 = vcombine.low %v12992_v50, %v12996_v5 }
 0x938   : > { %16218 = vmatpush1.bf16.msra.mxu1 %v18575_v18  ;;  %16055 = vmatprep.subr.bf16.mxu0 %v18582_v12  ;;  %v18616_v18 = vcombine.high %v12969_v53, %v12973_v8  ;;  %v12976_v12 = vld [vmem:[#allocation7 + $0x2e10] sm:$0xff] }
 0x939   : > { %16219 = vmatprep.subr.bf16.mxu1 %v18584_v7  ;;  %v12980_v7 = vld [vmem:[#allocation7 + $0x2e30] sm:$0xff] }
 0x93a   : > { %v18621_v46 = vcombine.low %v12976_v12, %v12980_v7 }
 0x93b   : > { %16056 = vmatpush1.bf16.msra.mxu0 %v18581_v34  ;;  %v18613_v34 = vcombine.low %v12968_v19, %v12972_v57 }
 0x93c   : > { %16220 = vmatpush1.bf16.msra.mxu1 %v18583_v10  ;;  %16057 = vmatprep.subr.bf16.mxu0 %v18590_v35  ;;  %v18615_v10 = vcombine.low %v12969_v53, %v12973_v8  ;;  %v18622_v35 = vcombine.high %v12976_v12, %v12980_v7  ;;  %v13013_v53 = vld [vmem:[#allocation7 + $0x2f38] sm:$0xff] }
 0x93d   : > { %16221 = vmatprep.subr.bf16.mxu1 %v18592_v38 }
 0x93f   : > { %16058 = vmatpush1.bf16.msra.mxu0 %v18589_v54  ;;  %v12989_v54 = vld [vmem:[#allocation7 + $0x2e78] sm:$0xff] }
 0x940   : > { %16222 = vmatpush1.bf16.msra.mxu1 %v18591_v30  ;;  %16059 = vmatprep.subr.bf16.mxu0 %v18598_v9  ;;  %v18623_v9 = vcombine.low %v12977_v28, %v12981_v61 }
 0x941   : > { %v15755_v45 = vpop.f32.mrb[24].mxu0  ;;  %v15919_v63 = vpop.f32.mrb[24].mxu1  ;;  %16223 = vmatprep.subr.bf16.mxu1 %v18600_v48  ;;  %v18632_v48 = vcombine.high %v12985_v44, %v12989_v54 }
 0x942   : > { %v16254_v3 = vmax.f32 %v15755_v45, 0.0  ;;  %v15757_v31 = vpop.f32.mrb[25].mxu0  ;;  %v15921_v49 = vpop.f32.mrb[25].mxu1  ;;  %v16256_v24 = vmax.f32 %v15919_v63, 0.0  ;;  %v13004_v45 = vld [vmem:[#allocation7 + $0x2ef0] sm:$0xff]  ;;  %v13001_v63 = vld [vmem:[#allocation7 + $0x2ed8] sm:$0xff] }
 0x943   : > { %v16255_v22 = vmax.f32 %v15757_v31, 0.0  ;;  %v15759_v0 = vpop.f32.mrb[26].mxu0  ;;  %v15923_v52 = vpop.f32.mrb[26].mxu1  ;;  %16060 = vmatpush1.bf16.msra.mxu0 %v18597_v39  ;;  %v16257_v20 = vmax.f32 %v15921_v49, 0.0  ;;  %v18631_v39 = vcombine.low %v12985_v44, %v12989_v54  ;;  %v13012_v31 = vld [vmem:[#allocation7 + $0x2f30] sm:$0xff]  ;;  %v13009_v49 = vld [vmem:[#allocation7 + $0x2f18] sm:$0xff]  ;;  %v16264_v44 = vunpack.c.h.bf16 %v19720_v29 }
 0x944   : > { %v16339_v14 = vmul.f32 %v16310_v59, %v16254_v3  ;;  %16224 = vmatpush1.bf16.msra.mxu1 %v18599_v55  ;;  %v15760_v62 = vpop.f32.mrb[27].mxu0  ;;  %v15924_v32 = vpop.f32.mrb[27].mxu1  ;;  %16061 = vmatprep.subr.bf16.mxu0 %v18606_v56  ;;  %v16341_v33 = vmul.f32 %v16318_v15, %v16256_v24  ;;  %v18638_v59 = vcombine.high %v12992_v50, %v12996_v5  ;;  %v13000_v56 = vld [vmem:[#allocation7 + $0x2ed0] sm:$0xff] }
 0x945   : > { %v16340_v41 = vmul.f32 %v16314_v60, %v16255_v22  ;;  %16225 = vmatprep.subr.bf16.mxu1 %v18608_v2  ;;  %v16342_v37 = vmul.f32 %v16322_v21, %v16257_v20  ;;  %v18640_v55 = vcombine.high %v12993_v1, %v12997_v51  ;;  %v13005_v60 = vld [vmem:[#allocation7 + $0x2ef8] sm:$0xff]  ;;  %v18639_v2 = vcombine.low %v12993_v1, %v12997_v51  ;;  %v13008_v3 = vld [vmem:[#allocation7 + $0x2f10] sm:$0xff] }
 0x946   : > { %v18646_v19 = vcombine.high %v13000_v56, %v13004_v45  ;;  %v18648_v57 = vcombine.high %v13001_v63, %v13005_v60  ;;  %v18645_v8 = vcombine.low %v13000_v56, %v13004_v45  ;;  %v18647_v24 = vcombine.low %v13001_v63, %v13005_v60  ;;  %v13016_v0 = vld [vmem:[#allocation7 + $0x2f50] sm:$0xff]  ;;  %v13025_v21 = vld [vmem:[#allocation7 + $0x2f98] sm:$0xff] }
 0x947   : > { %v16347_v58 = vadd.f32 %v16340_v41, %v16339_v14  ;;  %16062 = vmatpush1.bf16.msra.mxu0 %v18605_v11  ;;  %v18654_v15 = vcombine.high %v13008_v3, %v13012_v31  ;;  %v18656_v22 = vcombine.high %v13009_v49, %v13013_v53  ;;  %v13020_v52 = vld [vmem:[#allocation7 + $0x2f70] sm:$0xff]  ;;  %v13017_v11 = vld [vmem:[#allocation7 + $0x2f58] sm:$0xff]  ;;  %v18653_v62 = vcombine.low %v13008_v3, %v13012_v31 }
 0x948   : > { %16226 = vmatpush1.bf16.msra.mxu1 %v18607_v17  ;;  %16063 = vmatprep.subr.bf16.mxu0 %v18614_v27  ;;  %v13021_v14 = vld [vmem:[#allocation7 + $0x2f78] sm:$0xff]  ;;  %v18655_v32 = vcombine.low %v13009_v49, %v13013_v53  ;;  %v18662_v17 = vcombine.high %v13016_v0, %v13020_v52  ;;  %v13024_v41 = vld [vmem:[#allocation7 + $0x2f90] sm:$0xff]  ;;  %v18661_v12 = vcombine.low %v13016_v0, %v13020_v52 }
 0x949   : > { %v16348_v38 = vadd.f32 %v16347_v58, %v16341_v33  ;;  %16227 = vmatprep.subr.bf16.mxu1 %v18616_v18  ;;  %v18664_v27 = vcombine.high %v13017_v11, %v13021_v14  ;;  %v13028_v20 = vld [vmem:[#allocation7 + $0x2fb0] sm:$0xff]  ;;  %v13029_v18 = vld [vmem:[#allocation7 + $0x2fb8] sm:$0xff]  ;;  %v18663_v7 = vcombine.low %v13017_v11, %v13021_v14  ;;  %v16286_v54 = vrot.slane %v16264_v44, %v19724_v16 }
 0x94a   : > { %v18670_v28 = vcombine.high %v13024_v41, %v13028_v20  ;;  %v18672_v61 = vcombine.high %v13025_v21, %v13029_v18  ;;  %v13032_v33 = vld [vmem:[#allocation7 + $0x2fd0] sm:$0xff] }
 0x94b   : > { %v19740_v30 = vadd.f32 %v16348_v38, %v16342_v37  ;;  %16064 = vmatpush1.bf16.msra.mxu0 %v18613_v34  ;;  %v13036_v58 = vld [vmem:[#allocation7 + $0x2ff0] sm:$0xff]  ;;  %v13033_v34 = vld [vmem:[#allocation7 + $0x2fd8] sm:$0xff]  ;;  %v18671_v37 = vcombine.low %v13025_v21, %v13029_v18 }
 0x94c   : > { %16228 = vmatpush1.bf16.msra.mxu1 %v18615_v10  ;;  %16065 = vmatprep.subr.bf16.mxu0 %v18622_v35  ;;  %v13037_v10 = vld [vmem:[#allocation7 + $0x2ff8] sm:$0xff]  ;;  %v18669_v35 = vcombine.low %v13024_v41, %v13028_v20  ;;  %v18678_v38 = vcombine.high %v13032_v33, %v13036_v58  ;;  %v18677_v43 = vcombine.low %v13032_v33, %v13036_v58 }
 0x94d   : > { %16229 = vmatprep.subr.bf16.mxu1 %v18624_v42  ;;  %v18680_v42 = vcombine.high %v13033_v34, %v13037_v10  ;;  %v18679_v13 = vcombine.low %v13033_v34, %v13037_v10 }
 0x94f   : > { %16066 = vmatpush1.bf16.msra.mxu0 %v18621_v46  ;;  %v16290_v46 = vrot.slane %v16264_v44, %v16273_v6 }
 0x950   : > { %16230 = vmatpush1.bf16.msra.mxu1 %v18623_v9  ;;  %16067 = vmatprep.subr.bf16.mxu0 %v18630_v47  ;;  %v16326_v9 = vrot.slane %v16286_v54, %v19724_v16  ;;  %v16294_v47 = vrot.slane %v16264_v44, %v16277_v26 }
 0x951   : > { %16231 = vmatprep.subr.bf16.mxu1 %v18632_v48  ;;  %v16330_v50 = vrot.slane %v16290_v46, %v19724_v16 }
 0x952   : > { %v16334_v6 = vrot.slane %v16294_v47, %v19724_v16 }
 0x953   : > { %16068 = vmatpush1.bf16.msra.mxu0 %v18629_v36 }
 0x954   : > { %16232 = vmatpush1.bf16.msra.mxu1 %v18631_v39  ;;  %16069 = vmatprep.subr.bf16.mxu0 %v18638_v59 }
 0x955   : > { %16233 = vmatprep.subr.bf16.mxu1 %v18640_v55 }
 0x957   : > { %16070 = vmatpush1.bf16.msra.mxu0 %v18637_v4 }
 0x958   : > { %16234 = vmatpush1.bf16.msra.mxu1 %v18639_v2  ;;  %16071 = vmatprep.subr.bf16.mxu0 %v18646_v19 }
 0x959   : > { %16235 = vmatprep.subr.bf16.mxu1 %v18648_v57 }
 0x95b   : > { %16072 = vmatpush1.bf16.msra.mxu0 %v18645_v8 }
 0x95c   : > { %16236 = vmatpush1.bf16.msra.mxu1 %v18647_v24  ;;  %16073 = vmatprep.subr.bf16.mxu0 %v18654_v15 }
 0x95d   : > { %16237 = vmatprep.subr.bf16.mxu1 %v18656_v22 }
 0x95f   : > { %16074 = vmatpush1.bf16.msra.mxu0 %v18653_v62 }
 0x960   : > { %16238 = vmatpush1.bf16.msra.mxu1 %v18655_v32  ;;  %16075 = vmatprep.subr.bf16.mxu0 %v18662_v17 }
 0x961   : > { %16239 = vmatprep.subr.bf16.mxu1 %v18664_v27 }
 0x963   : > { %16076 = vmatpush1.bf16.msra.mxu0 %v18661_v12 }
 0x964   : > { %16240 = vmatpush1.bf16.msra.mxu1 %v18663_v7  ;;  %16077 = vmatprep.subr.bf16.mxu0 %v18670_v28 }
 0x965   : > { %16241 = vmatprep.subr.bf16.mxu1 %v18672_v61 }
 0x967   : > { %16078 = vmatpush1.bf16.msra.mxu0 %v18669_v35 }
 0x968   : > { %16242 = vmatpush1.bf16.msra.mxu1 %v18671_v37  ;;  %16079 = vmatprep.subr.bf16.mxu0 %v18678_v38 }
 0x969   : > { %16243 = vmatprep.subr.bf16.mxu1 %v18680_v42 }
 0x96b   : > { %16080 = vmatpush1.bf16.msra.mxu0 %v18677_v43 }
 0x96c   : > { %16244 = vmatpush1.bf16.msra.mxu1 %v18679_v13 }
 0x96e   : > { %16082 = vmatmul.mubr.bf16.vlgmr.msra.gmra.mrb[28].mxu0 %v19700_v40 }
 0x96f   : > { %16246 = vmatmul.mubr.bf16.vlgmr.msra.gmra.mrb[28].mxu1 %v19700_v40  ;;  %v16298_v40 = vrot.slane %v16264_v44, %v16281_v25 }
 0x971   : > { %v16338_v2 = vrot.slane %v16298_v40, %v19724_v16 }
 0xa41   : > { %v16083_v48 = vpop.f32.mrb[28].mxu0 }
 0xa42   : > { %v16258_v5 = vmax.f32 %v16083_v48, 0.0  ;;  %v16247_v1 = vpop.f32.mrb[28].mxu1  ;;  %v16085_v51 = vpop.f32.mrb[29].mxu0 }
 0xa43   : > { %v16259_v29 = vmax.f32 %v16085_v51, 0.0  ;;  %v16249_v36 = vpop.f32.mrb[29].mxu1  ;;  %v16087_v39 = vpop.f32.mrb[30].mxu0  ;;  %v16260_v55 = vmax.f32 %v16247_v1, 0.0 }
 0xa44   : > { %v16343_v59 = vmul.f32 %v16326_v9, %v16258_v5  ;;  %v16251_v56 = vpop.f32.mrb[30].mxu1  ;;  %v16088_v45 = vpop.f32.mrb[31].mxu0  ;;  %v16261_v4 = vmax.f32 %v16249_v36, 0.0 }
 0xa45   : > { %v16344_v63 = vmul.f32 %v16330_v50, %v16259_v29  ;;  %v16252_v26 = vpop.f32.mrb[31].mxu1  ;;  %v16345_v23 = vmul.f32 %v16334_v6, %v16260_v55 }
 0xa46   : > { %v16350_v60 = vadd.f32 %v19740_v30, %v16343_v59  ;;  %v16346_v19 = vmul.f32 %v16338_v2, %v16261_v4 }
 0xa48   : > { %v16351_v25 = vadd.f32 %v16350_v60, %v16344_v63 }
 0xa4a   : > { %v16352_v57 = vadd.f32 %v16351_v25, %v16345_v23 }
 0xa4c   : > { %v16353_v3 = vadd.f32 %v16352_v57, %v16346_v19 }
 0xa4e   : > { %16354 = vadd.xlane.f32.xlu0 %v16353_v3 }
 0xadb   : > { %v16355_v31 = vpop.xlane.xlu0 %16354 }
 0xadc   : > { %v16356_v49 = vsub.f32 0.0, %v16355_v31 }
 0xade   : > { %v16357_v53 = vmul.f32 1.442695, %v16356_v49 }
 0xae0   : > { %18982 = vpow2.f32 %v16357_v53 }
 0xaea   : > { %v18983_v8 = vpop.eup %18982 }
 0xaeb   : > { %v16359_v24 = vadd.f32 1.0, %v18983_v8 }
 0xaed   : > { %18984 = vrcp.f32 %v16359_v24 }
 0xaf7   : > { %v18985_v16 = vpop.eup %18984 }
 0xaf8   : > { %16362 = vst.msk [vmem:[%s319_s11] sm:$0xff] %vm16361_vm0, %v18985_v16 }
 0xaf9 PF: > { %p19_p3 = scmp.ge.s32.totalorder %s19336_s12, 4   ;;  %s19795_s18 = smov %s19168_s19 }
 0xafa   : > { %s19796_s19 = smov %s19172_s20  ;;  %s19797_s20 = smov %s19346_s10 }
 0xafb   : > { %s19798_s21 = smov %s19336_s12  ;;  %21 = sbr.rel (!%p19_p3) target bundleno = 6 (0x6), region = 107 }
 0xb02   :  { %16382 = vsyncpa [#allocation3], 1 }
 0xb03   :  { %16384 = vsyncpa [#allocation3 + $0x1], 1 }
 0xb04   :  { %16385 = vsyncpa [#allocation5], 1 }
 0xb05   :  { %16387 = vsyncpa [#allocation5 + $0x1], 1 }
 0xb06   :  { %16388 = vsyncpa [#allocation8], 1 }

</bundles_post_ra>
